<compile_context>
chip_gen: v6e
topology: v6e:2x2x1
jax: 0.10.0
libtpu: 0.0.40
codegen_flags: <defaults>
</compile_context>

<pallas_src>
import functools

import numpy as np
import jax
import jax.numpy as jnp
from jax.experimental import pallas as pl
from jax.experimental.pallas import tpu as pltpu


_KERNEL_SIZES = (3, 5, 7)                       # Aggregator segments 1..3
_MAX_PAD = (_KERNEL_SIZES[-1] - 1) // 2         # 3
_N_OFFSETS = (2 * _MAX_PAD + 1) ** 2            # 49 distinct (dy, dx) offsets


def _offset_row(oy, ox):
    return (oy + _MAX_PAD) * (2 * _MAX_PAD + 1) + (ox + _MAX_PAD)


# ------------------------------ fused kernel --------------------------------

def _spatial_attention_kernel(x_ref, wqkv_ref, wfold_ref, bfold_ref, dw_ref,
                              mask_ref, g_ref, wproj_ref, bproj_ref, out_ref,
                              *, H, W, C):
    f32 = jnp.float32
    N = H * W
    N2 = 2 * N
    seg_dim = C // 4

    x_nc = x_ref[...].astype(f32)                                  # (N, C) natural layout
    # qkv projection, NT contraction: (3C, C) x (N, C)^T -> (3C, N); tokens on lanes.
    qkvT = jax.lax.dot_general(wqkv_ref[...], x_nc, (((1,), (1,)), ((), ())),
                               preferred_element_type=f32)
    qT = qkvT[0:C, :]                                              # (C, N), already head-major

    # k and v share the whole Aggregator: concatenate along the token (lane) axis.
    kvT = jnp.concatenate([qkvT[C:2 * C, :], qkvT[2 * C:3 * C, :]], axis=1)   # (C, 2N)
    dsegs = kvT[seg_dim:, :]                                       # segments 1..3 -> depthwise

    # ---- depthwise convs: ONE roll per (dy, dx) offset, shared by all branches
    acc = [jnp.zeros((seg_dim, N2), f32) for _ in range(3)]
    for oy in range(-_MAX_PAD, _MAX_PAD + 1):
        for ox in range(-_MAX_PAD, _MAX_PAD + 1):
            m = max(abs(oy), abs(ox))
            first = 0 if m <= 1 else (1 if m <= 2 else 2)          # first branch using this tap
            start = first * seg_dim
            rows = 3 * seg_dim - start
            o = _offset_row(oy, ox)
            slab = dsegs[start:, :]
            if (oy, ox) != (0, 0):
                off = oy * W + ox                                  # flat token shift
                slab = pltpu.roll(slab, shift=(-off) % N2, axis=1) # XLU; wrap killed by mask
                slab = slab * mask_ref[pl.ds(o, 1), :]             # zero-pad boundary mask
            slab = slab * dw_ref[pl.ds(start, rows), pl.ds(o, 1)]  # per-channel tap weights
            for si in range(first, 3):
                r0 = (si - first) * seg_dim
                acc[si] = acc[si] + slab[r0:r0 + seg_dim, :]

    # ---- folded pointwise convs + BN affines + seg->head interleave + ReLU ---
    # ReLU commutes with the row-disjoint interleave, so it is applied once.
    stack = jnp.concatenate([kvT[0:seg_dim, :], acc[0], acc[1], acc[2]], axis=0)  # (C, 2N)
    z = jnp.dot(wfold_ref[...], stack, preferred_element_type=f32) + bfold_ref[...]
    aggH = jnp.maximum(z, 0.0)                                     # (C, 2N) head-major
    kH = aggH[:, 0:N]
    vH = aggH[:, N:]

    # ---- linear attention, batched over all heads ----------------------------
    G = g_ref[...]                                                 # (C, C) block-diag head mask

    # k softmax over tokens (lane axis); rows are independent.
    km = jnp.max(kH, axis=1, keepdims=True)
    ke = jnp.exp(kH - km)
    ks = ke / jnp.sum(ke, axis=1, keepdims=True)

    # ktv[rk, rv] = sum_n ks[rk, n] * vH[rv, n]  (cross-head entries masked later)
    ktv = jax.lax.dot_general(ks, vH, (((1,), (1,)), ((), ())),
                              preferred_element_type=f32)          # (C, C)

    # q softmax over the d channels of each head (consecutive row groups).
    # A per-lane global max is a valid shared stabilizer for every group.
    qm = jnp.max(qT, axis=0, keepdims=True)
    qe = jnp.exp(qT - qm)
    qden = jnp.dot(G, qe, preferred_element_type=f32)              # per-group sums, broadcast
    qs = qe / qden

    # effT[rv, n] = sum_rk (G * ktv)[rk, rv] * qs[rk, n]
    effT = jax.lax.dot_general(G * ktv, qs, (((0,), (0,)), ((), ())),
                               preferred_element_type=f32)         # (C, N)

    # output projection (proj_drop p=0 -> identity); lane-dense (C, N) store.
    outT = jnp.dot(wproj_ref[...], effT, preferred_element_type=f32) + bproj_ref[...]
    out_ref[...] = outT.astype(out_ref.dtype)


# ------------------------------ host wrapper ---------------------------------

def spatial_attention_forward(x, size, ops, num_heads):
    """x: (B, N, C) channels-last tokens. ops: folded operands from fold_params."""
    B, N, C = x.shape
    H, W = size
    assert N == H * W
    assert C % 4 == 0 and (C // 4) % num_heads == 0, "dim must be divisible by 4*num_heads"

    kernel = functools.partial(_spatial_attention_kernel, H=H, W=W, C=C)
    bcast = lambda b: (0, 0)

    outT = pl.pallas_call(
        kernel,
        out_shape=jax.ShapeDtypeStruct((B, C, N), jnp.float32),
        grid=(B,),
        in_specs=[
            pl.BlockSpec((None, N, C), lambda b: (b, 0, 0)),      # x, natural (N, C) layout
            pl.BlockSpec((3 * C, C), bcast),                      # qkv weight (3C, C)
            pl.BlockSpec((C, C), bcast),                          # folded pw+BN+head-interleave
            pl.BlockSpec((C, 1), bcast),                          # folded BN bias
            pl.BlockSpec((3 * (C // 4), _N_OFFSETS), bcast),      # depthwise taps, offset-major
            pl.BlockSpec((_N_OFFSETS, 2 * N), bcast),             # conv boundary masks (k|v tiled)
            pl.BlockSpec((C, C), bcast),                          # block-diagonal head mask
            pl.BlockSpec((C, C), bcast),                          # proj weight
            pl.BlockSpec((C, 1), bcast),                          # proj bias
        ],
        out_specs=pl.BlockSpec((None, C, N), lambda b: (b, 0, 0)),
        compiler_params=pltpu.CompilerParams(
            dimension_semantics=("parallel",)),                   # v7x: one batch per TensorCore
    )(x, ops["w_qkv"], ops["w_fold"], ops["b_fold"], ops["dw"],
      ops["masks"], ops["g"], ops["w_proj"], ops["b_proj"])

    return jnp.transpose(outT, (0, 2, 1))                         # (B, N, C) layout plumbing


# --------------------------- parameter preparation ---------------------------

def init_params(key, dim, num_heads):
    """Random parameters in the PyTorch layouts of SpatialAttention(dim, num_heads)."""
    del num_heads
    seg_dim = dim // 4
    ks = jax.random.split(key, 9)
    params = {
        "w_qkv": jax.random.normal(ks[0], (3 * dim, dim), jnp.float32) * 0.05,   # Linear(dim,3dim,bias=False)
        "w_proj": jax.random.normal(ks[1], (dim, dim), jnp.float32) * 0.05,      # Linear(dim,dim)
        "b_proj": jax.random.normal(ks[2], (dim,), jnp.float32) * 0.05,
        # eval-mode BatchNorm2d stats: gamma=1, beta=0, running_mean=0, running_var=1
        "bn_gamma": {s: jnp.ones((seg_dim,), jnp.float32) for s in range(4)},
        "bn_beta": {s: jnp.zeros((seg_dim,), jnp.float32) for s in range(4)},
        "bn_mean": {s: jnp.zeros((seg_dim,), jnp.float32) for s in range(4)},
        "bn_var": {s: jnp.ones((seg_dim,), jnp.float32) for s in range(4)},
        "dw": {}, "pw": {},
    }
    for i, (s, K) in enumerate(zip((1, 2, 3), _KERNEL_SIZES)):
        # depthwise Conv2d(seg, seg, K, groups=seg, bias=False).weight: (seg, 1, K, K)
        params["dw"][s] = jax.random.normal(ks[3 + i], (seg_dim, 1, K, K), jnp.float32) * 0.05
        # pointwise Conv2d(seg, seg, 1, bias=False).weight[:, :, 0, 0]: (out, in)
        params["pw"][s] = jax.random.normal(ks[6 + i], (seg_dim, seg_dim), jnp.float32) * 0.05
    return params


def fold_params(params, dim, num_heads, size):
    """Repack torch-layout parameters into fused-kernel operands.

    For each Aggregator segment, the 1x1 pointwise conv, the eval-mode
    BatchNorm affine, and the segment->head channel interleave are folded into
    a single (C, C) matrix + (C, 1) bias applied after the depthwise convs."""
    C = dim
    H, W = size
    N = H * W
    seg_dim = C // 4
    d = C // num_heads
    sd_h = seg_dim // num_heads
    eps = 1e-5

    # segment-local channel -> head-major attention channel scatter matrices
    scat = []
    for s in range(4):
        m = np.zeros((C, seg_dim), np.float32)
        for hh in range(num_heads):
            for sub in range(sd_h):
                m[hh * d + s * sd_h + sub, hh * sd_h + sub] = 1.0
        scat.append(jnp.asarray(m))

    w_fold = jnp.zeros((C, C), jnp.float32)
    b_fold = jnp.zeros((C,), jnp.float32)
    for s in range(4):
        scale = params["bn_gamma"][s] / jnp.sqrt(params["bn_var"][s] + eps)
        shift = params["bn_beta"][s] - params["bn_mean"][s] * scale
        eff = jnp.diag(scale) if s == 0 else scale[:, None] * params["pw"][s]
        w_fold = w_fold.at[:, s * seg_dim:(s + 1) * seg_dim].set(scat[s] @ eff)
        b_fold = b_fold + scat[s] @ shift

    # depthwise taps repacked offset-major: row = (segment-1)*seg_dim + channel,
    # column = 7x7 offset index; offsets outside a segment's kernel stay 0 (unused).
    dw_off = np.zeros((3 * seg_dim, _N_OFFSETS), np.float32)
    for si, (s, K) in enumerate(zip((1, 2, 3), _KERNEL_SIZES)):
        pad = (K - 1) // 2
        w = np.asarray(params["dw"][s])[:, 0]                     # (seg_dim, K, K)
        for dy in range(K):
            for dx in range(K):
                dw_off[si * seg_dim:(si + 1) * seg_dim,
                       _offset_row(dy - pad, dx - pad)] = w[:, dy, dx]

    # per-offset boundary masks over the flattened H*W token (lane) axis,
    # tiled twice because k and v ride the lane axis concatenated (2N wide).
    yy, xx = np.meshgrid(np.arange(H), np.arange(W), indexing="ij")
    yy = yy.reshape(-1)
    xx = xx.reshape(-1)
    masks = np.zeros((_N_OFFSETS, N), np.float32)
    for oy in range(-_MAX_PAD, _MAX_PAD + 1):
        for ox in range(-_MAX_PAD, _MAX_PAD + 1):
            valid = ((yy + oy >= 0) & (yy + oy < H) &
                     (xx + ox >= 0) & (xx + ox < W))
            masks[_offset_row(oy, ox)] = valid
    masks2 = np.tile(masks, (1, 2))

    # block-diagonal head mask: same head <=> same group of d consecutive rows
    rows = np.arange(C) // d
    g = (rows[:, None] == rows[None, :]).astype(np.float32)

    return dict(
        w_qkv=params["w_qkv"].astype(jnp.float32),
        w_fold=w_fold,
        b_fold=b_fold.reshape(C, 1),
        dw=jnp.asarray(dw_off),
        masks=jnp.asarray(masks2),
        g=jnp.asarray(g),
        w_proj=params["w_proj"].astype(jnp.float32),
        b_proj=params["b_proj"].reshape(C, 1).astype(jnp.float32),
    )


# --------------------- pure-JAX reference (correctness) ----------------------

def reference_forward(x, params, size, num_heads):
    B, N, C = x.shape
    H, W = size
    seg_dim = C // 4
    d = C // num_heads
    hp = jax.lax.Precision.HIGHEST
    eps = 1e-5

    qkv = jnp.einsum("bnc,oc->bno", x, params["w_qkv"], precision=hp)
    qkv = qkv.reshape(B, N, 3, C).transpose(2, 0, 1, 3)
    q = qkv[0].reshape(B, N, num_heads, d).transpose(0, 2, 1, 3)        # (B,h,N,d)
    kv = qkv[1:].reshape(2 * B, N, C)

    xs = kv.transpose(0, 2, 1).reshape(2 * B, C, H, W)

    def bn_relu(z, s):
        scale = params["bn_gamma"][s] / jnp.sqrt(params["bn_var"][s] + eps)
        shift = params["bn_beta"][s] - params["bn_mean"][s] * scale
        return jax.nn.relu(z * scale[None, :, None, None] + shift[None, :, None, None])

    parts = [bn_relu(xs[:, 0:seg_dim], 0)]
    for s, K in zip((1, 2, 3), _KERNEL_SIZES):
        pad = (K - 1) // 2
        seg_x = xs[:, s * seg_dim:(s + 1) * seg_dim]
        y = jax.lax.conv_general_dilated(
            seg_x, params["dw"][s], (1, 1), ((pad, pad), (pad, pad)),
            dimension_numbers=("NCHW", "OIHW", "NCHW"),
            feature_group_count=seg_dim, precision=hp)
        y = jax.lax.conv_general_dilated(
            y, params["pw"][s][:, :, None, None], (1, 1), "VALID",
            dimension_numbers=("NCHW", "OIHW", "NCHW"), precision=hp)
        parts.append(bn_relu(y, s))

    parts = [p.reshape(2, B, num_heads, seg_dim // num_heads, N) for p in parts]
    kv_agg = jnp.concatenate(parts, axis=3).transpose(0, 1, 2, 4, 3)    # (2,B,h,N,d)
    k, v = kv_agg[0], kv_agg[1]

    k_softmax = jax.nn.softmax(k, axis=-2)
    ktv = jnp.einsum("bhnk,bhnv->bhkv", k_softmax, v, precision=hp)
    q_softmax = jax.nn.softmax(q, axis=-1)
    eff = jnp.einsum("bhnk,bhkv->bhnv", q_softmax, ktv, precision=hp)
    out = eff.transpose(0, 2, 1, 3).reshape(B, N, C)
    out = jnp.einsum("bnc,oc->bno", out, params["w_proj"], precision=hp) + params["b_proj"]
    return out


# ----------------------------------- main ------------------------------------

if __name__ == "__main__":
    B, C, H, W = 2, 32, 16, 16
    num_heads = 8
    N = H * W

    key = jax.random.PRNGKey(0)
    k_x, k_p = jax.random.split(key)
    x = jax.random.normal(k_x, (B, N, C), jnp.float32)

    params = init_params(k_p, C, num_heads)
    ops = fold_params(params, C, num_heads, (H, W))

    out = spatial_attention_forward(x, (H, W), ops, num_heads)
    out = jax.block_until_ready(out)
    assert out.shape == (B, N, C)
    assert bool(jnp.all(jnp.isfinite(out)))

    ref = jax.block_until_ready(reference_forward(x, params, (H, W), num_heads))
    rel_err = float(jnp.max(jnp.abs(out - ref)) / (jnp.max(jnp.abs(ref)) + 1e-6))
    assert rel_err < 3e-2, f"kernel/reference mismatch: rel-max err {rel_err:.3e}"

    print("KERNEL_OK")
</pallas_src>

<mosaic_0001>
module attributes {stable_mosaic.version = 11 : i64} {
  func.func @_spatial_attention_kernel(%arg0: i32, %arg1: memref<1x256x32xf32, #tpu.memory_space<vmem>>, %arg2: memref<96x32xf32, #tpu.memory_space<vmem>>, %arg3: memref<32x32xf32, #tpu.memory_space<vmem>>, %arg4: memref<32x1xf32, #tpu.memory_space<vmem>>, %arg5: memref<24x49xf32, #tpu.memory_space<vmem>>, %arg6: memref<49x512xf32, #tpu.memory_space<vmem>>, %arg7: memref<32x32xf32, #tpu.memory_space<vmem>>, %arg8: memref<32x32xf32, #tpu.memory_space<vmem>>, %arg9: memref<32x1xf32, #tpu.memory_space<vmem>>, %arg10: memref<1x32x256xf32, #tpu.memory_space<vmem>>) attributes {dimension_semantics = [#tpu.dimension_semantics<parallel>], iteration_bounds = array<i64: 2>, scalar_prefetch = 0 : i64, scratch_operands = 0 : i64, tpu.core_type = #tpu.core_type<tc>, window_params = [{transform_indices = @transform_0, window_bounds = array<i64: 1, 256, 32>}, {pipeline_mode = #tpu.pipeline_mode<synchronous>, transform_indices = @transform_1, window_bounds = array<i64: 96, 32>}, {pipeline_mode = #tpu.pipeline_mode<synchronous>, transform_indices = @transform_2, window_bounds = array<i64: 32, 32>}, {pipeline_mode = #tpu.pipeline_mode<synchronous>, transform_indices = @transform_3, window_bounds = array<i64: 32, 1>}, {pipeline_mode = #tpu.pipeline_mode<synchronous>, transform_indices = @transform_4, window_bounds = array<i64: 24, 49>}, {pipeline_mode = #tpu.pipeline_mode<synchronous>, transform_indices = @transform_5, window_bounds = array<i64: 49, 512>}, {pipeline_mode = #tpu.pipeline_mode<synchronous>, transform_indices = @transform_6, window_bounds = array<i64: 32, 32>}, {pipeline_mode = #tpu.pipeline_mode<synchronous>, transform_indices = @transform_7, window_bounds = array<i64: 32, 32>}, {pipeline_mode = #tpu.pipeline_mode<synchronous>, transform_indices = @transform_8, window_bounds = array<i64: 32, 1>}, {transform_indices = @transform_9, window_bounds = array<i64: 1, 32, 256>}]} {
    %c0 = arith.constant 0 : index
    %c0_0 = arith.constant 0 : index
    %c0_1 = arith.constant 0 : index
    %0 = vector.load %arg1[%c0, %c0_0, %c0_1] : memref<1x256x32xf32, #tpu.memory_space<vmem>>, vector<1x256x32xf32>
    %1 = vector.shape_cast %0 : vector<1x256x32xf32> to vector<256x32xf32>
    %c0_2 = arith.constant 0 : index
    %c0_3 = arith.constant 0 : index
    %2 = vector.load %arg2[%c0_2, %c0_3] : memref<96x32xf32, #tpu.memory_space<vmem>>, vector<96x32xf32>
    %cst = arith.constant dense<0.000000e+00> : vector<96x256xf32>
    %3 = tpu.matmul %2, %1, %cst {dimension_numbers = #tpu.dot_dimension_numbers<[1], [1], [0], [0], [0, 0, 1, 0], [], []>} : vector<96x32xf32>, vector<256x32xf32>, vector<96x256xf32> -> vector<96x256xf32>
    %4 = vector.extract_strided_slice %3 {offsets = [0, 0], sizes = [32, 256], strides = [1, 1]} : vector<96x256xf32> to vector<32x256xf32>
    %5 = vector.extract_strided_slice %3 {offsets = [32, 0], sizes = [32, 256], strides = [1, 1]} : vector<96x256xf32> to vector<32x256xf32>
    %6 = vector.extract_strided_slice %3 {offsets = [64, 0], sizes = [32, 256], strides = [1, 1]} : vector<96x256xf32> to vector<32x256xf32>
    %7 = tpu.concatenate %5, %6 in 1 : vector<32x256xf32>, vector<32x256xf32> -> vector<32x512xf32>
    %8 = vector.extract_strided_slice %7 {offsets = [8, 0], sizes = [24, 512], strides = [1, 1]} : vector<32x512xf32> to vector<24x512xf32>
    %cst_4 = arith.constant 0.000000e+00 : f32
    %9 = vector.broadcast %cst_4 : f32 to vector<8x512xf32>
    %cst_5 = arith.constant 0.000000e+00 : f32
    %10 = vector.broadcast %cst_5 : f32 to vector<8x512xf32>
    %cst_6 = arith.constant 0.000000e+00 : f32
    %11 = vector.broadcast %cst_6 : f32 to vector<8x512xf32>
    %12 = vector.extract_strided_slice %8 {offsets = [16, 0], sizes = [8, 512], strides = [1, 1]} : vector<24x512xf32> to vector<8x512xf32>
    %c51_i32 = arith.constant 51 : i32
    %13 = tpu.dynamic_rotate %12 by %c51_i32 dim 1 : vector<8x512xf32>, i32 -> vector<8x512xf32>
    %c0_7 = arith.constant 0 : index
    %c0_8 = arith.constant 0 : index
    %14 = vector.load %arg6[%c0_7, %c0_8] : memref<49x512xf32, #tpu.memory_space<vmem>>, vector<1x512xf32>
    %15 = vector.broadcast %14 : vector<1x512xf32> to vector<8x512xf32>
    %16 = arith.mulf %13, %15 : vector<8x512xf32>
    %c16 = arith.constant 16 : index
    %c0_9 = arith.constant 0 : index
    %17 = vector.load %arg5[%c16, %c0_9] : memref<24x49xf32, #tpu.memory_space<vmem>>, vector<8x1xf32>
    %18 = vector.broadcast %17 : vector<8x1xf32> to vector<8x512xf32>
    %19 = arith.mulf %16, %18 : vector<8x512xf32>
    %20 = arith.addf %11, %19 : vector<8x512xf32>
    %21 = vector.extract_strided_slice %8 {offsets = [16, 0], sizes = [8, 512], strides = [1, 1]} : vector<24x512xf32> to vector<8x512xf32>
    %c50_i32 = arith.constant 50 : i32
    %22 = tpu.dynamic_rotate %21 by %c50_i32 dim 1 : vector<8x512xf32>, i32 -> vector<8x512xf32>
    %c1 = arith.constant 1 : index
    %c0_10 = arith.constant 0 : index
    %23 = vector.load %arg6[%c1, %c0_10] : memref<49x512xf32, #tpu.memory_space<vmem>>, vector<1x512xf32>
    %24 = vector.broadcast %23 : vector<1x512xf32> to vector<8x512xf32>
    %25 = arith.mulf %22, %24 : vector<8x512xf32>
    %c16_11 = arith.constant 16 : index
    %c1_12 = arith.constant 1 : index
    %26 = vector.load %arg5[%c16_11, %c1_12] : memref<24x49xf32, #tpu.memory_space<vmem>>, vector<8x1xf32>
    %27 = vector.broadcast %26 : vector<8x1xf32> to vector<8x512xf32>
    %28 = arith.mulf %25, %27 : vector<8x512xf32>
    %29 = arith.addf %20, %28 : vector<8x512xf32>
    %30 = vector.extract_strided_slice %8 {offsets = [16, 0], sizes = [8, 512], strides = [1, 1]} : vector<24x512xf32> to vector<8x512xf32>
    %c49_i32 = arith.constant 49 : i32
    %31 = tpu.dynamic_rotate %30 by %c49_i32 dim 1 : vector<8x512xf32>, i32 -> vector<8x512xf32>
    %c2 = arith.constant 2 : index
    %c0_13 = arith.constant 0 : index
    %32 = vector.load %arg6[%c2, %c0_13] : memref<49x512xf32, #tpu.memory_space<vmem>>, vector<1x512xf32>
    %33 = vector.broadcast %32 : vector<1x512xf32> to vector<8x512xf32>
    %34 = arith.mulf %31, %33 : vector<8x512xf32>
    %c16_14 = arith.constant 16 : index
    %c2_15 = arith.constant 2 : index
    %35 = vector.load %arg5[%c16_14, %c2_15] : memref<24x49xf32, #tpu.memory_space<vmem>>, vector<8x1xf32>
    %36 = vector.broadcast %35 : vector<8x1xf32> to vector<8x512xf32>
    %37 = arith.mulf %34, %36 : vector<8x512xf32>
    %38 = arith.addf %29, %37 : vector<8x512xf32>
    %39 = vector.extract_strided_slice %8 {offsets = [16, 0], sizes = [8, 512], strides = [1, 1]} : vector<24x512xf32> to vector<8x512xf32>
    %c48_i32 = arith.constant 48 : i32
    %40 = tpu.dynamic_rotate %39 by %c48_i32 dim 1 : vector<8x512xf32>, i32 -> vector<8x512xf32>
    %c3 = arith.constant 3 : index
    %c0_16 = arith.constant 0 : index
    %41 = vector.load %arg6[%c3, %c0_16] : memref<49x512xf32, #tpu.memory_space<vmem>>, vector<1x512xf32>
    %42 = vector.broadcast %41 : vector<1x512xf32> to vector<8x512xf32>
    %43 = arith.mulf %40, %42 : vector<8x512xf32>
    %c16_17 = arith.constant 16 : index
    %c3_18 = arith.constant 3 : index
    %44 = vector.load %arg5[%c16_17, %c3_18] : memref<24x49xf32, #tpu.memory_space<vmem>>, vector<8x1xf32>
    %45 = vector.broadcast %44 : vector<8x1xf32> to vector<8x512xf32>
    %46 = arith.mulf %43, %45 : vector<8x512xf32>
    %47 = arith.addf %38, %46 : vector<8x512xf32>
    %48 = vector.extract_strided_slice %8 {offsets = [16, 0], sizes = [8, 512], strides = [1, 1]} : vector<24x512xf32> to vector<8x512xf32>
    %c47_i32 = arith.constant 47 : i32
    %49 = tpu.dynamic_rotate %48 by %c47_i32 dim 1 : vector<8x512xf32>, i32 -> vector<8x512xf32>
    %c4 = arith.constant 4 : index
    %c0_19 = arith.constant 0 : index
    %50 = vector.load %arg6[%c4, %c0_19] : memref<49x512xf32, #tpu.memory_space<vmem>>, vector<1x512xf32>
    %51 = vector.broadcast %50 : vector<1x512xf32> to vector<8x512xf32>
    %52 = arith.mulf %49, %51 : vector<8x512xf32>
    %c16_20 = arith.constant 16 : index
    %c4_21 = arith.constant 4 : index
    %53 = vector.load %arg5[%c16_20, %c4_21] : memref<24x49xf32, #tpu.memory_space<vmem>>, vector<8x1xf32>
    %54 = vector.broadcast %53 : vector<8x1xf32> to vector<8x512xf32>
    %55 = arith.mulf %52, %54 : vector<8x512xf32>
    %56 = arith.addf %47, %55 : vector<8x512xf32>
    %57 = vector.extract_strided_slice %8 {offsets = [16, 0], sizes = [8, 512], strides = [1, 1]} : vector<24x512xf32> to vector<8x512xf32>
    %c46_i32 = arith.constant 46 : i32
    %58 = tpu.dynamic_rotate %57 by %c46_i32 dim 1 : vector<8x512xf32>, i32 -> vector<8x512xf32>
    %c5 = arith.constant 5 : index
    %c0_22 = arith.constant 0 : index
    %59 = vector.load %arg6[%c5, %c0_22] : memref<49x512xf32, #tpu.memory_space<vmem>>, vector<1x512xf32>
    %60 = vector.broadcast %59 : vector<1x512xf32> to vector<8x512xf32>
    %61 = arith.mulf %58, %60 : vector<8x512xf32>
    %c16_23 = arith.constant 16 : index
    %c5_24 = arith.constant 5 : index
    %62 = vector.load %arg5[%c16_23, %c5_24] : memref<24x49xf32, #tpu.memory_space<vmem>>, vector<8x1xf32>
    %63 = vector.broadcast %62 : vector<8x1xf32> to vector<8x512xf32>
    %64 = arith.mulf %61, %63 : vector<8x512xf32>
    %65 = arith.addf %56, %64 : vector<8x512xf32>
    %66 = vector.extract_strided_slice %8 {offsets = [16, 0], sizes = [8, 512], strides = [1, 1]} : vector<24x512xf32> to vector<8x512xf32>
    %c45_i32 = arith.constant 45 : i32
    %67 = tpu.dynamic_rotate %66 by %c45_i32 dim 1 : vector<8x512xf32>, i32 -> vector<8x512xf32>
    %c6 = arith.constant 6 : index
    %c0_25 = arith.constant 0 : index
    %68 = vector.load %arg6[%c6, %c0_25] : memref<49x512xf32, #tpu.memory_space<vmem>>, vector<1x512xf32>
    %69 = vector.broadcast %68 : vector<1x512xf32> to vector<8x512xf32>
    %70 = arith.mulf %67, %69 : vector<8x512xf32>
    %c16_26 = arith.constant 16 : index
    %c6_27 = arith.constant 6 : index
    %71 = vector.load %arg5[%c16_26, %c6_27] : memref<24x49xf32, #tpu.memory_space<vmem>>, vector<8x1xf32>
    %72 = vector.broadcast %71 : vector<8x1xf32> to vector<8x512xf32>
    %73 = arith.mulf %70, %72 : vector<8x512xf32>
    %74 = arith.addf %65, %73 : vector<8x512xf32>
    %75 = vector.extract_strided_slice %8 {offsets = [16, 0], sizes = [8, 512], strides = [1, 1]} : vector<24x512xf32> to vector<8x512xf32>
    %c35_i32 = arith.constant 35 : i32
    %76 = tpu.dynamic_rotate %75 by %c35_i32 dim 1 : vector<8x512xf32>, i32 -> vector<8x512xf32>
    %c7 = arith.constant 7 : index
    %c0_28 = arith.constant 0 : index
    %77 = vector.load %arg6[%c7, %c0_28] : memref<49x512xf32, #tpu.memory_space<vmem>>, vector<1x512xf32>
    %78 = vector.broadcast %77 : vector<1x512xf32> to vector<8x512xf32>
    %79 = arith.mulf %76, %78 : vector<8x512xf32>
    %c16_29 = arith.constant 16 : index
    %c7_30 = arith.constant 7 : index
    %80 = vector.load %arg5[%c16_29, %c7_30] : memref<24x49xf32, #tpu.memory_space<vmem>>, vector<8x1xf32>
    %81 = vector.broadcast %80 : vector<8x1xf32> to vector<8x512xf32>
    %82 = arith.mulf %79, %81 : vector<8x512xf32>
    %83 = arith.addf %74, %82 : vector<8x512xf32>
    %84 = vector.extract_strided_slice %8 {offsets = [8, 0], sizes = [16, 512], strides = [1, 1]} : vector<24x512xf32> to vector<16x512xf32>
    %c34_i32 = arith.constant 34 : i32
    %85 = tpu.dynamic_rotate %84 by %c34_i32 dim 1 : vector<16x512xf32>, i32 -> vector<16x512xf32>
    %c8 = arith.constant 8 : index
    %c0_31 = arith.constant 0 : index
    %86 = vector.load %arg6[%c8, %c0_31] : memref<49x512xf32, #tpu.memory_space<vmem>>, vector<1x512xf32>
    %87 = vector.broadcast %86 : vector<1x512xf32> to vector<16x512xf32>
    %88 = arith.mulf %85, %87 : vector<16x512xf32>
    %c8_32 = arith.constant 8 : index
    %c8_33 = arith.constant 8 : index
    %89 = vector.load %arg5[%c8_32, %c8_33] : memref<24x49xf32, #tpu.memory_space<vmem>>, vector<16x1xf32>
    %90 = vector.broadcast %89 : vector<16x1xf32> to vector<16x512xf32>
    %91 = arith.mulf %88, %90 : vector<16x512xf32>
    %92 = vector.extract_strided_slice %91 {offsets = [0, 0], sizes = [8, 512], strides = [1, 1]} : vector<16x512xf32> to vector<8x512xf32>
    %93 = arith.addf %10, %92 : vector<8x512xf32>
    %94 = vector.extract_strided_slice %91 {offsets = [8, 0], sizes = [8, 512], strides = [1, 1]} : vector<16x512xf32> to vector<8x512xf32>
    %95 = arith.addf %83, %94 : vector<8x512xf32>
    %96 = vector.extract_strided_slice %8 {offsets = [8, 0], sizes = [16, 512], strides = [1, 1]} : vector<24x512xf32> to vector<16x512xf32>
    %c33_i32 = arith.constant 33 : i32
    %97 = tpu.dynamic_rotate %96 by %c33_i32 dim 1 : vector<16x512xf32>, i32 -> vector<16x512xf32>
    %c9 = arith.constant 9 : index
    %c0_34 = arith.constant 0 : index
    %98 = vector.load %arg6[%c9, %c0_34] : memref<49x512xf32, #tpu.memory_space<vmem>>, vector<1x512xf32>
    %99 = vector.broadcast %98 : vector<1x512xf32> to vector<16x512xf32>
    %100 = arith.mulf %97, %99 : vector<16x512xf32>
    %c8_35 = arith.constant 8 : index
    %c9_36 = arith.constant 9 : index
    %101 = vector.load %arg5[%c8_35, %c9_36] : memref<24x49xf32, #tpu.memory_space<vmem>>, vector<16x1xf32>
    %102 = vector.broadcast %101 : vector<16x1xf32> to vector<16x512xf32>
    %103 = arith.mulf %100, %102 : vector<16x512xf32>
    %104 = vector.extract_strided_slice %103 {offsets = [0, 0], sizes = [8, 512], strides = [1, 1]} : vector<16x512xf32> to vector<8x512xf32>
    %105 = arith.addf %93, %104 : vector<8x512xf32>
    %106 = vector.extract_strided_slice %103 {offsets = [8, 0], sizes = [8, 512], strides = [1, 1]} : vector<16x512xf32> to vector<8x512xf32>
    %107 = arith.addf %95, %106 : vector<8x512xf32>
    %108 = vector.extract_strided_slice %8 {offsets = [8, 0], sizes = [16, 512], strides = [1, 1]} : vector<24x512xf32> to vector<16x512xf32>
    %c32_i32 = arith.constant 32 : i32
    %109 = tpu.dynamic_rotate %108 by %c32_i32 dim 1 : vector<16x512xf32>, i32 -> vector<16x512xf32>
    %c10 = arith.constant 10 : index
    %c0_37 = arith.constant 0 : index
    %110 = vector.load %arg6[%c10, %c0_37] : memref<49x512xf32, #tpu.memory_space<vmem>>, vector<1x512xf32>
    %111 = vector.broadcast %110 : vector<1x512xf32> to vector<16x512xf32>
    %112 = arith.mulf %109, %111 : vector<16x512xf32>
    %c8_38 = arith.constant 8 : index
    %c10_39 = arith.constant 10 : index
    %113 = vector.load %arg5[%c8_38, %c10_39] : memref<24x49xf32, #tpu.memory_space<vmem>>, vector<16x1xf32>
    %114 = vector.broadcast %113 : vector<16x1xf32> to vector<16x512xf32>
    %115 = arith.mulf %112, %114 : vector<16x512xf32>
    %116 = vector.extract_strided_slice %115 {offsets = [0, 0], sizes = [8, 512], strides = [1, 1]} : vector<16x512xf32> to vector<8x512xf32>
    %117 = arith.addf %105, %116 : vector<8x512xf32>
    %118 = vector.extract_strided_slice %115 {offsets = [8, 0], sizes = [8, 512], strides = [1, 1]} : vector<16x512xf32> to vector<8x512xf32>
    %119 = arith.addf %107, %118 : vector<8x512xf32>
    %120 = vector.extract_strided_slice %8 {offsets = [8, 0], sizes = [16, 512], strides = [1, 1]} : vector<24x512xf32> to vector<16x512xf32>
    %c31_i32 = arith.constant 31 : i32
    %121 = tpu.dynamic_rotate %120 by %c31_i32 dim 1 : vector<16x512xf32>, i32 -> vector<16x512xf32>
    %c11 = arith.constant 11 : index
    %c0_40 = arith.constant 0 : index
    %122 = vector.load %arg6[%c11, %c0_40] : memref<49x512xf32, #tpu.memory_space<vmem>>, vector<1x512xf32>
    %123 = vector.broadcast %122 : vector<1x512xf32> to vector<16x512xf32>
    %124 = arith.mulf %121, %123 : vector<16x512xf32>
    %c8_41 = arith.constant 8 : index
    %c11_42 = arith.constant 11 : index
    %125 = vector.load %arg5[%c8_41, %c11_42] : memref<24x49xf32, #tpu.memory_space<vmem>>, vector<16x1xf32>
    %126 = vector.broadcast %125 : vector<16x1xf32> to vector<16x512xf32>
    %127 = arith.mulf %124, %126 : vector<16x512xf32>
    %128 = vector.extract_strided_slice %127 {offsets = [0, 0], sizes = [8, 512], strides = [1, 1]} : vector<16x512xf32> to vector<8x512xf32>
    %129 = arith.addf %117, %128 : vector<8x512xf32>
    %130 = vector.extract_strided_slice %127 {offsets = [8, 0], sizes = [8, 512], strides = [1, 1]} : vector<16x512xf32> to vector<8x512xf32>
    %131 = arith.addf %119, %130 : vector<8x512xf32>
    %132 = vector.extract_strided_slice %8 {offsets = [8, 0], sizes = [16, 512], strides = [1, 1]} : vector<24x512xf32> to vector<16x512xf32>
    %c30_i32 = arith.constant 30 : i32
    %133 = tpu.dynamic_rotate %132 by %c30_i32 dim 1 : vector<16x512xf32>, i32 -> vector<16x512xf32>
    %c12 = arith.constant 12 : index
    %c0_43 = arith.constant 0 : index
    %134 = vector.load %arg6[%c12, %c0_43] : memref<49x512xf32, #tpu.memory_space<vmem>>, vector<1x512xf32>
    %135 = vector.broadcast %134 : vector<1x512xf32> to vector<16x512xf32>
    %136 = arith.mulf %133, %135 : vector<16x512xf32>
    %c8_44 = arith.constant 8 : index
    %c12_45 = arith.constant 12 : index
    %137 = vector.load %arg5[%c8_44, %c12_45] : memref<24x49xf32, #tpu.memory_space<vmem>>, vector<16x1xf32>
    %138 = vector.broadcast %137 : vector<16x1xf32> to vector<16x512xf32>
    %139 = arith.mulf %136, %138 : vector<16x512xf32>
    %140 = vector.extract_strided_slice %139 {offsets = [0, 0], sizes = [8, 512], strides = [1, 1]} : vector<16x512xf32> to vector<8x512xf32>
    %141 = arith.addf %129, %140 : vector<8x512xf32>
    %142 = vector.extract_strided_slice %139 {offsets = [8, 0], sizes = [8, 512], strides = [1, 1]} : vector<16x512xf32> to vector<8x512xf32>
    %143 = arith.addf %131, %142 : vector<8x512xf32>
    %144 = vector.extract_strided_slice %8 {offsets = [16, 0], sizes = [8, 512], strides = [1, 1]} : vector<24x512xf32> to vector<8x512xf32>
    %c29_i32 = arith.constant 29 : i32
    %145 = tpu.dynamic_rotate %144 by %c29_i32 dim 1 : vector<8x512xf32>, i32 -> vector<8x512xf32>
    %c13 = arith.constant 13 : index
    %c0_46 = arith.constant 0 : index
    %146 = vector.load %arg6[%c13, %c0_46] : memref<49x512xf32, #tpu.memory_space<vmem>>, vector<1x512xf32>
    %147 = vector.broadcast %146 : vector<1x512xf32> to vector<8x512xf32>
    %148 = arith.mulf %145, %147 : vector<8x512xf32>
    %c16_47 = arith.constant 16 : index
    %c13_48 = arith.constant 13 : index
    %149 = vector.load %arg5[%c16_47, %c13_48] : memref<24x49xf32, #tpu.memory_space<vmem>>, vector<8x1xf32>
    %150 = vector.broadcast %149 : vector<8x1xf32> to vector<8x512xf32>
    %151 = arith.mulf %148, %150 : vector<8x512xf32>
    %152 = arith.addf %143, %151 : vector<8x512xf32>
    %153 = vector.extract_strided_slice %8 {offsets = [16, 0], sizes = [8, 512], strides = [1, 1]} : vector<24x512xf32> to vector<8x512xf32>
    %c19_i32 = arith.constant 19 : i32
    %154 = tpu.dynamic_rotate %153 by %c19_i32 dim 1 : vector<8x512xf32>, i32 -> vector<8x512xf32>
    %c14 = arith.constant 14 : index
    %c0_49 = arith.constant 0 : index
    %155 = vector.load %arg6[%c14, %c0_49] : memref<49x512xf32, #tpu.memory_space<vmem>>, vector<1x512xf32>
    %156 = vector.broadcast %155 : vector<1x512xf32> to vector<8x512xf32>
    %157 = arith.mulf %154, %156 : vector<8x512xf32>
    %c16_50 = arith.constant 16 : index
    %c14_51 = arith.constant 14 : index
    %158 = vector.load %arg5[%c16_50, %c14_51] : memref<24x49xf32, #tpu.memory_space<vmem>>, vector<8x1xf32>
    %159 = vector.broadcast %158 : vector<8x1xf32> to vector<8x512xf32>
    %160 = arith.mulf %157, %159 : vector<8x512xf32>
    %161 = arith.addf %152, %160 : vector<8x512xf32>
    %162 = vector.extract_strided_slice %8 {offsets = [8, 0], sizes = [16, 512], strides = [1, 1]} : vector<24x512xf32> to vector<16x512xf32>
    %c18_i32 = arith.constant 18 : i32
    %163 = tpu.dynamic_rotate %162 by %c18_i32 dim 1 : vector<16x512xf32>, i32 -> vector<16x512xf32>
    %c15 = arith.constant 15 : index
    %c0_52 = arith.constant 0 : index
    %164 = vector.load %arg6[%c15, %c0_52] : memref<49x512xf32, #tpu.memory_space<vmem>>, vector<1x512xf32>
    %165 = vector.broadcast %164 : vector<1x512xf32> to vector<16x512xf32>
    %166 = arith.mulf %163, %165 : vector<16x512xf32>
    %c8_53 = arith.constant 8 : index
    %c15_54 = arith.constant 15 : index
    %167 = vector.load %arg5[%c8_53, %c15_54] : memref<24x49xf32, #tpu.memory_space<vmem>>, vector<16x1xf32>
    %168 = vector.broadcast %167 : vector<16x1xf32> to vector<16x512xf32>
    %169 = arith.mulf %166, %168 : vector<16x512xf32>
    %170 = vector.extract_strided_slice %169 {offsets = [0, 0], sizes = [8, 512], strides = [1, 1]} : vector<16x512xf32> to vector<8x512xf32>
    %171 = arith.addf %141, %170 : vector<8x512xf32>
    %172 = vector.extract_strided_slice %169 {offsets = [8, 0], sizes = [8, 512], strides = [1, 1]} : vector<16x512xf32> to vector<8x512xf32>
    %173 = arith.addf %161, %172 : vector<8x512xf32>
    %c17_i32 = arith.constant 17 : i32
    %174 = tpu.dynamic_rotate %8 by %c17_i32 dim 1 : vector<24x512xf32>, i32 -> vector<24x512xf32>
    %c16_55 = arith.constant 16 : index
    %c0_56 = arith.constant 0 : index
    %175 = vector.load %arg6[%c16_55, %c0_56] : memref<49x512xf32, #tpu.memory_space<vmem>>, vector<1x512xf32>
    %176 = vector.broadcast %175 : vector<1x512xf32> to vector<24x512xf32>
    %177 = arith.mulf %174, %176 : vector<24x512xf32>
    %c0_57 = arith.constant 0 : index
    %c16_58 = arith.constant 16 : index
    %178 = vector.load %arg5[%c0_57, %c16_58] : memref<24x49xf32, #tpu.memory_space<vmem>>, vector<24x1xf32>
    %179 = vector.broadcast %178 : vector<24x1xf32> to vector<24x512xf32>
    %180 = arith.mulf %177, %179 : vector<24x512xf32>
    %181 = vector.extract_strided_slice %180 {offsets = [0, 0], sizes = [8, 512], strides = [1, 1]} : vector<24x512xf32> to vector<8x512xf32>
    %182 = arith.addf %9, %181 : vector<8x512xf32>
    %183 = vector.extract_strided_slice %180 {offsets = [8, 0], sizes = [8, 512], strides = [1, 1]} : vector<24x512xf32> to vector<8x512xf32>
    %184 = arith.addf %171, %183 : vector<8x512xf32>
    %185 = vector.extract_strided_slice %180 {offsets = [16, 0], sizes = [8, 512], strides = [1, 1]} : vector<24x512xf32> to vector<8x512xf32>
    %186 = arith.addf %173, %185 : vector<8x512xf32>
    %c16_i32 = arith.constant 16 : i32
    %187 = tpu.dynamic_rotate %8 by %c16_i32 dim 1 : vector<24x512xf32>, i32 -> vector<24x512xf32>
    %c17 = arith.constant 17 : index
    %c0_59 = arith.constant 0 : index
    %188 = vector.load %arg6[%c17, %c0_59] : memref<49x512xf32, #tpu.memory_space<vmem>>, vector<1x512xf32>
    %189 = vector.broadcast %188 : vector<1x512xf32> to vector<24x512xf32>
    %190 = arith.mulf %187, %189 : vector<24x512xf32>
    %c0_60 = arith.constant 0 : index
    %c17_61 = arith.constant 17 : index
    %191 = vector.load %arg5[%c0_60, %c17_61] : memref<24x49xf32, #tpu.memory_space<vmem>>, vector<24x1xf32>
    %192 = vector.broadcast %191 : vector<24x1xf32> to vector<24x512xf32>
    %193 = arith.mulf %190, %192 : vector<24x512xf32>
    %194 = vector.extract_strided_slice %193 {offsets = [0, 0], sizes = [8, 512], strides = [1, 1]} : vector<24x512xf32> to vector<8x512xf32>
    %195 = arith.addf %182, %194 : vector<8x512xf32>
    %196 = vector.extract_strided_slice %193 {offsets = [8, 0], sizes = [8, 512], strides = [1, 1]} : vector<24x512xf32> to vector<8x512xf32>
    %197 = arith.addf %184, %196 : vector<8x512xf32>
    %198 = vector.extract_strided_slice %193 {offsets = [16, 0], sizes = [8, 512], strides = [1, 1]} : vector<24x512xf32> to vector<8x512xf32>
    %199 = arith.addf %186, %198 : vector<8x512xf32>
    %c15_i32 = arith.constant 15 : i32
    %200 = tpu.dynamic_rotate %8 by %c15_i32 dim 1 : vector<24x512xf32>, i32 -> vector<24x512xf32>
    %c18 = arith.constant 18 : index
    %c0_62 = arith.constant 0 : index
    %201 = vector.load %arg6[%c18, %c0_62] : memref<49x512xf32, #tpu.memory_space<vmem>>, vector<1x512xf32>
    %202 = vector.broadcast %201 : vector<1x512xf32> to vector<24x512xf32>
    %203 = arith.mulf %200, %202 : vector<24x512xf32>
    %c0_63 = arith.constant 0 : index
    %c18_64 = arith.constant 18 : index
    %204 = vector.load %arg5[%c0_63, %c18_64] : memref<24x49xf32, #tpu.memory_space<vmem>>, vector<24x1xf32>
    %205 = vector.broadcast %204 : vector<24x1xf32> to vector<24x512xf32>
    %206 = arith.mulf %203, %205 : vector<24x512xf32>
    %207 = vector.extract_strided_slice %206 {offsets = [0, 0], sizes = [8, 512], strides = [1, 1]} : vector<24x512xf32> to vector<8x512xf32>
    %208 = arith.addf %195, %207 : vector<8x512xf32>
    %209 = vector.extract_strided_slice %206 {offsets = [8, 0], sizes = [8, 512], strides = [1, 1]} : vector<24x512xf32> to vector<8x512xf32>
    %210 = arith.addf %197, %209 : vector<8x512xf32>
    %211 = vector.extract_strided_slice %206 {offsets = [16, 0], sizes = [8, 512], strides = [1, 1]} : vector<24x512xf32> to vector<8x512xf32>
    %212 = arith.addf %199, %211 : vector<8x512xf32>
    %213 = vector.extract_strided_slice %8 {offsets = [8, 0], sizes = [16, 512], strides = [1, 1]} : vector<24x512xf32> to vector<16x512xf32>
    %c14_i32 = arith.constant 14 : i32
    %214 = tpu.dynamic_rotate %213 by %c14_i32 dim 1 : vector<16x512xf32>, i32 -> vector<16x512xf32>
    %c19 = arith.constant 19 : index
    %c0_65 = arith.constant 0 : index
    %215 = vector.load %arg6[%c19, %c0_65] : memref<49x512xf32, #tpu.memory_space<vmem>>, vector<1x512xf32>
    %216 = vector.broadcast %215 : vector<1x512xf32> to vector<16x512xf32>
    %217 = arith.mulf %214, %216 : vector<16x512xf32>
    %c8_66 = arith.constant 8 : index
    %c19_67 = arith.constant 19 : index
    %218 = vector.load %arg5[%c8_66, %c19_67] : memref<24x49xf32, #tpu.memory_space<vmem>>, vector<16x1xf32>
    %219 = vector.broadcast %218 : vector<16x1xf32> to vector<16x512xf32>
    %220 = arith.mulf %217, %219 : vector<16x512xf32>
    %221 = vector.extract_strided_slice %220 {offsets = [0, 0], sizes = [8, 512], strides = [1, 1]} : vector<16x512xf32> to vector<8x512xf32>
    %222 = arith.addf %210, %221 : vector<8x512xf32>
    %223 = vector.extract_strided_slice %220 {offsets = [8, 0], sizes = [8, 512], strides = [1, 1]} : vector<16x512xf32> to vector<8x512xf32>
    %224 = arith.addf %212, %223 : vector<8x512xf32>
    %225 = vector.extract_strided_slice %8 {offsets = [16, 0], sizes = [8, 512], strides = [1, 1]} : vector<24x512xf32> to vector<8x512xf32>
    %c13_i32 = arith.constant 13 : i32
    %226 = tpu.dynamic_rotate %225 by %c13_i32 dim 1 : vector<8x512xf32>, i32 -> vector<8x512xf32>
    %c20 = arith.constant 20 : index
    %c0_68 = arith.constant 0 : index
    %227 = vector.load %arg6[%c20, %c0_68] : memref<49x512xf32, #tpu.memory_space<vmem>>, vector<1x512xf32>
    %228 = vector.broadcast %227 : vector<1x512xf32> to vector<8x512xf32>
    %229 = arith.mulf %226, %228 : vector<8x512xf32>
    %c16_69 = arith.constant 16 : index
    %c20_70 = arith.constant 20 : index
    %230 = vector.load %arg5[%c16_69, %c20_70] : memref<24x49xf32, #tpu.memory_space<vmem>>, vector<8x1xf32>
    %231 = vector.broadcast %230 : vector<8x1xf32> to vector<8x512xf32>
    %232 = arith.mulf %229, %231 : vector<8x512xf32>
    %233 = arith.addf %224, %232 : vector<8x512xf32>
    %234 = vector.extract_strided_slice %8 {offsets = [16, 0], sizes = [8, 512], strides = [1, 1]} : vector<24x512xf32> to vector<8x512xf32>
    %c3_i32 = arith.constant 3 : i32
    %235 = tpu.dynamic_rotate %234 by %c3_i32 dim 1 : vector<8x512xf32>, i32 -> vector<8x512xf32>
    %c21 = arith.constant 21 : index
    %c0_71 = arith.constant 0 : index
    %236 = vector.load %arg6[%c21, %c0_71] : memref<49x512xf32, #tpu.memory_space<vmem>>, vector<1x512xf32>
    %237 = vector.broadcast %236 : vector<1x512xf32> to vector<8x512xf32>
    %238 = arith.mulf %235, %237 : vector<8x512xf32>
    %c16_72 = arith.constant 16 : index
    %c21_73 = arith.constant 21 : index
    %239 = vector.load %arg5[%c16_72, %c21_73] : memref<24x49xf32, #tpu.memory_space<vmem>>, vector<8x1xf32>
    %240 = vector.broadcast %239 : vector<8x1xf32> to vector<8x512xf32>
    %241 = arith.mulf %238, %240 : vector<8x512xf32>
    %242 = arith.addf %233, %241 : vector<8x512xf32>
    %243 = vector.extract_strided_slice %8 {offsets = [8, 0], sizes = [16, 512], strides = [1, 1]} : vector<24x512xf32> to vector<16x512xf32>
    %c2_i32 = arith.constant 2 : i32
    %244 = tpu.dynamic_rotate %243 by %c2_i32 dim 1 : vector<16x512xf32>, i32 -> vector<16x512xf32>
    %c22 = arith.constant 22 : index
    %c0_74 = arith.constant 0 : index
    %245 = vector.load %arg6[%c22, %c0_74] : memref<49x512xf32, #tpu.memory_space<vmem>>, vector<1x512xf32>
    %246 = vector.broadcast %245 : vector<1x512xf32> to vector<16x512xf32>
    %247 = arith.mulf %244, %246 : vector<16x512xf32>
    %c8_75 = arith.constant 8 : index
    %c22_76 = arith.constant 22 : index
    %248 = vector.load %arg5[%c8_75, %c22_76] : memref<24x49xf32, #tpu.memory_space<vmem>>, vector<16x1xf32>
    %249 = vector.broadcast %248 : vector<16x1xf32> to vector<16x512xf32>
    %250 = arith.mulf %247, %249 : vector<16x512xf32>
    %251 = vector.extract_strided_slice %250 {offsets = [0, 0], sizes = [8, 512], strides = [1, 1]} : vector<16x512xf32> to vector<8x512xf32>
    %252 = arith.addf %222, %251 : vector<8x512xf32>
    %253 = vector.extract_strided_slice %250 {offsets = [8, 0], sizes = [8, 512], strides = [1, 1]} : vector<16x512xf32> to vector<8x512xf32>
    %254 = arith.addf %242, %253 : vector<8x512xf32>
    %c1_i32 = arith.constant 1 : i32
    %255 = tpu.dynamic_rotate %8 by %c1_i32 dim 1 : vector<24x512xf32>, i32 -> vector<24x512xf32>
    %c23 = arith.constant 23 : index
    %c0_77 = arith.constant 0 : index
    %256 = vector.load %arg6[%c23, %c0_77] : memref<49x512xf32, #tpu.memory_space<vmem>>, vector<1x512xf32>
    %257 = vector.broadcast %256 : vector<1x512xf32> to vector<24x512xf32>
    %258 = arith.mulf %255, %257 : vector<24x512xf32>
    %c0_78 = arith.constant 0 : index
    %c23_79 = arith.constant 23 : index
    %259 = vector.load %arg5[%c0_78, %c23_79] : memref<24x49xf32, #tpu.memory_space<vmem>>, vector<24x1xf32>
    %260 = vector.broadcast %259 : vector<24x1xf32> to vector<24x512xf32>
    %261 = arith.mulf %258, %260 : vector<24x512xf32>
    %262 = vector.extract_strided_slice %261 {offsets = [0, 0], sizes = [8, 512], strides = [1, 1]} : vector<24x512xf32> to vector<8x512xf32>
    %263 = arith.addf %208, %262 : vector<8x512xf32>
    %264 = vector.extract_strided_slice %261 {offsets = [8, 0], sizes = [8, 512], strides = [1, 1]} : vector<24x512xf32> to vector<8x512xf32>
    %265 = arith.addf %252, %264 : vector<8x512xf32>
    %266 = vector.extract_strided_slice %261 {offsets = [16, 0], sizes = [8, 512], strides = [1, 1]} : vector<24x512xf32> to vector<8x512xf32>
    %267 = arith.addf %254, %266 : vector<8x512xf32>
    %c0_80 = arith.constant 0 : index
    %c24 = arith.constant 24 : index
    %268 = vector.load %arg5[%c0_80, %c24] : memref<24x49xf32, #tpu.memory_space<vmem>>, vector<24x1xf32>
    %269 = vector.broadcast %268 : vector<24x1xf32> to vector<24x512xf32>
    %270 = arith.mulf %8, %269 : vector<24x512xf32>
    %271 = vector.extract_strided_slice %270 {offsets = [0, 0], sizes = [8, 512], strides = [1, 1]} : vector<24x512xf32> to vector<8x512xf32>
    %272 = arith.addf %263, %271 : vector<8x512xf32>
    %273 = vector.extract_strided_slice %270 {offsets = [8, 0], sizes = [8, 512], strides = [1, 1]} : vector<24x512xf32> to vector<8x512xf32>
    %274 = arith.addf %265, %273 : vector<8x512xf32>
    %275 = vector.extract_strided_slice %270 {offsets = [16, 0], sizes = [8, 512], strides = [1, 1]} : vector<24x512xf32> to vector<8x512xf32>
    %276 = arith.addf %267, %275 : vector<8x512xf32>
    %c511_i32 = arith.constant 511 : i32
    %277 = tpu.dynamic_rotate %8 by %c511_i32 dim 1 : vector<24x512xf32>, i32 -> vector<24x512xf32>
    %c25 = arith.constant 25 : index
    %c0_81 = arith.constant 0 : index
    %278 = vector.load %arg6[%c25, %c0_81] : memref<49x512xf32, #tpu.memory_space<vmem>>, vector<1x512xf32>
    %279 = vector.broadcast %278 : vector<1x512xf32> to vector<24x512xf32>
    %280 = arith.mulf %277, %279 : vector<24x512xf32>
    %c0_82 = arith.constant 0 : index
    %c25_83 = arith.constant 25 : index
    %281 = vector.load %arg5[%c0_82, %c25_83] : memref<24x49xf32, #tpu.memory_space<vmem>>, vector<24x1xf32>
    %282 = vector.broadcast %281 : vector<24x1xf32> to vector<24x512xf32>
    %283 = arith.mulf %280, %282 : vector<24x512xf32>
    %284 = vector.extract_strided_slice %283 {offsets = [0, 0], sizes = [8, 512], strides = [1, 1]} : vector<24x512xf32> to vector<8x512xf32>
    %285 = arith.addf %272, %284 : vector<8x512xf32>
    %286 = vector.extract_strided_slice %283 {offsets = [8, 0], sizes = [8, 512], strides = [1, 1]} : vector<24x512xf32> to vector<8x512xf32>
    %287 = arith.addf %274, %286 : vector<8x512xf32>
    %288 = vector.extract_strided_slice %283 {offsets = [16, 0], sizes = [8, 512], strides = [1, 1]} : vector<24x512xf32> to vector<8x512xf32>
    %289 = arith.addf %276, %288 : vector<8x512xf32>
    %290 = vector.extract_strided_slice %8 {offsets = [8, 0], sizes = [16, 512], strides = [1, 1]} : vector<24x512xf32> to vector<16x512xf32>
    %c510_i32 = arith.constant 510 : i32
    %291 = tpu.dynamic_rotate %290 by %c510_i32 dim 1 : vector<16x512xf32>, i32 -> vector<16x512xf32>
    %c26 = arith.constant 26 : index
    %c0_84 = arith.constant 0 : index
    %292 = vector.load %arg6[%c26, %c0_84] : memref<49x512xf32, #tpu.memory_space<vmem>>, vector<1x512xf32>
    %293 = vector.broadcast %292 : vector<1x512xf32> to vector<16x512xf32>
    %294 = arith.mulf %291, %293 : vector<16x512xf32>
    %c8_85 = arith.constant 8 : index
    %c26_86 = arith.constant 26 : index
    %295 = vector.load %arg5[%c8_85, %c26_86] : memref<24x49xf32, #tpu.memory_space<vmem>>, vector<16x1xf32>
    %296 = vector.broadcast %295 : vector<16x1xf32> to vector<16x512xf32>
    %297 = arith.mulf %294, %296 : vector<16x512xf32>
    %298 = vector.extract_strided_slice %297 {offsets = [0, 0], sizes = [8, 512], strides = [1, 1]} : vector<16x512xf32> to vector<8x512xf32>
    %299 = arith.addf %287, %298 : vector<8x512xf32>
    %300 = vector.extract_strided_slice %297 {offsets = [8, 0], sizes = [8, 512], strides = [1, 1]} : vector<16x512xf32> to vector<8x512xf32>
    %301 = arith.addf %289, %300 : vector<8x512xf32>
    %302 = vector.extract_strided_slice %8 {offsets = [16, 0], sizes = [8, 512], strides = [1, 1]} : vector<24x512xf32> to vector<8x512xf32>
    %c509_i32 = arith.constant 509 : i32
    %303 = tpu.dynamic_rotate %302 by %c509_i32 dim 1 : vector<8x512xf32>, i32 -> vector<8x512xf32>
    %c27 = arith.constant 27 : index
    %c0_87 = arith.constant 0 : index
    %304 = vector.load %arg6[%c27, %c0_87] : memref<49x512xf32, #tpu.memory_space<vmem>>, vector<1x512xf32>
    %305 = vector.broadcast %304 : vector<1x512xf32> to vector<8x512xf32>
    %306 = arith.mulf %303, %305 : vector<8x512xf32>
    %c16_88 = arith.constant 16 : index
    %c27_89 = arith.constant 27 : index
    %307 = vector.load %arg5[%c16_88, %c27_89] : memref<24x49xf32, #tpu.memory_space<vmem>>, vector<8x1xf32>
    %308 = vector.broadcast %307 : vector<8x1xf32> to vector<8x512xf32>
    %309 = arith.mulf %306, %308 : vector<8x512xf32>
    %310 = arith.addf %301, %309 : vector<8x512xf32>
    %311 = vector.extract_strided_slice %8 {offsets = [16, 0], sizes = [8, 512], strides = [1, 1]} : vector<24x512xf32> to vector<8x512xf32>
    %c499_i32 = arith.constant 499 : i32
    %312 = tpu.dynamic_rotate %311 by %c499_i32 dim 1 : vector<8x512xf32>, i32 -> vector<8x512xf32>
    %c28 = arith.constant 28 : index
    %c0_90 = arith.constant 0 : index
    %313 = vector.load %arg6[%c28, %c0_90] : memref<49x512xf32, #tpu.memory_space<vmem>>, vector<1x512xf32>
    %314 = vector.broadcast %313 : vector<1x512xf32> to vector<8x512xf32>
    %315 = arith.mulf %312, %314 : vector<8x512xf32>
    %c16_91 = arith.constant 16 : index
    %c28_92 = arith.constant 28 : index
    %316 = vector.load %arg5[%c16_91, %c28_92] : memref<24x49xf32, #tpu.memory_space<vmem>>, vector<8x1xf32>
    %317 = vector.broadcast %316 : vector<8x1xf32> to vector<8x512xf32>
    %318 = arith.mulf %315, %317 : vector<8x512xf32>
    %319 = arith.addf %310, %318 : vector<8x512xf32>
    %320 = vector.extract_strided_slice %8 {offsets = [8, 0], sizes = [16, 512], strides = [1, 1]} : vector<24x512xf32> to vector<16x512xf32>
    %c498_i32 = arith.constant 498 : i32
    %321 = tpu.dynamic_rotate %320 by %c498_i32 dim 1 : vector<16x512xf32>, i32 -> vector<16x512xf32>
    %c29 = arith.constant 29 : index
    %c0_93 = arith.constant 0 : index
    %322 = vector.load %arg6[%c29, %c0_93] : memref<49x512xf32, #tpu.memory_space<vmem>>, vector<1x512xf32>
    %323 = vector.broadcast %322 : vector<1x512xf32> to vector<16x512xf32>
    %324 = arith.mulf %321, %323 : vector<16x512xf32>
    %c8_94 = arith.constant 8 : index
    %c29_95 = arith.constant 29 : index
    %325 = vector.load %arg5[%c8_94, %c29_95] : memref<24x49xf32, #tpu.memory_space<vmem>>, vector<16x1xf32>
    %326 = vector.broadcast %325 : vector<16x1xf32> to vector<16x512xf32>
    %327 = arith.mulf %324, %326 : vector<16x512xf32>
    %328 = vector.extract_strided_slice %327 {offsets = [0, 0], sizes = [8, 512], strides = [1, 1]} : vector<16x512xf32> to vector<8x512xf32>
    %329 = arith.addf %299, %328 : vector<8x512xf32>
    %330 = vector.extract_strided_slice %327 {offsets = [8, 0], sizes = [8, 512], strides = [1, 1]} : vector<16x512xf32> to vector<8x512xf32>
    %331 = arith.addf %319, %330 : vector<8x512xf32>
    %c497_i32 = arith.constant 497 : i32
    %332 = tpu.dynamic_rotate %8 by %c497_i32 dim 1 : vector<24x512xf32>, i32 -> vector<24x512xf32>
    %c30 = arith.constant 30 : index
    %c0_96 = arith.constant 0 : index
    %333 = vector.load %arg6[%c30, %c0_96] : memref<49x512xf32, #tpu.memory_space<vmem>>, vector<1x512xf32>
    %334 = vector.broadcast %333 : vector<1x512xf32> to vector<24x512xf32>
    %335 = arith.mulf %332, %334 : vector<24x512xf32>
    %c0_97 = arith.constant 0 : index
    %c30_98 = arith.constant 30 : index
    %336 = vector.load %arg5[%c0_97, %c30_98] : memref<24x49xf32, #tpu.memory_space<vmem>>, vector<24x1xf32>
    %337 = vector.broadcast %336 : vector<24x1xf32> to vector<24x512xf32>
    %338 = arith.mulf %335, %337 : vector<24x512xf32>
    %339 = vector.extract_strided_slice %338 {offsets = [0, 0], sizes = [8, 512], strides = [1, 1]} : vector<24x512xf32> to vector<8x512xf32>
    %340 = arith.addf %285, %339 : vector<8x512xf32>
    %341 = vector.extract_strided_slice %338 {offsets = [8, 0], sizes = [8, 512], strides = [1, 1]} : vector<24x512xf32> to vector<8x512xf32>
    %342 = arith.addf %329, %341 : vector<8x512xf32>
    %343 = vector.extract_strided_slice %338 {offsets = [16, 0], sizes = [8, 512], strides = [1, 1]} : vector<24x512xf32> to vector<8x512xf32>
    %344 = arith.addf %331, %343 : vector<8x512xf32>
    %c496_i32 = arith.constant 496 : i32
    %345 = tpu.dynamic_rotate %8 by %c496_i32 dim 1 : vector<24x512xf32>, i32 -> vector<24x512xf32>
    %c31 = arith.constant 31 : index
    %c0_99 = arith.constant 0 : index
    %346 = vector.load %arg6[%c31, %c0_99] : memref<49x512xf32, #tpu.memory_space<vmem>>, vector<1x512xf32>
    %347 = vector.broadcast %346 : vector<1x512xf32> to vector<24x512xf32>
    %348 = arith.mulf %345, %347 : vector<24x512xf32>
    %c0_100 = arith.constant 0 : index
    %c31_101 = arith.constant 31 : index
    %349 = vector.load %arg5[%c0_100, %c31_101] : memref<24x49xf32, #tpu.memory_space<vmem>>, vector<24x1xf32>
    %350 = vector.broadcast %349 : vector<24x1xf32> to vector<24x512xf32>
    %351 = arith.mulf %348, %350 : vector<24x512xf32>
    %352 = vector.extract_strided_slice %351 {offsets = [0, 0], sizes = [8, 512], strides = [1, 1]} : vector<24x512xf32> to vector<8x512xf32>
    %353 = arith.addf %340, %352 : vector<8x512xf32>
    %354 = vector.extract_strided_slice %351 {offsets = [8, 0], sizes = [8, 512], strides = [1, 1]} : vector<24x512xf32> to vector<8x512xf32>
    %355 = arith.addf %342, %354 : vector<8x512xf32>
    %356 = vector.extract_strided_slice %351 {offsets = [16, 0], sizes = [8, 512], strides = [1, 1]} : vector<24x512xf32> to vector<8x512xf32>
    %357 = arith.addf %344, %356 : vector<8x512xf32>
    %c495_i32 = arith.constant 495 : i32
    %358 = tpu.dynamic_rotate %8 by %c495_i32 dim 1 : vector<24x512xf32>, i32 -> vector<24x512xf32>
    %c32 = arith.constant 32 : index
    %c0_102 = arith.constant 0 : index
    %359 = vector.load %arg6[%c32, %c0_102] : memref<49x512xf32, #tpu.memory_space<vmem>>, vector<1x512xf32>
    %360 = vector.broadcast %359 : vector<1x512xf32> to vector<24x512xf32>
    %361 = arith.mulf %358, %360 : vector<24x512xf32>
    %c0_103 = arith.constant 0 : index
    %c32_104 = arith.constant 32 : index
    %362 = vector.load %arg5[%c0_103, %c32_104] : memref<24x49xf32, #tpu.memory_space<vmem>>, vector<24x1xf32>
    %363 = vector.broadcast %362 : vector<24x1xf32> to vector<24x512xf32>
    %364 = arith.mulf %361, %363 : vector<24x512xf32>
    %365 = vector.extract_strided_slice %364 {offsets = [0, 0], sizes = [8, 512], strides = [1, 1]} : vector<24x512xf32> to vector<8x512xf32>
    %366 = arith.addf %353, %365 : vector<8x512xf32>
    %367 = vector.extract_strided_slice %364 {offsets = [8, 0], sizes = [8, 512], strides = [1, 1]} : vector<24x512xf32> to vector<8x512xf32>
    %368 = arith.addf %355, %367 : vector<8x512xf32>
    %369 = vector.extract_strided_slice %364 {offsets = [16, 0], sizes = [8, 512], strides = [1, 1]} : vector<24x512xf32> to vector<8x512xf32>
    %370 = arith.addf %357, %369 : vector<8x512xf32>
    %371 = vector.extract_strided_slice %8 {offsets = [8, 0], sizes = [16, 512], strides = [1, 1]} : vector<24x512xf32> to vector<16x512xf32>
    %c494_i32 = arith.constant 494 : i32
    %372 = tpu.dynamic_rotate %371 by %c494_i32 dim 1 : vector<16x512xf32>, i32 -> vector<16x512xf32>
    %c33 = arith.constant 33 : index
    %c0_105 = arith.constant 0 : index
    %373 = vector.load %arg6[%c33, %c0_105] : memref<49x512xf32, #tpu.memory_space<vmem>>, vector<1x512xf32>
    %374 = vector.broadcast %373 : vector<1x512xf32> to vector<16x512xf32>
    %375 = arith.mulf %372, %374 : vector<16x512xf32>
    %c8_106 = arith.constant 8 : index
    %c33_107 = arith.constant 33 : index
    %376 = vector.load %arg5[%c8_106, %c33_107] : memref<24x49xf32, #tpu.memory_space<vmem>>, vector<16x1xf32>
    %377 = vector.broadcast %376 : vector<16x1xf32> to vector<16x512xf32>
    %378 = arith.mulf %375, %377 : vector<16x512xf32>
    %379 = vector.extract_strided_slice %378 {offsets = [0, 0], sizes = [8, 512], strides = [1, 1]} : vector<16x512xf32> to vector<8x512xf32>
    %380 = arith.addf %368, %379 : vector<8x512xf32>
    %381 = vector.extract_strided_slice %378 {offsets = [8, 0], sizes = [8, 512], strides = [1, 1]} : vector<16x512xf32> to vector<8x512xf32>
    %382 = arith.addf %370, %381 : vector<8x512xf32>
    %383 = vector.extract_strided_slice %8 {offsets = [16, 0], sizes = [8, 512], strides = [1, 1]} : vector<24x512xf32> to vector<8x512xf32>
    %c493_i32 = arith.constant 493 : i32
    %384 = tpu.dynamic_rotate %383 by %c493_i32 dim 1 : vector<8x512xf32>, i32 -> vector<8x512xf32>
    %c34 = arith.constant 34 : index
    %c0_108 = arith.constant 0 : index
    %385 = vector.load %arg6[%c34, %c0_108] : memref<49x512xf32, #tpu.memory_space<vmem>>, vector<1x512xf32>
    %386 = vector.broadcast %385 : vector<1x512xf32> to vector<8x512xf32>
    %387 = arith.mulf %384, %386 : vector<8x512xf32>
    %c16_109 = arith.constant 16 : index
    %c34_110 = arith.constant 34 : index
    %388 = vector.load %arg5[%c16_109, %c34_110] : memref<24x49xf32, #tpu.memory_space<vmem>>, vector<8x1xf32>
    %389 = vector.broadcast %388 : vector<8x1xf32> to vector<8x512xf32>
    %390 = arith.mulf %387, %389 : vector<8x512xf32>
    %391 = arith.addf %382, %390 : vector<8x512xf32>
    %392 = vector.extract_strided_slice %8 {offsets = [16, 0], sizes = [8, 512], strides = [1, 1]} : vector<24x512xf32> to vector<8x512xf32>
    %c483_i32 = arith.constant 483 : i32
    %393 = tpu.dynamic_rotate %392 by %c483_i32 dim 1 : vector<8x512xf32>, i32 -> vector<8x512xf32>
    %c35 = arith.constant 35 : index
    %c0_111 = arith.constant 0 : index
    %394 = vector.load %arg6[%c35, %c0_111] : memref<49x512xf32, #tpu.memory_space<vmem>>, vector<1x512xf32>
    %395 = vector.broadcast %394 : vector<1x512xf32> to vector<8x512xf32>
    %396 = arith.mulf %393, %395 : vector<8x512xf32>
    %c16_112 = arith.constant 16 : index
    %c35_113 = arith.constant 35 : index
    %397 = vector.load %arg5[%c16_112, %c35_113] : memref<24x49xf32, #tpu.memory_space<vmem>>, vector<8x1xf32>
    %398 = vector.broadcast %397 : vector<8x1xf32> to vector<8x512xf32>
    %399 = arith.mulf %396, %398 : vector<8x512xf32>
    %400 = arith.addf %391, %399 : vector<8x512xf32>
    %401 = vector.extract_strided_slice %8 {offsets = [8, 0], sizes = [16, 512], strides = [1, 1]} : vector<24x512xf32> to vector<16x512xf32>
    %c482_i32 = arith.constant 482 : i32
    %402 = tpu.dynamic_rotate %401 by %c482_i32 dim 1 : vector<16x512xf32>, i32 -> vector<16x512xf32>
    %c36 = arith.constant 36 : index
    %c0_114 = arith.constant 0 : index
    %403 = vector.load %arg6[%c36, %c0_114] : memref<49x512xf32, #tpu.memory_space<vmem>>, vector<1x512xf32>
    %404 = vector.broadcast %403 : vector<1x512xf32> to vector<16x512xf32>
    %405 = arith.mulf %402, %404 : vector<16x512xf32>
    %c8_115 = arith.constant 8 : index
    %c36_116 = arith.constant 36 : index
    %406 = vector.load %arg5[%c8_115, %c36_116] : memref<24x49xf32, #tpu.memory_space<vmem>>, vector<16x1xf32>
    %407 = vector.broadcast %406 : vector<16x1xf32> to vector<16x512xf32>
    %408 = arith.mulf %405, %407 : vector<16x512xf32>
    %409 = vector.extract_strided_slice %408 {offsets = [0, 0], sizes = [8, 512], strides = [1, 1]} : vector<16x512xf32> to vector<8x512xf32>
    %410 = arith.addf %380, %409 : vector<8x512xf32>
    %411 = vector.extract_strided_slice %408 {offsets = [8, 0], sizes = [8, 512], strides = [1, 1]} : vector<16x512xf32> to vector<8x512xf32>
    %412 = arith.addf %400, %411 : vector<8x512xf32>
    %413 = vector.extract_strided_slice %8 {offsets = [8, 0], sizes = [16, 512], strides = [1, 1]} : vector<24x512xf32> to vector<16x512xf32>
    %c481_i32 = arith.constant 481 : i32
    %414 = tpu.dynamic_rotate %413 by %c481_i32 dim 1 : vector<16x512xf32>, i32 -> vector<16x512xf32>
    %c37 = arith.constant 37 : index
    %c0_117 = arith.constant 0 : index
    %415 = vector.load %arg6[%c37, %c0_117] : memref<49x512xf32, #tpu.memory_space<vmem>>, vector<1x512xf32>
    %416 = vector.broadcast %415 : vector<1x512xf32> to vector<16x512xf32>
    %417 = arith.mulf %414, %416 : vector<16x512xf32>
    %c8_118 = arith.constant 8 : index
    %c37_119 = arith.constant 37 : index
    %418 = vector.load %arg5[%c8_118, %c37_119] : memref<24x49xf32, #tpu.memory_space<vmem>>, vector<16x1xf32>
    %419 = vector.broadcast %418 : vector<16x1xf32> to vector<16x512xf32>
    %420 = arith.mulf %417, %419 : vector<16x512xf32>
    %421 = vector.extract_strided_slice %420 {offsets = [0, 0], sizes = [8, 512], strides = [1, 1]} : vector<16x512xf32> to vector<8x512xf32>
    %422 = arith.addf %410, %421 : vector<8x512xf32>
    %423 = vector.extract_strided_slice %420 {offsets = [8, 0], sizes = [8, 512], strides = [1, 1]} : vector<16x512xf32> to vector<8x512xf32>
    %424 = arith.addf %412, %423 : vector<8x512xf32>
    %425 = vector.extract_strided_slice %8 {offsets = [8, 0], sizes = [16, 512], strides = [1, 1]} : vector<24x512xf32> to vector<16x512xf32>
    %c480_i32 = arith.constant 480 : i32
    %426 = tpu.dynamic_rotate %425 by %c480_i32 dim 1 : vector<16x512xf32>, i32 -> vector<16x512xf32>
    %c38 = arith.constant 38 : index
    %c0_120 = arith.constant 0 : index
    %427 = vector.load %arg6[%c38, %c0_120] : memref<49x512xf32, #tpu.memory_space<vmem>>, vector<1x512xf32>
    %428 = vector.broadcast %427 : vector<1x512xf32> to vector<16x512xf32>
    %429 = arith.mulf %426, %428 : vector<16x512xf32>
    %c8_121 = arith.constant 8 : index
    %c38_122 = arith.constant 38 : index
    %430 = vector.load %arg5[%c8_121, %c38_122] : memref<24x49xf32, #tpu.memory_space<vmem>>, vector<16x1xf32>
    %431 = vector.broadcast %430 : vector<16x1xf32> to vector<16x512xf32>
    %432 = arith.mulf %429, %431 : vector<16x512xf32>
    %433 = vector.extract_strided_slice %432 {offsets = [0, 0], sizes = [8, 512], strides = [1, 1]} : vector<16x512xf32> to vector<8x512xf32>
    %434 = arith.addf %422, %433 : vector<8x512xf32>
    %435 = vector.extract_strided_slice %432 {offsets = [8, 0], sizes = [8, 512], strides = [1, 1]} : vector<16x512xf32> to vector<8x512xf32>
    %436 = arith.addf %424, %435 : vector<8x512xf32>
    %437 = vector.extract_strided_slice %8 {offsets = [8, 0], sizes = [16, 512], strides = [1, 1]} : vector<24x512xf32> to vector<16x512xf32>
    %c479_i32 = arith.constant 479 : i32
    %438 = tpu.dynamic_rotate %437 by %c479_i32 dim 1 : vector<16x512xf32>, i32 -> vector<16x512xf32>
    %c39 = arith.constant 39 : index
    %c0_123 = arith.constant 0 : index
    %439 = vector.load %arg6[%c39, %c0_123] : memref<49x512xf32, #tpu.memory_space<vmem>>, vector<1x512xf32>
    %440 = vector.broadcast %439 : vector<1x512xf32> to vector<16x512xf32>
    %441 = arith.mulf %438, %440 : vector<16x512xf32>
    %c8_124 = arith.constant 8 : index
    %c39_125 = arith.constant 39 : index
    %442 = vector.load %arg5[%c8_124, %c39_125] : memref<24x49xf32, #tpu.memory_space<vmem>>, vector<16x1xf32>
    %443 = vector.broadcast %442 : vector<16x1xf32> to vector<16x512xf32>
    %444 = arith.mulf %441, %443 : vector<16x512xf32>
    %445 = vector.extract_strided_slice %444 {offsets = [0, 0], sizes = [8, 512], strides = [1, 1]} : vector<16x512xf32> to vector<8x512xf32>
    %446 = arith.addf %434, %445 : vector<8x512xf32>
    %447 = vector.extract_strided_slice %444 {offsets = [8, 0], sizes = [8, 512], strides = [1, 1]} : vector<16x512xf32> to vector<8x512xf32>
    %448 = arith.addf %436, %447 : vector<8x512xf32>
    %449 = vector.extract_strided_slice %8 {offsets = [8, 0], sizes = [16, 512], strides = [1, 1]} : vector<24x512xf32> to vector<16x512xf32>
    %c478_i32 = arith.constant 478 : i32
    %450 = tpu.dynamic_rotate %449 by %c478_i32 dim 1 : vector<16x512xf32>, i32 -> vector<16x512xf32>
    %c40 = arith.constant 40 : index
    %c0_126 = arith.constant 0 : index
    %451 = vector.load %arg6[%c40, %c0_126] : memref<49x512xf32, #tpu.memory_space<vmem>>, vector<1x512xf32>
    %452 = vector.broadcast %451 : vector<1x512xf32> to vector<16x512xf32>
    %453 = arith.mulf %450, %452 : vector<16x512xf32>
    %c8_127 = arith.constant 8 : index
    %c40_128 = arith.constant 40 : index
    %454 = vector.load %arg5[%c8_127, %c40_128] : memref<24x49xf32, #tpu.memory_space<vmem>>, vector<16x1xf32>
    %455 = vector.broadcast %454 : vector<16x1xf32> to vector<16x512xf32>
    %456 = arith.mulf %453, %455 : vector<16x512xf32>
    %457 = vector.extract_strided_slice %456 {offsets = [0, 0], sizes = [8, 512], strides = [1, 1]} : vector<16x512xf32> to vector<8x512xf32>
    %458 = arith.addf %446, %457 : vector<8x512xf32>
    %459 = vector.extract_strided_slice %456 {offsets = [8, 0], sizes = [8, 512], strides = [1, 1]} : vector<16x512xf32> to vector<8x512xf32>
    %460 = arith.addf %448, %459 : vector<8x512xf32>
    %461 = vector.extract_strided_slice %8 {offsets = [16, 0], sizes = [8, 512], strides = [1, 1]} : vector<24x512xf32> to vector<8x512xf32>
    %c477_i32 = arith.constant 477 : i32
    %462 = tpu.dynamic_rotate %461 by %c477_i32 dim 1 : vector<8x512xf32>, i32 -> vector<8x512xf32>
    %c41 = arith.constant 41 : index
    %c0_129 = arith.constant 0 : index
    %463 = vector.load %arg6[%c41, %c0_129] : memref<49x512xf32, #tpu.memory_space<vmem>>, vector<1x512xf32>
    %464 = vector.broadcast %463 : vector<1x512xf32> to vector<8x512xf32>
    %465 = arith.mulf %462, %464 : vector<8x512xf32>
    %c16_130 = arith.constant 16 : index
    %c41_131 = arith.constant 41 : index
    %466 = vector.load %arg5[%c16_130, %c41_131] : memref<24x49xf32, #tpu.memory_space<vmem>>, vector<8x1xf32>
    %467 = vector.broadcast %466 : vector<8x1xf32> to vector<8x512xf32>
    %468 = arith.mulf %465, %467 : vector<8x512xf32>
    %469 = arith.addf %460, %468 : vector<8x512xf32>
    %470 = vector.extract_strided_slice %8 {offsets = [16, 0], sizes = [8, 512], strides = [1, 1]} : vector<24x512xf32> to vector<8x512xf32>
    %c467_i32 = arith.constant 467 : i32
    %471 = tpu.dynamic_rotate %470 by %c467_i32 dim 1 : vector<8x512xf32>, i32 -> vector<8x512xf32>
    %c42 = arith.constant 42 : index
    %c0_132 = arith.constant 0 : index
    %472 = vector.load %arg6[%c42, %c0_132] : memref<49x512xf32, #tpu.memory_space<vmem>>, vector<1x512xf32>
    %473 = vector.broadcast %472 : vector<1x512xf32> to vector<8x512xf32>
    %474 = arith.mulf %471, %473 : vector<8x512xf32>
    %c16_133 = arith.constant 16 : index
    %c42_134 = arith.constant 42 : index
    %475 = vector.load %arg5[%c16_133, %c42_134] : memref<24x49xf32, #tpu.memory_space<vmem>>, vector<8x1xf32>
    %476 = vector.broadcast %475 : vector<8x1xf32> to vector<8x512xf32>
    %477 = arith.mulf %474, %476 : vector<8x512xf32>
    %478 = arith.addf %469, %477 : vector<8x512xf32>
    %479 = vector.extract_strided_slice %8 {offsets = [16, 0], sizes = [8, 512], strides = [1, 1]} : vector<24x512xf32> to vector<8x512xf32>
    %c466_i32 = arith.constant 466 : i32
    %480 = tpu.dynamic_rotate %479 by %c466_i32 dim 1 : vector<8x512xf32>, i32 -> vector<8x512xf32>
    %c43 = arith.constant 43 : index
    %c0_135 = arith.constant 0 : index
    %481 = vector.load %arg6[%c43, %c0_135] : memref<49x512xf32, #tpu.memory_space<vmem>>, vector<1x512xf32>
    %482 = vector.broadcast %481 : vector<1x512xf32> to vector<8x512xf32>
    %483 = arith.mulf %480, %482 : vector<8x512xf32>
    %c16_136 = arith.constant 16 : index
    %c43_137 = arith.constant 43 : index
    %484 = vector.load %arg5[%c16_136, %c43_137] : memref<24x49xf32, #tpu.memory_space<vmem>>, vector<8x1xf32>
    %485 = vector.broadcast %484 : vector<8x1xf32> to vector<8x512xf32>
    %486 = arith.mulf %483, %485 : vector<8x512xf32>
    %487 = arith.addf %478, %486 : vector<8x512xf32>
    %488 = vector.extract_strided_slice %8 {offsets = [16, 0], sizes = [8, 512], strides = [1, 1]} : vector<24x512xf32> to vector<8x512xf32>
    %c465_i32 = arith.constant 465 : i32
    %489 = tpu.dynamic_rotate %488 by %c465_i32 dim 1 : vector<8x512xf32>, i32 -> vector<8x512xf32>
    %c44 = arith.constant 44 : index
    %c0_138 = arith.constant 0 : index
    %490 = vector.load %arg6[%c44, %c0_138] : memref<49x512xf32, #tpu.memory_space<vmem>>, vector<1x512xf32>
    %491 = vector.broadcast %490 : vector<1x512xf32> to vector<8x512xf32>
    %492 = arith.mulf %489, %491 : vector<8x512xf32>
    %c16_139 = arith.constant 16 : index
    %c44_140 = arith.constant 44 : index
    %493 = vector.load %arg5[%c16_139, %c44_140] : memref<24x49xf32, #tpu.memory_space<vmem>>, vector<8x1xf32>
    %494 = vector.broadcast %493 : vector<8x1xf32> to vector<8x512xf32>
    %495 = arith.mulf %492, %494 : vector<8x512xf32>
    %496 = arith.addf %487, %495 : vector<8x512xf32>
    %497 = vector.extract_strided_slice %8 {offsets = [16, 0], sizes = [8, 512], strides = [1, 1]} : vector<24x512xf32> to vector<8x512xf32>
    %c464_i32 = arith.constant 464 : i32
    %498 = tpu.dynamic_rotate %497 by %c464_i32 dim 1 : vector<8x512xf32>, i32 -> vector<8x512xf32>
    %c45 = arith.constant 45 : index
    %c0_141 = arith.constant 0 : index
    %499 = vector.load %arg6[%c45, %c0_141] : memref<49x512xf32, #tpu.memory_space<vmem>>, vector<1x512xf32>
    %500 = vector.broadcast %499 : vector<1x512xf32> to vector<8x512xf32>
    %501 = arith.mulf %498, %500 : vector<8x512xf32>
    %c16_142 = arith.constant 16 : index
    %c45_143 = arith.constant 45 : index
    %502 = vector.load %arg5[%c16_142, %c45_143] : memref<24x49xf32, #tpu.memory_space<vmem>>, vector<8x1xf32>
    %503 = vector.broadcast %502 : vector<8x1xf32> to vector<8x512xf32>
    %504 = arith.mulf %501, %503 : vector<8x512xf32>
    %505 = arith.addf %496, %504 : vector<8x512xf32>
    %506 = vector.extract_strided_slice %8 {offsets = [16, 0], sizes = [8, 512], strides = [1, 1]} : vector<24x512xf32> to vector<8x512xf32>
    %c463_i32 = arith.constant 463 : i32
    %507 = tpu.dynamic_rotate %506 by %c463_i32 dim 1 : vector<8x512xf32>, i32 -> vector<8x512xf32>
    %c46 = arith.constant 46 : index
    %c0_144 = arith.constant 0 : index
    %508 = vector.load %arg6[%c46, %c0_144] : memref<49x512xf32, #tpu.memory_space<vmem>>, vector<1x512xf32>
    %509 = vector.broadcast %508 : vector<1x512xf32> to vector<8x512xf32>
    %510 = arith.mulf %507, %509 : vector<8x512xf32>
    %c16_145 = arith.constant 16 : index
    %c46_146 = arith.constant 46 : index
    %511 = vector.load %arg5[%c16_145, %c46_146] : memref<24x49xf32, #tpu.memory_space<vmem>>, vector<8x1xf32>
    %512 = vector.broadcast %511 : vector<8x1xf32> to vector<8x512xf32>
    %513 = arith.mulf %510, %512 : vector<8x512xf32>
    %514 = arith.addf %505, %513 : vector<8x512xf32>
    %515 = vector.extract_strided_slice %8 {offsets = [16, 0], sizes = [8, 512], strides = [1, 1]} : vector<24x512xf32> to vector<8x512xf32>
    %c462_i32 = arith.constant 462 : i32
    %516 = tpu.dynamic_rotate %515 by %c462_i32 dim 1 : vector<8x512xf32>, i32 -> vector<8x512xf32>
    %c47 = arith.constant 47 : index
    %c0_147 = arith.constant 0 : index
    %517 = vector.load %arg6[%c47, %c0_147] : memref<49x512xf32, #tpu.memory_space<vmem>>, vector<1x512xf32>
    %518 = vector.broadcast %517 : vector<1x512xf32> to vector<8x512xf32>
    %519 = arith.mulf %516, %518 : vector<8x512xf32>
    %c16_148 = arith.constant 16 : index
    %c47_149 = arith.constant 47 : index
    %520 = vector.load %arg5[%c16_148, %c47_149] : memref<24x49xf32, #tpu.memory_space<vmem>>, vector<8x1xf32>
    %521 = vector.broadcast %520 : vector<8x1xf32> to vector<8x512xf32>
    %522 = arith.mulf %519, %521 : vector<8x512xf32>
    %523 = arith.addf %514, %522 : vector<8x512xf32>
    %524 = vector.extract_strided_slice %8 {offsets = [16, 0], sizes = [8, 512], strides = [1, 1]} : vector<24x512xf32> to vector<8x512xf32>
    %c461_i32 = arith.constant 461 : i32
    %525 = tpu.dynamic_rotate %524 by %c461_i32 dim 1 : vector<8x512xf32>, i32 -> vector<8x512xf32>
    %c48 = arith.constant 48 : index
    %c0_150 = arith.constant 0 : index
    %526 = vector.load %arg6[%c48, %c0_150] : memref<49x512xf32, #tpu.memory_space<vmem>>, vector<1x512xf32>
    %527 = vector.broadcast %526 : vector<1x512xf32> to vector<8x512xf32>
    %528 = arith.mulf %525, %527 : vector<8x512xf32>
    %c16_151 = arith.constant 16 : index
    %c48_152 = arith.constant 48 : index
    %529 = vector.load %arg5[%c16_151, %c48_152] : memref<24x49xf32, #tpu.memory_space<vmem>>, vector<8x1xf32>
    %530 = vector.broadcast %529 : vector<8x1xf32> to vector<8x512xf32>
    %531 = arith.mulf %528, %530 : vector<8x512xf32>
    %532 = arith.addf %523, %531 : vector<8x512xf32>
    %533 = vector.extract_strided_slice %7 {offsets = [0, 0], sizes = [8, 512], strides = [1, 1]} : vector<32x512xf32> to vector<8x512xf32>
    %534 = tpu.concatenate %533, %366, %458, %532 in 0 : vector<8x512xf32>, vector<8x512xf32>, vector<8x512xf32>, vector<8x512xf32> -> vector<32x512xf32>
    %c0_153 = arith.constant 0 : index
    %c0_154 = arith.constant 0 : index
    %535 = vector.load %arg3[%c0_153, %c0_154] : memref<32x32xf32, #tpu.memory_space<vmem>>, vector<32x32xf32>
    %cst_155 = arith.constant dense<0.000000e+00> : vector<32x512xf32>
    %536 = tpu.matmul %535, %534, %cst_155 {dimension_numbers = #tpu.dot_dimension_numbers<[1], [0], [0], [1], [0, 0, 1, 1], [], []>} : vector<32x32xf32>, vector<32x512xf32>, vector<32x512xf32> -> vector<32x512xf32>
    %c0_156 = arith.constant 0 : index
    %c0_157 = arith.constant 0 : index
    %537 = vector.load %arg4[%c0_156, %c0_157] : memref<32x1xf32, #tpu.memory_space<vmem>>, vector<32x1xf32>
    %538 = vector.broadcast %537 : vector<32x1xf32> to vector<32x512xf32>
    %539 = arith.addf %536, %538 : vector<32x512xf32>
    %cst_158 = arith.constant 0.000000e+00 : f32
    %540 = vector.broadcast %cst_158 : f32 to vector<32x512xf32>
    %541 = arith.maximumf %539, %540 : vector<32x512xf32>
    %542 = vector.extract_strided_slice %541 {offsets = [0, 0], sizes = [32, 256], strides = [1, 1]} : vector<32x512xf32> to vector<32x256xf32>
    %543 = vector.extract_strided_slice %541 {offsets = [0, 256], sizes = [32, 256], strides = [1, 1]} : vector<32x512xf32> to vector<32x256xf32>
    %c0_159 = arith.constant 0 : index
    %c0_160 = arith.constant 0 : index
    %544 = vector.load %arg7[%c0_159, %c0_160] : memref<32x32xf32, #tpu.memory_space<vmem>>, vector<32x32xf32>
    %cst_161 = arith.constant dense<0xFF800000> : vector<32xf32>
    %545 = vector.multi_reduction <maximumf>, %542, %cst_161 [1] : vector<32x256xf32> to vector<32xf32>
    %546 = vector.shape_cast %545 : vector<32xf32> to vector<32x1xf32>
    %547 = vector.broadcast %546 : vector<32x1xf32> to vector<32x256xf32>
    %548 = arith.subf %542, %547 : vector<32x256xf32>
    %549 = math.exp %548 : vector<32x256xf32>
    %cst_162 = arith.constant dense<0.000000e+00> : vector<32xf32>
    %550 = vector.multi_reduction <add>, %549, %cst_162 [1] : vector<32x256xf32> to vector<32xf32>
    %551 = vector.shape_cast %550 : vector<32xf32> to vector<32x1xf32>
    %552 = vector.broadcast %551 : vector<32x1xf32> to vector<32x256xf32>
    %553 = arith.divf %549, %552 : vector<32x256xf32>
    %cst_163 = arith.constant dense<0.000000e+00> : vector<32x32xf32>
    %554 = tpu.matmul %553, %543, %cst_163 {dimension_numbers = #tpu.dot_dimension_numbers<[1], [1], [0], [0], [0, 0, 1, 0], [], []>} : vector<32x256xf32>, vector<32x256xf32>, vector<32x32xf32> -> vector<32x32xf32>
    %cst_164 = arith.constant dense<0xFF800000> : vector<256xf32>
    %555 = vector.multi_reduction <maximumf>, %4, %cst_164 [0] : vector<32x256xf32> to vector<256xf32>
    %556 = vector.shape_cast %555 : vector<256xf32> to vector<1x256xf32>
    %557 = vector.broadcast %556 : vector<1x256xf32> to vector<32x256xf32>
    %558 = arith.subf %4, %557 : vector<32x256xf32>
    %559 = math.exp %558 : vector<32x256xf32>
    %cst_165 = arith.constant dense<0.000000e+00> : vector<32x256xf32>
    %560 = tpu.matmul %544, %559, %cst_165 {dimension_numbers = #tpu.dot_dimension_numbers<[1], [0], [0], [1], [0, 0, 1, 1], [], []>} : vector<32x32xf32>, vector<32x256xf32>, vector<32x256xf32> -> vector<32x256xf32>
    %561 = arith.divf %559, %560 : vector<32x256xf32>
    %562 = arith.mulf %544, %554 : vector<32x32xf32>
    %cst_166 = arith.constant dense<0.000000e+00> : vector<32x256xf32>
    %563 = tpu.matmul %562, %561, %cst_166 {dimension_numbers = #tpu.dot_dimension_numbers<[0], [0], [1], [1], [0, 1, 1, 1], [], []>} : vector<32x32xf32>, vector<32x256xf32>, vector<32x256xf32> -> vector<32x256xf32>
    %c0_167 = arith.constant 0 : index
    %c0_168 = arith.constant 0 : index
    %564 = vector.load %arg8[%c0_167, %c0_168] : memref<32x32xf32, #tpu.memory_space<vmem>>, vector<32x32xf32>
    %cst_169 = arith.constant dense<0.000000e+00> : vector<32x256xf32>
    %565 = tpu.matmul %564, %563, %cst_169 {dimension_numbers = #tpu.dot_dimension_numbers<[1], [0], [0], [1], [0, 0, 1, 1], [], []>} : vector<32x32xf32>, vector<32x256xf32>, vector<32x256xf32> -> vector<32x256xf32>
    %c0_170 = arith.constant 0 : index
    %c0_171 = arith.constant 0 : index
    %566 = vector.load %arg9[%c0_170, %c0_171] : memref<32x1xf32, #tpu.memory_space<vmem>>, vector<32x1xf32>
    %567 = vector.broadcast %566 : vector<32x1xf32> to vector<32x256xf32>
    %568 = arith.addf %565, %567 : vector<32x256xf32>
    %c0_172 = arith.constant 0 : index
    %c0_173 = arith.constant 0 : index
    %c0_174 = arith.constant 0 : index
    %569 = vector.load %arg10[%c0_172, %c0_173, %c0_174] : memref<1x32x256xf32, #tpu.memory_space<vmem>>, vector<1x32x256xf32>
    %570 = vector.shape_cast %569 : vector<1x32x256xf32> to vector<32x256xf32>
    %571 = vector.shape_cast %568 : vector<32x256xf32> to vector<1x32x256xf32>
    tpu.vector_store %arg10[%c0_172, %c0_173, %c0_174], %571 {strides = array<i32>} : memref<1x32x256xf32, #tpu.memory_space<vmem>>, vector<1x32x256xf32>,
    return
  }
  func.func @transform_0(%arg0: i32) -> (i32, i32, i32) {
    %c0_i32 = arith.constant 0 : i32
    %c0_i32_0 = arith.constant 0 : i32
    %c0_i32_1 = arith.constant 0 : i32
    return %arg0, %c0_i32, %c0_i32_0 : i32, i32, i32
  }
  func.func @transform_1(%arg0: i32) -> (i32, i32) {
    %c0_i32 = arith.constant 0 : i32
    %c0_i32_0 = arith.constant 0 : i32
    %c0_i32_1 = arith.constant 0 : i32
    return %c0_i32, %c0_i32_0 : i32, i32
  }
  func.func @transform_2(%arg0: i32) -> (i32, i32) {
    %c0_i32 = arith.constant 0 : i32
    %c0_i32_0 = arith.constant 0 : i32
    %c0_i32_1 = arith.constant 0 : i32
    return %c0_i32, %c0_i32_0 : i32, i32
  }
  func.func @transform_3(%arg0: i32) -> (i32, i32) {
    %c0_i32 = arith.constant 0 : i32
    %c0_i32_0 = arith.constant 0 : i32
    %c0_i32_1 = arith.constant 0 : i32
    return %c0_i32, %c0_i32_0 : i32, i32
  }
  func.func @transform_4(%arg0: i32) -> (i32, i32) {
    %c0_i32 = arith.constant 0 : i32
    %c0_i32_0 = arith.constant 0 : i32
    %c0_i32_1 = arith.constant 0 : i32
    return %c0_i32, %c0_i32_0 : i32, i32
  }
  func.func @transform_5(%arg0: i32) -> (i32, i32) {
    %c0_i32 = arith.constant 0 : i32
    %c0_i32_0 = arith.constant 0 : i32
    %c0_i32_1 = arith.constant 0 : i32
    return %c0_i32, %c0_i32_0 : i32, i32
  }
  func.func @transform_6(%arg0: i32) -> (i32, i32) {
    %c0_i32 = arith.constant 0 : i32
    %c0_i32_0 = arith.constant 0 : i32
    %c0_i32_1 = arith.constant 0 : i32
    return %c0_i32, %c0_i32_0 : i32, i32
  }
  func.func @transform_7(%arg0: i32) -> (i32, i32) {
    %c0_i32 = arith.constant 0 : i32
    %c0_i32_0 = arith.constant 0 : i32
    %c0_i32_1 = arith.constant 0 : i32
    return %c0_i32, %c0_i32_0 : i32, i32
  }
  func.func @transform_8(%arg0: i32) -> (i32, i32) {
    %c0_i32 = arith.constant 0 : i32
    %c0_i32_0 = arith.constant 0 : i32
    %c0_i32_1 = arith.constant 0 : i32
    return %c0_i32, %c0_i32_0 : i32, i32
  }
  func.func @transform_9(%arg0: i32) -> (i32, i32, i32) {
    %c0_i32 = arith.constant 0 : i32
    %c0_i32_0 = arith.constant 0 : i32
    %c0_i32_1 = arith.constant 0 : i32
    return %arg0, %c0_i32, %c0_i32_0 : i32, i32, i32
  }
}

</mosaic_0001>

<bundles_post_ra>
// kernel: tpu_custom_call.1
= control target key start
LH: loop header
LB: loop body
LE: loop exit
PB: predicated region body
PF: predicated region fallthrough
CT: control target
= control target key end

     0   :  { %s11111_s0 = inlined_call_operand.vmem [shape: f32[2,256,32], index: 0, kind: input, shape index: {}]   ;;  %s11112_s1 = inlined_call_operand.vmem [shape: f32[96,32], index: 1, kind: input, shape index: {}]   ;;  %s11113_s2 = inlined_call_operand.vmem [shape: f32[32,32], index: 2, kind: input, shape index: {}]   ;;  %s11114_s3 = inlined_call_operand.vmem [shape: f32[32,1], index: 3, kind: input, shape index: {}]   ;;  %s11115_s4 = inlined_call_operand.vmem [shape: f32[24,49], index: 4, kind: input, shape index: {}]   ;;  %s11116_s5 = inlined_call_operand.vmem [shape: f32[49,512], index: 5, kind: input, shape index: {}]   ;;  %s11117_s6 = inlined_call_operand.vmem [shape: f32[32,32], index: 6, kind: input, shape index: {}]   ;;  %s11118_s7 = inlined_call_operand.vmem [shape: f32[32,32], index: 7, kind: input, shape index: {}]   ;;  %s11119_s8 = inlined_call_operand.vmem [shape: f32[32,1], index: 8, kind: input, shape index: {}]   ;;  %s11120_s9 = inlined_call_operand.hbm [shape: f32[2,32,256], index: 9, kind: output, shape index: {}]  }
   0x1   :  { %11844 = sst [smem:[#allocation345_spill]] %s11111_s0 }
   0x2   :  { %11845 = sst [smem:[#allocation346_spill]] %s11112_s1 }
   0x3   :  { %11846 = sst [smem:[#allocation347_spill]] %s11113_s2 }
   0x4   :  { %11847 = sst [smem:[#allocation348_spill]] %s11114_s3 }
   0x5   :  { %11848 = sst [smem:[#allocation349_spill]] %s11117_s6 }
   0x6   :  { %11849 = sst [smem:[#allocation350_spill]] %s11118_s7 }
   0x7   :  { %11850 = sst [smem:[#allocation351_spill]] %s11119_s8 }
   0x8   :  { %11851 = sst [smem:[#allocation352_spill]] %s11120_s9 }
   0x9   :  { %14 = vsyncpa [#allocation3], 0 }
   0xa   :  { %16 = vsyncpa [#allocation3 + $0x1], 0  ;;  %s5680_s30 = smov 0   ;;  %s5682_s10 = smov 0  }
   0xb   :  { %s5684_s11 = smov 0   ;;  %s5686_s12 = smov 0  }
   0xc LB: > { %11852 = sst [smem:[#allocation5_spill]] %s5516_s30  ;;  %s5701_s13 = sadd.s32 4294967295, %s5528_s12   ;;  %s5528_s12 = sphi %s5686_s12, %s13328_s12   ;;  %s5524_s11 = sphi %s5684_s11, %s13331_s11   ;;  %s5520_s10 = sphi %s5682_s10, %s13330_s10   ;;  %s5516_s30 = sphi %s5680_s30, %s13329_s30  }
   0xd   : > { %11853 = sst [smem:[#allocation6_spill]] %s5520_s10  ;;  %s4972_s14 = sadd.s32 4294967294, %s5528_s12  }
   0xe   : > { %11854 = sst [smem:[#allocation7_spill]] %s5524_s11  ;;  %s5705_s15 = sadd.s32 1, %s5528_s12  }
   0xf   : > { %11855 = sst [smem:[#allocation8_spill]] %s5528_s12  ;;  %s223_s16 = sadd.s32 1, %s5524_s11 }
  0x10   : > { %11856 = sst [smem:[#allocation9_spill]] %s5701_s13  ;;  %s220_s17 = ssub.s32 %s5528_s12, %s5705_s15 }
  0x11   : > { %11857 = sst [smem:[#allocation10_spill]] %s5705_s15  ;;  %p233_p0 = scmp.ne.s32.totalorder %s5524_s11, %s5520_s10 }
  0x12   : > { %p221_p1 = scmp.eq.s32.totalorder %s220_s17, 0  ;;  %p234_p2 = scmp.eq.s32.totalorder %s5701_s13, 1 }
  0x13   : > { %p239_p3 = scmp.ne.s32.totalorder %s5520_s10, %s5516_s30  ;;  %p240_p4 = scmp.eq.s32.totalorder %s4972_s14, 1 }
  0x14   : > { %s5716_s18 = scalar_select %p221_p1, %s5524_s11, %s223_s16  }
  0x15   : > { %p5718_p5 = por %p234_p2, %p233_p0  ;;  %p5722_p6 = por %p240_p4, %p239_p3 }
  0x16   : > { %11858 = sst [smem:[#allocation11_spill]] %s5716_s18  ;;  %p4975_p7 = scmp.ge.s32.totalorder %s5528_s12, 1 }
  0x17   : > { %s11859_s19 = scalar_select %p5718_p5, 1, 0 }
  0x18   : > { %s11861_s20 = scalar_select %p5722_p6, 1, 0 }
  0x19   : > { %11860 = sst [smem:[#allocation12_spill]] %s11859_s19  ;;  %p290_p8 = scmp.lt.s32.totalorder %s5528_s12, 3 }
  0x1a   : > { %11862 = sst [smem:[#allocation13_spill]] %s11861_s20 }
  0x1b   : > { %p291_p9 = pnand %p4975_p7, %p290_p8 }
  0x1d   : > { %294 = sbr.rel (%p291_p9) target bundleno = 2387 (0x953), region = 56 }
  0x22   : > { %p326_p10 = scmp.lt.s32.totalorder %s5701_s13, 1  ;;  %vm11510_vm0 = vcmask 261120   ;;  %s11863_s1 = sld [smem:[#allocation346_spill]]  ;;  %v5530_v1 = vmov 2   ;;  %v5739_v2 = vld [vmem:[%s11115_s4 + $0x10] sm:$0xff]  ;;  %v5531_v6 = vmov 4  }
  0x23   : > { %5293 = vset.pattern.permute.xlu1 %v5530_v1  ;;  %s11864_s0 = sld [smem:[#allocation345_spill]]  ;;  %v11145_v7 = vmov 0   ;;  %v5533_v10 = vmov 5   ;;  %v5534_v13 = vmov 6   ;;  %v5535_v16 = vmov 1   ;;  %v5791_v27 = vld [vmem:[%s11115_s4 + $0x8] sm:$0xff] }
  0x24   : > { %s327_s25 = scalar_select %p326_p10, %s5701_s13, 1  ;;  %793 = vperm.xlu1 %5293, %v5739_v2   ;;  %5291 = vset.pattern.permute.xlu0 %v11145_v7  ;;  %v5536_v18 = vmov 7   ;;  %v5537_v20 = vmov 3   ;;  %v5538_v23 = vmov 8   ;;  %v5539_v26 = vmov 9  }
  0x25   : > { %689 = vperm.xlu0 %5291, %v5739_v2   ;;  %v5540_v30 = vmov 10   ;;  %v5541_v33 = vmov 27   ;;  %v5542_v35 = vmov 11   ;;  %v5543_v39 = vmov 12   ;;  %s11147_s14 = smov 31   ;;  %s11219_s16 = smov 34  }
  0x26   : > { %s5095_s26 = sshll.u32 %s327_s25, 8  ;;  %v5544_v42 = vmov 13   ;;  %v5545_v45 = vmov 14   ;;  %v5546_v49 = vmov 15   ;;  %v11154_v52 = vmov 16   ;;  %s11135_s17 = smov 30  }
  0x27   : > { %v11153_v54 = vmov 17   ;;  %v11152_v56 = vmov 18   ;;  %v11164_v59 = vmov 19   ;;  %v5551_v61 = vmov 20   ;;  %s11213_s21 = smov 33   ;;  %s11141_s22 = smov 18  }
  0x28   : > { %v5732_v0 = vld [vmem:[%s11863_s1] sm:$0xff]  ;;  %5295 = vset.pattern.permute.xlu1 %v5531_v6  ;;  %v364_v53 = vld [vmem:[%s11863_s1 + $0x8] sm:$0xff]  ;;  %v365_v55 = vld [vmem:[%s11863_s1 + $0x10] sm:$0xff]  ;;  %v5552_v63 = vmov 21   ;;  %v11161_v1 = vmov 22   ;;  %s11209_s23 = smov 32  }
  0x29   : > { %5129 = vmatprep.mubr.msk.f32.mxu0 %vm11510_vm0, %v5732_v0  ;;  %s5746_s29 = scalar_lea.vmem %s11864_s0, %s5095_s26  ;;  %897 = vperm.xlu1 %5295, %v5739_v2   ;;  %v366_v57 = vld [vmem:[%s11863_s1 + $0x18] sm:$0xff]  ;;  %v367_v58 = vld [vmem:[%s11863_s1 + $0x20] sm:$0xff]  ;;  %v368_v60 = vld [vmem:[%s11863_s1 + $0x28] sm:$0xff]  ;;  %s11121_s24 = smov 49  }
  0x2a   : > { %v362_v3 = vld [vmem:[%s5746_s29 + $0xf8] sm:$0xff]  ;;  %v361_v5 = vld [vmem:[%s5746_s29 + $0xf0] sm:$0xff]  ;;  %v360_v9 = vld [vmem:[%s5746_s29 + $0xe8] sm:$0xff]  ;;  %5292 = vset.pattern.permute.xlu0 %v5535_v16  ;;  %s11125_s25 = smov 51   ;;  %s11123_s26 = smov 127  }
  0x2b   : > { %v346_v4 = vld [vmem:[%s5746_s29 + $0x78] sm:$0xff]  ;;  %5097 = vmatprep.subr.msk.mxu0 %vm11510_vm0, %v362_v3  ;;  %v345_v8 = vld [vmem:[%s5746_s29 + $0x70] sm:$0xff]  ;;  %v344_v11 = vld [vmem:[%s5746_s29 + $0x68] sm:$0xff]  ;;  %741 = vperm.xlu0 %5292, %v5739_v2   ;;  %s11127_s27 = smov 50   ;;  %s11178_s28 = smov 126  }
  0x2c   : > { %5098 = vmatpush3.xpose.msk.msra.mxu0 %vm11510_vm0, %v346_v4  ;;  %v359_v12 = vld [vmem:[%s5746_s29 + $0xe0] sm:$0xff]  ;;  %v358_v15 = vld [vmem:[%s5746_s29 + $0xd8] sm:$0xff]  ;;  %v357_v19 = vld [vmem:[%s5746_s29 + $0xd0] sm:$0xff]  ;;  %s11957_s0 = smov 125   ;;  %s11961_s18 = smov 115  }
  0x2d   : > { %5099 = vmatprep.subr.msk.mxu0 %vm11510_vm0, %v361_v5  ;;  %5296 = vset.pattern.permute.xlu1 %v5533_v10  ;;  %v343_v14 = vld [vmem:[%s5746_s29 + $0x60] sm:$0xff]  ;;  %v342_v17 = vld [vmem:[%s5746_s29 + $0x58] sm:$0xff]  ;;  %v341_v21 = vld [vmem:[%s5746_s29 + $0x50] sm:$0xff]  ;;  %v11149_v5 = vmov 23   ;;  %v11157_v10 = vmov 25   ;;  %s11962_s11 = smov 33  }
  0x2e   : > { %949 = vperm.xlu1 %5296, %v5739_v2   ;;  %v356_v22 = vld [vmem:[%s5746_s29 + $0xc8] sm:$0xff]  ;;  %v355_v25 = vld [vmem:[%s5746_s29 + $0xc0] sm:$0xff]  ;;  %v354_v29 = vld [vmem:[%s5746_s29 + $0xb8] sm:$0xff]  ;;  %s11965_s15 = smov 114   ;;  %s11966_s20 = smov 32  }
  0x2f   : > { %5294 = vset.pattern.permute.xlu0 %v5537_v20  ;;  %v340_v24 = vld [vmem:[%s5746_s29 + $0x48] sm:$0xff]  ;;  %v339_v28 = vld [vmem:[%s5746_s29 + $0x40] sm:$0xff]  ;;  %v338_v31 = vld [vmem:[%s5746_s29 + $0x38] sm:$0xff]  ;;  %s11969_s30 = smov 113   ;;  %s11972_s12 = smov 50  }
  0x30   : > { %5100 = vmatpush3.xpose.msk.msra.mxu0 %vm11510_vm0, %v345_v8  ;;  %845 = vperm.xlu0 %5294, %v5739_v2   ;;  %v353_v32 = vld [vmem:[%s5746_s29 + $0xb0] sm:$0xff]  ;;  %v352_v36 = vld [vmem:[%s5746_s29 + $0xa8] sm:$0xff]  ;;  %v351_v38 = vld [vmem:[%s5746_s29 + $0xa0] sm:$0xff]  ;;  %v11159_v8 = vmov 24   ;;  %s11975_s9 = smov 29   ;;  %s11978_s19 = smov 19  }
  0x31   : > { %5101 = vmatprep.subr.msk.mxu0 %vm11510_vm0, %v360_v9  ;;  %v337_v34 = vld [vmem:[%s5746_s29 + $0x30] sm:$0xff]  ;;  %v336_v37 = vld [vmem:[%s5746_s29 + $0x28] sm:$0xff]  ;;  %v335_v40 = vld [vmem:[%s5746_s29 + $0x20] sm:$0xff]  ;;  %s11981_s13 = smov 17   ;;  %s11268_s7 = smov 112  }
  0x32   : > { %5297 = vset.pattern.permute.xlu1 %v5534_v13  ;;  %v350_v41 = vld [vmem:[%s5746_s29 + $0x98] sm:$0xff]  ;;  %v349_v44 = vld [vmem:[%s5746_s29 + $0x90] sm:$0xff]  ;;  %v348_v47 = vld [vmem:[%s5746_s29 + $0x88] sm:$0xff]  ;;  %s11986_s10 = smov 16   ;;  %s11989_s6 = smov 15  }
  0x33   : > { %1001 = vperm.xlu1 %5297, %v5739_v2   ;;  %v334_v43 = vld [vmem:[%s5746_s29 + $0x18] sm:$0xff]  ;;  %v333_v46 = vld [vmem:[%s5746_s29 + $0x10] sm:$0xff]  ;;  %v332_v48 = vld [vmem:[%s5746_s29 + $0x8] sm:$0xff]  ;;  %s11992_s8 = smov 14   ;;  %s11995_s2 = smov 13  }
  0x34   : > { %5102 = vmatpush3.xpose.msk.msra.mxu0 %vm11510_vm0, %v344_v11  ;;  %5317 = vset.pattern.permute.xlu0 %v5538_v23  ;;  %v347_v50 = vld [vmem:[%s5746_s29 + $0x80] sm:$0xff]  ;;  %v369_v62 = vld [vmem:[%s11863_s1 + $0x30] sm:$0xff]  ;;  %v372_v4 = vld [vmem:[%s11863_s1 + $0x48] sm:$0xff]  ;;  %v5557_v11 = vmov 26   ;;  %s11283_s3 = smov 111  }
  0x35   : > { %5103 = vmatprep.subr.msk.mxu0 %vm11510_vm0, %v359_v12  ;;  %1123 = vperm.xlu0 %5317, %v5791_v27   ;;  %v331_v51 = vld [vmem:[%s5746_s29] sm:$0xff]  ;;  %v373_v6 = vld [vmem:[%s11863_s1 + $0x50] sm:$0xff]  ;;  %v374_v9 = vld [vmem:[%s11863_s1 + $0x58] sm:$0xff]  ;;  %v5558_v12 = vmov 28   ;;  %s11180_s29 = smov 48  }
  0x36   : > { %v371_v3 = vld [vmem:[%s11863_s1 + $0x40] sm:$0xff] }
  0x37   : > { %5298 = vset.pattern.permute.xlu1 %v5536_v18 }
  0x38   : > { %5104 = vmatpush3.xpose.msk.msra.mxu0 %vm11510_vm0, %v343_v14  ;;  %1053 = vperm.xlu1 %5298, %v5739_v2  }
  0x39   : > { %5105 = vmatprep.subr.msk.mxu0 %vm11510_vm0, %v358_v15  ;;  %5321 = vset.pattern.permute.xlu0 %v5541_v33 }
  0x3a   : > { %2613 = vperm.xlu0 %5321, %v5739_v2  }
  0x3c   : > { %5106 = vmatpush3.xpose.msk.msra.mxu0 %vm11510_vm0, %v342_v17  ;;  %5299 = vset.pattern.permute.xlu1 %v5538_v23 }
  0x3d   : > { %5107 = vmatprep.subr.msk.mxu0 %vm11510_vm0, %v357_v19  ;;  %1127 = vperm.xlu1 %5299, %v5739_v2  }
  0x3e   : > { %5323 = vset.pattern.permute.xlu0 %v5558_v12 }
  0x3f   : > { %2665 = vperm.xlu0 %5323, %v5739_v2  }
  0x40   : > { %5108 = vmatpush3.xpose.msk.msra.mxu0 %vm11510_vm0, %v341_v21 }
  0x41   : > { %5109 = vmatprep.subr.msk.mxu0 %vm11510_vm0, %v356_v22  ;;  %5300 = vset.pattern.permute.xlu1 %v5539_v26 }
  0x42   : > { %1207 = vperm.xlu1 %5300, %v5739_v2  }
  0x43   : > { %5324 = vset.pattern.permute.xlu0 %v5543_v39 }
  0x44   : > { %5110 = vmatpush3.xpose.msk.msra.mxu0 %vm11510_vm0, %v340_v24  ;;  %1443 = vperm.xlu0 %5324, %v5791_v27  }
  0x45   : > { %5111 = vmatprep.subr.msk.mxu0 %vm11510_vm0, %v355_v25 }
  0x46   : > { %5301 = vset.pattern.permute.xlu1 %v5540_v30 }
  0x47   : > { %1287 = vperm.xlu1 %5301, %v5739_v2  }
  0x48   : > { %5112 = vmatpush3.xpose.msk.msra.mxu0 %vm11510_vm0, %v339_v28  ;;  %5325 = vset.pattern.permute.xlu0 %v5546_v49 }
  0x49   : > { %5113 = vmatprep.subr.msk.mxu0 %vm11510_vm0, %v354_v29  ;;  %1627 = vperm.xlu0 %5325, %v5791_v27  }
  0x4b   : > { %5302 = vset.pattern.permute.xlu1 %v5542_v35 }
  0x4c   : > { %5114 = vmatpush3.xpose.msk.msra.mxu0 %vm11510_vm0, %v338_v31  ;;  %1367 = vperm.xlu1 %5302, %v5739_v2  }
  0x4d   : > { %5115 = vmatprep.subr.msk.mxu0 %vm11510_vm0, %v353_v32  ;;  %5326 = vset.pattern.permute.xlu0 %v11153_v54 }
  0x50   : > { %5116 = vmatpush3.xpose.msk.msra.mxu0 %vm11510_vm0, %v337_v34  ;;  %5303 = vset.pattern.permute.xlu1 %v5543_v39 }
  0x51   : > { %5117 = vmatprep.subr.msk.mxu0 %vm11510_vm0, %v352_v36  ;;  %1447 = vperm.xlu1 %5303, %v5739_v2  }
  0x54   : > { %5118 = vmatpush3.xpose.msk.msra.mxu0 %vm11510_vm0, %v336_v37 }
  0x55   : > { %5119 = vmatprep.subr.msk.mxu0 %vm11510_vm0, %v351_v38  ;;  %5304 = vset.pattern.permute.xlu1 %v5544_v42 }
  0x56   : > { %1507 = vperm.xlu1 %5304, %v5739_v2  }
  0x58   : > { %5120 = vmatpush3.xpose.msk.msra.mxu0 %vm11510_vm0, %v335_v40 }
  0x59   : > { %5121 = vmatprep.subr.msk.mxu0 %vm11510_vm0, %v350_v41 }
  0x5a   : > { %5305 = vset.pattern.permute.xlu1 %v5545_v45 }
  0x5b   : > { %1559 = vperm.xlu1 %5305, %v5739_v2  }
  0x5c   : > { %5122 = vmatpush3.xpose.msk.msra.mxu0 %vm11510_vm0, %v334_v43 }
  0x5d   : > { %5123 = vmatprep.subr.msk.mxu0 %vm11510_vm0, %v349_v44 }
  0x5f   : > { %5306 = vset.pattern.permute.xlu1 %v5546_v49 }
  0x60   : > { %5124 = vmatpush3.xpose.msk.msra.mxu0 %vm11510_vm0, %v333_v46  ;;  %1631 = vperm.xlu1 %5306, %v5739_v2  }
  0x61   : > { %5125 = vmatprep.subr.msk.mxu0 %vm11510_vm0, %v348_v47 }
  0x64   : > { %5126 = vmatpush3.xpose.msk.msra.mxu0 %vm11510_vm0, %v332_v48  ;;  %5307 = vset.pattern.permute.xlu1 %v11154_v52 }
  0x65   : > { %5127 = vmatprep.subr.msk.mxu0 %vm11510_vm0, %v347_v50  ;;  %1733 = vperm.xlu1 %5307, %v5739_v2  }
  0x68   : > { %5128 = vmatpush3.xpose.msk.msra.mxu0 %vm11510_vm0, %v331_v51 }
  0x69   : > { %5308 = vset.pattern.permute.xlu1 %v11153_v54 }
  0x6a   : > { %1841 = vperm.xlu1 %5308, %v5739_v2  }
  0x6b   : > { %5130 = vmatmul.mubr.msk.f32.vlgmr.msra.gmra.mxu0 %vm11510_vm0, %v5732_v0  ;;  %v370_v0 = vld [vmem:[%s11863_s1 + $0x38] sm:$0xff]  ;;  %s11958_s1 = smov 34  }
  0x6c   : > { %5131 = vmatprep.mubr.msk.f32.mxu0 %vm11510_vm0, %v364_v53 }
  0x6e   : > { %5309 = vset.pattern.permute.xlu1 %v11152_v56 }
  0x6f   : > { %5132 = vmatmul.mubr.msk.f32.gmra.mxu0 %vm11510_vm0, %v364_v53  ;;  %1949 = vperm.xlu1 %5309, %v5739_v2  }
  0x70   : > { %5133 = vmatprep.mubr.msk.f32.mxu0 %vm11510_vm0, %v365_v55 }
  0x73   : > { %5134 = vmatmul.mubr.msk.f32.gmra.mxu0 %vm11510_vm0, %v365_v55  ;;  %5310 = vset.pattern.permute.xlu1 %v11164_v59 }
  0x74   : > { %5135 = vmatprep.mubr.msk.f32.mxu0 %vm11510_vm0, %v366_v57  ;;  %2037 = vperm.xlu1 %5310, %v5739_v2  }
  0x77   : > { %5136 = vmatmul.mubr.msk.f32.gmra.mxu0 %vm11510_vm0, %v366_v57 }
  0x78   : > { %5137 = vmatprep.mubr.msk.f32.mxu0 %vm11510_vm0, %v367_v58  ;;  %5311 = vset.pattern.permute.xlu1 %v5551_v61 }
  0x79   : > { %2097 = vperm.xlu1 %5311, %v5739_v2  }
  0x7b   : > { %5138 = vmatmul.mubr.msk.f32.gmra.mxu0 %vm11510_vm0, %v367_v58 }
  0x7c   : > { %5139 = vmatprep.mubr.msk.f32.mxu0 %vm11510_vm0, %v368_v60 }
  0x7d   : > { %5312 = vset.pattern.permute.xlu1 %v5552_v63 }
  0x7e   : > { %2149 = vperm.xlu1 %5312, %v5739_v2  }
  0x7f   : > { %5140 = vmatmul.mubr.msk.f32.gmra.mxu0 %vm11510_vm0, %v368_v60 }
  0x80   : > { %5141 = vmatprep.mubr.msk.f32.mxu0 %vm11510_vm0, %v369_v62 }
  0x82   : > { %5313 = vset.pattern.permute.xlu1 %v11161_v1 }
  0x83   : > { %5142 = vmatmul.mubr.msk.f32.gmra.mxu0 %vm11510_vm0, %v369_v62  ;;  %2221 = vperm.xlu1 %5313, %v5739_v2  }
  0x84   : > { %5143 = vmatprep.mubr.msk.f32.mxu0 %vm11510_vm0, %v370_v0 }
  0x87   : > { %5144 = vmatmul.mubr.msk.f32.gmra.mxu0 %vm11510_vm0, %v370_v0  ;;  %5314 = vset.pattern.permute.xlu1 %v11149_v5 }
  0x88   : > { %5145 = vmatprep.mubr.msk.f32.mxu0 %vm11510_vm0, %v371_v3  ;;  %2321 = vperm.xlu1 %5314, %v5739_v2  }
  0x8b   : > { %5146 = vmatmul.mubr.msk.f32.gmra.mxu0 %vm11510_vm0, %v371_v3 }
  0x8c   : > { %5147 = vmatprep.mubr.msk.f32.mxu0 %vm11510_vm0, %v372_v4  ;;  %5315 = vset.pattern.permute.xlu1 %v11159_v8 }
  0x8d   : > { %2357 = vperm.xlu1 %5315, %v5739_v2  }
  0x8f   : > { %5148 = vmatmul.mubr.msk.f32.gmra.mxu0 %vm11510_vm0, %v372_v4 }
  0x90   : > { %5149 = vmatprep.mubr.msk.f32.mxu0 %vm11510_vm0, %v373_v6 }
  0x91   : > { %5316 = vset.pattern.permute.xlu1 %v11157_v10 }
  0x92   : > { %2465 = vperm.xlu1 %5316, %v5739_v2  }
  0x93   : > { %5150 = vmatmul.mubr.msk.f32.gmra.mxu0 %vm11510_vm0, %v373_v6 }
  0x94   : > { %5151 = vmatprep.mubr.msk.f32.mxu0 %vm11510_vm0, %v374_v9 }
  0x96   : > { %5318 = vset.pattern.permute.xlu1 %v5539_v26 }
  0x97   : > { %5152 = vmatmul.mubr.msk.f32.gmra.mxu0 %vm11510_vm0, %v374_v9  ;;  %1203 = vperm.xlu1 %5318, %v5791_v27  }
  0x9b   : > { %5319 = vset.pattern.permute.xlu1 %v5557_v11 }
  0x9c   : > { %2553 = vperm.xlu1 %5319, %v5739_v2  }
  0x9f   : > { %v5928_v13 = vpop.permute.xlu1 %793 }
  0xa0   : > { %5320 = vset.pattern.permute.xlu1 %v5540_v30  ;;  %11865 = vst [vmem:[#allocation14_spill] sm:$0xff] %v5928_v13 }
  0xa1   : > { %1283 = vperm.xlu1 %5320, %v5791_v27  }
  0xa4   : > { %v5930_v14 = vpop.permute.xlu1 %897 }
  0xa5   : > { %5322 = vset.pattern.permute.xlu1 %v5542_v35  ;;  %11866 = vst [vmem:[#allocation15_spill] sm:$0xff] %v5930_v14 }
  0xa6   : > { %1363 = vperm.xlu1 %5322, %v5791_v27  }
  0xa9   : > { %v5932_v15 = vpop.permute.xlu1 %949 }
  0xaa   : > { %5335 = vset.pattern.permute.xlu1 %v5557_v11  ;;  %11867 = vst [vmem:[#allocation16_spill] sm:$0xff] %v5932_v15 }
  0xae   : > { %v5934_v16 = vpop.permute.xlu1 %1001 }
  0xaf   : > { %11868 = vst [vmem:[#allocation17_spill] sm:$0xff] %v5934_v16 }
  0xb3   : > { %v5940_v19 = vpop.permute.xlu1 %1053 }
  0xb4   : > { %11871 = vst [vmem:[#allocation20_spill] sm:$0xff] %v5940_v19 }
  0xb8   : > { %v5948_v23 = vpop.permute.xlu1 %1127 }
  0xb9   : > { %11875 = vst [vmem:[#allocation24_spill] sm:$0xff] %v5948_v23 }
  0xbd   : > { %v5962_v31 = vpop.permute.xlu1 %1207 }
  0xbe   : > { %11879 = vst [vmem:[#allocation28_spill] sm:$0xff] %v5962_v31 }
  0xc2   : > { %v5972_v41 = vpop.permute.xlu1 %1287 }
  0xc3   : > { %11883 = vst [vmem:[#allocation32_spill] sm:$0xff] %v5972_v41 }
  0xc7   : > { %v5982_v50 = vpop.permute.xlu1 %1367 }
  0xc8   : > { %11885 = vst [vmem:[#allocation34_spill] sm:$0xff] %v5982_v50  ;;  %v11323_v50 = vmov 31  }
  0xcc   : > { %v6006_v3 = vpop.permute.xlu1 %1447 }
  0xcd   : > { %11888 = vst [vmem:[#allocation37_spill] sm:$0xff] %v6006_v3 }
  0xd1   : > { %v6020_v9 = vpop.permute.xlu1 %1507 }
  0xd2   : > { %11890 = vst [vmem:[#allocation39_spill] sm:$0xff] %v6020_v9 }
  0xd6   : > { %v6026_v11 = vpop.permute.xlu1 %1559 }
  0xd7   : > { %11891 = vst [vmem:[#allocation40_spill] sm:$0xff] %v6026_v11 }
 0x12b   : > { %v5936_v17 = vpop.f32.mrf.mxu0 }
 0x12c   : > { %11869 = vst [vmem:[#allocation18_spill] sm:$0xff] %v5936_v17 }
 0x12d   : > { %v5938_v18 = vpop.f32.mrf.mxu0 }
 0x12e   : > { %11870 = vst [vmem:[#allocation19_spill] sm:$0xff] %v5938_v18 }
 0x12f   : > { %v5942_v20 = vpop.f32.mrf.mxu0 }
 0x130   : > { %11872 = vst [vmem:[#allocation21_spill] sm:$0xff] %v5942_v20 }
 0x131   : > { %v5944_v21 = vpop.f32.mrf.mxu0 }
 0x132   : > { %11873 = vst [vmem:[#allocation22_spill] sm:$0xff] %v5944_v21 }
 0x133   : > { %v5946_v22 = vpop.f32.mrf.mxu0 }
 0x134   : > { %11874 = vst [vmem:[#allocation23_spill] sm:$0xff] %v5946_v22  ;;  %v4463_v24 = vmax.f32 %v5936_v17, %v5946_v22 }
 0x135   : > { %v5952_v25 = vpop.f32.mrf.mxu0 }
 0x136   : > { %11876 = vst [vmem:[#allocation25_spill] sm:$0xff] %v5952_v25  ;;  %v4472_v26 = vmax.f32 %v5938_v18, %v5952_v25 }
 0x137   : > { %v5956_v28 = vpop.f32.mrf.mxu0 }
 0x138   : > { %11877 = vst [vmem:[#allocation26_spill] sm:$0xff] %v5956_v28  ;;  %v4464_v29 = vmax.f32 %v5942_v20, %v5956_v28 }
 0x139   : > { %v5960_v30 = vpop.f32.mrf.mxu0 }
 0x13a   : > { %11878 = vst [vmem:[#allocation27_spill] sm:$0xff] %v5960_v30  ;;  %v4465_v32 = vmax.f32 %v4463_v24, %v4464_v29  ;;  %v4473_v33 = vmax.f32 %v5944_v21, %v5960_v30  ;;  %v6038_v24 = vpop.permute.xlu1 %1631 }
 0x13b   : > { %v5966_v34 = vpop.f32.mrf.mxu0  ;;  %11892 = vst [vmem:[#allocation41_spill] sm:$0xff] %v6038_v24 }
 0x13c   : > { %11880 = vst [vmem:[#allocation29_spill] sm:$0xff] %v5966_v34  ;;  %v4466_v35 = vrot.slane %v4465_v32, 4  ;;  %v4474_v36 = vmax.f32 %v4472_v26, %v4473_v33 }
 0x13d   : > { %v5968_v37 = vpop.f32.mrf.mxu0 }
 0x13e   : > { %11881 = vst [vmem:[#allocation30_spill] sm:$0xff] %v5968_v37  ;;  %v4467_v38 = vmax.f32 %v4465_v32, %v4466_v35  ;;  %v4475_v39 = vrot.slane %v4474_v36, 4  ;;  %v6044_v26 = vpop.permute.xlu1 %1733 }
 0x13f   : > { %v5970_v40 = vpop.f32.mrf.mxu0  ;;  %11893 = vst [vmem:[#allocation42_spill] sm:$0xff] %v6044_v26 }
 0x140   : > { %11882 = vst [vmem:[#allocation31_spill] sm:$0xff] %v5970_v40  ;;  %v4468_v42 = vrot.slane %v4467_v38, 2  ;;  %v4476_v43 = vmax.f32 %v4474_v36, %v4475_v39  ;;  %v6094_v39 = vpop.permute.xlu0 %689 }
 0x141   : > { %v5974_v44 = vpop.f32.mrf.mxu0  ;;  %11899 = vst [vmem:[#allocation48_spill] sm:$0xff] %v6094_v39 }
 0x142   : > { %11884 = vst [vmem:[#allocation33_spill] sm:$0xff] %v5974_v44  ;;  %v4469_v45 = vmax.f32 %v4467_v38, %v4468_v42  ;;  %v4477_v46 = vrot.slane %v4476_v43, 2  ;;  %v6056_v32 = vpop.permute.xlu1 %1841 }
 0x143   : > { %v5976_v47 = vpop.f32.mrf.mxu0  ;;  %11894 = vst [vmem:[#allocation43_spill] sm:$0xff] %v6056_v32 }
 0x144   : > { %v4470_v48 = vrot.slane %v4469_v45, 1  ;;  %v4478_v49 = vmax.f32 %v4476_v43, %v4477_v46  ;;  %1306 = vrot.lane.b32.xlu0 %v5976_v47, %s11147_s14  ;;  %1064 = vrot.lane.b32.xlu1 %v5976_v47, %s11219_s16  ;;  %v6104_v43 = vpop.permute.xlu0 %741 }
 0x145   : > { %v6014_v6 = vpop.f32.mrf.mxu0  ;;  %11901 = vst [vmem:[#allocation50_spill] sm:$0xff] %v6104_v43 }
 0x146   : > { %v5984_v51 = vmax.f32 %v4469_v45, %v4470_v48  ;;  %v4479_v53 = vrot.slane %v4478_v49, 1  ;;  %11889 = vst [vmem:[#allocation38_spill] sm:$0xff] %v6014_v6  ;;  %v6062_v33 = vpop.permute.xlu1 %1949 }
 0x147   : > { %v6032_v12 = vpop.f32.mrf.mxu0  ;;  %11895 = vst [vmem:[#allocation44_spill] sm:$0xff] %v6062_v33 }
 0x148   : > { %11886 = vst [vmem:[#allocation35_spill] sm:$0xff] %v5984_v51  ;;  %1386 = vrot.lane.b32.xlu0 %v5976_v47, %s11135_s17  ;;  %v5996_v61 = vmax.f32 %v4478_v49, %v4479_v53  ;;  %1146 = vrot.lane.b32.xlu1 %v5976_v47, %s11213_s21  ;;  %v6114_v46 = vpop.permute.xlu0 %845 }
 0x149   : > { %v6050_v29 = vpop.f32.mrf.mxu0  ;;  %11903 = vst [vmem:[#allocation52_spill] sm:$0xff] %v6114_v46 }
 0x14a   : > { %11887 = vst [vmem:[#allocation36_spill] sm:$0xff] %v5996_v61  ;;  %v6072_v35 = vpop.permute.xlu1 %2037 }
 0x14b   : > { %11896 = vst [vmem:[#allocation45_spill] sm:$0xff] %v6072_v35  ;;  %v6162_v57 = vpop.f32.mrf.mxu0 }
 0x14c   : > { %1570 = vrot.lane.b32.xlu0 %v5976_v47, %s11141_s22  ;;  %1226 = vrot.lane.b32.xlu1 %v5976_v47, %s11209_s23  ;;  %v6126_v53 = vpop.permute.xlu0 %1123  ;;  %11913 = vst [vmem:[#allocation62_spill] sm:$0xff] %v6162_v57 }
 0x14d   : > { %11906 = vst [vmem:[#allocation55_spill] sm:$0xff] %v6126_v53  ;;  %v6172_v5 = vpop.f32.mrf.mxu0 }
 0x14e   : > { %v6078_v36 = vpop.permute.xlu1 %2097  ;;  %11916 = vst [vmem:[#allocation65_spill] sm:$0xff] %v6172_v5 }
 0x14f   : > { %11897 = vst [vmem:[#allocation46_spill] sm:$0xff] %v6078_v36  ;;  %v6182_v52 = vpop.f32.mrf.mxu0 }
 0x150   : > { %1068 = vrot.lane.b32.xlu0 %v6014_v6, %s11219_s16  ;;  %1310 = vrot.lane.b32.xlu1 %v6014_v6, %s11147_s14  ;;  %v6136_v62 = vpop.permute.xlu0 %2613  ;;  %11919 = vst [vmem:[#allocation68_spill] sm:$0xff] %v6182_v52 }
 0x151   : > { %11908 = vst [vmem:[#allocation57_spill] sm:$0xff] %v6136_v62  ;;  %v6190_v8 = vpop.f32.mrf.mxu0 }
 0x152   : > { %v6088_v38 = vpop.permute.xlu1 %2149  ;;  %11921 = vst [vmem:[#allocation70_spill] sm:$0xff] %v6190_v8 }
 0x153   : > { %11898 = vst [vmem:[#allocation47_spill] sm:$0xff] %v6088_v38  ;;  %v6200_v17 = vpop.f32.mrf.mxu0 }
 0x154   : > { %1150 = vrot.lane.b32.xlu0 %v6014_v6, %s11213_s21  ;;  %1390 = vrot.lane.b32.xlu1 %v6014_v6, %s11135_s17  ;;  %v6146_v58 = vpop.permute.xlu0 %2665 }
 0x155   : > { %11910 = vst [vmem:[#allocation59_spill] sm:$0xff] %v6146_v58  ;;  %v6210_v22 = vpop.f32.mrf.mxu0 }
 0x156   : > { %v6096_v42 = vpop.permute.xlu1 %2221  ;;  %11926 = vst [vmem:[#allocation75_spill] sm:$0xff] %v6210_v22 }
 0x157   : > { %11900 = vst [vmem:[#allocation49_spill] sm:$0xff] %v6096_v42  ;;  %v6220_v51 = vpop.f32.mrf.mxu0  ;;  %v11940_v42 = vmov 19  }
 0x158   : > { %1230 = vrot.lane.b32.xlu0 %v6014_v6, %s11209_s23  ;;  %1574 = vrot.lane.b32.xlu1 %v6014_v6, %s11141_s22  ;;  %v6156_v60 = vpop.permute.xlu0 %1443 }
 0x159   : > { %11912 = vst [vmem:[#allocation61_spill] sm:$0xff] %v6156_v60  ;;  %v6230_v30 = vpop.f32.mrf.mxu0 }
 0x15a   : > { %v6108_v45 = vpop.permute.xlu1 %2321  ;;  %11934 = vst [vmem:[#allocation80_spill] sm:$0xff] %v6230_v30 }
 0x15b   : > { %11902 = vst [vmem:[#allocation51_spill] sm:$0xff] %v6108_v45 }
 0x15c   : > { %752 = vrot.lane.b32.xlu0 %v6032_v12, %s11121_s24  ;;  %645 = vrot.lane.b32.xlu1 %v6032_v12, %s11125_s25  ;;  %s11143_s24 = smov 47   ;;  %s11131_s25 = smov 45   ;;  %v6168_v7 = vpop.permute.xlu0 %1627 }
 0x15d   : > { %11915 = vst [vmem:[#allocation64_spill] sm:$0xff] %v6168_v7 }
 0x15e   : > { %v6116_v48 = vpop.permute.xlu1 %2357 }
 0x15f   : > { %11904 = vst [vmem:[#allocation53_spill] sm:$0xff] %v6116_v48 }
 0x160   : > { %2388 = vrot.lane.b32.xlu0 %v6032_v12, %s11123_s26  ;;  %700 = vrot.lane.b32.xlu1 %v6032_v12, %s11127_s27  ;;  %s11133_s26 = smov 46  }
 0x162   : > { %v6124_v49 = vpop.permute.xlu1 %2465 }
 0x163   : > { %11905 = vst [vmem:[#allocation54_spill] sm:$0xff] %v6124_v49  ;;  %v11195_v49 = vmov 32  }
 0x164   : > { %2494 = vrot.lane.b32.xlu0 %v6032_v12, %s11178_s28  ;;  %804 = vrot.lane.b32.xlu1 %v6032_v12, %s11180_s29 }
 0x166   : > { %v6134_v55 = vpop.permute.xlu1 %1203 }
 0x167   : > { %11907 = vst [vmem:[#allocation56_spill] sm:$0xff] %v6134_v55 }
 0x168   : > { %702 = vrot.lane.b32.xlu0 %v6050_v29, %s11127_s27  ;;  %856 = vrot.lane.b32.xlu1 %v6032_v12, %s11143_s24  ;;  %s11129_s27 = smov 35  }
 0x16a   : > { %v6144_v63 = vpop.permute.xlu1 %2553 }
 0x16b   : > { %11909 = vst [vmem:[#allocation58_spill] sm:$0xff] %v6144_v63 }
 0x16c   : > { %806 = vrot.lane.b32.xlu0 %v6050_v29, %s11180_s29  ;;  %908 = vrot.lane.b32.xlu1 %v6032_v12, %s11133_s26  ;;  %s11932_s29 = smov 49  }
 0x16e   : > { %v6154_v0 = vpop.permute.xlu1 %1283 }
 0x16f   : > { %11911 = vst [vmem:[#allocation60_spill] sm:$0xff] %v6154_v0 }
 0x170   : > { %858 = vrot.lane.b32.xlu0 %v6050_v29, %s11143_s24  ;;  %960 = vrot.lane.b32.xlu1 %v6032_v12, %s11131_s25  ;;  %s11162_s24 = smov 3  }
 0x172   : > { %v6166_v4 = vpop.permute.xlu1 %1363 }
 0x173   : > { %11914 = vst [vmem:[#allocation63_spill] sm:$0xff] %v6166_v4 }
 0x174   : > { %910 = vrot.lane.b32.xlu0 %v6050_v29, %s11133_s26  ;;  %1012 = vrot.lane.b32.xlu1 %v6032_v12, %s11129_s27  ;;  %s11189_s26 = smov 17  }
 0x178   : > { %962 = vrot.lane.b32.xlu0 %v6050_v29, %s11131_s25  ;;  %1066 = vrot.lane.b32.xlu1 %v6032_v12, %s11219_s16  ;;  %s11137_s25 = smov 19  }
 0x17c   : > { %1014 = vrot.lane.b32.xlu0 %v6050_v29, %s11129_s27  ;;  %1148 = vrot.lane.b32.xlu1 %v6032_v12, %s11213_s21  ;;  %s11139_s27 = smov 29  }
 0x180   : > { %1070 = vrot.lane.b32.xlu0 %v6050_v29, %s11219_s16  ;;  %1228 = vrot.lane.b32.xlu1 %v6032_v12, %s11209_s23 }
 0x184   : > { %1152 = vrot.lane.b32.xlu0 %v6050_v29, %s11213_s21  ;;  %1308 = vrot.lane.b32.xlu1 %v6032_v12, %s11147_s14 }
 0x188   : > { %1232 = vrot.lane.b32.xlu0 %v6050_v29, %s11209_s23  ;;  %1388 = vrot.lane.b32.xlu1 %v6032_v12, %s11135_s17 }
 0x18c   : > { %1312 = vrot.lane.b32.xlu0 %v6050_v29, %s11147_s14  ;;  %1466 = vrot.lane.b32.xlu1 %v6032_v12, %s11139_s27  ;;  %s11167_s14 = smov 2  }
 0x190   : > { %1392 = vrot.lane.b32.xlu0 %v6050_v29, %s11135_s17  ;;  %1518 = vrot.lane.b32.xlu1 %v6032_v12, %s11137_s25  ;;  %s11198_s17 = smov 16  }
 0x194   : > { %1468 = vrot.lane.b32.xlu0 %v6050_v29, %s11139_s27  ;;  %1572 = vrot.lane.b32.xlu1 %v6032_v12, %s11141_s22  ;;  %s11150_s27 = smov 14  }
 0x198   : > { %1520 = vrot.lane.b32.xlu0 %v6050_v29, %s11137_s25  ;;  %1654 = vrot.lane.b32.xlu1 %v6032_v12, %s11189_s26  ;;  %s11207_s25 = smov 15  }
 0x19c   : > { %1576 = vrot.lane.b32.xlu0 %v6050_v29, %s11141_s22  ;;  %1764 = vrot.lane.b32.xlu1 %v6032_v12, %s11198_s17  ;;  %s11155_s22 = smov 13  }
 0x1a0   : > { %1660 = vrot.lane.b32.xlu0 %v6050_v29, %s11189_s26  ;;  %1872 = vrot.lane.b32.xlu1 %v6032_v12, %s11207_s25 }
 0x1a4   : > { %1770 = vrot.lane.b32.xlu0 %v6050_v29, %s11198_s17  ;;  %1978 = vrot.lane.b32.xlu1 %v6032_v12, %s11150_s27 }
 0x1a8   : > { %1878 = vrot.lane.b32.xlu0 %v6050_v29, %s11207_s25  ;;  %2056 = vrot.lane.b32.xlu1 %v6032_v12, %s11155_s22 }
 0x1ac   : > { %1982 = vrot.lane.b32.xlu0 %v6050_v29, %s11150_s27  ;;  %2108 = vrot.lane.b32.xlu1 %v6032_v12, %s11162_s24  ;;  %s11172_s27 = smov 1  }
 0x1b0   : > { %2058 = vrot.lane.b32.xlu0 %v6050_v29, %s11155_s22  ;;  %2162 = vrot.lane.b32.xlu1 %v6032_v12, %s11167_s14  ;;  %s11221_s22 = smov 125  }
 0x1b4   : > { %2110 = vrot.lane.b32.xlu0 %v6050_v29, %s11162_s24  ;;  %2244 = vrot.lane.b32.xlu1 %v6032_v12, %s11172_s27  ;;  %s11215_s24 = smov 115  }
 0x1b6   : > { %v6178_v56 = vpop.permute.xlu0 %1306  ;;  %v6180_v54 = vpop.permute.xlu1 %1064 }
 0x1b7   : > { %11917 = vst [vmem:[#allocation66_spill] sm:$0xff] %v6178_v56  ;;  %11918 = vst [vmem:[#allocation67_spill] sm:$0xff] %v6180_v54 }
 0x1b8   : > { %2166 = vrot.lane.b32.xlu0 %v6050_v29, %s11167_s14  ;;  %2572 = vrot.lane.b32.xlu1 %v6032_v12, %s11221_s22  ;;  %s11203_s14 = smov 114  }
 0x1ba   : > { %v6188_v10 = vpop.permute.xlu0 %1386  ;;  %v6192_v1 = vpop.permute.xlu1 %1146 }
 0x1bb   : > { %11920 = vst [vmem:[#allocation69_spill] sm:$0xff] %v6188_v10  ;;  %11922 = vst [vmem:[#allocation71_spill] sm:$0xff] %v6192_v1 }
 0x1bc   : > { %2250 = vrot.lane.b32.xlu0 %v6050_v29, %s11172_s27  ;;  %2624 = vrot.lane.b32.xlu1 %v6032_v12, %s11215_s24  ;;  %s11928_s27 = smov 51  }
 0x1be   : > { %v6198_v59 = vpop.permute.xlu0 %1570  ;;  %v6202_v18 = vpop.permute.xlu1 %1226 }
 0x1bf   : > { %11923 = vst [vmem:[#allocation72_spill] sm:$0xff] %v6198_v59  ;;  %11924 = vst [vmem:[#allocation73_spill] sm:$0xff] %v6202_v18 }
 0x1c0   : > { %2498 = vrot.lane.b32.xlu0 %v6050_v29, %s11178_s28  ;;  %2678 = vrot.lane.b32.xlu1 %v6032_v12, %s11203_s14  ;;  %s11931_s28 = smov 127  }
 0x1c2   : > { %v6208_v21 = vpop.permute.xlu0 %1068  ;;  %v6212_v25 = vpop.permute.xlu1 %1310 }
 0x1c3   : > { %11925 = vst [vmem:[#allocation74_spill] sm:$0xff] %v6208_v21  ;;  %11927 = vst [vmem:[#allocation76_spill] sm:$0xff] %v6212_v25 }
 0x1c4   : > { %2574 = vrot.lane.b32.xlu0 %v6050_v29, %s11221_s22  ;;  %647 = vrot.lane.b32.xlu1 %v6050_v29, %s11928_s27  ;;  %s11954_s22 = smov 35  }
 0x1c6   : > { %v6218_v28 = vpop.permute.xlu0 %1150  ;;  %v6222_v20 = vpop.permute.xlu1 %1390 }
 0x1c7   : > { %11929 = vst [vmem:[#allocation77_spill] sm:$0xff] %v6218_v28  ;;  %11930 = vst [vmem:[#allocation78_spill] sm:$0xff] %v6222_v20 }
 0x1c8   : > { %2400 = vrot.lane.b32.xlu0 %v6220_v51, %s11931_s28  ;;  %754 = vrot.lane.b32.xlu1 %v6050_v29, %s11932_s29 }
 0x1ca   : > { %v6228_v61 = vpop.permute.xlu0 %1230  ;;  %v6232_v57 = vpop.permute.xlu1 %1574 }
 0x1cb   : > { %11933 = vst [vmem:[#allocation79_spill] sm:$0xff] %v6228_v61  ;;  %11935 = vst [vmem:[#allocation81_spill] sm:$0xff] %v6232_v57 }
 0x1cc   : > { %651 = vrot.lane.b32.xlu0 %v6230_v30, %s11928_s27  ;;  %2394 = vrot.lane.b32.xlu1 %v6050_v29, %s11931_s28  ;;  %s5625_s27 = smov 77  }
 0x1ce   : > { %v6238_v5 = vpop.permute.xlu0 %752  ;;  %v6240_v34 = vpop.permute.xlu1 %645 }
 0x1d0   : > { %1652 = vrot.lane.b32.xlu0 %v5976_v47, %s11189_s26  ;;  %2626 = vrot.lane.b32.xlu1 %v6050_v29, %s11215_s24  ;;  %s11201_s26 = smov 113   ;;  %s11951_s24 = smov 45  }
 0x1d2   : > { %v6246_v37 = vpop.permute.xlu0 %2388  ;;  %v6248_v58 = vpop.permute.xlu1 %700 }
 0x1d3   : > { %11936 = vst [vmem:[#allocation82_spill] sm:$0xff] %v6246_v37 }
 0x1d4   : > { %1837 = vperm.xlu0 %5326, %v5791_v27   ;;  %2682 = vrot.lane.b32.xlu1 %v6050_v29, %s11203_s14  ;;  %s11945_s14 = smov 47  }
 0x1d6   : > { %v6253_v62 = vpop.permute.xlu0 %2494  ;;  %v6255_v63 = vpop.permute.xlu1 %804 }
 0x1d7   : > { %11937 = vst [vmem:[#allocation83_spill] sm:$0xff] %v6253_v62 }
 0x1d8   : > { %5327 = vset.pattern.permute.xlu0 %v11195_v49  ;;  %2766 = vrot.lane.b32.xlu1 %v6050_v29, %s11201_s26  ;;  %s11944_s26 = smov 31  }
 0x1d9   : > { %3053 = vperm.xlu0 %5327, %v5739_v2  }
 0x1da   : > { %v6261_v37 = vpop.permute.xlu0 %702  ;;  %v6263_v45 = vpop.permute.xlu1 %856 }
 0x1db   : > { %11938 = vst [vmem:[#allocation84_spill] sm:$0xff] %v6261_v37 }
 0x1dc   : > { %1076 = vrot.lane.b32.xlu1 %v6210_v22, %s11219_s16  ;;  %s11953_s16 = smov 126  }
 0x1dd   : > { %1762 = vrot.lane.b32.xlu0 %v5976_v47, %s11198_s17  ;;  %s11942_s17 = smov 48  }
 0x1de   : > { %v6269_v62 = vpop.permute.xlu0 %806  ;;  %5328 = vset.pattern.permute.xlu0 %v11940_v42  ;;  %v6272_v49 = vpop.permute.xlu1 %908 }
 0x1df   : > { %11939 = vst [vmem:[#allocation85_spill] sm:$0xff] %v6269_v62 }
 0x1e0   : > { %1158 = vrot.lane.b32.xlu1 %v6210_v22, %s11213_s21  ;;  %s11950_s21 = smov 18  }
 0x1e1   : > { %1870 = vrot.lane.b32.xlu0 %v5976_v47, %s11207_s25  ;;  %s11947_s25 = smov 30  }
 0x1e2   : > { %v6278_v2 = vpop.permute.xlu0 %858  ;;  %v6280_v38 = vpop.permute.xlu1 %960 }
 0x1e3   : > { %11941 = vst [vmem:[#allocation86_spill] sm:$0xff] %v6278_v2 }
 0x1e4   : > { %1238 = vrot.lane.b32.xlu1 %v6210_v22, %s11209_s23  ;;  %s11948_s23 = smov 46  }
 0x1e5   : > { %810 = vrot.lane.b32.xlu0 %v6230_v30, %s11942_s17 }
 0x1e6   : > { %v6286_v7 = vpop.permute.xlu0 %910  ;;  %v6288_v42 = vpop.permute.xlu1 %1012 }
 0x1e7   : > { %11943 = vst [vmem:[#allocation87_spill] sm:$0xff] %v6286_v7 }
 0x1e8   : > { %1318 = vrot.lane.b32.xlu1 %v6210_v22, %s11944_s26 }
 0x1e9   : > { %862 = vrot.lane.b32.xlu0 %v6230_v30, %s11945_s14  ;;  %s11410_s14 = smov 80  }
 0x1ea   : > { %v6294_v36 = vpop.permute.xlu0 %962  ;;  %v6296_v60 = vpop.permute.xlu1 %1066 }
 0x1eb   : > { %11946 = vst [vmem:[#allocation88_spill] sm:$0xff] %v6294_v36 }
 0x1ec   : > { %1398 = vrot.lane.b32.xlu1 %v6210_v22, %s11947_s25 }
 0x1ed   : > { %914 = vrot.lane.b32.xlu0 %v6230_v30, %s11948_s23 }
 0x1ee   : > { %v6302_v35 = vpop.permute.xlu0 %1014  ;;  %v6304_v59 = vpop.permute.xlu1 %1148 }
 0x1ef   : > { %11949 = vst [vmem:[#allocation89_spill] sm:$0xff] %v6302_v35 }
 0x1f0   : > { %1582 = vrot.lane.b32.xlu1 %v6210_v22, %s11950_s21 }
 0x1f1   : > { %966 = vrot.lane.b32.xlu0 %v6230_v30, %s11951_s24  ;;  %s11352_s24 = smov 97  }
 0x1f2   : > { %v6310_v57 = vpop.permute.xlu0 %1070  ;;  %v6312_v4 = vpop.permute.xlu1 %1228 }
 0x1f3   : > { %11952 = vst [vmem:[#allocation90_spill] sm:$0xff] %v6310_v57 }
 0x1f4   : > { %2502 = vrot.lane.b32.xlu1 %v6220_v51, %s11953_s16 }
 0x1f5   : > { %1018 = vrot.lane.b32.xlu0 %v6230_v30, %s11954_s22 }
 0x1f6   : > { %v6318_v33 = vpop.permute.xlu0 %1152  ;;  %v6320_v10 = vpop.permute.xlu1 %1308 }
 0x1f7   : > { %11955 = vst [vmem:[#allocation91_spill] sm:$0xff] %v6318_v33  ;;  %11956 = vst [vmem:[#allocation92_spill] sm:$0xff] %v6320_v10  ;;  %v12154_v10 = vmov 0  }
 0x1f8   : > { %2576 = vrot.lane.b32.xlu1 %v6220_v51, %s11957_s0 }
 0x1f9   : > { %1078 = vrot.lane.b32.xlu0 %v6230_v30, %s11958_s1 }
 0x1fa   : > { %v6326_v20 = vpop.permute.xlu0 %1232  ;;  %v6328_v32 = vpop.permute.xlu1 %1388 }
 0x1fb   : > { %11959 = vst [vmem:[#allocation93_spill] sm:$0xff] %v6326_v20  ;;  %11960 = vst [vmem:[#allocation94_spill] sm:$0xff] %v6328_v32 }
 0x1fc   : > { %2628 = vrot.lane.b32.xlu1 %v6220_v51, %s11961_s18 }
 0x1fd   : > { %1160 = vrot.lane.b32.xlu0 %v6230_v30, %s11962_s11 }
 0x1fe   : > { %v6334_v0 = vpop.permute.xlu0 %1312  ;;  %v6336_v53 = vpop.permute.xlu1 %1466 }
 0x1ff   : > { %11963 = vst [vmem:[#allocation95_spill] sm:$0xff] %v6334_v0  ;;  %11964 = vst [vmem:[#allocation96_spill] sm:$0xff] %v6336_v53  ;;  %v5599_v53 = vmov 41  }
 0x200   : > { %2686 = vrot.lane.b32.xlu1 %v6220_v51, %s11965_s15 }
 0x201   : > { %1240 = vrot.lane.b32.xlu0 %v6230_v30, %s11966_s20  ;;  %s11304_s20 = smov 109  }
 0x202   : > { %v6342_v56 = vpop.permute.xlu0 %1392  ;;  %v6344_v25 = vpop.permute.xlu1 %1518 }
 0x203   : > { %11967 = vst [vmem:[#allocation97_spill] sm:$0xff] %v6342_v56  ;;  %11968 = vst [vmem:[#allocation98_spill] sm:$0xff] %v6344_v25  ;;  %v5613_v56 = vmov 37  }
 0x204   : > { %2772 = vrot.lane.b32.xlu1 %v6220_v51, %s11969_s30 }
 0x205   : > { %1320 = vrot.lane.b32.xlu0 %v6230_v30, %s11944_s26 }
 0x206   : > { %v6350_v55 = vpop.permute.xlu0 %1468  ;;  %v6352_v26 = vpop.permute.xlu1 %1572 }
 0x207   : > { %11970 = vst [vmem:[#allocation99_spill] sm:$0xff] %v6350_v55  ;;  %11971 = vst [vmem:[#allocation100_spill] sm:$0xff] %v6352_v26 }
 0x208   : > { %706 = vrot.lane.b32.xlu1 %v6230_v30, %s11972_s12 }
 0x209   : > { %1400 = vrot.lane.b32.xlu0 %v6230_v30, %s11947_s25  ;;  %s11332_s25 = smov 99  }
 0x20a   : > { %v6358_v18 = vpop.permute.xlu0 %1520  ;;  %v6360_v61 = vpop.permute.xlu1 %1654 }
 0x20b   : > { %11973 = vst [vmem:[#allocation101_spill] sm:$0xff] %v6358_v18  ;;  %11974 = vst [vmem:[#allocation102_spill] sm:$0xff] %v6360_v61  ;;  %v6562_v18 = vld [vmem:[%s11115_s4 + $0x8] sm:$0xff] }
 0x20c   : > { %758 = vrot.lane.b32.xlu1 %v6230_v30, %s11932_s29  ;;  %s11440_s29 = smov 78  }
 0x20d   : > { %1472 = vrot.lane.b32.xlu0 %v6230_v30, %s11975_s9 }
 0x20e   : > { %v6366_v24 = vpop.permute.xlu0 %1576  ;;  %v6368_v54 = vpop.permute.xlu1 %1764 }
 0x20f   : > { %11976 = vst [vmem:[#allocation103_spill] sm:$0xff] %v6366_v24  ;;  %11977 = vst [vmem:[#allocation104_spill] sm:$0xff] %v6368_v54 }
 0x210   : > { %2760 = vrot.lane.b32.xlu1 %v6032_v12, %s11969_s30 }
 0x211   : > { %1524 = vrot.lane.b32.xlu0 %v6230_v30, %s11978_s19  ;;  %s12001_s19 = smov 2  }
 0x212   : > { %v6374_v21 = vpop.permute.xlu0 %1660  ;;  %v6376_v1 = vpop.permute.xlu1 %1872 }
 0x213   : > { %11979 = vst [vmem:[#allocation105_spill] sm:$0xff] %v6374_v21  ;;  %11980 = vst [vmem:[#allocation106_spill] sm:$0xff] %v6376_v1 }
 0x214   : > { %1658 = vrot.lane.b32.xlu1 %v6014_v6, %s11981_s13 }
 0x215   : > { %1584 = vrot.lane.b32.xlu0 %v6230_v30, %s11950_s21 }
 0x216   : > { %v6382_v28 = vpop.permute.xlu0 %1770  ;;  %v6384_v48 = vpop.permute.xlu1 %1978 }
 0x217   : > { %11982 = vst [vmem:[#allocation107_spill] sm:$0xff] %v6382_v28  ;;  %11983 = vst [vmem:[#allocation108_spill] sm:$0xff] %v6384_v48 }
 0x218   : > { %2874 = vrot.lane.b32.xlu1 %v6050_v29, %s11268_s7 }
 0x219   : > { %1672 = vrot.lane.b32.xlu0 %v6230_v30, %s11981_s13 }
 0x21a   : > { %v6390_v54 = vpop.permute.xlu0 %1878  ;;  %v6392_v1 = vpop.permute.xlu1 %2056 }
 0x21b   : > { %11984 = vst [vmem:[#allocation109_spill] sm:$0xff] %v6390_v54  ;;  %11985 = vst [vmem:[#allocation110_spill] sm:$0xff] %v6392_v1 }
 0x21c   : > { %2880 = vrot.lane.b32.xlu1 %v6220_v51, %s11268_s7 }
 0x21d   : > { %1782 = vrot.lane.b32.xlu0 %v6230_v30, %s11986_s10 }
 0x21e   : > { %v6398_v28 = vpop.permute.xlu0 %1982  ;;  %v6400_v48 = vpop.permute.xlu1 %2108 }
 0x21f   : > { %11987 = vst [vmem:[#allocation111_spill] sm:$0xff] %v6398_v28  ;;  %11988 = vst [vmem:[#allocation112_spill] sm:$0xff] %v6400_v48 }
 0x220   : > { %1670 = vrot.lane.b32.xlu1 %v6210_v22, %s11981_s13 }
 0x221   : > { %1890 = vrot.lane.b32.xlu0 %v6230_v30, %s11989_s6 }
 0x222   : > { %v6406_v61 = vpop.permute.xlu0 %2058  ;;  %v6408_v54 = vpop.permute.xlu1 %2162 }
 0x223   : > { %11990 = vst [vmem:[#allocation113_spill] sm:$0xff] %v6406_v61  ;;  %11991 = vst [vmem:[#allocation114_spill] sm:$0xff] %v6408_v54 }
 0x224   : > { %2868 = vrot.lane.b32.xlu1 %v6032_v12, %s11268_s7  ;;  %s11998_s7 = smov 3  }
 0x225   : > { %1990 = vrot.lane.b32.xlu0 %v6230_v30, %s11992_s8 }
 0x226   : > { %v6414_v1 = vpop.permute.xlu0 %2110  ;;  %v6416_v28 = vpop.permute.xlu1 %2244 }
 0x227   : > { %11993 = vst [vmem:[#allocation115_spill] sm:$0xff] %v6414_v1  ;;  %11994 = vst [vmem:[#allocation116_spill] sm:$0xff] %v6416_v28 }
 0x228   : > { %1768 = vrot.lane.b32.xlu1 %v6014_v6, %s11986_s10 }
 0x229   : > { %2062 = vrot.lane.b32.xlu0 %v6230_v30, %s11995_s2  ;;  %s12004_s2 = smov 1  }
 0x22a   : > { %v6422_v48 = vpop.permute.xlu0 %2166  ;;  %v6424_v61 = vpop.permute.xlu1 %2572 }
 0x22b   : > { %11996 = vst [vmem:[#allocation117_spill] sm:$0xff] %v6422_v48  ;;  %11997 = vst [vmem:[#allocation118_spill] sm:$0xff] %v6424_v61 }
 0x22c   : > { %2982 = vrot.lane.b32.xlu1 %v6050_v29, %s11283_s3 }
 0x22d   : > { %2114 = vrot.lane.b32.xlu0 %v6230_v30, %s11998_s7 }
 0x22e   : > { %v6430_v54 = vpop.permute.xlu0 %2250  ;;  %v6432_v28 = vpop.permute.xlu1 %2624 }
 0x22f   : > { %11999 = vst [vmem:[#allocation119_spill] sm:$0xff] %v6430_v54  ;;  %12000 = vst [vmem:[#allocation120_spill] sm:$0xff] %v6432_v28 }
 0x230   : > { %2988 = vrot.lane.b32.xlu1 %v6220_v51, %s11283_s3 }
 0x231   : > { %2174 = vrot.lane.b32.xlu0 %v6230_v30, %s12001_s19 }
 0x232   : > { %v6438_v48 = vpop.permute.xlu1 %2678  ;;  %v6440_v61 = vpop.permute.xlu0 %2498 }
 0x233   : > { %12002 = vst [vmem:[#allocation121_spill] sm:$0xff] %v6438_v48  ;;  %12003 = vst [vmem:[#allocation122_spill] sm:$0xff] %v6440_v61  ;;  %v5592_v48 = vmov 34   ;;  %v6460_v61 = vld [vmem:[%s11115_s4 + $0x10] sm:$0xff] }
 0x234   : > { %1780 = vrot.lane.b32.xlu1 %v6210_v22, %s11986_s10 }
 0x235   : > { %2262 = vrot.lane.b32.xlu0 %v6230_v30, %s12004_s2 }
 0x236   : > { %v6446_v1 = vpop.permute.xlu1 %647  ;;  %v6448_v54 = vpop.permute.xlu0 %2574 }
 0x237   : > { %12005 = vst [vmem:[#allocation123_spill] sm:$0xff] %v6446_v1  ;;  %12006 = vst [vmem:[#allocation124_spill] sm:$0xff] %v6448_v54 }
 0x238   : > { %2976 = vrot.lane.b32.xlu1 %v6032_v12, %s11283_s3  ;;  %s11309_s3 = smov 110  }
 0x239   : > { %2033 = vperm.xlu0 %5328, %v5791_v27  }
 0x23a   : > { %v6453_v28 = vpop.permute.xlu1 %754  ;;  %v6463_v54 = vpop.permute.xlu0 %2400 }
 0x23b   : > { %12007 = vst [vmem:[#allocation125_spill] sm:$0xff] %v6453_v28  ;;  %12008 = vst [vmem:[#allocation126_spill] sm:$0xff] %v6463_v54 }
 0x23c   : > { %1876 = vrot.lane.b32.xlu1 %v6014_v6, %s11989_s6 }
 0x23d   : > { %5329 = vset.pattern.permute.xlu0 %v5592_v48  ;;  %v12011_v48 = vmov 22  }
 0x23e   : > { %3201 = vperm.xlu0 %5329, %v6460_v61   ;;  %v6465_v30 = vpop.permute.xlu1 %2394  ;;  %v6474_v11 = vpop.permute.xlu0 %651 }
 0x23f   : > { %12009 = vst [vmem:[#allocation127_spill] sm:$0xff] %v6465_v30  ;;  %12012 = vst [vmem:[#allocation129_spill] sm:$0xff] %v6474_v11  ;;  %v5594_v30 = vmov 35  }
 0x240   : > { %3086 = vrot.lane.b32.xlu1 %v6050_v29, %s11309_s3 }
 0x242   : > { %1976 = vrot.lane.b32.xlu0 %v5976_v47, %s11992_s8  ;;  %v6471_v21 = vpop.permute.xlu1 %2626  ;;  %v6483_v26 = vpop.permute.xlu0 %1652 }
 0x243   : > { %12010 = vst [vmem:[#allocation128_spill] sm:$0xff] %v6471_v21  ;;  %5330 = vset.pattern.permute.xlu0 %v12011_v48  ;;  %12014 = vst [vmem:[#allocation131_spill] sm:$0xff] %v6483_v26  ;;  %v12018_v21 = vmov 24  }
 0x244   : > { %3090 = vrot.lane.b32.xlu1 %v6220_v51, %s11309_s3 }
 0x246   : > { %2217 = vperm.xlu0 %5330, %v5791_v27   ;;  %v6479_v54 = vpop.permute.xlu1 %2682 }
 0x247   : > { %12013 = vst [vmem:[#allocation130_spill] sm:$0xff] %v6479_v54 }
 0x248   : > { %1888 = vrot.lane.b32.xlu1 %v6210_v22, %s11989_s6 }
 0x24a   : > { %5331 = vset.pattern.permute.xlu0 %v5594_v30  ;;  %v6485_v24 = vpop.permute.xlu1 %2766 }
 0x24b   : > { %12015 = vst [vmem:[#allocation132_spill] sm:$0xff] %v6485_v24  ;;  %3253 = vperm.xlu0 %5331, %v6460_v61  }
 0x24c   : > { %3082 = vrot.lane.b32.xlu1 %v6032_v12, %s11309_s3  ;;  %s11333_s3 = smov 98  }
 0x24e   : > { %v6490_v48 = vpop.permute.xlu1 %1076 }
 0x24f   : > { %12016 = vst [vmem:[#allocation133_spill] sm:$0xff] %v6490_v48  ;;  %2160 = vrot.lane.b32.xlu0 %v5976_v47, %s12001_s19  ;;  %v6494_v54 = vpop.permute.xlu0 %1837 }
 0x250   : > { %12017 = vst [vmem:[#allocation134_spill] sm:$0xff] %v6494_v54  ;;  %5332 = vset.pattern.permute.xlu0 %v12018_v21  ;;  %1980 = vrot.lane.b32.xlu1 %v6014_v6, %s11992_s8 }
 0x252   : > { %v6499_v30 = vpop.permute.xlu1 %1158 }
 0x253   : > { %12019 = vst [vmem:[#allocation135_spill] sm:$0xff] %v6499_v30  ;;  %2242 = vrot.lane.b32.xlu0 %v5976_v47, %s12004_s2  ;;  %v12024_v30 = vmov 25  }
 0x254   : > { %v6503_v26 = vpop.permute.xlu0 %3053  ;;  %3162 = vrot.lane.b32.xlu1 %v6050_v29, %s11304_s20 }
 0x255   : > { %12020 = vst [vmem:[#allocation136_spill] sm:$0xff] %v6503_v26 }
 0x256   : > { %v6507_v24 = vpop.permute.xlu1 %1238 }
 0x257   : > { %12021 = vst [vmem:[#allocation137_spill] sm:$0xff] %v6507_v24  ;;  %2353 = vperm.xlu0 %5332, %v5791_v27   ;;  %v5596_v24 = vmov 29  }
 0x258   : > { %v6510_v54 = vpop.permute.xlu0 %1762  ;;  %3164 = vrot.lane.b32.xlu1 %v6220_v51, %s11304_s20 }
 0x259   : > { %12022 = vst [vmem:[#allocation138_spill] sm:$0xff] %v6510_v54 }
 0x25a   : > { %v6514_v48 = vpop.permute.xlu1 %1318 }
 0x25b   : > { %12023 = vst [vmem:[#allocation139_spill] sm:$0xff] %v6514_v48  ;;  %5333 = vset.pattern.permute.xlu0 %v12024_v30 }
 0x25c   : > { %2461 = vperm.xlu0 %5333, %v5791_v27   ;;  %v6518_v26 = vpop.permute.xlu0 %1870  ;;  %1988 = vrot.lane.b32.xlu1 %v6210_v22, %s11992_s8 }
 0x25d   : > { %12025 = vst [vmem:[#allocation140_spill] sm:$0xff] %v6518_v26 }
 0x25e   : > { %v6522_v9 = vpop.permute.xlu1 %1398 }
 0x25f   : > { %12026 = vst [vmem:[#allocation141_spill] sm:$0xff] %v6522_v9 }
 0x260   : > { %5334 = vset.pattern.permute.xlu0 %v5596_v24  ;;  %v6524_v25 = vpop.permute.xlu0 %810  ;;  %3160 = vrot.lane.b32.xlu1 %v6032_v12, %s11304_s20  ;;  %s11338_s20 = smov 96  }
 0x261   : > { %12027 = vst [vmem:[#allocation142_spill] sm:$0xff] %v6524_v25  ;;  %2737 = vperm.xlu0 %5334, %v6460_v61  }
 0x262   : > { %v6529_v54 = vpop.permute.xlu1 %1582 }
 0x263   : > { %12028 = vst [vmem:[#allocation143_spill] sm:$0xff] %v6529_v54 }
 0x264   : > { %v6531_v48 = vpop.permute.xlu0 %862  ;;  %2164 = vrot.lane.b32.xlu1 %v6014_v6, %s12001_s19 }
 0x265   : > { %12029 = vst [vmem:[#allocation144_spill] sm:$0xff] %v6531_v48  ;;  %2398 = vrot.lane.b32.xlu0 %v6200_v17, %s11931_s28 }
 0x266   : > { %v6537_v27 = vpop.permute.xlu1 %2502 }
 0x267   : > { %12030 = vst [vmem:[#allocation145_spill] sm:$0xff] %v6537_v27 }
 0x268   : > { %v6539_v24 = vpop.permute.xlu0 %914  ;;  %3214 = vrot.lane.b32.xlu1 %v6050_v29, %s11332_s25 }
 0x269   : > { %12031 = vst [vmem:[#allocation146_spill] sm:$0xff] %v6539_v24  ;;  %3430 = vrot.lane.b32.xlu0 %v6050_v29, %s11338_s20  ;;  %s12057_s20 = smov 112  }
 0x26a   : > { %v6545_v26 = vpop.permute.xlu1 %2576 }
 0x26b   : > { %12032 = vst [vmem:[#allocation147_spill] sm:$0xff] %v6545_v26 }
 0x26c   : > { %v6547_v54 = vpop.permute.xlu0 %966  ;;  %3216 = vrot.lane.b32.xlu1 %v6220_v51, %s11332_s25 }
 0x26d   : > { %12033 = vst [vmem:[#allocation148_spill] sm:$0xff] %v6547_v54  ;;  %2496 = vrot.lane.b32.xlu0 %v6014_v6, %s11953_s16 }
 0x26e   : > { %v6553_v9 = vpop.permute.xlu1 %2628 }
 0x26f   : > { %12034 = vst [vmem:[#allocation149_spill] sm:$0xff] %v6553_v9 }
 0x270   : > { %v6555_v27 = vpop.permute.xlu0 %1018  ;;  %2172 = vrot.lane.b32.xlu1 %v6210_v22, %s12001_s19  ;;  %s11392_s19 = smov 93  }
 0x271   : > { %12035 = vst [vmem:[#allocation150_spill] sm:$0xff] %v6555_v27  ;;  %2733 = vperm.xlu0 %5334, %v6562_v18  }
 0x272   : > { %v6565_v26 = vpop.permute.xlu1 %2686 }
 0x273   : > { %12036 = vst [vmem:[#allocation151_spill] sm:$0xff] %v6565_v26 }
 0x274   : > { %v6567_v3 = vpop.permute.xlu0 %1078  ;;  %3212 = vrot.lane.b32.xlu1 %v6032_v12, %s11332_s25  ;;  %s11365_s25 = smov 83  }
 0x275   : > { %12037 = vst [vmem:[#allocation152_spill] sm:$0xff] %v6567_v3  ;;  %2680 = vrot.lane.b32.xlu0 %v6014_v6, %s11965_s15 }
 0x276   : > { %v6573_v9 = vpop.permute.xlu1 %2772  ;;  %5336 = vset.pattern.permute.xlu0 %v5599_v53 }
 0x277   : > { %12038 = vst [vmem:[#allocation153_spill] sm:$0xff] %v6573_v9 }
 0x278   : > { %v6575_v55 = vpop.permute.xlu0 %1160  ;;  %2248 = vrot.lane.b32.xlu1 %v6014_v6, %s12004_s2 }
 0x279   : > { %12039 = vst [vmem:[#allocation154_spill] sm:$0xff] %v6575_v55  ;;  %3705 = vperm.xlu0 %5336, %v6460_v61  }
 0x27a   : > { %v6580_v26 = vpop.permute.xlu1 %706 }
 0x27b   : > { %12040 = vst [vmem:[#allocation155_spill] sm:$0xff] %v6580_v26 }
 0x27c   : > { %v6582_v3 = vpop.permute.xlu0 %1240  ;;  %3270 = vrot.lane.b32.xlu1 %v6050_v29, %s11333_s3 }
 0x27d   : > { %12041 = vst [vmem:[#allocation156_spill] sm:$0xff] %v6582_v3  ;;  %5337 = vset.pattern.permute.xlu0 %v11323_v50 }
 0x27e   : > { %v6587_v9 = vpop.permute.xlu1 %758  ;;  %2945 = vperm.xlu0 %5337, %v6460_v61  }
 0x27f   : > { %12042 = vst [vmem:[#allocation157_spill] sm:$0xff] %v6587_v9 }
 0x280   : > { %v6590_v53 = vpop.permute.xlu0 %1320  ;;  %3274 = vrot.lane.b32.xlu1 %v6220_v51, %s11333_s3 }
 0x281   : > { %12043 = vst [vmem:[#allocation158_spill] sm:$0xff] %v6590_v53 }
 0x282   : > { %v6594_v55 = vpop.permute.xlu1 %2760  ;;  %2764 = vrot.lane.b32.xlu0 %v6014_v6, %s11969_s30 }
 0x283   : > { %12044 = vst [vmem:[#allocation159_spill] sm:$0xff] %v6594_v55  ;;  %v5602_v55 = vmov 42  }
 0x284   : > { %v6598_v3 = vpop.permute.xlu0 %1400  ;;  %2260 = vrot.lane.b32.xlu1 %v6210_v22, %s12004_s2 }
 0x285   : > { %12045 = vst [vmem:[#allocation160_spill] sm:$0xff] %v6598_v3  ;;  %v12066_v3 = vmov 18  }
 0x286   : > { %v6602_v50 = vpop.permute.xlu1 %1658  ;;  %2941 = vperm.xlu0 %5337, %v6562_v18  }
 0x287   : > { %12046 = vst [vmem:[#allocation161_spill] sm:$0xff] %v6602_v50  ;;  %v12051_v50 = vmov 16  }
 0x288   : > { %v6605_v27 = vpop.permute.xlu0 %1472  ;;  %3266 = vrot.lane.b32.xlu1 %v6032_v12, %s11333_s3  ;;  %s12062_s3 = smov 96  }
 0x289   : > { %12047 = vst [vmem:[#allocation162_spill] sm:$0xff] %v6605_v27 }
 0x28a   : > { %v6609_v53 = vpop.permute.xlu1 %2874  ;;  %5338 = vset.pattern.permute.xlu0 %v5602_v55  ;;  %v6627_v55 = vld [vmem:[%s11115_s4] sm:$0xff] }
 0x28b   : > { %12048 = vst [vmem:[#allocation163_spill] sm:$0xff] %v6609_v53  ;;  %3757 = vperm.xlu0 %5338, %v6460_v61  }
 0x28c   : > { %v6612_v32 = vpop.permute.xlu0 %1524  ;;  %3350 = vrot.lane.b32.xlu1 %v6050_v29, %s11352_s24 }
 0x28d   : > { %12049 = vst [vmem:[#allocation164_spill] sm:$0xff] %v6612_v32 }
 0x28e   : > { %v6616_v22 = vpop.permute.xlu1 %2880 }
 0x28f   : > { %12050 = vst [vmem:[#allocation165_spill] sm:$0xff] %v6616_v22  ;;  %5339 = vset.pattern.permute.xlu0 %v12051_v50 }
 0x290   : > { %v6619_v27 = vpop.permute.xlu0 %1584  ;;  %3354 = vrot.lane.b32.xlu1 %v6220_v51, %s11352_s24  ;;  %1729 = vperm.xlu0 %5339, %v6562_v18  }
 0x291   : > { %12052 = vst [vmem:[#allocation166_spill] sm:$0xff] %v6619_v27  ;;  %v5604_v27 = vmov 43  }
 0x292   : > { %v6629_v53 = vpop.permute.xlu1 %1670 }
 0x293   : > { %12053 = vst [vmem:[#allocation167_spill] sm:$0xff] %v6629_v53 }
 0x294   : > { %v6631_v32 = vpop.permute.xlu0 %1672  ;;  %3346 = vrot.lane.b32.xlu1 %v6032_v12, %s11352_s24  ;;  %1725 = vperm.xlu0 %5339, %v6627_v55   ;;  %s11368_s24 = smov 95  }
 0x295   : > { %12054 = vst [vmem:[#allocation168_spill] sm:$0xff] %v6631_v32 }
 0x296   : > { %v6636_v50 = vpop.permute.xlu1 %2868 }
 0x297   : > { %12055 = vst [vmem:[#allocation169_spill] sm:$0xff] %v6636_v50 }
 0x298   : > { %v6638_v22 = vpop.permute.xlu0 %1782  ;;  %2392 = vrot.lane.b32.xlu1 %v6014_v6, %s11931_s28  ;;  %2878 = vrot.lane.b32.xlu0 %v6200_v17, %s12057_s20 }
 0x299   : > { %12056 = vst [vmem:[#allocation170_spill] sm:$0xff] %v6638_v22  ;;  %5342 = vset.pattern.permute.xlu0 %v5604_v27  ;;  %v12063_v27 = vmov 17  }
 0x29a   : > { %v6644_v53 = vpop.permute.xlu1 %1768 }
 0x29b   : > { %12058 = vst [vmem:[#allocation171_spill] sm:$0xff] %v6644_v53 }
 0x29c   : > { %v6646_v32 = vpop.permute.xlu0 %1890  ;;  %2549 = vperm.xlu1 %5335, %v6562_v18   ;;  %3718 = vrot.lane.b32.xlu0 %v6050_v29, %s11365_s25  ;;  %s11386_s25 = smov 94  }
 0x29d   : > { %12059 = vst [vmem:[#allocation172_spill] sm:$0xff] %v6646_v32 }
 0x29e   : > { %v6651_v50 = vpop.permute.xlu1 %2982 }
 0x29f   : > { %12060 = vst [vmem:[#allocation173_spill] sm:$0xff] %v6651_v50 }
 0x2a0   : > { %v6653_v22 = vpop.permute.xlu0 %1990  ;;  %3434 = vrot.lane.b32.xlu1 %v6220_v51, %s12062_s3  ;;  %3809 = vperm.xlu0 %5342, %v6460_v61  }
 0x2a1   : > { %12061 = vst [vmem:[#allocation174_spill] sm:$0xff] %v6653_v22  ;;  %5340 = vset.pattern.permute.xlu1 %v12063_v27 }
 0x2a2   : > { %v6659_v53 = vpop.permute.xlu1 %2988 }
 0x2a3   : > { %12064 = vst [vmem:[#allocation175_spill] sm:$0xff] %v6659_v53 }
 0x2a4   : > { %v6661_v32 = vpop.permute.xlu0 %2062  ;;  %2386 = vrot.lane.b32.xlu1 %v5976_v47, %s11931_s28  ;;  %5343 = vset.pattern.permute.xlu0 %v12066_v3 }
 0x2a5   : > { %12065 = vst [vmem:[#allocation176_spill] sm:$0xff] %v6661_v32  ;;  %1945 = vperm.xlu0 %5343, %v6562_v18  }
 0x2a6   : > { %v6667_v50 = vpop.permute.xlu1 %1780 }
 0x2a7   : > { %12067 = vst [vmem:[#allocation177_spill] sm:$0xff] %v6667_v50 }
 0x2a8   : > { %v6669_v22 = vpop.permute.xlu0 %2114  ;;  %3426 = vrot.lane.b32.xlu1 %v6032_v12, %s12062_s3 }
 0x2a9   : > { %12068 = vst [vmem:[#allocation178_spill] sm:$0xff] %v6669_v22  ;;  %1650 = vrot.lane.b32.xlu0 %v5970_v40, %s11981_s13 }
 0x2aa   : > { %v6675_v27 = vpop.permute.xlu1 %2976 }
 0x2ab   : > { %12069 = vst [vmem:[#allocation179_spill] sm:$0xff] %v6675_v27 }
 0x2ac   : > { %v6677_v53 = vpop.permute.xlu0 %2174  ;;  %2500 = vrot.lane.b32.xlu1 %v6200_v17, %s11953_s16 }
 0x2ad   : > { %12070 = vst [vmem:[#allocation180_spill] sm:$0xff] %v6677_v53  ;;  %1760 = vrot.lane.b32.xlu0 %v5970_v40, %s11986_s10  ;;  %v5607_v53 = vmov 33  }
 0x2ae   : > { %v6683_v3 = vpop.permute.xlu1 %1876 }
 0x2af   : > { %12071 = vst [vmem:[#allocation181_spill] sm:$0xff] %v6683_v3 }
 0x2b0   : > { %v6685_v50 = vpop.permute.xlu0 %2262  ;;  %3510 = vrot.lane.b32.xlu1 %v6050_v29, %s11368_s24 }
 0x2b1   : > { %12072 = vst [vmem:[#allocation182_spill] sm:$0xff] %v6685_v50  ;;  %1941 = vperm.xlu0 %5343, %v6627_v55  }
 0x2b2   : > { %v6690_v22 = vpop.permute.xlu1 %3086 }
 0x2b3   : > { %12073 = vst [vmem:[#allocation183_spill] sm:$0xff] %v6690_v22 }
 0x2b4   : > { %v6692_v27 = vpop.permute.xlu0 %2033  ;;  %3514 = vrot.lane.b32.xlu1 %v6220_v51, %s11368_s24 }
 0x2b5   : > { %12074 = vst [vmem:[#allocation184_spill] sm:$0xff] %v6692_v27  ;;  %5344 = vset.pattern.permute.xlu0 %v5607_v53  ;;  %v5608_v53 = vmov 44  }
 0x2b6   : > { %v6696_v32 = vpop.permute.xlu1 %3090  ;;  %3141 = vperm.xlu0 %5344, %v6460_v61  }
 0x2b7   : > { %12075 = vst [vmem:[#allocation185_spill] sm:$0xff] %v6696_v32 }
 0x2b8   : > { %2492 = vrot.lane.b32.xlu1 %v5976_v47, %s11953_s16 }
 0x2b9   : > { %v6701_v3 = vpop.permute.xlu0 %3201 }
 0x2ba   : > { %12076 = vst [vmem:[#allocation186_spill] sm:$0xff] %v6701_v3  ;;  %v6703_v50 = vpop.permute.xlu1 %1888  ;;  %3137 = vperm.xlu0 %5344, %v6562_v18  }
 0x2bb   : > { %12077 = vst [vmem:[#allocation187_spill] sm:$0xff] %v6703_v50  ;;  %v12082_v50 = vmov 23  }
 0x2bc   : > { %3506 = vrot.lane.b32.xlu1 %v6032_v12, %s11368_s24  ;;  %s12085_s24 = smov 111  }
 0x2bd   : > { %v6708_v27 = vpop.permute.xlu0 %1976 }
 0x2be   : > { %12078 = vst [vmem:[#allocation188_spill] sm:$0xff] %v6708_v27  ;;  %v6710_v22 = vpop.permute.xlu1 %3082  ;;  %5345 = vset.pattern.permute.xlu0 %v5608_v53 }
 0x2bf   : > { %12079 = vst [vmem:[#allocation189_spill] sm:$0xff] %v6710_v22  ;;  %3861 = vperm.xlu0 %5345, %v6460_v61  }
 0x2c0   : > { %2684 = vrot.lane.b32.xlu1 %v6200_v17, %s11965_s15 }
 0x2c1   : > { %v6715_v32 = vpop.permute.xlu0 %2217 }
 0x2c2   : > { %12080 = vst [vmem:[#allocation190_spill] sm:$0xff] %v6715_v32  ;;  %v6717_v3 = vpop.permute.xlu1 %1980 }
 0x2c3   : > { %12081 = vst [vmem:[#allocation191_spill] sm:$0xff] %v6717_v3  ;;  %5346 = vset.pattern.permute.xlu0 %v12082_v50 }
 0x2c4   : > { %3590 = vrot.lane.b32.xlu1 %v6050_v29, %s11386_s25  ;;  %2317 = vperm.xlu0 %5346, %v6562_v18  }
 0x2c6   : > { %v6723_v22 = vpop.permute.xlu0 %3253  ;;  %v6725_v53 = vpop.permute.xlu1 %3162 }
 0x2c7   : > { %12083 = vst [vmem:[#allocation192_spill] sm:$0xff] %v6723_v22  ;;  %12084 = vst [vmem:[#allocation193_spill] sm:$0xff] %v6725_v53 }
 0x2c8   : > { %3594 = vrot.lane.b32.xlu1 %v6220_v51, %s11386_s25  ;;  %2974 = vrot.lane.b32.xlu0 %v5976_v47, %s12085_s24 }
 0x2ca   : > { %v6731_v32 = vpop.permute.xlu0 %2160  ;;  %v6733_v27 = vpop.permute.xlu1 %3164 }
 0x2cb   : > { %12086 = vst [vmem:[#allocation194_spill] sm:$0xff] %v6731_v32  ;;  %12087 = vst [vmem:[#allocation195_spill] sm:$0xff] %v6733_v27  ;;  %v5610_v27 = vmov 36  }
 0x2cc   : > { %2676 = vrot.lane.b32.xlu1 %v5976_v47, %s11965_s15  ;;  %1868 = vrot.lane.b32.xlu0 %v5970_v40, %s11989_s6  ;;  %s12204_s15 = smov 78  }
 0x2ce   : > { %v6739_v50 = vpop.permute.xlu0 %2242  ;;  %v6741_v22 = vpop.permute.xlu1 %1988 }
 0x2cf   : > { %12088 = vst [vmem:[#allocation196_spill] sm:$0xff] %v6739_v50  ;;  %12089 = vst [vmem:[#allocation197_spill] sm:$0xff] %v6741_v22 }
 0x2d0   : > { %3586 = vrot.lane.b32.xlu1 %v6032_v12, %s11386_s25  ;;  %2313 = vperm.xlu0 %5346, %v6627_v55   ;;  %s11395_s25 = smov 81  }
 0x2d2   : > { %v6746_v53 = vpop.permute.xlu1 %3160  ;;  %v6748_v32 = vpop.permute.xlu0 %2353 }
 0x2d3   : > { %12090 = vst [vmem:[#allocation198_spill] sm:$0xff] %v6746_v53  ;;  %12091 = vst [vmem:[#allocation199_spill] sm:$0xff] %v6748_v32 }
 0x2d4   : > { %2770 = vrot.lane.b32.xlu1 %v6200_v17, %s11969_s30  ;;  %5347 = vset.pattern.permute.xlu0 %v5610_v27  ;;  %v5612_v27 = vmov 45  }
 0x2d5   : > { %3325 = vperm.xlu0 %5347, %v6460_v61  }
 0x2d6   : > { %v6753_v3 = vpop.permute.xlu1 %2164 }
 0x2d7   : > { %12092 = vst [vmem:[#allocation200_spill] sm:$0xff] %v6753_v3  ;;  %v6755_v50 = vpop.permute.xlu0 %2461 }
 0x2d8   : > { %12093 = vst [vmem:[#allocation201_spill] sm:$0xff] %v6755_v50  ;;  %3666 = vrot.lane.b32.xlu1 %v6050_v29, %s11392_s19 }
 0x2d9   : > { %3321 = vperm.xlu0 %5347, %v6562_v18  }
 0x2da   : > { %v6760_v53 = vpop.permute.xlu1 %3214 }
 0x2db   : > { %12094 = vst [vmem:[#allocation202_spill] sm:$0xff] %v6760_v53 }
 0x2dc   : > { %3668 = vrot.lane.b32.xlu1 %v6220_v51, %s11392_s19  ;;  %v6764_v32 = vpop.permute.xlu0 %2737 }
 0x2dd   : > { %12095 = vst [vmem:[#allocation203_spill] sm:$0xff] %v6764_v32  ;;  %5348 = vset.pattern.permute.xlu0 %v5612_v27 }
 0x2de   : > { %v6766_v22 = vpop.permute.xlu1 %3216  ;;  %3913 = vperm.xlu0 %5348, %v6460_v61  }
 0x2df   : > { %12096 = vst [vmem:[#allocation204_spill] sm:$0xff] %v6766_v22 }
 0x2e0   : > { %2758 = vrot.lane.b32.xlu1 %v5976_v47, %s11969_s30  ;;  %v6771_v50 = vpop.permute.xlu0 %2398 }
 0x2e1   : > { %12097 = vst [vmem:[#allocation205_spill] sm:$0xff] %v6771_v50 }
 0x2e2   : > { %v6773_v3 = vpop.permute.xlu1 %2172  ;;  %5349 = vset.pattern.permute.xlu0 %v5613_v56 }
 0x2e3   : > { %12098 = vst [vmem:[#allocation206_spill] sm:$0xff] %v6773_v3  ;;  %3405 = vperm.xlu0 %5349, %v6460_v61  }
 0x2e4   : > { %3664 = vrot.lane.b32.xlu1 %v6032_v12, %s11392_s19  ;;  %v6778_v53 = vpop.permute.xlu0 %3430  ;;  %s12106_s19 = smov 98  }
 0x2e5   : > { %12099 = vst [vmem:[#allocation207_spill] sm:$0xff] %v6778_v53  ;;  %v12104_v53 = vmov 32  }
 0x2e6   : > { %v6780_v27 = vpop.permute.xlu1 %3212 }
 0x2e7   : > { %12100 = vst [vmem:[#allocation208_spill] sm:$0xff] %v6780_v27  ;;  %3820 = vrot.lane.b32.xlu0 %v6032_v12, %s11395_s25  ;;  %s12109_s25 = smov 83  }
 0x2e8   : > { %1833 = vperm.xlu1 %5340, %v6627_v55   ;;  %v6785_v50 = vpop.permute.xlu0 %2496 }
 0x2e9   : > { %12101 = vst [vmem:[#allocation209_spill] sm:$0xff] %v6785_v50 }
 0x2ea   : > { %v6787_v22 = vpop.permute.xlu1 %2248 }
 0x2eb   : > { %12102 = vst [vmem:[#allocation210_spill] sm:$0xff] %v6787_v22  ;;  %2246 = vrot.lane.b32.xlu0 %v5974_v44, %s12004_s2  ;;  %v5616_v22 = vmov 38  }
 0x2ec   : > { %2872 = vrot.lane.b32.xlu1 %v6014_v6, %s12057_s20  ;;  %v6793_v56 = vpop.permute.xlu0 %2733 }
 0x2ed   : > { %12103 = vst [vmem:[#allocation211_spill] sm:$0xff] %v6793_v56  ;;  %5341 = vset.pattern.permute.xlu1 %v12104_v53 }
 0x2ee   : > { %v6796_v27 = vpop.permute.xlu1 %3270 }
 0x2ef   : > { %12105 = vst [vmem:[#allocation212_spill] sm:$0xff] %v6796_v27  ;;  %3268 = vrot.lane.b32.xlu0 %v6014_v6, %s12106_s19  ;;  %v5615_v27 = vmov 46  }
 0x2f0   : > { %3049 = vperm.xlu1 %5341, %v6562_v18   ;;  %v6801_v50 = vpop.permute.xlu0 %2680 }
 0x2f1   : > { %12107 = vst [vmem:[#allocation213_spill] sm:$0xff] %v6801_v50 }
 0x2f2   : > { %v6803_v32 = vpop.permute.xlu1 %3274 }
 0x2f3   : > { %12108 = vst [vmem:[#allocation214_spill] sm:$0xff] %v6803_v32  ;;  %3401 = vperm.xlu0 %5349, %v6562_v18  }
 0x2f4   : > { %3720 = vrot.lane.b32.xlu1 %v6220_v51, %s12109_s25  ;;  %v6808_v3 = vpop.permute.xlu0 %3705 }
 0x2f5   : > { %12110 = vst [vmem:[#allocation215_spill] sm:$0xff] %v6808_v3  ;;  %5350 = vset.pattern.permute.xlu1 %v12018_v21 }
 0x2f6   : > { %v6811_v56 = vpop.permute.xlu1 %2260 }
 0x2f7   : > { %12111 = vst [vmem:[#allocation216_spill] sm:$0xff] %v6811_v56  ;;  %5351 = vset.pattern.permute.xlu0 %v5615_v27 }
 0x2f8   : > { %2866 = vrot.lane.b32.xlu1 %v5976_v47, %s12057_s20  ;;  %3965 = vperm.xlu0 %5351, %v6460_v61  }
 0x2f9   : > { %v6816_v50 = vpop.permute.xlu0 %2945 }
 0x2fa   : > { %12112 = vst [vmem:[#allocation217_spill] sm:$0xff] %v6816_v50  ;;  %v6818_v32 = vpop.permute.xlu1 %3266 }
 0x2fb   : > { %12113 = vst [vmem:[#allocation218_spill] sm:$0xff] %v6818_v32 }
 0x2fc   : > { %3716 = vrot.lane.b32.xlu1 %v6032_v12, %s12109_s25  ;;  %5352 = vset.pattern.permute.xlu0 %v5616_v22  ;;  %s12117_s25 = smov 97  }
 0x2fd   : > { %3485 = vperm.xlu0 %5352, %v6460_v61   ;;  %v6823_v21 = vpop.permute.xlu0 %2764 }
 0x2fe   : > { %12114 = vst [vmem:[#allocation219_spill] sm:$0xff] %v6823_v21  ;;  %v6827_v27 = vpop.permute.xlu1 %3350 }
 0x2ff   : > { %12115 = vst [vmem:[#allocation220_spill] sm:$0xff] %v6827_v27  ;;  %v5618_v27 = vmov 47  }
 0x300   : > { %1656 = vrot.lane.b32.xlu1 %v5974_v44, %s11981_s13 }
 0x301   : > { %3872 = vrot.lane.b32.xlu0 %v6032_v12, %s11410_s14  ;;  %v6831_v3 = vpop.permute.xlu0 %2941  ;;  %s11428_s14 = smov 82  }
 0x302   : > { %12116 = vst [vmem:[#allocation221_spill] sm:$0xff] %v6831_v3  ;;  %v6839_v21 = vpop.permute.xlu1 %3354 }
 0x303   : > { %12119 = vst [vmem:[#allocation223_spill] sm:$0xff] %v6839_v21 }
 0x304   : > { %1766 = vrot.lane.b32.xlu1 %v5974_v44, %s11986_s10 }
 0x305   : > { %3348 = vrot.lane.b32.xlu0 %v6014_v6, %s12117_s25 }
 0x306   : > { %v6837_v22 = vpop.permute.xlu0 %3757  ;;  %v6848_v3 = vpop.permute.xlu1 %3346 }
 0x307   : > { %12118 = vst [vmem:[#allocation222_spill] sm:$0xff] %v6837_v22  ;;  %12121 = vst [vmem:[#allocation225_spill] sm:$0xff] %v6848_v3  ;;  %v5620_v22 = vmov 30  }
 0x308   : > { %2980 = vrot.lane.b32.xlu1 %v6014_v6, %s12085_s24 }
 0x309   : > { %3481 = vperm.xlu0 %5352, %v6562_v18  }
 0x30a   : > { %v6855_v21 = vpop.permute.xlu1 %2392 }
 0x30b   : > { %v6844_v50 = vpop.permute.xlu0 %1729  ;;  %12123 = vst [vmem:[#allocation227_spill] sm:$0xff] %v6855_v21 }
 0x30c   : > { %12120 = vst [vmem:[#allocation224_spill] sm:$0xff] %v6844_v50  ;;  %2986 = vrot.lane.b32.xlu1 %v6200_v17, %s12085_s24 }
 0x30d   : > { %5354 = vset.pattern.permute.xlu0 %v5618_v27 }
 0x30e   : > { %4017 = vperm.xlu0 %5354, %v6460_v61  }
 0x30f   : > { %v6851_v32 = vpop.permute.xlu0 %1725 }
 0x310   : > { %12122 = vst [vmem:[#allocation226_spill] sm:$0xff] %v6851_v32  ;;  %3770 = vrot.lane.b32.xlu1 %v6050_v29, %s11428_s14 }
 0x312   : > { %5355 = vset.pattern.permute.xlu0 %v5620_v22 }
 0x313   : > { %2837 = vperm.xlu0 %5355, %v6460_v61   ;;  %v6858_v56 = vpop.permute.xlu0 %2878 }
 0x314   : > { %12124 = vst [vmem:[#allocation228_spill] sm:$0xff] %v6858_v56  ;;  %3772 = vrot.lane.b32.xlu1 %v6220_v51, %s11428_s14 }
 0x317   : > { %v6862_v27 = vpop.permute.xlu1 %2549  ;;  %2833 = vperm.xlu0 %5355, %v6562_v18   ;;  %v6865_v32 = vpop.permute.xlu0 %3718 }
 0x318   : > { %12125 = vst [vmem:[#allocation229_spill] sm:$0xff] %v6862_v27  ;;  %12126 = vst [vmem:[#allocation230_spill] sm:$0xff] %v6865_v32  ;;  %1668 = vrot.lane.b32.xlu1 %v6190_v8, %s11981_s13  ;;  %s12134_s13 = smov 110  }
 0x31b   : > { %v6869_v3 = vpop.permute.xlu1 %3434  ;;  %2390 = vrot.lane.b32.xlu0 %v5974_v44, %s11931_s28  ;;  %v6873_v22 = vpop.permute.xlu0 %3809 }
 0x31c   : > { %12127 = vst [vmem:[#allocation231_spill] sm:$0xff] %v6869_v3  ;;  %12128 = vst [vmem:[#allocation232_spill] sm:$0xff] %v6873_v22  ;;  %1778 = vrot.lane.b32.xlu1 %v6190_v8, %s11986_s10  ;;  %v5621_v3 = vmov 39  }
 0x31f   : > { %v6877_v56 = vpop.permute.xlu1 %2386  ;;  %2829 = vperm.xlu0 %5355, %v6627_v55  }
 0x320   : > { %12129 = vst [vmem:[#allocation233_spill] sm:$0xff] %v6877_v56  ;;  %3768 = vrot.lane.b32.xlu1 %v6032_v12, %s11428_s14  ;;  %v6882_v32 = vpop.permute.xlu0 %1945  ;;  %s12139_s14 = smov 81  }
 0x321   : > { %12130 = vst [vmem:[#allocation234_spill] sm:$0xff] %v6882_v32 }
 0x323   : > { %v6884_v27 = vpop.permute.xlu1 %3426  ;;  %5356 = vset.pattern.permute.xlu0 %v5621_v3  ;;  %v5622_v3 = vmov 48  }
 0x324   : > { %12131 = vst [vmem:[#allocation235_spill] sm:$0xff] %v6884_v27  ;;  %1874 = vrot.lane.b32.xlu1 %v5974_v44, %s11989_s6  ;;  %3565 = vperm.xlu0 %5356, %v6460_v61   ;;  %v6889_v22 = vpop.permute.xlu0 %1650 }
 0x325   : > { %12132 = vst [vmem:[#allocation236_spill] sm:$0xff] %v6889_v22 }
 0x327   : > { %v6891_v21 = vpop.permute.xlu1 %2500 }
 0x328   : > { %12133 = vst [vmem:[#allocation237_spill] sm:$0xff] %v6891_v21  ;;  %3084 = vrot.lane.b32.xlu1 %v6014_v6, %s12134_s13  ;;  %3561 = vperm.xlu0 %5356, %v6562_v18   ;;  %v6896_v56 = vpop.permute.xlu0 %1760  ;;  %v5623_v21 = vmov 40  }
 0x329   : > { %12135 = vst [vmem:[#allocation238_spill] sm:$0xff] %v6896_v56 }
 0x32b   : > { %v6898_v32 = vpop.permute.xlu1 %3510 }
 0x32c   : > { %12136 = vst [vmem:[#allocation239_spill] sm:$0xff] %v6898_v32  ;;  %3088 = vrot.lane.b32.xlu1 %v6200_v17, %s12134_s13  ;;  %5357 = vset.pattern.permute.xlu0 %v5622_v3  ;;  %v6902_v27 = vpop.permute.xlu0 %1941 }
 0x32d   : > { %12137 = vst [vmem:[#allocation240_spill] sm:$0xff] %v6902_v27  ;;  %4069 = vperm.xlu0 %5357, %v6460_v61  }
 0x32f   : > { %v6905_v22 = vpop.permute.xlu1 %3514 }
 0x330   : > { %12138 = vst [vmem:[#allocation241_spill] sm:$0xff] %v6905_v22  ;;  %3822 = vrot.lane.b32.xlu1 %v6050_v29, %s12139_s14 }
 0x331   : > { %5358 = vset.pattern.permute.xlu0 %v5623_v21  ;;  %v6909_v50 = vpop.permute.xlu0 %3141  ;;  %v653_v21 = vlaneseq }
 0x332   : > { %12140 = vst [vmem:[#allocation242_spill] sm:$0xff] %v6909_v50  ;;  %3645 = vperm.xlu0 %5358, %v6460_v61  }
 0x333   : > { %v6912_v56 = vpop.permute.xlu1 %2492  ;;  %v6942_v22 = vand.u32 127, %v653_v21 }
 0x334   : > { %12141 = vst [vmem:[#allocation243_spill] sm:$0xff] %v6912_v56  ;;  %3824 = vrot.lane.b32.xlu1 %v6220_v51, %s12139_s14  ;;  %s12146_s14 = smov 95  }
 0x335   : > { %v6916_v3 = vpop.permute.xlu0 %3137  ;;  %vm11537_vm1 = vcmp.lt.s32.totalorder %v6942_v22, 51  ;;  %vm11566_vm2 = vcmp.lt.s32.totalorder %v6942_v22, 50  ;;  %vm11531_vm3 = vcmp.lt.s32.totalorder %v6942_v22, 49  ;;  %vm11563_vm4 = vcmp.lt.s32.totalorder %v6942_v22, 48 }
 0x336   : > { %12142 = vst [vmem:[#allocation244_spill] sm:$0xff] %v6916_v3  ;;  %3976 = vrot.lane.b32.xlu0 %v6032_v12, %s11440_s29  ;;  %v6934_v3 = vshrl.u32 %v653_v21, 7  ;;  %v6961_v21 = vld [vmem:[%s11116_s5 + $0x1] ss:$8 sm:$0xf]  ;;  %v763_v0 = vsel %vm11531_vm3, %v6238_v5, %v6453_v28  ;;  %s12157_s29 = smov 80  }
 0x337   : > { %v6920_v27 = vpop.permute.xlu1 %3506  ;;  %vm11517_vm5 = vcmp.lt.s32.totalorder %v6942_v22, 47  ;;  %vm11559_vm6 = vcmp.lt.s32.totalorder %v6942_v22, 46  ;;  %vm11506_vm7 = vcmp.lt.s32.totalorder %v6942_v22, 45  ;;  %vm11541_vm8 = vcmp.lt.s32.totalorder %v6942_v22, 35 }
 0x338   : > { %12143 = vst [vmem:[#allocation245_spill] sm:$0xff] %v6920_v27  ;;  %1886 = vrot.lane.b32.xlu1 %v6190_v8, %s11989_s6  ;;  %12147 = vst [vmem:[#allocation248_spill] sm:$0xff] %v6934_v3  ;;  %vm11604_vm9 = vcmp.lt.s32.totalorder %v6942_v22, 34  ;;  %vm1162_vm10 = vcmp.lt.s32.totalorder %v6942_v22, 33  ;;  %vm11602_vm11 = vcmp.lt.s32.totalorder %v6942_v22, 32  ;;  %vm11666_vm12 = vcmp.lt.s32.totalorder %v6942_v22, 31 }
 0x339   : > { %vm11600_vm13 = vcmp.lt.s32.totalorder %v6942_v22, 30  ;;  %vm11557_vm14 = vcmp.lt.s32.totalorder %v6942_v22, 29  ;;  %vm11553_vm15 = vcmp.lt.s32.totalorder %v6942_v22, 19  ;;  %vm1674_vm0 = vcmp.lt.s32.totalorder %v6942_v22, 17  ;;  %s12360_s6 = smov 109  }
 0x33a   : > { %2768 = vrot.lane.b32.xlu0 %v6182_v52, %s11969_s30  ;;  %v6926_v61 = vpop.permute.xlu0 %3861 }
 0x33b   : > { %12144 = vst [vmem:[#allocation246_spill] sm:$0xff] %v6926_v61  ;;  %v6928_v50 = vpop.permute.xlu1 %2684  ;;  %v6947_v61 = vld [vmem:[%s11116_s5] ss:$8 sm:$0xf] }
 0x33c   : > { %12145 = vst [vmem:[#allocation247_spill] sm:$0xff] %v6928_v50  ;;  %3080 = vrot.lane.b32.xlu1 %v5976_v47, %s12134_s13  ;;  %v6951_v50 = vsub.s32 1, %v6934_v3  ;;  %s12160_s13 = smov 94  }
 0x33e   : > { %3508 = vrot.lane.b32.xlu0 %v6014_v6, %s12146_s14 }
 0x33f   : > { %v6936_v27 = vpop.permute.xlu1 %3590  ;;  %v6938_v32 = vpop.permute.xlu0 %2317 }
 0x340   : > { %12148 = vst [vmem:[#allocation249_spill] sm:$0xff] %v6936_v27  ;;  %12149 = vst [vmem:[#allocation250_spill] sm:$0xff] %v6938_v32  ;;  %2240 = vrot.lane.b32.xlu1 %v5970_v40, %s12004_s2  ;;  %v6966_v32 = vld [vmem:[%s11116_s5 + $0x2] ss:$8 sm:$0xf] }
 0x341   : > { %v775_v53 = vrot.slane %v6966_v32, %v6951_v50 }
 0x342   : > { %3641 = vperm.xlu0 %5358, %v6562_v18   ;;  %v669_v18 = vrot.slane %v6947_v61, %v6951_v50 }
 0x343   : > { %v6954_v27 = vpop.permute.xlu1 %3594  ;;  %v6956_v56 = vpop.permute.xlu0 %2974 }
 0x344   : > { %12150 = vst [vmem:[#allocation251_spill] sm:$0xff] %v6954_v27  ;;  %12151 = vst [vmem:[#allocation252_spill] sm:$0xff] %v6956_v56  ;;  %2349 = vperm.xlu1 %5350, %v6627_v55   ;;  %v658_v56 = vsel %vm11537_vm1, %v6240_v34, %v6446_v1  ;;  %v723_v27 = vrot.slane %v6961_v21, %v6951_v50  ;;  %v711_v1 = vsel %vm11566_vm2, %v6248_v58, %v6261_v37 }
 0x345   : > { %v683_v31 = vmul.f32 %v669_v18, %v658_v56 }
 0x346   : > { %2756 = vrot.lane.b32.xlu0 %v5970_v40, %s11969_s30  ;;  %v737_v37 = vmul.f32 %v723_v27, %v711_v1  ;;  %v815_v1 = vsel %vm11563_vm4, %v6255_v63, %v6269_v62 }
 0x347   : > { %v6983_v41 = vpop.permute.xlu1 %2676  ;;  %v6985_v54 = vpop.permute.xlu0 %1868  ;;  %5362 = vset.pattern.permute.xlu0 %v12154_v10  ;;  %v693_v56 = vmul.f32 %v6094_v39, %v683_v31 }
 0x348   : > { %12152 = vst [vmem:[#allocation253_spill] sm:$0xff] %v6983_v41  ;;  %12153 = vst [vmem:[#allocation254_spill] sm:$0xff] %v6985_v54  ;;  %3272 = vrot.lane.b32.xlu1 %v6200_v17, %s12106_s19  ;;  %v7002_v54 = vld [vmem:[%s11116_s5 + $0x3] ss:$8 sm:$0xf]  ;;  %v789_v41 = vmul.f32 %v775_v53, %v763_v0  ;;  %v745_v53 = vmul.f32 %v6104_v43, %v737_v37  ;;  %v867_v37 = vsel %vm11517_vm5, %v6263_v45, %v6278_v2 }
 0x349   : > { %5353 = vset.pattern.permute.xlu1 %v12024_v30  ;;  %v827_v30 = vrot.slane %v7002_v54, %v6951_v50  ;;  %v7023_v0 = vld [vmem:[%s11116_s5 + $0x4] ss:$8 sm:$0xf] }
 0x34a   : > { %4028 = vrot.lane.b32.xlu0 %v6032_v12, %s5625_s27  ;;  %v797_v27 = vmul.f32 %v5928_v13, %v789_v41  ;;  %v7045_v41 = vld [vmem:[%s11116_s5 + $0x5] ss:$8 sm:$0xf] }
 0x34b   : > { %v7007_v28 = vpop.permute.xlu1 %3586  ;;  %v7009_v10 = vpop.permute.xlu0 %2313  ;;  %v841_v62 = vmul.f32 %v827_v30, %v815_v1 }
 0x34c   : > { %12155 = vst [vmem:[#allocation255_spill] sm:$0xff] %v7007_v28  ;;  %12156 = vst [vmem:[#allocation256_spill] sm:$0xff] %v7009_v10  ;;  %3874 = vrot.lane.b32.xlu1 %v6050_v29, %s12157_s29  ;;  %v879_v10 = vrot.slane %v7023_v0, %v6951_v50  ;;  %v749_v28 = vadd.f32 %v745_v53, %v693_v56 }
 0x34d   : > { %v849_v53 = vmul.f32 %v6114_v46, %v841_v62 }
 0x34e   : > { %2876 = vrot.lane.b32.xlu0 %v6182_v52, %s12057_s20  ;;  %v801_v30 = vadd.f32 %v797_v27, %v749_v28  ;;  %v893_v2 = vmul.f32 %v879_v10, %v867_v37  ;;  %v7066_v28 = vld [vmem:[%s11116_s5 + $0x6] ss:$8 sm:$0xf]  ;;  %v7074_v27 = vsub.s32 0, %v6934_v3 }
 0x34f   : > { %v7030_v31 = vpop.permute.xlu1 %2770 }
 0x350   : > { %12158 = vst [vmem:[#allocation257_spill] sm:$0xff] %v7030_v31  ;;  %3876 = vrot.lane.b32.xlu1 %v6220_v51, %s12157_s29  ;;  %v7034_v18 = vpop.permute.xlu0 %3325  ;;  %v919_v31 = vsel %vm11559_vm6, %v6272_v49, %v6286_v7  ;;  %v853_v62 = vadd.f32 %v849_v53, %v801_v30  ;;  %v901_v37 = vmul.f32 %v5930_v14, %v893_v2 }
 0x351   : > { %12159 = vst [vmem:[#allocation258_spill] sm:$0xff] %v7034_v18  ;;  %v931_v18 = vrot.slane %v7045_v41, %v6951_v50  ;;  %v971_v53 = vsel %vm11506_vm7, %v6280_v38, %v6294_v36  ;;  %v719_v3 = vrot.slane %v6961_v21, %v7074_v27  ;;  %v665_v36 = vrot.slane %v6947_v61, %v7074_v27 }
 0x352   : > { %3588 = vrot.lane.b32.xlu0 %v6014_v6, %s12160_s13  ;;  %v905_v2 = vadd.f32 %v901_v37, %v853_v62  ;;  %v771_v21 = vrot.slane %v6966_v32, %v7074_v27  ;;  %v1023_v32 = vsel %vm11541_vm8, %v6288_v42, %v6302_v35  ;;  %v12179_v35 = vld [vmem:[#allocation148_spill] sm:$0xff] }
 0x353   : > { %v7050_v1 = vpop.permute.xlu1 %3666  ;;  %v945_v7 = vmul.f32 %v931_v18, %v919_v31  ;;  %v712_v31 = vsel %vm11566_vm2, %v6580_v26, %v6248_v58  ;;  %v659_v58 = vsel %vm11537_vm1, %v6474_v11, %v6240_v34  ;;  %v764_v26 = vsel %vm11531_vm3, %v6587_v9, %v6238_v5  ;;  %v7132_v34 = vld [vmem:[%s11116_s5 + $0x20] ss:$8 sm:$0xf] }
 0x354   : > { %12161 = vst [vmem:[#allocation259_spill] sm:$0xff] %v7050_v1  ;;  %2258 = vrot.lane.b32.xlu1 %v6190_v8, %s12004_s2  ;;  %v7054_v56 = vpop.permute.xlu0 %3321  ;;  %v7084_v8 = vld [vmem:[%s11116_s5 + $0x7] ss:$8 sm:$0xf]  ;;  %v736_v61 = vmul.f32 %v719_v3, %v712_v31  ;;  %v682_v5 = vmul.f32 %v665_v36, %v659_v58  ;;  %v12168_v9 = vmov 31   ;;  %vm11575_vm3 = vcmp.lt.s32.totalorder %v6942_v22, 15 }
 0x355   : > { %12162 = vst [vmem:[#allocation260_spill] sm:$0xff] %v7054_v56  ;;  %v983_v56 = vrot.slane %v7066_v28, %v6951_v50  ;;  %v953_v62 = vmul.f32 %v5932_v15, %v945_v7  ;;  %vm11662_vm1 = vcmp.lt.s32.totalorder %v6942_v22, 14  ;;  %vm11725_vm2 = vcmp.lt.s32.totalorder %v6942_v22, 126 }
 0x356   : > { %2864 = vrot.lane.b32.xlu0 %v5970_v40, %s12057_s20  ;;  %v692_v58 = vmul.f32 %v6094_v39, %v682_v5  ;;  %v875_v5 = vrot.slane %v7023_v0, %v7074_v27  ;;  %v7195_v0 = vld [vmem:[%s11116_s5 + $0x22] ss:$8 sm:$0xf] }
 0x357   : > { %v7071_v10 = vpop.permute.xlu1 %3668  ;;  %v997_v37 = vmul.f32 %v983_v56, %v971_v53  ;;  %v788_v53 = vmul.f32 %v771_v21, %v764_v26  ;;  %v744_v26 = vmul.f32 %v6104_v43, %v736_v61  ;;  %v816_v21 = vsel %vm11563_vm4, %v6524_v25, %v6255_v63  ;;  %v12177_v39 = vld [vmem:[#allocation92_spill] sm:$0xff] }
 0x358   : > { %12163 = vst [vmem:[#allocation261_spill] sm:$0xff] %v7071_v10  ;;  %3264 = vrot.lane.b32.xlu1 %v5976_v47, %s12106_s19  ;;  %vm2408_vm4 = vcmp.lt.s32.totalorder %v6942_v22, 127 }
 0x359   : > { %v7086_v30 = vpop.permute.xlu0 %3913  ;;  %v1005_v3 = vmul.f32 %v5934_v16, %v997_v37 }
 0x35a   : > { %12164 = vst [vmem:[#allocation262_spill] sm:$0xff] %v7086_v30  ;;  %2978 = vrot.lane.b32.xlu0 %v5974_v44, %s12085_s24  ;;  %v1035_v30 = vrot.slane %v7084_v8, %v6951_v50 }
 0x35b   : > { %v7101_v18 = vpop.permute.xlu1 %2758 }
 0x35c   : > { %12165 = vst [vmem:[#allocation263_spill] sm:$0xff] %v7101_v18  ;;  %2457 = vperm.xlu1 %5353, %v6627_v55   ;;  %v957_v55 = vadd.f32 %v953_v62, %v905_v2  ;;  %v1049_v31 = vmul.f32 %v1035_v30, %v1023_v32  ;;  %v1086_v2 = vsel %vm11604_vm9, %v6296_v60, %v6310_v57  ;;  %v12224_v18 = vld [vmem:[#allocation107_spill] sm:$0xff] }
 0x35d   : > { %v823_v62 = vrot.slane %v7002_v54, %v7074_v27  ;;  %v7152_v30 = vrot.slane %v7132_v34, %v6951_v50  ;;  %v7163_v54 = vld [vmem:[%s11116_s5 + $0x21] ss:$8 sm:$0xf]  ;;  %v796_v32 = vmul.f32 %v5928_v13, %v788_v53  ;;  %v748_v53 = vadd.f32 %v744_v26, %v692_v58 }
 0x35e   : > { %2972 = vrot.lane.b32.xlu0 %v5970_v40, %s12085_s24  ;;  %v7125_v7 = vpop.permute.xlu0 %3405  ;;  %v1057_v61 = vmul.f32 %v5940_v19, %v1049_v31  ;;  %v7184_v31 = vrot.slane %v7163_v54, %v6951_v50  ;;  %v868_v13 = vsel %vm11517_vm5, %v6531_v48, %v6263_v45  ;;  %v1248_v45 = vsel %vm11602_vm11, %v6312_v4, %v6326_v20  ;;  %v12176_v48 = vld [vmem:[#allocation95_spill] sm:$0xff] }
 0x35f   : > { %12166 = vst [vmem:[#allocation264_spill] sm:$0xff] %v7125_v7  ;;  %v7127_v56 = vpop.permute.xlu1 %3664  ;;  %v1117_v63 = vmul.f32 %v7152_v30, %v1086_v2  ;;  %v800_v26 = vadd.f32 %v796_v32, %v748_v53  ;;  %v927_v32 = vrot.slane %v7045_v41, %v7074_v27  ;;  %v920_v20 = vsel %vm11559_vm6, %v6539_v24, %v6272_v49  ;;  %v12183_v24 = vld [vmem:[#allocation94_spill] sm:$0xff] }
 0x360   : > { %12167 = vst [vmem:[#allocation265_spill] sm:$0xff] %v7127_v56  ;;  %3352 = vrot.lane.b32.xlu1 %v6200_v17, %s12117_s25  ;;  %v1328_v49 = vsel %vm11666_vm12, %v12177_v39, %v12176_v48  ;;  %v972_v48 = vsel %vm11506_vm7, %v12179_v35, %v6280_v38  ;;  %v7271_v35 = vld [vmem:[%s11116_s5 + $0x25] ss:$8 sm:$0xf]  ;;  %vm11624_vm7 = vcmp.lt.s32.totalorder %v6942_v22, 18  ;;  %vm11572_vm5 = vcmp.lt.s32.totalorder %v6942_v22, 16 }
 0x361   : > { %5359 = vset.pattern.permute.xlu1 %v12168_v9  ;;  %v1009_v9 = vadd.f32 %v1005_v3, %v957_v55  ;;  %v1168_v55 = vsel %vm1162_vm10, %v6304_v59, %v6318_v33  ;;  %v840_v3 = vmul.f32 %v823_v62, %v816_v21  ;;  %v944_v33 = vmul.f32 %v927_v32, %v920_v20  ;;  %v7257_v20 = vld [vmem:[%s11116_s5 + $0x24] ss:$8 sm:$0xf] }
 0x362   : > { %704 = vrot.lane.b32.xlu0 %v6220_v51, %s11972_s12  ;;  %v7148_v36 = vpop.permute.xlu0 %3820  ;;  %s5626_s12 = smov 79   ;;  %v1199_v21 = vmul.f32 %v7184_v31, %v1168_v55  ;;  %v12181_v32 = vld [vmem:[#allocation32_spill] sm:$0xff]  ;;  %vm2264_vm6 = vcmp.lt.s32.totalorder %v6942_v22, 1 }
 0x363   : > { %12169 = vst [vmem:[#allocation266_spill] sm:$0xff] %v7148_v36  ;;  %v7158_v37 = vpop.permute.xlu1 %1833  ;;  %v1061_v2 = vadd.f32 %v1057_v61, %v1009_v9  ;;  %v1135_v9 = vmul.f32 %v5948_v23, %v1117_v63  ;;  %v848_v58 = vmul.f32 %v6114_v46, %v840_v3  ;;  %v892_v61 = vmul.f32 %v875_v5, %v868_v13  ;;  %v7226_v13 = vld [vmem:[%s11116_s5 + $0x23] ss:$8 sm:$0xf] }
 0x364   : > { %12170 = vst [vmem:[#allocation267_spill] sm:$0xff] %v7158_v37  ;;  %3926 = vrot.lane.b32.xlu1 %v6050_v29, %s5626_s12  ;;  %v7215_v63 = vrot.slane %v7195_v0, %v6951_v50  ;;  %v12175_v5 = vld [vmem:[#allocation28_spill] sm:$0xff]  ;;  %v1031_v46 = vrot.slane %v7084_v8, %v7074_v27  ;;  %v12196_v36 = vld [vmem:[#allocation154_spill] sm:$0xff] }
 0x365   : > { %v1143_v55 = vadd.f32 %v1135_v9, %v1061_v2  ;;  %v852_v41 = vadd.f32 %v848_v58, %v800_v26  ;;  %v1215_v2 = vmul.f32 %v12175_v5, %v1199_v21  ;;  %v900_v11 = vmul.f32 %v5930_v14, %v892_v61  ;;  %v12182_v14 = vld [vmem:[#allocation97_spill] sm:$0xff]  ;;  %v12206_v37 = vld [vmem:[#allocation40_spill] sm:$0xff] }
 0x366   : > { %808 = vrot.lane.b32.xlu0 %v6220_v51, %s11942_s17  ;;  %v7180_v57 = vpop.permute.xlu0 %2246  ;;  %v1279_v9 = vmul.f32 %v7215_v63, %v1248_v45  ;;  %v979_v26 = vrot.slane %v7066_v28, %v7074_v27  ;;  %v7246_v21 = vrot.slane %v7226_v13, %v6951_v50  ;;  %v1408_v38 = vsel %vm11600_vm13, %v12183_v24, %v12182_v14  ;;  %v12184_v14 = vld [vmem:[#allocation150_spill] sm:$0xff]  ;;  %s12397_s17 = smov 49  }
 0x367   : > { %12171 = vst [vmem:[#allocation268_spill] sm:$0xff] %v7180_v57  ;;  %v7190_v62 = vpop.permute.xlu1 %2872  ;;  %v1223_v45 = vadd.f32 %v1215_v2, %v1143_v55  ;;  %v904_v28 = vadd.f32 %v900_v11, %v852_v41  ;;  %v952_v11 = vmul.f32 %v5932_v15, %v944_v33  ;;  %v1024_v25 = vsel %vm11541_vm8, %v12184_v14, %v6288_v42  ;;  %v7304_v14 = vld [vmem:[%s11116_s5 + $0x26] ss:$8 sm:$0xf] }
 0x368   : > { %12172 = vst [vmem:[#allocation269_spill] sm:$0xff] %v7190_v62  ;;  %3928 = vrot.lane.b32.xlu1 %v6220_v51, %s5626_s12  ;;  %v1295_v55 = vmul.f32 %v12181_v32, %v1279_v9  ;;  %v1359_v2 = vmul.f32 %v7246_v21, %v1328_v49  ;;  %v996_v41 = vmul.f32 %v979_v26, %v972_v48  ;;  %v12187_v26 = vld [vmem:[#allocation34_spill] sm:$0xff]  ;;  %vm11589_vm8 = vcmp.lt.s32.totalorder %v6942_v22, 13 }
 0x369   : > { %v7280_v9 = vrot.slane %v7257_v20, %v6951_v50  ;;  %v956_v8 = vadd.f32 %v952_v11, %v904_v28  ;;  %v1048_v11 = vmul.f32 %v1031_v46, %v1024_v25  ;;  %v12193_v46 = vld [vmem:[#allocation37_spill] sm:$0xff] }
 0x36a   : > { %912 = vrot.lane.b32.xlu0 %v6220_v51, %s11948_s23  ;;  %v7211_v53 = vpop.permute.xlu0 %3268  ;;  %v1303_v49 = vadd.f32 %v1295_v55, %v1223_v45  ;;  %v1375_v15 = vmul.f32 %v12187_v26, %v1359_v2  ;;  %v1489_v45 = vrot.slane %v7271_v35, %v6951_v50  ;;  %v12188_v55 = vld [vmem:[#allocation99_spill] sm:$0xff]  ;;  %v1004_v28 = vmul.f32 %v5934_v16, %v996_v41  ;;  %v12194_v16 = vld [vmem:[#allocation101_spill] sm:$0xff]  ;;  %s12372_s23 = smov 99  }
 0x36b   : > { %12173 = vst [vmem:[#allocation270_spill] sm:$0xff] %v7211_v53  ;;  %v7221_v3 = vpop.permute.xlu1 %3049  ;;  %v1439_v43 = vmul.f32 %v7280_v9, %v1408_v38  ;;  %v12190_v38 = vld [vmem:[#allocation152_spill] sm:$0xff]  ;;  %v7318_v53 = vrot.slane %v7132_v34, %v7074_v27  ;;  %v1056_v34 = vmul.f32 %v5940_v19, %v1048_v11  ;;  %v7348_v11 = vrot.slane %v7163_v54, %v7074_v27  ;;  %v12200_v19 = vld [vmem:[#allocation103_spill] sm:$0xff] }
 0x36c   : > { %12174 = vst [vmem:[#allocation271_spill] sm:$0xff] %v7221_v3  ;;  %3344 = vrot.lane.b32.xlu1 %v5976_v47, %s12117_s25  ;;  %v1383_v2 = vadd.f32 %v1375_v15, %v1303_v49  ;;  %v1008_v57 = vadd.f32 %v1004_v28, %v956_v8  ;;  %v1541_v49 = vrot.slane %v7304_v14, %v6951_v50  ;;  %v7363_v54 = vld [vmem:[%s11116_s5 + $0x40] ss:$8 sm:$0xf] }
 0x36d   : > { %v1455_v41 = vmul.f32 %v12193_v46, %v1439_v43  ;;  %v1170_v43 = vsel %vm1162_vm10, %v12196_v36, %v6304_v59  ;;  %v12199_v59 = vld [vmem:[#allocation39_spill] sm:$0xff]  ;;  %v12201_v36 = vld [vmem:[#allocation100_spill] sm:$0xff] }
 0x36e   : > { %1016 = vrot.lane.b32.xlu0 %v6220_v51, %s11954_s22  ;;  %v7242_v58 = vpop.permute.xlu0 %3401  ;;  %v1592_v3 = vsel %vm11624_vm7, %v12201_v36, %v12200_v19  ;;  %s12345_s22 = smov 110  }
 0x36f   : > { %12178 = vst [vmem:[#allocation92_spill] sm:$0xff] %v7242_v58  ;;  %v7252_v61 = vpop.permute.xlu1 %3720  ;;  %v12189_v58 = vld [vmem:[#allocation96_spill] sm:$0xff]  ;;  %v1463_v28 = vadd.f32 %v1455_v41, %v1383_v2 }
 0x370   : > { %12180 = vst [vmem:[#allocation272_spill] sm:$0xff] %v7252_v61  ;;  %3924 = vrot.lane.b32.xlu1 %v6032_v12, %s5626_s12  ;;  %v1477_v42 = vsel %vm11557_vm14, %v12189_v58, %v12188_v55 }
 0x371   : > { %v1503_v15 = vmul.f32 %v1489_v45, %v1477_v42  ;;  %v7344_v42 = vld [vmem:[%s11116_s5 + $0x27] ss:$8 sm:$0xf] }
 0x372   : > { %1156 = vrot.lane.b32.xlu0 %v6220_v51, %s11962_s11 }
 0x373   : > { %v7287_v33 = vpop.permute.xlu1 %2866  ;;  %v7289_v48 = vpop.permute.xlu0 %3965  ;;  %v1511_v41 = vmul.f32 %v12199_v59, %v1503_v15 }
 0x374   : > { %12185 = vst [vmem:[#allocation94_spill] sm:$0xff] %v7287_v33  ;;  %12186 = vst [vmem:[#allocation273_spill] sm:$0xff] %v7289_v48  ;;  %2396 = vrot.lane.b32.xlu1 %v6182_v52, %s11931_s28  ;;  %v1088_v48 = vsel %vm11604_vm9, %v12190_v38, %v6296_v60  ;;  %v12195_v60 = vld [vmem:[#allocation98_spill] sm:$0xff]  ;;  %v12244_v52 = vld [vmem:[#allocation111_spill] sm:$0xff] }
 0x375   : > { %v1529_v38 = vsel %vm11553_vm15, %v12195_v60, %v12194_v16  ;;  %v1116_v8 = vmul.f32 %v7318_v53, %v1088_v48  ;;  %v1060_v48 = vadd.f32 %v1056_v34, %v1008_v57  ;;  %v1198_v34 = vmul.f32 %v7348_v11, %v1170_v43 }
 0x376   : > { %1316 = vrot.lane.b32.xlu0 %v6220_v51, %s11944_s26  ;;  %v1555_v16 = vmul.f32 %v1541_v49, %v1529_v38  ;;  %v7371_v38 = vrot.slane %v7344_v42, %v6951_v50  ;;  %v1515_v15 = vadd.f32 %v1511_v41, %v1463_v28  ;;  %v12202_v49 = vld [vmem:[#allocation156_spill] sm:$0xff]  ;;  %v7392_v41 = vrot.slane %v7363_v54, %v6951_v50 }
 0x377   : > { %v7314_v55 = vpop.permute.xlu1 %3716  ;;  %v1134_v57 = vmul.f32 %v5948_v23, %v1116_v8  ;;  %v1250_v19 = vsel %vm11602_vm11, %v12202_v49, %v6312_v4  ;;  %v7382_v8 = vrot.slane %v7195_v0, %v7074_v27  ;;  %v12208_v4 = vld [vmem:[#allocation105_spill] sm:$0xff]  ;;  %v12209_v49 = vld [vmem:[#allocation102_spill] sm:$0xff] }
 0x378   : > { %12191 = vst [vmem:[#allocation96_spill] sm:$0xff] %v7314_v55  ;;  %3428 = vrot.lane.b32.xlu1 %v6014_v6, %s12062_s3  ;;  %v7322_v25 = vpop.permute.xlu0 %3485  ;;  %v1623_v28 = vmul.f32 %v7371_v38, %v1592_v3  ;;  %12207 = vst [vmem:[#allocation277_spill] sm:$0xff] %v7392_v41  ;;  %v1683_v0 = vsel %vm1674_vm0, %v12209_v49, %v12208_v4  ;;  %v12210_v3 = vld [vmem:[#allocation53_spill] sm:$0xff]  ;;  %v12212_v4 = vld [vmem:[#allocation158_spill] sm:$0xff] }
 0x379   : > { %12192 = vst [vmem:[#allocation274_spill] sm:$0xff] %v7322_v25  ;;  %v1142_v43 = vadd.f32 %v1134_v57, %v1060_v48  ;;  %v1563_v25 = vmul.f32 %v12206_v37, %v1555_v16  ;;  %v7401_v48 = vld [vmem:[%s11116_s5 + $0x41] ss:$8 sm:$0xf]  ;;  %v1214_v57 = vmul.f32 %v12175_v5, %v1198_v34  ;;  %v1278_v16 = vmul.f32 %v7382_v8, %v1250_v19 }
 0x37a   : > { %1470 = vrot.lane.b32.xlu0 %v6220_v51, %s11975_s9  ;;  %v12214_v34 = vld [vmem:[#allocation77_spill] sm:$0xff]  ;;  %v12215_v5 = vld [vmem:[#allocation71_spill] sm:$0xff]  ;;  %v7424_v33 = vmul.f32 %v12210_v3, %v6050_v29  ;;  %v1719_v7 = vmul.f32 %v7392_v41, %v1683_v0  ;;  %v7442_v62 = vrot.slane %v7401_v48, %v6951_v50  ;;  %v12226_v6 = vld [vmem:[#allocation160_spill] sm:$0xff]  ;;  %s12481_s9 = smov 19  }
 0x37b   : > { %v7339_v45 = vpop.permute.xlu1 %1656  ;;  %v1167_v19 = vsel %vm1162_vm10, %v12215_v5, %v12214_v34  ;;  %v12220_v34 = vld [vmem:[#allocation41_spill] sm:$0xff]  ;;  %v1294_v0 = vmul.f32 %v12181_v32, %v1278_v16 }
 0x37c   : > { %12197 = vst [vmem:[#allocation98_spill] sm:$0xff] %v7339_v45  ;;  %3432 = vrot.lane.b32.xlu1 %v6200_v17, %s12062_s3  ;;  %v7352_v2 = vpop.permute.xlu0 %3872  ;;  %v1567_v45 = vadd.f32 %v1563_v25, %v1515_v15  ;;  %v1222_v25 = vadd.f32 %v1214_v57, %v1142_v43  ;;  %v12218_v15 = vld [vmem:[#allocation74_spill] sm:$0xff]  ;;  %v1639_v61 = vmul.f32 %v12220_v34, %v1623_v28  ;;  %v12222_v43 = vld [vmem:[#allocation79_spill] sm:$0xff]  ;;  %v12223_v57 = vld [vmem:[#allocation73_spill] sm:$0xff] }
 0x37d   : > { %12198 = vst [vmem:[#allocation275_spill] sm:$0xff] %v7352_v2  ;;  %v1195_v1 = vmul.f32 %v7184_v31, %v1167_v19  ;;  %v7481_v31 = vmul.f32 %v12210_v3, %v6220_v51 }
 0x37e   : > { %1580 = vrot.lane.b32.xlu0 %v6220_v51, %s11950_s21  ;;  %v1647_v10 = vadd.f32 %v1639_v61, %v1567_v45  ;;  %v1302_v32 = vadd.f32 %v1294_v0, %v1222_v25  ;;  %v12231_v45 = vld [vmem:[#allocation42_spill] sm:$0xff]  ;;  %v12233_v0 = vld [vmem:[#allocation109_spill] sm:$0xff] }
 0x37f   : > { %v7378_v2 = vpop.permute.xlu1 %1766  ;;  %12230 = vst [vmem:[#allocation280_spill] sm:$0xff] %v7481_v31  ;;  %v1745_v19 = vmul.f32 %v12231_v45, %v1719_v7  ;;  %v1485_v7 = vrot.slane %v7271_v35, %v7074_v27 }
 0x380   : > { %12203 = vst [vmem:[#allocation100_spill] sm:$0xff] %v7378_v2  ;;  %3978 = vrot.lane.b32.xlu1 %v6050_v29, %s12204_s15  ;;  %v7386_v23 = vpop.permute.xlu0 %3348  ;;  %v1330_v2 = vsel %vm11666_vm12, %v12212_v4, %v12177_v39  ;;  %v12219_v4 = vld [vmem:[#allocation67_spill] sm:$0xff] }
 0x381   : > { %12205 = vst [vmem:[#allocation276_spill] sm:$0xff] %v7386_v23  ;;  %v7409_v23 = vmul.f32 %v12210_v3, %v6032_v12  ;;  %v7428_v12 = vrot.slane %v7226_v13, %v7074_v27  ;;  %12221 = vst [vmem:[#allocation67_spill] sm:$0xff] %v7442_v62  ;;  %v7447_v13 = vld [vmem:[%s11116_s5 + $0x42] ss:$8 sm:$0xf] }
 0x382   : > { %1776 = vrot.lane.b32.xlu0 %v6220_v51, %s11986_s10  ;;  %v7471_v16 = vrot.slane %v7447_v13, %v6951_v50 }
 0x383   : > { %12211 = vst [vmem:[#allocation102_spill] sm:$0xff] %v7409_v23  ;;  %v7416_v55 = vpop.permute.xlu1 %2980  ;;  %12216 = vst [vmem:[#allocation71_spill] sm:$0xff] %v7428_v12  ;;  %v1358_v56 = vmul.f32 %v7428_v12, %v1330_v2  ;;  %v7475_v2 = vrot.slane %v7257_v20, %v7074_v27  ;;  %v7490_v20 = vld [vmem:[%s11116_s5 + $0x43] ss:$8 sm:$0xf] }
 0x384   : > { %12213 = vst [vmem:[#allocation53_spill] sm:$0xff] %v7416_v55  ;;  %3980 = vrot.lane.b32.xlu1 %v6220_v51, %s12204_s15  ;;  %v7432_v39 = vpop.permute.xlu0 %3481  ;;  %v1085_v55 = vsel %vm11604_vm9, %v12219_v4, %v12218_v15  ;;  %v12225_v15 = vld [vmem:[#allocation104_spill] sm:$0xff] }
 0x385   : > { %12217 = vst [vmem:[#allocation278_spill] sm:$0xff] %v7432_v39  ;;  %v1247_v39 = vsel %vm11602_vm11, %v12223_v57, %v12222_v43  ;;  %v1793_v28 = vsel %vm11572_vm5, %v12225_v15, %v12224_v18  ;;  %v1410_v43 = vsel %vm11600_vm13, %v12226_v6, %v12183_v24  ;;  %12228 = vst [vmem:[#allocation104_spill] sm:$0xff] %v7471_v16  ;;  %v12234_v18 = vld [vmem:[#allocation106_spill] sm:$0xff]  ;;  %v12245_v23 = vld [vmem:[#allocation108_spill] sm:$0xff] }
 0x386   : > { %1986 = vrot.lane.b32.xlu0 %v6220_v51, %s11992_s8  ;;  %12229 = vst [vmem:[#allocation279_spill] sm:$0xff] %v7475_v2  ;;  %v1113_v24 = vmul.f32 %v7152_v30, %v1085_v55  ;;  %v1275_v61 = vmul.f32 %v7215_v63, %v1247_v39  ;;  %v1829_v6 = vmul.f32 %v7442_v62, %v1793_v28  ;;  %v12235_v55 = vld [vmem:[#allocation56_spill] sm:$0xff] }
 0x387   : > { %v7467_v41 = vpop.permute.xlu1 %2986  ;;  %v1901_v31 = vsel %vm11575_vm3, %v12234_v18, %v12233_v0  ;;  %v1374_v30 = vmul.f32 %v12187_v26, %v1358_v56  ;;  %v1438_v63 = vmul.f32 %v7475_v2, %v1410_v43  ;;  %v1211_v39 = vmul.f32 %v12235_v55, %v1195_v1  ;;  %v12238_v56 = vld [vmem:[#allocation76_spill] sm:$0xff]  ;;  %v12239_v43 = vld [vmem:[#allocation66_spill] sm:$0xff] }
 0x388   : > { %12227 = vst [vmem:[#allocation73_spill] sm:$0xff] %v7467_v41  ;;  %2384 = vrot.lane.b32.xlu1 %v5970_v40, %s11931_s28  ;;  %v1757_v28 = vadd.f32 %v1745_v19, %v1647_v10  ;;  %v1327_v35 = vsel %vm11666_vm12, %v12239_v43, %v12238_v56  ;;  %v7518_v26 = vrot.slane %v7490_v20, %v6951_v50  ;;  %v12241_v10 = vld [vmem:[#allocation55_spill] sm:$0xff] }
 0x389   : > { %v7492_v25 = vpop.permute.xlu0 %4017  ;;  %v1382_v1 = vadd.f32 %v1374_v30, %v1302_v32  ;;  %v1131_v19 = vmul.f32 %v12241_v10, %v1113_v24  ;;  %v1937_v62 = vmul.f32 %v7471_v16, %v1901_v31  ;;  %v7530_v56 = vld [vmem:[%s11116_s5 + $0x44] ss:$8 sm:$0xf]  ;;  %v1998_v32 = vsel %vm11662_vm1, %v12245_v23, %v12244_v52  ;;  %v7547_v16 = vld [vmem:[%s11116_s5 + $0x45] ss:$8 sm:$0xf] }
 0x38a   : > { %12232 = vst [vmem:[#allocation281_spill] sm:$0xff] %v7492_v25  ;;  %2112 = vrot.lane.b32.xlu0 %v6220_v51, %s11998_s7  ;;  %v12236_v25 = vld [vmem:[#allocation162_spill] sm:$0xff]  ;;  %12240 = vst [vmem:[#allocation66_spill] sm:$0xff] %v7518_v26  ;;  %v1454_v30 = vmul.f32 %v12193_v46, %v1438_v63  ;;  %v1537_v24 = vrot.slane %v7304_v14, %v7074_v27  ;;  %v1355_v31 = vmul.f32 %v7246_v21, %v1327_v35  ;;  %v12247_v63 = vld [vmem:[#allocation164_spill] sm:$0xff]  ;;  %s12297_s7 = smov 114  }
 0x38b   : > { %v1478_v0 = vsel %vm11557_vm14, %v12236_v25, %v12189_v58  ;;  %v7510_v40 = vpop.permute.xlu1 %3770  ;;  %v12242_v58 = vld [vmem:[#allocation60_spill] sm:$0xff]  ;;  %v12250_v46 = vld [vmem:[#allocation69_spill] sm:$0xff]  ;;  %v2079_v21 = vrot.slane %v7530_v56, %v6951_v50  ;;  %vm11659_vm14 = vcmp.lt.s32.totalorder %v6942_v22, 2 }
 0x38c   : > { %12237 = vst [vmem:[#allocation106_spill] sm:$0xff] %v7510_v40  ;;  %3424 = vrot.lane.b32.xlu1 %v5976_v47, %s12062_s3  ;;  %v1291_v25 = vmul.f32 %v12242_v58, %v1275_v61  ;;  %v12243_v40 = vld [vmem:[#allocation43_spill] sm:$0xff]  ;;  %v1502_v2 = vmul.f32 %v1485_v7, %v1478_v0  ;;  %v1219_v61 = vadd.f32 %v1211_v39, %v1131_v19  ;;  %v12249_v7 = vld [vmem:[#allocation78_spill] sm:$0xff] }
 0x38d   : > { %v1853_v41 = vmul.f32 %v12243_v40, %v1829_v6  ;;  %v1530_v0 = vsel %vm11553_vm15, %v12247_v63, %v12195_v60  ;;  %v1462_v39 = vadd.f32 %v1454_v30, %v1382_v1  ;;  %v12253_v60 = vld [vmem:[#allocation44_spill] sm:$0xff]  ;;  %v2029_v63 = vmul.f32 %v7518_v26, %v1998_v32  ;;  %v12257_v30 = vld [vmem:[#allocation63_spill] sm:$0xff]  ;;  %v12258_v26 = vld [vmem:[#allocation166_spill] sm:$0xff] }
 0x38e   : > { %2256 = vrot.lane.b32.xlu0 %v6220_v51, %s12004_s2  ;;  %v7541_v6 = vpop.permute.xlu0 %2837  ;;  %v1299_v35 = vadd.f32 %v1291_v25, %v1219_v61  ;;  %v1961_v19 = vmul.f32 %v12253_v60, %v1937_v62  ;;  %vm11592_vm15 = vcmp.lt.s32.totalorder %v6942_v22, 3  ;;  %v2131_v1 = vrot.slane %v7547_v16, %v6951_v50 }
 0x38f   : > { %12246 = vst [vmem:[#allocation108_spill] sm:$0xff] %v7541_v6  ;;  %v1865_v52 = vadd.f32 %v1853_v41, %v1757_v28  ;;  %v7553_v14 = vpop.permute.xlu1 %3772  ;;  %v1407_v6 = vsel %vm11600_vm13, %v12250_v46, %v12249_v7  ;;  %v12251_v41 = vld [vmem:[#allocation80_spill] sm:$0xff]  ;;  %v12255_v7 = vld [vmem:[#allocation110_spill] sm:$0xff]  ;;  %v1510_v25 = vmul.f32 %v12199_v59, %v1502_v2  ;;  %v1554_v62 = vmul.f32 %v1537_v24, %v1530_v0  ;;  %v12260_v46 = vld [vmem:[#allocation81_spill] sm:$0xff] }
 0x390   : > { %12248 = vst [vmem:[#allocation282_spill] sm:$0xff] %v7553_v14  ;;  %2762 = vrot.lane.b32.xlu1 %v5974_v44, %s11969_s30  ;;  %v7565_v28 = vmul.f32 %v12210_v3, %v12251_v41  ;;  %v12254_v14 = vld [vmem:[#allocation113_spill] sm:$0xff]  ;;  %v1371_v61 = vmul.f32 %v12257_v30, %v1355_v31  ;;  %v1594_v10 = vsel %vm11624_vm7, %v12258_v26, %v12201_v36  ;;  %v12261_v2 = vld [vmem:[#allocation72_spill] sm:$0xff] }
 0x391   : > { %v2067_v58 = vsel %vm11589_vm8, %v12255_v7, %v12254_v14  ;;  %v7579_v3 = vld [vmem:[%s11116_s5 + $0x46] ss:$8 sm:$0xf]  ;;  %v1973_v14 = vadd.f32 %v1961_v19, %v1865_v52  ;;  %v1591_v24 = vsel %vm11624_vm7, %v12261_v2, %v12260_v46  ;;  %v7601_v31 = vrot.slane %v7344_v42, %v7074_v27  ;;  %v7617_v42 = vld [vmem:[%s11116_s5 + $0x47] ss:$8 sm:$0xf] }
 0x392   : > { %12252 = vst [vmem:[#allocation283_spill] sm:$0xff] %v7565_v28  ;;  %1072 = vrot.lane.b32.xlu0 %v6200_v17, %s11958_s1  ;;  %v7584_v32 = vpop.permute.xlu0 %2833  ;;  %v1435_v28 = vmul.f32 %v7280_v9, %v1407_v6  ;;  %v1514_v9 = vadd.f32 %v1510_v25, %v1462_v39  ;;  %v7606_v52 = vld [vmem:[%s11115_s4] sm:$0xff]  ;;  %v1379_v36 = vadd.f32 %v1371_v61, %v1299_v35  ;;  %v12262_v6 = vld [vmem:[#allocation45_spill] sm:$0xff]  ;;  %v12264_v25 = vld [vmem:[#allocation115_spill] sm:$0xff] }
 0x393   : > { %12256 = vst [vmem:[#allocation110_spill] sm:$0xff] %v7584_v32  ;;  %v7592_v12 = vpop.permute.xlu1 %1668  ;;  %v2045_v0 = vmul.f32 %v12262_v6, %v2029_v63  ;;  %v2093_v19 = vmul.f32 %v2079_v21, %v2067_v58  ;;  %v7612_v46 = vrot.slane %v7579_v3, %v6951_v50  ;;  %v5047_v39 = vld [vmem:[%s11116_s5 + $0x62] ss:$8 sm:$0xf]  ;;  %v1562_v63 = vmul.f32 %v12206_v37, %v1554_v62 }
 0x394   : > { %12259 = vst [vmem:[#allocation284_spill] sm:$0xff] %v7592_v12  ;;  %2937 = vperm.xlu1 %5359, %v7606_v52   ;;  %v12265_v59 = vld [vmem:[#allocation112_spill] sm:$0xff]  ;;  %v1622_v21 = vmul.f32 %v7601_v31, %v1594_v10  ;;  %v12267_v26 = vld [vmem:[#allocation61_spill] sm:$0xff]  ;;  %v7648_v10 = vrot.slane %v7617_v42, %v6951_v50  ;;  %v7651_v62 = vrot.slane %v5047_v39, %v7074_v27 }
 0x395   : > { %12263 = vst [vmem:[#allocation285_spill] sm:$0xff] %v7612_v46  ;;  %v2119_v35 = vsel %vm11592_vm15, %v12265_v59, %v12264_v25  ;;  %v7630_v58 = vld [vmem:[%s11116_s5 + $0x63] ss:$8 sm:$0xf]  ;;  %v1451_v12 = vmul.f32 %v12267_v26, %v1435_v28  ;;  %v1619_v25 = vmul.f32 %v7371_v38, %v1591_v24  ;;  %v2053_v32 = vadd.f32 %v2045_v0, %v1973_v14 }
 0x396   : > { %2506 = vrot.lane.b32.xlu0 %v12251_v41, %s11953_s16  ;;  %v7636_v61 = vpop.permute.xlu0 %2390  ;;  %v12268_v30 = vld [vmem:[#allocation168_spill] sm:$0xff]  ;;  %12270 = vst [vmem:[#allocation287_spill] sm:$0xff] %v7648_v10  ;;  %v1566_v38 = vadd.f32 %v1562_v63, %v1514_v9  ;;  %v7658_v14 = vrot.slane %v7363_v54, %v7074_v27  ;;  %v12272_v24 = vld [vmem:[#allocation46_spill] sm:$0xff]  ;;  %v12273_v63 = vmov 32   ;;  %v7683_v37 = vrot.slane %v7401_v48, %v7074_v27 }
 0x397   : > { %12266 = vst [vmem:[#allocation112_spill] sm:$0xff] %v7636_v61  ;;  %v1686_v2 = vsel %vm1674_vm0, %v12268_v30, %v12209_v49  ;;  %v7644_v55 = vpop.permute.xlu1 %1778  ;;  %v5046_v28 = vld [vmem:[%s11116_s5 + $0x61] ss:$8 sm:$0xf]  ;;  %v1459_v49 = vadd.f32 %v1451_v12, %v1379_v36  ;;  %v2101_v0 = vmul.f32 %v12272_v24, %v2093_v19  ;;  %v2145_v30 = vmul.f32 %v2131_v1, %v2119_v35 }
 0x398   : > { %12269 = vst [vmem:[#allocation286_spill] sm:$0xff] %v7644_v55  ;;  %12271 = vst [vmem:[#allocation288_spill] sm:$0xff] %v7658_v14  ;;  %3512 = vrot.lane.b32.xlu1 %v6200_v17, %s12146_s14  ;;  %v7669_v9 = vld [vmem:[%s11116_s5 + $0x64] ss:$8 sm:$0xf]  ;;  %v1638_v19 = vmul.f32 %v12220_v34, %v1622_v21  ;;  %v1718_v35 = vmul.f32 %v7658_v14, %v1686_v2  ;;  %v7701_v34 = vrot.slane %v5046_v28, %v6951_v50 }
 0x399   : > { %v5050_v54 = vld [vmem:[%s11116_s5 + $0x65] ss:$8 sm:$0xf]  ;;  %5360 = vset.pattern.permute.xlu1 %v12273_v63  ;;  %v2105_v26 = vadd.f32 %v2101_v0, %v2053_v32 }
 0x39a   : > { %v12274_v12 = vld [vmem:[#allocation117_spill] sm:$0xff]  ;;  %v12275_v36 = vld [vmem:[#allocation114_spill] sm:$0xff]  ;;  %2578 = vrot.lane.b32.xlu0 %v12251_v41, %s11957_s0  ;;  %v7687_v61 = vpop.permute.xlu0 %2829  ;;  %v12278_v55 = vld [vmem:[#allocation64_spill] sm:$0xff]  ;;  %12282 = vst [vmem:[#allocation292_spill] sm:$0xff] %v7701_v34  ;;  %v1646_v32 = vadd.f32 %v1638_v19, %v1566_v38  ;;  %s12475_s0 = smov 17  }
 0x39b   : > { %v2182_v1 = vsel %vm11659_vm14, %v12275_v36, %v12274_v12  ;;  %12276 = vst [vmem:[#allocation114_spill] sm:$0xff] %v7683_v37  ;;  %12277 = vst [vmem:[#allocation289_spill] sm:$0xff] %v7687_v61  ;;  %v1635_v63 = vmul.f32 %v12278_v55, %v1619_v25  ;;  %v7692_v12 = vrot.slane %v5046_v28, %v7074_v27  ;;  %v12280_v21 = vld [vmem:[#allocation170_spill] sm:$0xff]  ;;  %v7698_v48 = vpop.permute.xlu1 %3768  ;;  %v12283_v0 = vld [vmem:[#allocation47_spill] sm:$0xff] }
 0x39c   : > { %v1796_v2 = vsel %vm11572_vm5, %v12280_v21, %v12225_v15  ;;  %12281 = vst [vmem:[#allocation291_spill] sm:$0xff] %v7698_v48  ;;  %v7706_v25 = vrot.slane %v5050_v54, %v7074_v27  ;;  %4030 = vrot.lane.b32.xlu1 %v6050_v29, %s5625_s27  ;;  %v2153_v14 = vmul.f32 %v12283_v0, %v2145_v30  ;;  %v5051_v28 = vld [vmem:[%s11116_s5 + $0x66] ss:$8 sm:$0xf]  ;;  %vm11597_vm5 = vcmp.lt.s32.totalorder %v6942_v22, 125 }
 0x39d   : > { %12279 = vst [vmem:[#allocation290_spill] sm:$0xff] %v7692_v12  ;;  %v2213_v55 = vmul.f32 %v7612_v46, %v2182_v1  ;;  %v7713_v15 = vrot.slane %v5047_v39, %v6951_v50  ;;  %v7718_v21 = vadd.f32 %v1635_v63, %v1459_v49  ;;  %v12285_v61 = vld [vmem:[#allocation119_spill] sm:$0xff]  ;;  %v12286_v48 = vld [vmem:[#allocation116_spill] sm:$0xff]  ;;  %v1744_v29 = vmul.f32 %v12231_v45, %v1718_v35 }
 0x39e   : > { %v2273_v38 = vsel %vm2264_vm6, %v12286_v48, %v12285_v61  ;;  %v1828_v30 = vmul.f32 %v7683_v37, %v1796_v2  ;;  %v7729_v39 = vrot.slane %v7447_v13, %v7074_v27  ;;  %2630 = vrot.lane.b32.xlu0 %v12251_v41, %s11961_s18  ;;  %v2157_v49 = vadd.f32 %v2153_v14, %v2105_v26  ;;  %v5052_v35 = vld [vmem:[%s11116_s5 + $0x67] ss:$8 sm:$0xf]  ;;  %v7761_v61 = vld [vmem:[%s11116_s5 + $0x80] ss:$8 sm:$0xf] }
 0x39f   : > { %12284 = vst [vmem:[#allocation293_spill] sm:$0xff] %v7718_v21  ;;  %v12288_v63 = vld [vmem:[#allocation172_spill] sm:$0xff]  ;;  %v7744_v2 = vpop.permute.xlu1 %1874  ;;  %v7746_v45 = vpop.permute.xlu0 %3565  ;;  %v7749_v26 = vrot.slane %v5050_v54, %v6951_v50  ;;  %v7752_v14 = vrot.slane %v5051_v28, %v6951_v50  ;;  %v1756_v19 = vadd.f32 %v1744_v29, %v1646_v32  ;;  %v7756_v1 = vrot.slane %v7490_v20, %v7074_v27  ;;  %v12295_v32 = vld [vmem:[#allocation174_spill] sm:$0xff]  ;;  %v12305_v21 = vld [vmem:[#allocation51_spill] sm:$0xff]  ;;  %s13317_s18 = sld [smem:[#allocation350_spill]] }
 0x3a0   : > { %12287 = vst [vmem:[#allocation116_spill] sm:$0xff] %v7729_v39  ;;  %v1904_v13 = vsel %vm11575_vm3, %v12288_v63, %v12234_v18  ;;  %12289 = vst [vmem:[#allocation294_spill] sm:$0xff] %v7744_v2  ;;  %4032 = vrot.lane.b32.xlu1 %v6220_v51, %s5625_s27  ;;  %v12293_v18 = vld [vmem:[#allocation49_spill] sm:$0xff]  ;;  %v2309_v54 = vmul.f32 %v7648_v10, %v2273_v38  ;;  %v7768_v2 = vrot.slane %v5051_v28, %v7074_v27  ;;  %v12304_v10 = vld [vmem:[#allocation127_spill] sm:$0xff] }
 0x3a1   : > { %12290 = vst [vmem:[#allocation295_spill] sm:$0xff] %v7746_v45  ;;  %12291 = vst [vmem:[#allocation296_spill] sm:$0xff] %v7752_v14  ;;  %v2229_v63 = vmul.f32 %v12293_v18, %v2213_v55  ;;  %v2000_v20 = vsel %vm11662_vm1, %v12295_v32, %v12245_v23  ;;  %vm11595_vm3 = vcmp.lt.s32.totalorder %v6942_v22, 115  ;;  %v7776_v29 = vrot.slane %v5052_v35, %v6951_v50  ;;  %v12300_v32 = vld [vmem:[#allocation176_spill] sm:$0xff] }
 0x3a2   : > { %12292 = vst [vmem:[#allocation297_spill] sm:$0xff] %v7756_v1  ;;  %12294 = vst [vmem:[#allocation298_spill] sm:$0xff] %v7768_v2  ;;  %v1852_v45 = vmul.f32 %v12243_v40, %v1828_v30  ;;  %v1936_v46 = vmul.f32 %v7729_v39, %v1904_v13  ;;  %v2075_v55 = vrot.slane %v7530_v56, %v7074_v27  ;;  %2690 = vrot.lane.b32.xlu0 %v12251_v41, %s12297_s7  ;;  %v12303_v56 = vld [vmem:[#allocation126_spill] sm:$0xff] }
 0x3a3   : > { %12296 = vst [vmem:[#allocation299_spill] sm:$0xff] %v7776_v29  ;;  %v2237_v28 = vadd.f32 %v2229_v63, %v2157_v49  ;;  %v7785_v38 = vrot.slane %v5052_v35, %v7074_v27  ;;  %v7789_v23 = vrot.slane %v7761_v61, %v6951_v50  ;;  %v2068_v30 = vsel %vm11589_vm8, %v12300_v32, %v12255_v7  ;;  %v7795_v13 = vpop.permute.xlu1 %3084  ;;  %v7797_v40 = vpop.permute.xlu0 %3561  ;;  %v12306_v32 = vld [vmem:[#allocation178_spill] sm:$0xff] }
 0x3a4   : > { %12301 = vst [vmem:[#allocation302_spill] sm:$0xff] %v7795_v13  ;;  %12302 = vst [vmem:[#allocation303_spill] sm:$0xff] %v7797_v40  ;;  %v2414_v49 = vsel %vm2408_vm4, %v12304_v10, %v12303_v56  ;;  %v1864_v35 = vadd.f32 %v1852_v45, %v1756_v19  ;;  %v2028_v63 = vmul.f32 %v7756_v1, %v2000_v20  ;;  %3504 = vrot.lane.b32.xlu1 %v5976_v47, %s12146_s14  ;;  %v12307_v19 = vld [vmem:[#allocation122_spill] sm:$0xff]  ;;  %v12310_v1 = vld [vmem:[#allocation133_spill] sm:$0xff] }
 0x3a5   : > { %12298 = vst [vmem:[#allocation300_spill] sm:$0xff] %v7785_v38  ;;  %12299 = vst [vmem:[#allocation301_spill] sm:$0xff] %v7789_v23  ;;  %v2127_v39 = vrot.slane %v7547_v16, %v7074_v27  ;;  %v2333_v7 = vmul.f32 %v12305_v21, %v2309_v54  ;;  %v2120_v40 = vsel %vm11592_vm15, %v12306_v32, %v12265_v59  ;;  %v12308_v16 = vld [vmem:[#allocation83_spill] sm:$0xff]  ;;  %vm11674_vm8 = vcmp.lt.s32.totalorder %v6942_v22, 114 }
 0x3a6   : > { %v7815_v13 = vrot.slane %v7579_v3, %v7074_v27  ;;  %v7819_v45 = vrot.slane %v7617_v42, %v7074_v27  ;;  %v2514_v20 = vsel %vm11725_vm2, %v12308_v16, %v12307_v19  ;;  %v12309_v54 = vld [vmem:[#allocation135_spill] sm:$0xff]  ;;  %v1960_v59 = vmul.f32 %v12253_v60, %v1936_v46  ;;  %2778 = vrot.lane.b32.xlu0 %v12251_v41, %s11969_s30  ;;  %v12311_v16 = vld [vmem:[#allocation180_spill] sm:$0xff]  ;;  %v12313_v46 = vld [vmem:[#allocation137_spill] sm:$0xff] }
 0x3a7   : > { %v1169_v56 = vsel %vm1162_vm10, %v12309_v54, %v12215_v5  ;;  %v2092_v32 = vmul.f32 %v2075_v55, %v2068_v30  ;;  %v2345_v3 = vadd.f32 %v2333_v7, %v2237_v28  ;;  %v2453_v42 = vmul.f32 %v7701_v34, %v2414_v49  ;;  %v7841_v5 = vpop.permute.xlu1 %3088  ;;  %v12316_v54 = vld [vmem:[#allocation118_spill] sm:$0xff] }
 0x3a8   : > { %v1087_v37 = vsel %vm11604_vm9, %v12310_v1, %v12219_v4  ;;  %v2184_v23 = vsel %vm11659_vm14, %v12311_v16, %v12275_v36  ;;  %12312 = vst [vmem:[#allocation127_spill] sm:$0xff] %v7841_v5  ;;  %v1249_v55 = vsel %vm11602_vm11, %v12313_v46, %v12223_v57  ;;  %v1972_v28 = vadd.f32 %v1960_v59, %v1864_v35  ;;  %v7850_v4 = vpop.permute.xlu0 %4069  ;;  %v12315_v36 = vld [vmem:[#allocation124_spill] sm:$0xff]  ;;  %v12317_v35 = vld [vmem:[#allocation182_spill] sm:$0xff] }
 0x3a9   : > { %v2044_v30 = vmul.f32 %v12262_v6, %v2028_v63  ;;  %v2144_v49 = vmul.f32 %v2127_v39, %v2120_v40  ;;  %2870 = vrot.lane.b32.xlu1 %v5974_v44, %s12057_s20  ;;  %12314 = vst [vmem:[#allocation122_spill] sm:$0xff] %v7850_v4  ;;  %v7853_v7 = vmul.f32 %v7651_v62, %v2514_v20  ;;  %v12318_v39 = vld [vmem:[#allocation82_spill] sm:$0xff]  ;;  %v12319_v20 = vld [vmem:[#allocation145_spill] sm:$0xff]  ;;  %vm2780_vm15 = vcmp.lt.s32.totalorder %v6942_v22, 113  ;;  %v12336_v6 = vld [vmem:[#allocation279_spill] sm:$0xff] }
 0x3aa   : > { %v2583_v16 = vsel %vm11597_vm5, %v12316_v54, %v12315_v36  ;;  %v1194_v57 = vmul.f32 %v7348_v11, %v1169_v56  ;;  %v2276_v40 = vsel %vm2264_vm6, %v12317_v35, %v12286_v48  ;;  %v2417_v63 = vsel %vm2408_vm4, %v12318_v39, %v12304_v10  ;;  %2886 = vrot.lane.b32.xlu0 %v12251_v41, %s12057_s20  ;;  %v12320_v10 = vld [vmem:[#allocation139_spill] sm:$0xff]  ;;  %v12383_v4 = vld [vmem:[#allocation169_spill] sm:$0xff] }
 0x3ab   : > { %v2512_v59 = vsel %vm11725_vm2, %v12307_v19, %v12319_v20  ;;  %v2100_v46 = vmul.f32 %v12272_v24, %v2092_v32  ;;  %v2212_v60 = vmul.f32 %v7815_v13, %v2184_v23  ;;  %v2381_v11 = vadd.f32 %v7424_v33, %v2345_v3  ;;  %v7884_v54 = vpop.permute.xlu1 %3822  ;;  %v12322_v19 = vld [vmem:[#allocation54_spill] sm:$0xff]  ;;  %v12323_v33 = vld [vmem:[#allocation128_spill] sm:$0xff]  ;;  %v12334_v35 = vld [vmem:[#allocation143_spill] sm:$0xff] }
 0x3ac   : > { %v1112_v48 = vmul.f32 %v7318_v53, %v1087_v37  ;;  %v1274_v56 = vmul.f32 %v7382_v8, %v1249_v55  ;;  %v1329_v39 = vsel %vm11666_vm12, %v12320_v10, %v12239_v43  ;;  %12321 = vst [vmem:[#allocation124_spill] sm:$0xff] %v7884_v54  ;;  %v2477_v32 = vmul.f32 %v12322_v19, %v2453_v42  ;;  %v12324_v37 = vld [vmem:[#allocation120_spill] sm:$0xff]  ;;  %v12326_v55 = vld [vmem:[#allocation69_spill] sm:$0xff]  ;;  %v12399_v54 = vld [vmem:[#allocation114_spill] sm:$0xff] }
 0x3ad   : > { %v2052_v24 = vadd.f32 %v2044_v30, %v1972_v28  ;;  %v2152_v23 = vmul.f32 %v12283_v0, %v2144_v49  ;;  %v2308_v20 = vmul.f32 %v7819_v45, %v2276_v40  ;;  %3045 = vperm.xlu1 %5360, %v7606_v52   ;;  %v2635_v53 = vsel %vm11595_vm3, %v12324_v37, %v12323_v33  ;;  %v12325_v8 = vld [vmem:[#allocation56_spill] sm:$0xff]  ;;  %v12327_v43 = vld [vmem:[#allocation141_spill] sm:$0xff]  ;;  %v7901_v28 = vpop.permute.xlu0 %3645  ;;  %v12329_v30 = vld [vmem:[#allocation71_spill] sm:$0xff] }
 0x3ae   : > { %v1210_v3 = vmul.f32 %v12325_v8, %v1194_v57  ;;  %v1409_v10 = vsel %vm11600_vm13, %v12327_v43, %v12326_v55  ;;  %v2545_v42 = vmul.f32 %v7713_v15, %v2512_v59  ;;  %12328 = vst [vmem:[#allocation128_spill] sm:$0xff] %v7901_v28  ;;  %v1354_v52 = vmul.f32 %v12329_v30, %v1329_v39  ;;  %v12330_v49 = vld [vmem:[#allocation147_spill] sm:$0xff]  ;;  %v12332_v8 = vld [vmem:[#allocation60_spill] sm:$0xff]  ;;  %v12388_v44 = vld [vmem:[#allocation177_spill] sm:$0xff] }
 0x3af   : > { %v2582_v40 = vsel %vm11597_vm5, %v12315_v36, %v12330_v49  ;;  %v2104_v37 = vadd.f32 %v2100_v46, %v2052_v24  ;;  %v2228_v57 = vmul.f32 %v12293_v18, %v2212_v60  ;;  %2994 = vrot.lane.b32.xlu0 %v12251_v41, %s12085_s24  ;;  %v2489_v55 = vadd.f32 %v2477_v32, %v2381_v11  ;;  %v12331_v43 = vld [vmem:[#allocation55_spill] sm:$0xff]  ;;  %v12333_v0 = vld [vmem:[#allocation72_spill] sm:$0xff]  ;;  %v7917_v30 = vpop.permute.xlu1 %3824  ;;  %v12337_v24 = vld [vmem:[#allocation149_spill] sm:$0xff] }
 0x3b0   : > { %v1130_v59 = vmul.f32 %v12331_v43, %v1112_v48  ;;  %v1290_v1 = vmul.f32 %v12332_v8, %v1274_v56  ;;  %v1593_v39 = vsel %vm11624_vm7, %v12334_v35, %v12333_v0  ;;  %12335 = vst [vmem:[#allocation69_spill] sm:$0xff] %v7917_v30  ;;  %v1434_v36 = vmul.f32 %v12336_v6, %v1409_v10  ;;  %v12339_v32 = vld [vmem:[#allocation58_spill] sm:$0xff] }
 0x3b1   : > { %v2634_v60 = vsel %vm11595_vm3, %v12323_v33, %v12337_v24  ;;  %v2156_v46 = vadd.f32 %v2152_v23, %v2104_v37  ;;  %v2332_v11 = vmul.f32 %v12305_v21, %v2308_v20  ;;  %3592 = vrot.lane.b32.xlu1 %v6200_v17, %s12160_s13  ;;  %v12338_v48 = vrot.slane %v7630_v58, %v7074_v27  ;;  %v7936_v23 = vpop.permute.xlu0 %3976  ;;  %v12343_v37 = vld [vmem:[#allocation63_spill] sm:$0xff] }
 0x3b2   : > { %v2452_v0 = vmul.f32 %v7692_v12, %v2417_v63  ;;  %v2561_v35 = vmul.f32 %v12339_v32, %v2545_v42  ;;  %v12340_v6 = vrot.slane %v7630_v58, %v6951_v50  ;;  %vm2888_vm3 = vcmp.lt.s32.totalorder %v6942_v22, 112  ;;  %12341 = vst [vmem:[#allocation71_spill] sm:$0xff] %v7936_v23  ;;  %v7944_v63 = vld [vmem:[%s11116_s5 + $0x81] ss:$8 sm:$0xf] }
 0x3b3   : > { %v2608_v56 = vmul.f32 %v12338_v48, %v2583_v16  ;;  %v12342_v20 = vmov 0   ;;  %v1218_v33 = vadd.f32 %v1210_v3, %v1130_v59  ;;  %v1370_v8 = vmul.f32 %v12343_v37, %v1354_v52  ;;  %12344 = vst [vmem:[#allocation72_spill] sm:$0xff] %v7944_v63  ;;  %3094 = vrot.lane.b32.xlu0 %v12251_v41, %s12345_s22  ;;  %v12350_v59 = vld [vmem:[#allocation130_spill] sm:$0xff]  ;;  %v12364_v37 = vld [vmem:[#allocation151_spill] sm:$0xff] }
 0x3b4   : > { %v2609_v10 = vmul.f32 %v12340_v6, %v2582_v40  ;;  %5361 = vset.pattern.permute.xlu1 %v12342_v20  ;;  %v1618_v18 = vmul.f32 %v7601_v31, %v1593_v39  ;;  %v2236_v16 = vadd.f32 %v2228_v57, %v2156_v46  ;;  %v12346_v58 = vrot.slane %v7669_v9, %v7074_v27  ;;  %v7959_v57 = vpop.permute.xlu1 %1886  ;;  %v12351_v39 = vld [vmem:[#allocation121_spill] sm:$0xff]  ;;  %v12377_v21 = vld [vmem:[#allocation159_spill] sm:$0xff] }
 0x3b5   : > { %v2569_v40 = vadd.f32 %v2561_v35, %v2489_v55  ;;  %v12347_v3 = vrot.slane %v7669_v9, %v6951_v50  ;;  %vm2996_vm5 = vcmp.lt.s32.totalorder %v6942_v22, 111  ;;  %v7957_v31 = vrot.slane %v7761_v61, %v7074_v27  ;;  %12349 = vst [vmem:[#allocation304_spill] sm:$0xff] %v7959_v57  ;;  %3584 = vrot.lane.b32.xlu1 %v5976_v47, %s12160_s13  ;;  %v12353_v61 = vld [vmem:[#allocation57_spill] sm:$0xff] }
 0x3b6   : > { %v2660_v42 = vmul.f32 %v12346_v58, %v2635_v53  ;;  %v2698_v46 = vsel %vm11674_vm8, %v12351_v39, %v12350_v59  ;;  %v1298_v48 = vadd.f32 %v1290_v1, %v1218_v33  ;;  %v12352_v53 = vld [vmem:[#allocation61_spill] sm:$0xff]  ;;  %v2344_v55 = vadd.f32 %v2332_v11, %v2236_v16  ;;  %v7980_v1 = vpop.permute.xlu0 %2768  ;;  %v12356_v33 = vld [vmem:[#allocation64_spill] sm:$0xff] }
 0x3b7   : > { %v2661_v52 = vmul.f32 %v12347_v3, %v2634_v60  ;;  %12348 = vst [vmem:[#allocation279_spill] sm:$0xff] %v7957_v31  ;;  %v1450_v35 = vmul.f32 %v12352_v53, %v1434_v36  ;;  %v7970_v9 = vmul.f32 %v12339_v32, %v7853_v7  ;;  %v7973_v60 = vmul.f32 %v12353_v61, %v2608_v56  ;;  %v7991_v56 = vld [vmem:[%s11116_s5 + $0x82] ss:$8 sm:$0xf] }
 0x3b8   : > { %v2617_v6 = vmul.f32 %v12353_v61, %v2609_v10  ;;  %v7978_v20 = vrot.slane %v7944_v63, %v6951_v50  ;;  %12355 = vst [vmem:[#allocation305_spill] sm:$0xff] %v7980_v1  ;;  %v2476_v36 = vmul.f32 %v12322_v19, %v2452_v0  ;;  %v1378_v11 = vadd.f32 %v1370_v8, %v1298_v48  ;;  %v7996_v10 = vld [vmem:[%s11116_s5 + $0x83] ss:$8 sm:$0xf] }
 0x3b9   : > { %v1634_v16 = vmul.f32 %v12356_v33, %v1618_v18  ;;  %v7986_v7 = vrot.slane %v7944_v63, %v7074_v27  ;;  %12358 = vst [vmem:[#allocation307_spill] sm:$0xff] %v7991_v56  ;;  %12359 = vst [vmem:[#allocation308_spill] sm:$0xff] %v7996_v10  ;;  %3166 = vrot.lane.b32.xlu0 %v12251_v41, %s12360_s6  ;;  %v12361_v8 = vld [vmem:[#allocation59_spill] sm:$0xff]  ;;  %v8004_v18 = vmul.f32 %v7706_v25, %v2698_v46  ;;  %v8012_v33 = vpop.permute.xlu1 %3080  ;;  %v12365_v19 = vld [vmem:[#allocation153_spill] sm:$0xff]  ;;  %s12381_s6 = smov 51  }
 0x3ba   : > { %12354 = vst [vmem:[#allocation130_spill] sm:$0xff] %v7978_v20  ;;  %v8001_v0 = vmul.f32 %v12361_v8, %v2660_v42  ;;  %v2621_v58 = vadd.f32 %v2617_v6, %v2569_v40  ;;  %v2669_v3 = vmul.f32 %v12361_v8, %v2661_v52  ;;  %v8010_v48 = vld [vmem:[%s11116_s5 + $0x84] ss:$8 sm:$0xf]  ;;  %12363 = vst [vmem:[#allocation310_spill] sm:$0xff] %v8012_v33  ;;  %vm11646_vm13 = vcmp.lt.s32.totalorder %v6942_v22, 109  ;;  %v8032_v8 = vpop.permute.xlu0 %3508 }
 0x3bb   : > { %12357 = vst [vmem:[#allocation306_spill] sm:$0xff] %v7986_v7  ;;  %12362 = vst [vmem:[#allocation309_spill] sm:$0xff] %v8010_v48  ;;  %v1458_v53 = vadd.f32 %v1450_v35, %v1378_v11  ;;  %v2696_v42 = vsel %vm11674_vm8, %v12350_v59, %v12364_v37  ;;  %v12366_v61 = vld [vmem:[#allocation132_spill] sm:$0xff]  ;;  %v12367_v46 = vld [vmem:[#allocation102_spill] sm:$0xff]  ;;  %vm11750_vm11 = vcmp.lt.s32.totalorder %v6942_v22, 110  ;;  %v8045_v11 = vrot.slane %v8010_v48, %v6951_v50 }
 0x3bc   : > { %v2786_v40 = vsel %vm2780_vm15, %v12366_v61, %v12365_v19  ;;  %v2380_v52 = vadd.f32 %v12367_v46, %v2344_v55  ;;  %v12368_v6 = vld [vmem:[#allocation68_spill] sm:$0xff]  ;;  %12369 = vst [vmem:[#allocation132_spill] sm:$0xff] %v8032_v8  ;;  %v12370_v19 = vld [vmem:[#allocation161_spill] sm:$0xff]  ;;  %v12371_v55 = vld [vmem:[#allocation131_spill] sm:$0xff]  ;;  %vm12375_vm9 = vcmp.lt.s32.totalorder %v6942_v22, 16  ;;  %v2789_v24 = vsel %vm2780_vm15, %v12377_v21, %v12366_v61 }
 0x3bd   : > { %2984 = vrot.lane.b32.xlu1 %v12368_v6, %s12085_s24  ;;  %v8034_v39 = vadd.f32 %v1634_v16, %v1458_v53  ;;  %v1682_v46 = vsel %vm1674_vm0, %v12371_v55, %v12370_v19  ;;  %v5058_v59 = vld [vmem:[%s11116_s5 + $0x85] ss:$8 sm:$0xf]  ;;  %3218 = vrot.lane.b32.xlu0 %v12251_v41, %s12372_s23  ;;  %v8052_v53 = vadd.f32 %v2669_v3, %v2621_v58  ;;  %v8064_v43 = vpop.permute.xlu1 %2240  ;;  %vm11655_vm7 = vcmp.lt.s32.totalorder %v6942_v22, 99  ;;  %s12497_s23 = smov 15  }
 0x3be   : > { %v8055_v16 = vmul.f32 %v7749_v26, %v2696_v42  ;;  %v8058_v19 = vmul.f32 %v7752_v14, %v2786_v40  ;;  %v12373_v35 = vld [vmem:[#allocation171_spill] sm:$0xff]  ;;  %v12374_v32 = vld [vmem:[#allocation138_spill] sm:$0xff]  ;;  %12376 = vst [vmem:[#allocation102_spill] sm:$0xff] %v8064_v43  ;;  %v12378_v58 = vld [vmem:[#allocation165_spill] sm:$0xff]  ;;  %v2488_v1 = vadd.f32 %v2476_v36, %v2380_v52  ;;  %v8087_v21 = vrot.slane %v8010_v48, %v7074_v27  ;;  %v8092_v23 = vpop.permute.xlu0 %3641 }
 0x3bf   : > { %v1792_v37 = vsel %vm12375_vm9, %v12374_v32, %v12373_v35  ;;  %v12379_v3 = vld [vmem:[#allocation163_spill] sm:$0xff]  ;;  %v12382_v35 = vld [vmem:[#allocation277_spill] sm:$0xff]  ;;  %12384 = vst [vmem:[#allocation68_spill] sm:$0xff] %v8092_v23  ;;  %v8117_v43 = vrot.slane %v5058_v59, %v7074_v27  ;;  %vm11692_vm12 = vcmp.lt.s32.totalorder %v6942_v22, 93 }
 0x3c0   : > { %v2894_v42 = vsel %vm2888_vm3, %v12379_v3, %v12378_v58  ;;  %v12380_v40 = vld [vmem:[#allocation167_spill] sm:$0xff]  ;;  %v1715_v8 = vmul.f32 %v12382_v35, %v1682_v46  ;;  %v2897_v61 = vsel %vm2888_vm3, %v12383_v4, %v12379_v3  ;;  %v8090_v58 = vrot.slane %v5058_v59, %v6951_v50  ;;  %v12398_v59 = vld [vmem:[#allocation301_spill] sm:$0xff] }
 0x3c1   : > { %v1685_v49 = vsel %vm1674_vm0, %v12380_v40, %v12371_v55  ;;  %649 = vrot.lane.b32.xlu1 %v6220_v51, %s12381_s6  ;;  %v12385_v36 = vld [vmem:[#allocation67_spill] sm:$0xff]  ;;  %v12387_v40 = vld [vmem:[#allocation173_spill] sm:$0xff]  ;;  %v1795_v3 = vsel %vm12375_vm9, %v12388_v44, %v12374_v32  ;;  %3278 = vrot.lane.b32.xlu0 %v12251_v41, %s12106_s19  ;;  %v8113_v23 = vmul.f32 %v7776_v29, %v2894_v42  ;;  %v8122_v44 = vpop.permute.xlu1 %2349  ;;  %vm12395_vm9 = vcmp.lt.s32.totalorder %v6942_v22, 15  ;;  %s12414_s6 = smov 47  }
 0x3c2   : > { %v1825_v52 = vmul.f32 %v12385_v36, %v1792_v37  ;;  %v12386_v55 = vld [vmem:[#allocation175_spill] sm:$0xff]  ;;  %v8110_v37 = vmul.f32 %v7768_v2, %v2789_v24  ;;  %12391 = vst [vmem:[#allocation131_spill] sm:$0xff] %v8117_v43  ;;  %12392 = vst [vmem:[#allocation138_spill] sm:$0xff] %v8122_v44  ;;  %v12394_v24 = vld [vmem:[#allocation140_spill] sm:$0xff]  ;;  %v2568_v33 = vadd.f32 %v7970_v9, %v2488_v1 }
 0x3c3   : > { %v3002_v46 = vsel %vm2996_vm5, %v12387_v40, %v12386_v55  ;;  %v12389_v4 = vld [vmem:[#allocation179_spill] sm:$0xff]  ;;  %v12390_v55 = vld [vmem:[#allocation288_spill] sm:$0xff]  ;;  %v1824_v5 = vmul.f32 %v12399_v54, %v1795_v3  ;;  %v12413_v36 = vld [vmem:[#allocation293_spill] sm:$0xff] }
 0x3c4   : > { %v3005_v48 = vsel %vm2996_vm5, %v12389_v4, %v12387_v40  ;;  %v1714_v63 = vmul.f32 %v12390_v55, %v1685_v49  ;;  %v5059_v32 = vld [vmem:[%s11116_s5 + $0x86] ss:$8 sm:$0xf]  ;;  %v8125_v40 = vmul.f32 %v7785_v38, %v2897_v61  ;;  %v3041_v57 = vmul.f32 %v12398_v59, %v3002_v46  ;;  %v8138_v61 = vpop.permute.xlu0 %2756 }
 0x3c5   : > { %v12393_v4 = vld [vmem:[#allocation181_spill] sm:$0xff]  ;;  %v12396_v49 = vld [vmem:[#allocation224_spill] sm:$0xff]  ;;  %756 = vrot.lane.b32.xlu1 %v6220_v51, %s12397_s17  ;;  %v3040_v44 = vmul.f32 %v7957_v31, %v3005_v48  ;;  %12400 = vst [vmem:[#allocation163_spill] sm:$0xff] %v8138_v61  ;;  %v12401_v55 = vld [vmem:[#allocation134_spill] sm:$0xff]  ;;  %v8146_v9 = vrot.slane %v5059_v32, %v7074_v27  ;;  %v8164_v35 = vpop.permute.xlu1 %3272  ;;  %s12460_s17 = smov 32  }
 0x3c6   : > { %v1900_v42 = vsel %vm12395_vm9, %v12394_v24, %v12393_v4  ;;  %v1741_v30 = vmul.f32 %v12396_v49, %v1715_v8  ;;  %v1849_v28 = vmul.f32 %v12401_v55, %v1825_v52  ;;  %v8143_v4 = vrot.slane %v5059_v32, %v6951_v50  ;;  %v12404_v1 = vld [vmem:[#allocation75_spill] sm:$0xff]  ;;  %v12405_v46 = vld [vmem:[#allocation104_spill] sm:$0xff] }
 0x3c7   : > { %12403 = vst [vmem:[#allocation140_spill] sm:$0xff] %v8146_v9  ;;  %2404 = vrot.lane.b32.xlu0 %v12404_v1, %s11931_s28  ;;  %v11628_v8 = vmov 0.0   ;;  %v1933_v48 = vmul.f32 %v12405_v46, %v1900_v42  ;;  %v12406_v3 = vld [vmem:[#allocation187_spill] sm:$0xff]  ;;  %v12408_v54 = vld [vmem:[#allocation188_spill] sm:$0xff]  ;;  %v1740_v32 = vmul.f32 %v12396_v49, %v1714_v63  ;;  %v12411_v42 = vld [vmem:[#allocation193_spill] sm:$0xff] }
 0x3c8   : > { %12402 = vst [vmem:[#allocation173_spill] sm:$0xff] %v8143_v4  ;;  %4184 = vmatprep.mubr.f32.mxu1 %v11628_v8  ;;  %v1903_v52 = vsel %vm12395_vm9, %v12406_v3, %v12394_v24  ;;  %v12407_v61 = vld [vmem:[#allocation191_spill] sm:$0xff]  ;;  %12409 = vst [vmem:[#allocation188_spill] sm:$0xff] %v8164_v35  ;;  %v12412_v24 = vld [vmem:[#allocation197_spill] sm:$0xff]  ;;  %v1753_v63 = vadd.f32 %v1741_v30, %v12413_v36  ;;  %v1848_v35 = vmul.f32 %v12401_v55, %v1824_v5 }
 0x3c9   : > { %v1997_v59 = vsel %vm11662_vm1, %v12408_v54, %v12407_v61  ;;  %v5060_v31 = vld [vmem:[%s11116_s5 + $0x87] ss:$8 sm:$0xf]  ;;  %v1999_v3 = vsel %vm11662_vm1, %v12412_v24, %v12408_v54  ;;  %v2620_v61 = vadd.f32 %v7973_v60, %v2568_v33  ;;  %860 = vrot.lane.b32.xlu1 %v6220_v51, %s12414_s6  ;;  %v8189_v24 = vpop.permute.xlu0 %4028  ;;  %vm3280_vm9 = vcmp.lt.s32.totalorder %v6942_v22, 98  ;;  %s12469_s6 = smov 30  }
 0x3ca   : > { %v12410_v8 = vld [vmem:[#allocation195_spill] sm:$0xff]  ;;  %v12415_v49 = vld [vmem:[#allocation136_spill] sm:$0xff]  ;;  %12418 = vst [vmem:[#allocation193_spill] sm:$0xff] %v8189_v24  ;;  %v12419_v30 = vld [vmem:[#allocation189_spill] sm:$0xff]  ;;  %v8198_v5 = vrot.slane %v5060_v31, %v6951_v50  ;;  %vm11805_vm1 = vcmp.lt.s32.totalorder %v6942_v22, 94 }
 0x3cb   : > { %v3170_v46 = vsel %vm11646_vm13, %v12411_v42, %v12410_v8  ;;  %v8179_v38 = vmul.f32 %v12415_v49, %v3041_v57  ;;  %v8183_v29 = vmul.f32 %v12415_v49, %v3040_v44  ;;  %v12416_v8 = vld [vmem:[#allocation185_spill] sm:$0xff]  ;;  %v12417_v2 = vld [vmem:[#allocation183_spill] sm:$0xff]  ;;  %v12420_v33 = vld [vmem:[#allocation66_spill] sm:$0xff]  ;;  %2504 = vrot.lane.b32.xlu0 %v12404_v1, %s11953_s16  ;;  %v12424_v49 = vrot.slane %v7991_v56, %v6951_v50  ;;  %s12428_s16 = smov 45  }
 0x3cc   : > { %v3100_v54 = vsel %vm11750_vm11, %v12417_v2, %v12416_v8  ;;  %v3102_v60 = vsel %vm11750_vm11, %v12419_v30, %v12417_v2  ;;  %v2025_v57 = vmul.f32 %v12420_v33, %v1997_v59  ;;  %v12421_v36 = vld [vmem:[#allocation234_spill] sm:$0xff]  ;;  %12422 = vst [vmem:[#allocation293_spill] sm:$0xff] %v8198_v5  ;;  %v12423_v44 = vld [vmem:[#allocation116_spill] sm:$0xff]  ;;  %v12425_v24 = vld [vmem:[#allocation297_spill] sm:$0xff]  ;;  %v1752_v2 = vadd.f32 %v1740_v32, %v8034_v39 }
 0x3cd   : > { %v1957_v14 = vmul.f32 %v12421_v36, %v1933_v48  ;;  %v1932_v55 = vmul.f32 %v12423_v44, %v1903_v52  ;;  %v3197_v8 = vmul.f32 %v12424_v49, %v3170_v46  ;;  %v2024_v41 = vmul.f32 %v12425_v24, %v1999_v3  ;;  %v5061_v59 = vld [vmem:[%s11116_s5 + $0xa0] ss:$8 sm:$0xf]  ;;  %v8212_v48 = vpop.permute.xlu1 %3874  ;;  %964 = vrot.lane.b32.xlu1 %v6220_v51, %s12428_s16  ;;  %s12735_s16 = smov 93  }
 0x3ce   : > { %12426 = vst [vmem:[#allocation183_spill] sm:$0xff] %v8212_v48  ;;  %v8215_v33 = vmul.f32 %v7978_v20, %v3100_v54  ;;  %v2672_v52 = vadd.f32 %v8001_v0, %v2620_v61  ;;  %v1861_v30 = vadd.f32 %v1849_v28, %v1753_v63  ;;  %v8219_v49 = vrot.slane %v5060_v31, %v7074_v27  ;;  %v12429_v46 = vld [vmem:[#allocation198_spill] sm:$0xff]  ;;  %v12430_v32 = vld [vmem:[#allocation200_spill] sm:$0xff]  ;;  %v8235_v31 = vpop.permute.xlu0 %2876  ;;  %v12443_v44 = vld [vmem:[#allocation285_spill] sm:$0xff] }
 0x3cf   : > { %v8224_v39 = vmul.f32 %v7986_v7, %v3102_v60  ;;  %v3171_v3 = vsel %vm11646_vm13, %v12429_v46, %v12411_v42  ;;  %v12431_v24 = vld [vmem:[#allocation194_spill] sm:$0xff]  ;;  %v1956_v28 = vmul.f32 %v12421_v36, %v1932_v55  ;;  %12432 = vst [vmem:[#allocation297_spill] sm:$0xff] %v8235_v31  ;;  %v12433_v61 = vld [vmem:[#allocation184_spill] sm:$0xff]  ;;  %v8239_v60 = vrot.slane %v5061_v59, %v6951_v50  ;;  %v12442_v7 = vld [vmem:[#allocation199_spill] sm:$0xff] }
 0x3d0   : > { %12427 = vst [vmem:[#allocation66_spill] sm:$0xff] %v8219_v49  ;;  %v2181_v0 = vsel %vm11659_vm14, %v12431_v24, %v12430_v32  ;;  %v2041_v63 = vmul.f32 %v12433_v61, %v2025_v57  ;;  %v1969_v54 = vadd.f32 %v1957_v14, %v1861_v30  ;;  %v8242_v48 = vrot.slane %v5061_v59, %v7074_v27  ;;  %v12436_v42 = vld [vmem:[#allocation186_spill] sm:$0xff]  ;;  %v12439_v36 = vld [vmem:[#allocation196_spill] sm:$0xff] }
 0x3d1   : > { %12434 = vst [vmem:[#allocation194_spill] sm:$0xff] %v8239_v60  ;;  %2688 = vrot.lane.b32.xlu0 %v12404_v1, %s12297_s7  ;;  %v8247_v46 = vmul.f32 %v12436_v42, %v3197_v8  ;;  %v2040_v32 = vmul.f32 %v12433_v61, %v2024_v41  ;;  %v12438_v55 = vld [vmem:[#allocation210_spill] sm:$0xff]  ;;  %vm3360_vm13 = vcmp.lt.s32.totalorder %v6942_v22, 97  ;;  %v1860_v14 = vadd.f32 %v1848_v35, %v1752_v2  ;;  %v8255_v30 = vpop.permute.xlu1 %3876  ;;  %v12445_v35 = vld [vmem:[#allocation203_spill] sm:$0xff]  ;;  %s12511_s7 = smov 13  }
 0x3d2   : > { %12435 = vst [vmem:[#allocation311_spill] sm:$0xff] %v8242_v48  ;;  %v2272_v57 = vsel %vm2264_vm6, %v12439_v36, %v12438_v55  ;;  %12440 = vst [vmem:[#allocation196_spill] sm:$0xff] %v8255_v30  ;;  %v12441_v59 = vrot.slane %v7991_v56, %v7074_v27  ;;  %v8262_v8 = vmul.f32 %v12442_v7, %v5976_v47  ;;  %v12444_v61 = vld [vmem:[#allocation206_spill] sm:$0xff]  ;;  %1074 = vrot.lane.b32.xlu1 %v6220_v51, %s11958_s1  ;;  %v12446_v30 = vld [vmem:[#allocation204_spill] sm:$0xff]  ;;  %s12506_s1 = smov 81  }
 0x3d3   : > { %12437 = vst [vmem:[#allocation312_spill] sm:$0xff] %v8247_v46  ;;  %v2209_v41 = vmul.f32 %v12443_v44, %v2181_v0  ;;  %v2183_v55 = vsel %vm11659_vm14, %v12444_v61, %v12431_v24  ;;  %v2744_v2 = vmul.f32 %v12445_v35, %v8004_v18  ;;  %v12447_v56 = vld [vmem:[#allocation202_spill] sm:$0xff]  ;;  %v12448_v47 = vld [vmem:[#allocation208_spill] sm:$0xff]  ;;  %v1968_v0 = vadd.f32 %v1956_v28, %v1860_v14  ;;  %v12450_v61 = vld [vmem:[#allocation287_spill] sm:$0xff] }
 0x3d4   : > { %v3196_v31 = vmul.f32 %v12441_v59, %v3171_v3  ;;  %v3222_v3 = vsel %vm11655_vm7, %v12447_v56, %v12446_v30  ;;  %v3223_v44 = vsel %vm11655_vm7, %v12448_v47, %v12447_v56  ;;  %v8281_v59 = vpop.permute.xlu0 %3588  ;;  %v2745_v24 = vmul.f32 %v12445_v35, %v8055_v16  ;;  %v12451_v18 = vld [vmem:[#allocation216_spill] sm:$0xff]  ;;  %v12452_v56 = vld [vmem:[#allocation38_spill] sm:$0xff] }
 0x3d5   : > { %12449 = vst [vmem:[#allocation199_spill] sm:$0xff] %v8281_v59  ;;  %v2305_v20 = vmul.f32 %v12450_v61, %v2272_v57  ;;  %v2275_v46 = vsel %vm2264_vm6, %v12451_v18, %v12439_v36  ;;  %v2049_v48 = vadd.f32 %v2041_v63, %v1969_v54  ;;  %v8293_v30 = vld [vmem:[%s11116_s5 + $0xa1] ss:$8 sm:$0xf]  ;;  %2776 = vrot.lane.b32.xlu0 %v12404_v1, %s11969_s30  ;;  %vm3440_vm7 = vcmp.lt.s32.totalorder %v6942_v22, 96  ;;  %v8309_v63 = vpop.permute.xlu1 %2258 }
 0x3d6   : > { %v2365_v28 = vmul.f32 %v12442_v7, %v12452_v56  ;;  %v8301_v16 = vmul.f32 %v12442_v7, %v6200_v17  ;;  %v8305_v57 = vmul.f32 %v12442_v7, %v12404_v1  ;;  %v2208_v36 = vmul.f32 %v7815_v13, %v2183_v55  ;;  %12455 = vst [vmem:[#allocation287_spill] sm:$0xff] %v8309_v63  ;;  %v12456_v54 = vld [vmem:[#allocation190_spill] sm:$0xff] }
 0x3d7   : > { %v2225_v14 = vmul.f32 %v12456_v54, %v2209_v41  ;;  %v12457_v18 = vrot.slane %v7996_v10, %v6951_v50  ;;  %v12458_v47 = vrot.slane %v7996_v10, %v7074_v27  ;;  %v12459_v35 = vld [vmem:[#allocation250_spill] sm:$0xff]  ;;  %1236 = vrot.lane.b32.xlu1 %v6220_v51, %s12460_s17  ;;  %v8322_v13 = vmul.f32 %v12436_v42, %v3196_v31  ;;  %v12477_v42 = vld [vmem:[#allocation237_spill] sm:$0xff] }
 0x3d8   : > { %12453 = vst [vmem:[#allocation285_spill] sm:$0xff] %v8301_v16  ;;  %12454 = vst [vmem:[#allocation202_spill] sm:$0xff] %v8305_v57  ;;  %v2329_v59 = vmul.f32 %v12459_v35, %v2305_v20  ;;  %v2304_v7 = vmul.f32 %v7819_v45, %v2275_v46  ;;  %v2048_v55 = vadd.f32 %v2040_v32, %v1968_v0  ;;  %v8327_v57 = vpop.permute.xlu0 %2864  ;;  %v8337_v31 = vld [vmem:[%s11116_s5 + $0xa2] ss:$8 sm:$0xf]  ;;  %vm3520_vm14 = vcmp.lt.s32.totalorder %v6942_v22, 95 }
 0x3d9   : > { %v3249_v56 = vmul.f32 %v12457_v18, %v3222_v3  ;;  %v3248_v16 = vmul.f32 %v12458_v47, %v3223_v44  ;;  %12461 = vst [vmem:[#allocation38_spill] sm:$0xff] %v8327_v57  ;;  %v2752_v3 = vadd.f32 %v2744_v2, %v2672_v52  ;;  %v2753_v18 = vadd.f32 %v2745_v24, %v8052_v53  ;;  %v12462_v47 = vld [vmem:[#allocation214_spill] sm:$0xff]  ;;  %v12463_v44 = vld [vmem:[#allocation212_spill] sm:$0xff]  ;;  %v12464_v32 = vld [vmem:[#allocation205_spill] sm:$0xff]  ;;  %v8350_v0 = vpop.permute.xlu1 %3264 }
 0x3da   : > { %v3284_v20 = vsel %vm3280_vm9, %v12463_v44, %v12462_v47  ;;  %v2233_v63 = vadd.f32 %v2225_v14, %v2049_v48  ;;  %2884 = vrot.lane.b32.xlu0 %v12404_v1, %s12057_s20  ;;  %v2224_v46 = vmul.f32 %v12456_v54, %v2208_v36  ;;  %v12465_v52 = vld [vmem:[#allocation227_spill] sm:$0xff]  ;;  %v2328_v2 = vmul.f32 %v12459_v35, %v2304_v7  ;;  %v12467_v24 = vld [vmem:[#allocation192_spill] sm:$0xff] }
 0x3db   : > { %v2413_v53 = vsel %vm2408_vm4, %v12465_v52, %v12464_v32  ;;  %12466 = vst [vmem:[#allocation212_spill] sm:$0xff] %v8350_v0  ;;  %v8353_v14 = vmul.f32 %v12467_v24, %v3249_v56  ;;  %v8356_v41 = vmul.f32 %v12467_v24, %v3248_v16  ;;  %v12468_v54 = vld [vmem:[#allocation108_spill] sm:$0xff]  ;;  %1396 = vrot.lane.b32.xlu1 %v6220_v51, %s12469_s6 }
 0x3dc   : > { %v2341_v36 = vadd.f32 %v2329_v59, %v2233_v63  ;;  %v2849_v47 = vmul.f32 %v12468_v54, %v8058_v19  ;;  %v8363_v7 = vmul.f32 %v8045_v11, %v3284_v20  ;;  %v2232_v35 = vadd.f32 %v2224_v46, %v2048_v55  ;;  %v8370_v48 = vpop.permute.xlu0 %2978  ;;  %v12471_v59 = vld [vmem:[#allocation218_spill] sm:$0xff]  ;;  %v12472_v63 = vld [vmem:[#allocation223_spill] sm:$0xff]  ;;  %v12473_v24 = vld [vmem:[#allocation220_spill] sm:$0xff] }
 0x3dd   : > { %v2848_v16 = vmul.f32 %v12468_v54, %v8110_v37  ;;  %12470 = vst [vmem:[#allocation227_spill] sm:$0xff] %v8370_v48  ;;  %v3286_v19 = vsel %vm3280_vm9, %v12471_v59, %v12463_v44  ;;  %v3364_v55 = vsel %vm3360_vm13, %v12473_v24, %v12472_v63  ;;  %v2449_v20 = vmul.f32 %v7701_v34, %v2413_v53  ;;  %v12474_v46 = vld [vmem:[#allocation233_spill] sm:$0xff]  ;;  %v8396_v63 = vpop.permute.xlu1 %2457 }
 0x3de   : > { %v2416_v56 = vsel %vm2408_vm4, %v12474_v46, %v12465_v52  ;;  %1662 = vrot.lane.b32.xlu0 %v12368_v6, %s12475_s0  ;;  %v12476_v37 = vld [vmem:[#allocation217_spill] sm:$0xff]  ;;  %v2340_v54 = vadd.f32 %v2328_v2, %v2232_v35  ;;  %12479 = vst [vmem:[#allocation220_spill] sm:$0xff] %v8396_v63  ;;  %v2377_v57 = vadd.f32 %v2365_v28, %v2341_v36  ;;  %v12485_v36 = vld [vmem:[#allocation207_spill] sm:$0xff] }
 0x3df   : > { %v2956_v32 = vmul.f32 %v12476_v37, %v8125_v40  ;;  %v12478_v44 = vld [vmem:[#allocation209_spill] sm:$0xff]  ;;  %v2957_v52 = vmul.f32 %v12476_v37, %v8113_v23  ;;  %v2861_v34 = vadd.f32 %v2849_v47, %v2753_v18  ;;  %1522 = vrot.lane.b32.xlu1 %v6220_v51, %s12481_s9  ;;  %v8407_v35 = vmul.f32 %v8087_v21, %v3286_v19  ;;  %v12484_v47 = vld [vmem:[#allocation231_spill] sm:$0xff] }
 0x3e0   : > { %v2511_v59 = vsel %vm11725_vm2, %v12478_v44, %v12477_v42  ;;  %v12480_v46 = vld [vmem:[#allocation225_spill] sm:$0xff]  ;;  %v8410_v2 = vmul.f32 %v8090_v58, %v3364_v55  ;;  %v2448_v53 = vmul.f32 %v7692_v12, %v2416_v56  ;;  %v2860_v42 = vadd.f32 %v2848_v16, %v2752_v3  ;;  %v12487_v16 = vld [vmem:[#allocation247_spill] sm:$0xff] }
 0x3e1   : > { %v3366_v40 = vsel %vm3360_vm13, %v12480_v46, %v12473_v24  ;;  %v8416_v23 = vld [vmem:[%s11116_s5 + $0xa3] ss:$8 sm:$0xf]  ;;  %v8418_v24 = vpop.permute.xlu0 %2972  ;;  %v3444_v19 = vsel %vm3440_vm7, %v12485_v36, %v12484_v47  ;;  %v2541_v55 = vmul.f32 %v7713_v15, %v2511_v59  ;;  %v2376_v47 = vadd.f32 %v8262_v8, %v2340_v54  ;;  %v8444_v63 = vpop.permute.xlu1 %3352  ;;  %v8455_v8 = vld [vmem:[%s11116_s5 + $0xa4] ss:$8 sm:$0xf] }
 0x3e2   : > { %12482 = vst [vmem:[#allocation209_spill] sm:$0xff] %v8418_v24  ;;  %v12483_v28 = vld [vmem:[#allocation201_spill] sm:$0xff]  ;;  %v12486_v46 = vld [vmem:[#allocation243_spill] sm:$0xff]  ;;  %2992 = vrot.lane.b32.xlu0 %v12404_v1, %s12085_s24  ;;  %v8433_v56 = vmul.f32 %v8117_v43, %v3366_v40  ;;  %12490 = vst [vmem:[#allocation207_spill] sm:$0xff] %v8444_v63  ;;  %v2969_v12 = vadd.f32 %v2957_v52, %v2861_v34  ;;  %v8460_v54 = vmul.f32 %v8143_v4, %v3444_v19 }
 0x3e3   : > { %v2473_v18 = vmul.f32 %v12483_v28, %v2449_v20  ;;  %v2513_v3 = vsel %vm11725_vm2, %v12486_v46, %v12478_v44  ;;  %v12488_v20 = vld [vmem:[#allocation213_spill] sm:$0xff]  ;;  %v12491_v44 = vld [vmem:[#allocation235_spill] sm:$0xff]  ;;  %1666 = vrot.lane.b32.xlu1 %v6220_v51, %s12475_s0  ;;  %vm12588_vm2 = vcmp.lt.s32.totalorder %v6942_v22, 16 }
 0x3e4   : > { %v2695_v37 = vsel %vm11674_vm8, %v12488_v20, %v12487_v16  ;;  %v12489_v15 = vld [vmem:[#allocation253_spill] sm:$0xff]  ;;  %v3446_v40 = vsel %vm3440_vm7, %v12491_v44, %v12485_v36  ;;  %12492 = vst [vmem:[#allocation213_spill] sm:$0xff] %v8455_v8  ;;  %v2540_v36 = vmul.f32 %v7651_v62, %v2513_v3  ;;  %v12496_v44 = vld [vmem:[#allocation239_spill] sm:$0xff]  ;;  %v3077_v3 = vadd.f32 %v8179_v38, %v2969_v12 }
 0x3e5   : > { %v2697_v59 = vsel %vm11674_vm8, %v12489_v15, %v12488_v20  ;;  %v2485_v46 = vadd.f32 %v2473_v18, %v2377_v57  ;;  %v2472_v20 = vmul.f32 %v12483_v28, %v2448_v53  ;;  %v2968_v57 = vadd.f32 %v2956_v32, %v2860_v42  ;;  %v8464_v34 = vpop.permute.xlu0 %704  ;;  %v12494_v52 = vld [vmem:[#allocation229_spill] sm:$0xff]  ;;  %v8483_v19 = vpop.permute.xlu1 %3926  ;;  %v12503_v12 = vld [vmem:[#allocation211_spill] sm:$0xff] }
 0x3e6   : > { %12493 = vst [vmem:[#allocation313_spill] sm:$0xff] %v8464_v34  ;;  %v2557_v18 = vmul.f32 %v12494_v52, %v2541_v55  ;;  %v12495_v43 = vld [vmem:[#allocation241_spill] sm:$0xff]  ;;  %v2725_v16 = vmul.f32 %v7749_v26, %v2695_v37  ;;  %v2724_v24 = vmul.f32 %v7706_v25, %v2697_v59  ;;  %1880 = vrot.lane.b32.xlu0 %v12368_v6, %s12497_s23  ;;  %vm11690_vm8 = vcmp.lt.s32.totalorder %v6942_v22, 83  ;;  %v12499_v37 = vld [vmem:[#allocation251_spill] sm:$0xff]  ;;  %v12585_v34 = vld [vmem:[#allocation106_spill] sm:$0xff] }
 0x3e7   : > { %v3524_v15 = vsel %vm3520_vm14, %v12496_v44, %v12495_v43  ;;  %v8476_v53 = vmul.f32 %v8146_v9, %v3446_v40  ;;  %v2484_v62 = vadd.f32 %v2472_v20, %v2376_v47  ;;  %v12498_v26 = vld [vmem:[#allocation245_spill] sm:$0xff]  ;;  %1884 = vrot.lane.b32.xlu1 %v6220_v51, %s12497_s23  ;;  %v12501_v20 = vld [vmem:[#allocation242_spill] sm:$0xff]  ;;  %v2556_v42 = vmul.f32 %v12494_v52, %v2540_v36  ;;  %v12505_v43 = vld [vmem:[#allocation259_spill] sm:$0xff] }
 0x3e8   : > { %v3526_v25 = vsel %vm3520_vm14, %v12498_v26, %v12496_v44  ;;  %v12500_v55 = vld [vmem:[#allocation249_spill] sm:$0xff]  ;;  %v2565_v59 = vadd.f32 %v2557_v18, %v2485_v46  ;;  %v8497_v40 = vmul.f32 %v8198_v5, %v3524_v15  ;;  %v3148_v32 = vmul.f32 %v12501_v20, %v8224_v39 }
 0x3e9   : > { %v3604_v47 = vsel %vm11805_vm1, %v12500_v55, %v12499_v37  ;;  %v3076_v44 = vadd.f32 %v8183_v29, %v2968_v57  ;;  %v8503_v26 = vpop.permute.xlu0 %808  ;;  %v3149_v37 = vmul.f32 %v12501_v20, %v8215_v33  ;;  %v2741_v38 = vmul.f32 %v12503_v12, %v2725_v16  ;;  %v12504_v18 = vld [vmem:[#allocation261_spill] sm:$0xff]  ;;  %v12507_v29 = vld [vmem:[#allocation80_spill] sm:$0xff]  ;;  %v8528_v57 = vpop.permute.xlu1 %3928 }
 0x3ea   : > { %12502 = vst [vmem:[#allocation239_spill] sm:$0xff] %v8503_v26  ;;  %v2740_v46 = vmul.f32 %v12503_v12, %v2724_v24  ;;  %v3674_v15 = vsel %vm11692_vm12, %v12505_v43, %v12504_v18  ;;  %v8516_v39 = vld [vmem:[%s11116_s5 + $0xa5] ss:$8 sm:$0xf]  ;;  %3826 = vrot.lane.b32.xlu0 %v12507_v29, %s12506_s1  ;;  %v8521_v36 = vmul.f32 %v8219_v49, %v3526_v25  ;;  %12508 = vst [vmem:[#allocation249_spill] sm:$0xff] %v8528_v57  ;;  %s13307_s1 = sld [smem:[#allocation349_spill]] }
 0x3eb   : > { %v8524_v33 = vmul.f32 %v8239_v60, %v3604_v47  ;;  %v2564_v24 = vadd.f32 %v2556_v42, %v2484_v62  ;;  %v12509_v18 = vld [vmem:[#allocation255_spill] sm:$0xff]  ;;  %v12510_v52 = vld [vmem:[#allocation265_spill] sm:$0xff]  ;;  %v3157_v28 = vadd.f32 %v3149_v37, %v3077_v3  ;;  %v8538_v20 = vadd.f32 %v2741_v38, %v2565_v59  ;;  %2060 = vrot.lane.b32.xlu1 %v6220_v51, %s12511_s7  ;;  %v12552_v26 = vld [vmem:[#allocation236_spill] sm:$0xff]  ;;  %s5628_s7 = smov [#allocation2]  }
 0x3ec   : > { %v3606_v12 = vsel %vm11805_vm1, %v12509_v18, %v12500_v55  ;;  %v3675_v25 = vsel %vm11692_vm12, %v12510_v52, %v12505_v43  ;;  %v12512_v62 = vld [vmem:[#allocation257_spill] sm:$0xff]  ;;  %v12513_v42 = vld [vmem:[#allocation219_spill] sm:$0xff]  ;;  %v12514_v16 = vrot.slane %v8293_v30, %v6951_v50  ;;  %v3156_v18 = vadd.f32 %v3148_v32, %v3076_v44  ;;  %v12517_v52 = vld [vmem:[#allocation248_spill] sm:$0xff] }
 0x3ed   : > { %v2785_v47 = vsel %vm2780_vm15, %v12513_v42, %v12512_v62  ;;  %v8551_v43 = vpop.permute.xlu0 %912  ;;  %v8553_v37 = vadd.f32 %v2740_v46, %v2564_v24  ;;  %v12516_v3 = vld [vmem:[#allocation263_spill] sm:$0xff]  ;;  %v8562_v62 = vsub.s32 2, %v12517_v52  ;;  %v12520_v46 = vrot.slane %v8293_v30, %v7074_v27  ;;  %v12521_v24 = vld [vmem:[#allocation228_spill] sm:$0xff]  ;;  %v8579_v60 = vpop.permute.xlu1 %3344 }
 0x3ee   : > { %v3701_v55 = vmul.f32 %v12514_v16, %v3674_v15  ;;  %12515 = vst [vmem:[#allocation259_spill] sm:$0xff] %v8551_v43  ;;  %v2788_v59 = vsel %vm2780_vm15, %v12516_v3, %v12513_v42  ;;  %3276 = vrot.lane.b32.xlu0 %v12404_v1, %s12106_s19  ;;  %v12519_v32 = vld [vmem:[#allocation311_spill] sm:$0xff]  ;;  %v12522_v16 = vld [vmem:[#allocation269_spill] sm:$0xff]  ;;  %v8577_v38 = vsub.s32 3, %v12517_v52  ;;  %12523 = vst [vmem:[#allocation219_spill] sm:$0xff] %v8579_v60  ;;  %s12527_s19 = smov 2  }
 0x3ef   : > { %12518 = vst [vmem:[#allocation80_spill] sm:$0xff] %v8562_v62  ;;  %v8567_v44 = vmul.f32 %v12519_v32, %v3606_v12  ;;  %v3700_v15 = vmul.f32 %v12520_v46, %v3675_v25  ;;  %v2893_v42 = vsel %vm2888_vm3, %v12522_v16, %v12521_v24  ;;  %v12524_v3 = vld [vmem:[#allocation296_spill] sm:$0xff]  ;;  %v12525_v12 = vld [vmem:[#allocation258_spill] sm:$0xff]  ;;  %2170 = vrot.lane.b32.xlu1 %v6220_v51, %s12527_s19  ;;  %v12528_v24 = vld [vmem:[#allocation215_spill] sm:$0xff]  ;;  %vm11741_vm12 = vcmp.lt.s32.totalorder %v6942_v22, 82 }
 0x3f0   : > { %v8582_v43 = vmul.f32 %v12524_v3, %v2785_v47  ;;  %v3332_v32 = vmul.f32 %v12525_v12, %v8407_v35  ;;  %v3333_v30 = vmul.f32 %v12525_v12, %v8363_v7  ;;  %v12526_v25 = vld [vmem:[#allocation312_spill] sm:$0xff]  ;;  %v8592_v49 = vmul.f32 %v12528_v24, %v3701_v55  ;;  %v12529_v52 = vld [vmem:[#allocation298_spill] sm:$0xff] }
 0x3f1   : > { %v3209_v46 = vadd.f32 %v12526_v25, %v3157_v28  ;;  %v8595_v9 = vmul.f32 %v12529_v52, %v2788_v59  ;;  %v12530_v47 = vld [vmem:[#allocation264_spill] sm:$0xff]  ;;  %v3208_v35 = vadd.f32 %v8322_v13, %v3156_v18  ;;  %v8602_v5 = vpop.permute.xlu0 %1016  ;;  %v12532_v28 = vld [vmem:[#allocation299_spill] sm:$0xff]  ;;  %v12534_v12 = vld [vmem:[#allocation230_spill] sm:$0xff] }
 0x3f2   : > { %v8599_v3 = vmul.f32 %v12530_v47, %v8433_v56  ;;  %12531 = vst [vmem:[#allocation248_spill] sm:$0xff] %v8602_v5  ;;  %v3413_v7 = vmul.f32 %v12530_v47, %v8410_v2  ;;  %v2929_v25 = vmul.f32 %v12532_v28, %v2893_v42  ;;  %v12533_v51 = vld [vmem:[#allocation272_spill] sm:$0xff]  ;;  %3356 = vrot.lane.b32.xlu0 %v12404_v1, %s12117_s25  ;;  %v12538_v56 = vld [vmem:[#allocation94_spill] sm:$0xff]  ;;  %v12546_v28 = vld [vmem:[#allocation221_spill] sm:$0xff] }
 0x3f3   : > { %v3726_v55 = vsel %vm11690_vm8, %v12534_v12, %v12533_v51  ;;  %v8614_v59 = vld [vmem:[%s11116_s5 + $0x1] ss:$8 sm:$0xf]  ;;  %v8621_v2 = vmul.f32 %v12528_v24, %v3700_v15  ;;  %v8628_v18 = vld [vmem:[%s11116_s5 + $0x3] ss:$8 sm:$0xf]  ;;  %v8639_v15 = vpop.permute.xlu1 %3924  ;;  %v2896_v24 = vsel %vm2888_vm3, %v12538_v56, %v12522_v16  ;;  %v3261_v5 = vadd.f32 %v8353_v14, %v3209_v46  ;;  %2406 = vrot.lane.b32.xlu1 %v12507_v29, %s11931_s28 }
 0x3f4   : > { %12535 = vst [vmem:[#allocation269_spill] sm:$0xff] %v8614_v59  ;;  %12536 = vst [vmem:[#allocation312_spill] sm:$0xff] %v8628_v18  ;;  %v8637_v51 = vld [vmem:[%s11116_s5 + $0xa6] ss:$8 sm:$0xf]  ;;  %v12541_v16 = vrot.slane %v8337_v31, %v6951_v50  ;;  %v8672_v4 = vmul.f32 %v12546_v28, %v2929_v25 }
 0x3f5   : > { %12537 = vst [vmem:[#allocation230_spill] sm:$0xff] %v8639_v15  ;;  %v12539_v47 = vld [vmem:[#allocation96_spill] sm:$0xff]  ;;  %v12543_v18 = vld [vmem:[#allocation238_spill] sm:$0xff]  ;;  %v3341_v48 = vadd.f32 %v3333_v30, %v3261_v5 }
 0x3f6   : > { %v3727_v42 = vsel %vm11690_vm8, %v12539_v47, %v12534_v12  ;;  %v8653_v13 = vld [vmem:[%s11116_s5 + $0x5] ss:$8 sm:$0xf]  ;;  %v3753_v56 = vmul.f32 %v12541_v16, %v3726_v55  ;;  %vm12544_vm8 = vcmp.lt.s32.totalorder %v6942_v22, 16  ;;  %v3260_v12 = vadd.f32 %v8356_v41, %v3208_v35  ;;  %v8669_v47 = vpop.permute.xlu0 %1156 }
 0x3f7   : > { %12540 = vst [vmem:[#allocation314_spill] sm:$0xff] %v8653_v13  ;;  %v12542_v52 = vld [vmem:[#allocation100_spill] sm:$0xff]  ;;  %12545 = vst [vmem:[#allocation238_spill] sm:$0xff] %v8669_v47  ;;  %v12548_v46 = vld [vmem:[#allocation70_spill] sm:$0xff]  ;;  %v12550_v47 = vrot.slane %v8337_v31, %v7074_v27  ;;  %v8698_v59 = vpop.permute.xlu1 %2396  ;;  %1154 = vrot.lane.b32.xlu1 %v6200_v17, %s11962_s11 }
 0x3f8   : > { %v1791_v14 = vsel %vm12544_vm8, %v12543_v18, %v12542_v52  ;;  %v8680_v16 = vld [vmem:[%s11116_s5 + $0x7] ss:$8 sm:$0xf]  ;;  %2402 = vrot.lane.b32.xlu0 %v12548_v46, %s11931_s28  ;;  %12553 = vst [vmem:[#allocation70_spill] sm:$0xff] %v8698_v59  ;;  %vm11749_vm8 = vcmp.lt.s32.totalorder %v6942_v22, 81 }
 0x3f9   : > { %12547 = vst [vmem:[#allocation315_spill] sm:$0xff] %v8680_v16  ;;  %v12549_v25 = vld [vmem:[#allocation300_spill] sm:$0xff]  ;;  %v3752_v55 = vmul.f32 %v12550_v47, %v3727_v42  ;;  %v12551_v13 = vld [vmem:[#allocation98_spill] sm:$0xff]  ;;  %v12554_v35 = vld [vmem:[#allocation67_spill] sm:$0xff] }
 0x3fa   : > { %v2928_v52 = vmul.f32 %v12549_v25, %v2896_v24  ;;  %v1681_v60 = vsel %vm1674_vm0, %v12552_v26, %v12551_v13  ;;  %v1821_v16 = vmul.f32 %v12554_v35, %v1791_v14  ;;  %v5426_v24 = vld [vmem:[%s11116_s5 + $0x21] ss:$8 sm:$0xf]  ;;  %v3340_v13 = vadd.f32 %v3332_v32, %v3260_v12  ;;  %v5427_v5 = vld [vmem:[%s11116_s5 + $0x23] ss:$8 sm:$0xf]  ;;  %v8724_v35 = vpop.permute.xlu0 %1316 }
 0x3fb   : > { %v8705_v31 = vrot.slane %v5426_v24, %v8562_v62  ;;  %v8708_v47 = vrot.slane %v5426_v24, %v8577_v38  ;;  %v12557_v42 = vld [vmem:[#allocation222_spill] sm:$0xff]  ;;  %v8719_v30 = vrot.slane %v5427_v5, %v8562_v62  ;;  %v8722_v14 = vrot.slane %v5427_v5, %v8577_v38  ;;  %12560 = vst [vmem:[#allocation318_spill] sm:$0xff] %v8724_v35  ;;  %v12561_v24 = vld [vmem:[#allocation277_spill] sm:$0xff]  ;;  %v12563_v25 = vld [vmem:[#allocation252_spill] sm:$0xff]  ;;  %v8752_v35 = vpop.permute.xlu1 %3428 }
 0x3fc   : > { %v8713_v41 = vmul.f32 %v12557_v42, %v3753_v56  ;;  %3982 = vrot.lane.b32.xlu0 %v12507_v29, %s12204_s15  ;;  %v8736_v32 = vld [vmem:[%s11116_s5 + $0x25] ss:$8 sm:$0xf]  ;;  %v8757_v12 = vld [vmem:[%s11116_s5 + $0xa7] ss:$8 sm:$0xf]  ;;  %1234 = vrot.lane.b32.xlu1 %v6200_v17, %s12460_s17 }
 0x3fd   : > { %12555 = vst [vmem:[#allocation236_spill] sm:$0xff] %v8705_v31  ;;  %12556 = vst [vmem:[#allocation67_spill] sm:$0xff] %v8708_v47  ;;  %v1711_v47 = vmul.f32 %v12561_v24, %v1681_v60  ;;  %v12562_v31 = vld [vmem:[#allocation53_spill] sm:$0xff]  ;;  %v8743_v60 = vmul.f32 %v12546_v28, %v2928_v52  ;;  %v8746_v24 = vmul.f32 %v12557_v42, %v3752_v55  ;;  %v12568_v5 = vld [vmem:[#allocation267_spill] sm:$0xff]  ;;  %s12638_s17 = sld [smem:[#allocation348_spill]] }
 0x3fe   : > { %12558 = vst [vmem:[#allocation316_spill] sm:$0xff] %v8719_v30  ;;  %12559 = vst [vmem:[#allocation317_spill] sm:$0xff] %v8722_v14  ;;  %v3004_v56 = vsel %vm2996_vm5, %v12563_v25, %v12562_v31  ;;  %v12565_v25 = vld [vmem:[#allocation274_spill] sm:$0xff]  ;;  %v3421_v52 = vadd.f32 %v3413_v7, %v3341_v48  ;;  %v12571_v42 = vld [vmem:[#allocation279_spill] sm:$0xff]  ;;  %v3420_v7 = vadd.f32 %v8599_v3, %v3340_v13 }
 0x3ff   : > { %12564 = vst [vmem:[#allocation277_spill] sm:$0xff] %v8736_v32  ;;  %v3492_v14 = vmul.f32 %v12565_v25, %v8476_v53  ;;  %v3493_v30 = vmul.f32 %v12565_v25, %v8460_v54  ;;  %12566 = vst [vmem:[#allocation53_spill] sm:$0xff] %v8752_v35  ;;  %v1845_v32 = vmul.f32 %v12568_v5, %v1821_v16  ;;  %v5429_v53 = vld [vmem:[%s11116_s5 + $0x27] ss:$8 sm:$0xf]  ;;  %v8777_v16 = vpop.permute.xlu0 %1470 }
 0x400   : > { %12567 = vst [vmem:[#allocation319_spill] sm:$0xff] %v8757_v12  ;;  %v8766_v55 = vrot.slane %v5429_v53, %v8562_v62  ;;  %v8769_v54 = vrot.slane %v5429_v53, %v8577_v38  ;;  %v3036_v25 = vmul.f32 %v12571_v42, %v3004_v56  ;;  %v12572_v28 = vld [vmem:[#allocation73_spill] sm:$0xff]  ;;  %12573 = vst [vmem:[#allocation322_spill] sm:$0xff] %v8777_v16  ;;  %v12575_v53 = vld [vmem:[#allocation226_spill] sm:$0xff]  ;;  %3516 = vrot.lane.b32.xlu0 %v12404_v1, %s12146_s14 }
 0x401   : > { %v3001_v48 = vsel %vm2996_vm5, %v12562_v31, %v12572_v28  ;;  %v5430_v59 = vld [vmem:[%s11116_s5 + $0x41] ss:$8 sm:$0xf]  ;;  %v8797_v28 = vpop.permute.xlu1 %3432  ;;  %1314 = vrot.lane.b32.xlu1 %v6200_v17, %s11944_s26 }
 0x402   : > { %12569 = vst [vmem:[#allocation320_spill] sm:$0xff] %v8766_v55  ;;  %12570 = vst [vmem:[#allocation321_spill] sm:$0xff] %v8769_v54  ;;  %v8783_v55 = vrot.slane %v5430_v59, %v8562_v62  ;;  %v1737_v54 = vmul.f32 %v12575_v53, %v1711_v47  ;;  %v12576_v56 = vld [vmem:[#allocation110_spill] sm:$0xff]  ;;  %v8793_v13 = vrot.slane %v5430_v59, %v8577_v38  ;;  %v12583_v47 = vld [vmem:[#allocation271_spill] sm:$0xff] }
 0x403   : > { %v2844_v42 = vmul.f32 %v12576_v56, %v8595_v9  ;;  %v2845_v31 = vmul.f32 %v12576_v56, %v8582_v43  ;;  %12578 = vst [vmem:[#allocation325_spill] sm:$0xff] %v8797_v28  ;;  %v5431_v9 = vld [vmem:[%s11116_s5 + $0x43] ss:$8 sm:$0xf]  ;;  %v3501_v43 = vadd.f32 %v3493_v30, %v3421_v52  ;;  %v3060_v35 = vmul.f32 %v12583_v47, %v3036_v25  ;;  %v8825_v30 = vpop.permute.xlu0 %1580 }
 0x404   : > { %12574 = vst [vmem:[#allocation323_spill] sm:$0xff] %v8783_v55  ;;  %12577 = vst [vmem:[#allocation324_spill] sm:$0xff] %v8793_v13  ;;  %v8805_v55 = vrot.slane %v5431_v9, %v8562_v62  ;;  %v8808_v3 = vrot.slane %v5431_v9, %v8577_v38  ;;  %v8810_v59 = vadd.f32 %v1845_v32, %v1737_v54  ;;  %v12581_v13 = vld [vmem:[#allocation301_spill] sm:$0xff]  ;;  %v12582_v56 = vld [vmem:[#allocation295_spill] sm:$0xff]  ;;  %2882 = vrot.lane.b32.xlu0 %v12548_v46, %s12057_s20  ;;  %s12793_s20 = sld [smem:[#allocation347_spill]] }
 0x405   : > { %v3037_v16 = vmul.f32 %v12581_v13, %v3001_v48  ;;  %v3573_v1 = vmul.f32 %v12582_v56, %v8497_v40  ;;  %v12584_v28 = vld [vmem:[#allocation282_spill] sm:$0xff]  ;;  %v3500_v9 = vadd.f32 %v3492_v14, %v3420_v7  ;;  %v3572_v32 = vmul.f32 %v12582_v56, %v8521_v36  ;;  %v12586_v52 = vld [vmem:[#allocation284_spill] sm:$0xff]  ;;  %1394 = vrot.lane.b32.xlu1 %v6200_v17, %s12469_s6 }
 0x406   : > { %12579 = vst [vmem:[#allocation326_spill] sm:$0xff] %v8805_v55  ;;  %12580 = vst [vmem:[#allocation327_spill] sm:$0xff] %v8808_v3  ;;  %v3778_v55 = vsel %vm11741_vm12, %v12585_v34, %v12584_v28  ;;  %v2856_v40 = vadd.f32 %v2844_v42, %v8553_v37  ;;  %v1684_v25 = vsel %vm1674_vm0, %v12586_v52, %v12552_v26  ;;  %v12587_v54 = vld [vmem:[#allocation286_spill] sm:$0xff]  ;;  %v12589_v14 = vld [vmem:[#allocation128_spill] sm:$0xff]  ;;  %v8843_v42 = vpop.permute.xlu1 %3978 }
 0x407   : > { %v1794_v48 = vsel %vm12588_vm2, %v12587_v54, %v12543_v18  ;;  %v3653_v7 = vmul.f32 %v12589_v14, %v8524_v33  ;;  %v2857_v36 = vadd.f32 %v2845_v31, %v8538_v20  ;;  %v3652_v37 = vmul.f32 %v12589_v14, %v8567_v44  ;;  %v8848_v26 = vld [vmem:[%s11116_s5 + $0x45] ss:$8 sm:$0xf]  ;;  %v5433_v14 = vld [vmem:[%s11116_s5 + $0x47] ss:$8 sm:$0xf] }
 0x408   : > { %12590 = vst [vmem:[#allocation301_spill] sm:$0xff] %v8848_v26  ;;  %v3061_v28 = vmul.f32 %v12583_v47, %v3037_v16  ;;  %v12591_v20 = vrot.slane %v8416_v23, %v6951_v50  ;;  %v3581_v44 = vadd.f32 %v3573_v1, %v3501_v43  ;;  %v8864_v54 = vrot.slane %v5433_v14, %v8562_v62  ;;  %v12593_v18 = vld [vmem:[#allocation288_spill] sm:$0xff]  ;;  %v12594_v33 = vld [vmem:[#allocation114_spill] sm:$0xff]  ;;  %v8868_v47 = vpop.permute.xlu0 %1776 }
 0x409   : > { %v1710_v56 = vmul.f32 %v12593_v18, %v1684_v25  ;;  %v1820_v52 = vmul.f32 %v12594_v33, %v1794_v48  ;;  %v3580_v16 = vadd.f32 %v3572_v32, %v3500_v9  ;;  %12595 = vst [vmem:[#allocation288_spill] sm:$0xff] %v8868_v47  ;;  %v12597_v1 = vld [vmem:[#allocation294_spill] sm:$0xff]  ;;  %vm12599_vm2 = vcmp.lt.s32.totalorder %v6942_v22, 15  ;;  %2990 = vrot.lane.b32.xlu0 %v12548_v46, %s12085_s24  ;;  %v12600_v25 = vld [vmem:[#allocation291_spill] sm:$0xff]  ;;  %s5472_s24 = sshll.u32 %s5628_s7, 4  ;;  %s5473_s24 = int_to_ptr.vmem [resolvable:$false] %s5472_s24 }
 0x40a   : > { %v3805_v31 = vmul.f32 %v12591_v20, %v3778_v55  ;;  %12592 = vst [vmem:[#allocation106_spill] sm:$0xff] %v8864_v54  ;;  %v8871_v55 = vrot.slane %v5433_v14, %v8577_v38  ;;  %v12598_v43 = vld [vmem:[#allocation254_spill] sm:$0xff]  ;;  %v3661_v26 = vadd.f32 %v3653_v7, %v3581_v44  ;;  %v2964_v3 = vadd.f32 %v8743_v60, %v2856_v40  ;;  %v8891_v18 = vpop.permute.xlu1 %3980  ;;  %v12603_v40 = vld [vmem:[#allocation232_spill] sm:$0xff]  ;;  %v12604_v44 = vld [vmem:[#allocation127_spill] sm:$0xff]  ;;  %s5474_s28 = scalar_lea.vmem %s5473_s24, 2048 }
 0x40b   : > { %v1899_v20 = vsel %vm12599_vm2, %v12598_v43, %v12597_v1  ;;  %v5434_v9 = vld [vmem:[%s11116_s5 + $0x20] ss:$8 sm:$0xf]  ;;  %v3779_v48 = vsel %vm11741_vm12, %v12600_v25, %v12585_v34  ;;  %v2965_v14 = vadd.f32 %v8672_v4, %v2857_v36  ;;  %v3660_v7 = vadd.f32 %v3652_v37, %v3580_v16  ;;  %12601 = vst [vmem:[#allocation254_spill] sm:$0xff] %v8891_v18 }
 0x40c   : > { %12596 = vst [vmem:[#allocation114_spill] sm:$0xff] %v8871_v55  ;;  %v8884_v32 = vrot.slane %v5434_v9, %v8562_v62  ;;  %v8894_v60 = vrot.slane %v5434_v9, %v8577_v38  ;;  %v3813_v33 = vmul.f32 %v12603_v40, %v3805_v31  ;;  %v12605_v1 = vld [vmem:[#allocation302_spill] sm:$0xff]  ;;  %1578 = vrot.lane.b32.xlu1 %v6200_v17, %s11950_s21  ;;  %v12608_v9 = vld [vmem:[#allocation104_spill] sm:$0xff]  ;;  %v8920_v25 = vpop.permute.xlu0 %1986  ;;  %vm11773_vm12 = vcmp.lt.s32.totalorder %v6942_v22, 79  ;;  %s13291_s21 = sld [smem:[#allocation351_spill]] }
 0x40d   : > { %v3099_v55 = vsel %vm11750_vm11, %v12605_v1, %v12604_v44  ;;  %v5435_v4 = vld [vmem:[%s11116_s5 + $0x62] ss:$8 sm:$0xf]  ;;  %v8915_v37 = vld [vmem:[%s11116_s5 + $0xc0] ss:$8 sm:$0xf]  ;;  %v1736_v31 = vmul.f32 %v12575_v53, %v1710_v56  ;;  %v1844_v16 = vmul.f32 %v12568_v5, %v1820_v52  ;;  %v1929_v44 = vmul.f32 %v12608_v9, %v1899_v20 }
 0x40e   : > { %12602 = vst [vmem:[#allocation328_spill] sm:$0xff] %v8894_v60  ;;  %v8907_v34 = vrot.slane %v5435_v4, %v8562_v62  ;;  %v8910_v36 = vrot.slane %v5435_v4, %v8577_v38  ;;  %12609 = vst [vmem:[#allocation104_spill] sm:$0xff] %v8920_v25  ;;  %v3713_v56 = vadd.f32 %v8592_v49, %v3661_v26  ;;  %v12612_v9 = vld [vmem:[#allocation130_spill] sm:$0xff]  ;;  %v8939_v47 = vpop.permute.xlu1 %2384  ;;  %v12614_v60 = vld [vmem:[#allocation124_spill] sm:$0xff] }
 0x40f   : > { %v8933_v53 = vadd.f32 %v3060_v35, %v2964_v3  ;;  %v3073_v20 = vadd.f32 %v3061_v28, %v2965_v14  ;;  %v3129_v5 = vmul.f32 %v12612_v9, %v3099_v55  ;;  %v3712_v25 = vadd.f32 %v8621_v2, %v3660_v7  ;;  %12613 = vst [vmem:[#allocation130_spill] sm:$0xff] %v8939_v47  ;;  %v12616_v35 = vld [vmem:[#allocation304_spill] sm:$0xff]  ;;  %v12619_v7 = vld [vmem:[#allocation69_spill] sm:$0xff] }
 0x410   : > { %12606 = vst [vmem:[#allocation302_spill] sm:$0xff] %v8907_v34  ;;  %12607 = vst [vmem:[#allocation329_spill] sm:$0xff] %v8910_v36  ;;  %v8925_v34 = vld [vmem:[%s11116_s5 + $0x63] ss:$8 sm:$0xf]  ;;  %v12611_v36 = vrot.slane %v8416_v23, %v7074_v27  ;;  %v1902_v3 = vsel %vm12599_vm2, %v12616_v35, %v12598_v43  ;;  %1664 = vrot.lane.b32.xlu1 %v6200_v17, %s12475_s0  ;;  %v1856_v55 = vadd.f32 %v1844_v16, %v1736_v31  ;;  %v8972_v52 = vpop.permute.xlu0 %2112  ;;  %s12773_s0 = smov 82  }
 0x411   : > { %12610 = vst [vmem:[#allocation330_spill] sm:$0xff] %v8925_v34  ;;  %v12615_v23 = vld [vmem:[#allocation266_spill] sm:$0xff]  ;;  %v3830_v43 = vsel %vm11749_vm8, %v12614_v60, %v12619_v7  ;;  %vm11804_vm2 = vcmp.lt.s32.totalorder %v6942_v22, 80  ;;  %v3765_v16 = vadd.f32 %v8713_v41, %v3713_v56  ;;  %v12623_v26 = vld [vmem:[#allocation244_spill] sm:$0xff]  ;;  %v12624_v4 = vrot.slane %v8455_v8, %v7074_v27 }
 0x412   : > { %v3804_v54 = vmul.f32 %v12611_v36, %v3779_v48  ;;  %v3831_v49 = vsel %vm11749_vm8, %v12615_v23, %v12614_v60  ;;  %v8956_v28 = vld [vmem:[%s11116_s5 + $0x64] ss:$8 sm:$0xf]  ;;  %v3764_v7 = vadd.f32 %v8746_v24, %v3712_v25  ;;  %vm3984_vm8 = vcmp.lt.s32.totalorder %v6942_v22, 78 }
 0x413   : > { %12617 = vst [vmem:[#allocation124_spill] sm:$0xff] %v8956_v28  ;;  %v12618_v48 = vld [vmem:[#allocation240_spill] sm:$0xff]  ;;  %v12620_v36 = vld [vmem:[#allocation310_spill] sm:$0xff] }
 0x414   : > { %v1953_v14 = vmul.f32 %v12618_v48, %v1929_v44  ;;  %v3101_v9 = vsel %vm11750_vm11, %v12620_v36, %v12605_v1  ;;  %v3812_v2 = vmul.f32 %v12603_v40, %v3804_v54  ;;  %v5438_v44 = vld [vmem:[%s11116_s5 + $0x65] ss:$8 sm:$0xf]  ;;  %v3145_v1 = vmul.f32 %v12623_v26, %v3129_v5  ;;  %v8991_v40 = vpop.permute.xlu1 %3424  ;;  %1774 = vrot.lane.b32.xlu1 %v6200_v17, %s11986_s10  ;;  %v5439_v5 = vld [vmem:[%s11116_s5 + $0x66] ss:$8 sm:$0xf] }
 0x415   : > { %v8979_v31 = vrot.slane %v5438_v44, %v8562_v62  ;;  %v8982_v60 = vrot.slane %v5438_v44, %v8577_v38  ;;  %v3856_v36 = vmul.f32 %v12624_v4, %v3831_v49  ;;  %v12625_v23 = vld [vmem:[#allocation116_spill] sm:$0xff]  ;;  %v12627_v44 = vrot.slane %v8455_v8, %v6951_v50  ;;  %v12729_v8 = vld [vmem:[#allocation303_spill] sm:$0xff] }
 0x416   : > { %v1928_v54 = vmul.f32 %v12625_v23, %v1902_v3  ;;  %12626 = vst [vmem:[#allocation116_spill] sm:$0xff] %v8991_v40  ;;  %v9004_v4 = vrot.slane %v5439_v5, %v8562_v62  ;;  %v1965_v24 = vadd.f32 %v1953_v14, %v8810_v59  ;;  %v12630_v25 = vld [vmem:[#allocation268_spill] sm:$0xff]  ;;  %v12631_v23 = vld [vmem:[#allocation102_spill] sm:$0xff]  ;;  %v9013_v3 = vpop.permute.xlu0 %2256  ;;  %vm11772_vm11 = vcmp.lt.s32.totalorder %v6942_v22, 77 }
 0x417   : > { %12621 = vst [vmem:[#allocation331_spill] sm:$0xff] %v8979_v31  ;;  %12622 = vst [vmem:[#allocation332_spill] sm:$0xff] %v8982_v60  ;;  %v3857_v35 = vmul.f32 %v12627_v44, %v3830_v43  ;;  %v12628_v60 = vld [vmem:[#allocation306_spill] sm:$0xff]  ;;  %v2271_v49 = vsel %vm2264_vm6, %v12631_v23, %v12630_v25  ;;  %v9016_v43 = vrot.slane %v5439_v5, %v8577_v38 }
 0x418   : > { %v3128_v41 = vmul.f32 %v12628_v60, %v3101_v9  ;;  %12629 = vst [vmem:[#allocation306_spill] sm:$0xff] %v9004_v4  ;;  %v5440_v9 = vld [vmem:[%s11116_s5 + $0x67] ss:$8 sm:$0xf]  ;;  %v3817_v44 = vadd.f32 %v3813_v33, %v3765_v16  ;;  %v9036_v25 = vadd.f32 %v3145_v1, %v3073_v20  ;;  %v9040_v33 = vpop.permute.xlu1 %2762  ;;  %v3816_v16 = vadd.f32 %v3812_v2, %v3764_v7 }
 0x419   : > { %12632 = vst [vmem:[#allocation102_spill] sm:$0xff] %v9016_v43  ;;  %v9022_v60 = vrot.slane %v5440_v9, %v8562_v62  ;;  %v9025_v59 = vrot.slane %v5440_v9, %v8577_v38  ;;  %v5441_v14 = vld [vmem:[%s11116_s5 + $0x80] ss:$8 sm:$0xf]  ;;  %1882 = vrot.lane.b32.xlu1 %v6200_v17, %s12497_s23 }
 0x41a   : > { %v9031_v56 = vrot.slane %v5441_v14, %v8562_v62  ;;  %v9034_v5 = vrot.slane %v5441_v14, %v8577_v38  ;;  %v12637_v43 = vld [vmem:[#allocation246_spill] sm:$0xff]  ;;  %v4085_v9 = vld [vmem:[%s12638_s17 + $0x8] sm:$0xff]  ;;  %v2301_v14 = vmul.f32 %v12450_v61, %v2271_v49  ;;  %v12639_v20 = vld [vmem:[#allocation72_spill] sm:$0xff] }
 0x41b   : > { %12633 = vst [vmem:[#allocation333_spill] sm:$0xff] %v9022_v60  ;;  %12634 = vst [vmem:[#allocation334_spill] sm:$0xff] %v9025_v59  ;;  %v3864_v4 = vmul.f32 %v12637_v43, %v3856_v36  ;;  %v1952_v60 = vmul.f32 %v12618_v48, %v1928_v54  ;;  %v3865_v59 = vmul.f32 %v12637_v43, %v3857_v35  ;;  %4095 = vperm.xlu0 %5362, %v4085_v9   ;;  %v12643_v1 = vld [vmem:[#allocation188_spill] sm:$0xff]  ;;  %v12644_v54 = vld [vmem:[#allocation270_spill] sm:$0xff]  ;;  %v9076_v43 = vpop.permute.xlu0 %1072 }
 0x41c   : > { %12635 = vst [vmem:[#allocation335_spill] sm:$0xff] %v9031_v56  ;;  %12636 = vst [vmem:[#allocation336_spill] sm:$0xff] %v9034_v5  ;;  %v3144_v56 = vmul.f32 %v12623_v26, %v3128_v41  ;;  %v9054_v2 = vrot.slane %v12639_v20, %v8562_v62  ;;  %v9058_v7 = vrot.slane %v12639_v20, %v8577_v38  ;;  %v9078_v36 = vpop.permute.xlu1 %2937  ;;  %v12648_v9 = vld [vmem:[#allocation183_spill] sm:$0xff] }
 0x41d   : > { %v3283_v41 = vsel %vm3280_vm9, %v12644_v54, %v12643_v1  ;;  %v9068_v49 = vadd.f32 %v3865_v59, %v3817_v44  ;;  %v9074_v26 = vadd.f32 %v1952_v60, %v1856_v55  ;;  %12645 = vst [vmem:[#allocation270_spill] sm:$0xff] %v9076_v43  ;;  %12646 = vst [vmem:[#allocation338_spill] sm:$0xff] %v9078_v36  ;;  %v9085_v1 = vld [vmem:[%s11116_s5] ss:$8 sm:$0xf]  ;;  %1984 = vrot.lane.b32.xlu1 %v6200_v17, %s11992_s8  ;;  %s12749_s8 = smov 83  }
 0x41e   : > { %12640 = vst [vmem:[#allocation72_spill] sm:$0xff] %v9054_v2  ;;  %12641 = vst [vmem:[#allocation337_spill] sm:$0xff] %v9058_v7  ;;  %v9080_v61 = vadd.f32 %v3864_v4, %v3816_v16  ;;  %v9092_v55 = vadd.f32 %v3144_v56, %v8933_v53  ;;  %v12647_v60 = vld [vmem:[#allocation256_spill] sm:$0xff]  ;;  %v12649_v48 = vld [vmem:[#allocation275_spill] sm:$0xff]  ;;  %v3313_v59 = vmul.f32 %v8045_v11, %v3283_v41 }
 0x41f   : > { %v2325_v20 = vmul.f32 %v12647_v60, %v2301_v14  ;;  %v3883_v4 = vsel %vm11804_vm2, %v12649_v48, %v12648_v9  ;;  %v12650_v16 = vld [vmem:[#allocation196_spill] sm:$0xff]  ;;  %v12651_v53 = vld [vmem:[#allocation309_spill] sm:$0xff]  ;;  %v12654_v48 = vld [vmem:[#allocation31_spill] sm:$0xff] }
 0x420   : > { %v3882_v10 = vsel %vm11804_vm2, %v12648_v9, %v12650_v16  ;;  %v9108_v56 = vrot.slane %v12651_v53, %v8562_v62  ;;  %v9112_v14 = vrot.slane %v12651_v53, %v8577_v38  ;;  %v9117_v44 = vld [vmem:[%s11116_s5 + $0x2] ss:$8 sm:$0xf]  ;;  %v3934_v53 = vsel %vm11773_vm12, %v8483_v19, %v8528_v57  ;;  %v9147_v5 = vpop.permute.xlu1 %3512 }
 0x421   : > { %v12655_v16 = vld [vmem:[#allocation138_spill] sm:$0xff]  ;;  %v12656_v11 = vld [vmem:[#allocation33_spill] sm:$0xff]  ;;  %v12658_v9 = vrot.slane %v8516_v39, %v6951_v50  ;;  %v12659_v2 = vld [vmem:[#allocation287_spill] sm:$0xff]  ;;  %v3935_v57 = vsel %vm11773_vm12, %v8639_v15, %v8483_v19  ;;  %12660 = vst [vmem:[#allocation31_spill] sm:$0xff] %v9147_v5  ;;  %2168 = vrot.lane.b32.xlu1 %v6200_v17, %s12527_s19  ;;  %v12668_v15 = vrot.slane %v8637_v51, %v7074_v27  ;;  %vm12788_vm2 = vcmp.lt.s32.totalorder %v6942_v22, 49 }
 0x422   : > { %12652 = vst [vmem:[#allocation183_spill] sm:$0xff] %v9108_v56  ;;  %12653 = vst [vmem:[#allocation309_spill] sm:$0xff] %v9112_v14  ;;  %v9123_v35 = vmul.f32 %v12655_v16, %v12654_v48  ;;  %v2361_v41 = vmul.f32 %v12655_v16, %v12656_v11  ;;  %v12657_v56 = vrot.slane %v8516_v39, %v7074_v27  ;;  %v12663_v19 = vld [vmem:[#allocation260_spill] sm:$0xff] }
 0x423   : > { %v3909_v48 = vmul.f32 %v12658_v9, %v3882_v10  ;;  %v2274_v11 = vsel %vm2264_vm6, %v12659_v2, %v12631_v23  ;;  %v2337_v14 = vadd.f32 %v2325_v20, %v1965_v24  ;;  %v9155_v10 = vmul.f32 %v12655_v16, %v12548_v46  ;;  %v9171_v9 = vpop.permute.xlu0 %2506 }
 0x424   : > { %v3908_v7 = vmul.f32 %v12657_v56, %v3883_v4  ;;  %v9151_v4 = vmul.f32 %v12655_v16, %v12368_v6  ;;  %v3986_v39 = vsel %vm3984_vm8, %v8843_v42, %v8891_v18  ;;  %v3329_v23 = vmul.f32 %v12663_v19, %v3313_v59  ;;  %v12665_v56 = vld [vmem:[#allocation71_spill] sm:$0xff]  ;;  %12666 = vst [vmem:[#allocation339_spill] sm:$0xff] %v9171_v9 }
 0x425   : > { %12662 = vst [vmem:[#allocation33_spill] sm:$0xff] %v9155_v10  ;;  %v12664_v24 = vrot.slane %v8637_v51, %v6951_v50  ;;  %v3987_v16 = vsel %vm3984_vm8, %v12665_v56, %v8843_v42  ;;  %v2300_v59 = vmul.f32 %v7819_v45, %v2274_v11  ;;  %v9189_v42 = vld [vmem:[%s11116_s5 + $0x4] ss:$8 sm:$0xf]  ;;  %v12671_v45 = vrot.slane %v8757_v12, %v6951_v50 }
 0x426   : > { %12661 = vst [vmem:[#allocation138_spill] sm:$0xff] %v9151_v4  ;;  %v5444_v4 = vld [vmem:[%s11116_s5 + $0x61] ss:$8 sm:$0xf]  ;;  %v3285_v11 = vsel %vm3280_vm9, %v8350_v0, %v12644_v54  ;;  %2254 = vrot.lane.b32.xlu1 %v6200_v17, %s12004_s2 }
 0x427   : > { %v3961_v20 = vmul.f32 %v12664_v24, %v3934_v53  ;;  %v9177_v10 = vrot.slane %v5444_v4, %v8562_v62  ;;  %v3960_v53 = vmul.f32 %v12668_v15, %v3935_v57  ;;  %v9184_v24 = vrot.slane %v5444_v4, %v8577_v38  ;;  %v12670_v56 = vld [vmem:[#allocation262_spill] sm:$0xff]  ;;  %v4031_v57 = vpop.permute.xlu1 %4030  ;;  %v12675_v17 = vld [vmem:[#allocation276_spill] sm:$0xff]  ;;  %v9237_v0 = vpop.permute.xlu0 %2578 }
 0x428   : > { %v3916_v18 = vmul.f32 %v12670_v56, %v3908_v7  ;;  %v4013_v51 = vmul.f32 %v12671_v45, %v3986_v39  ;;  %v9204_v4 = vadd.f32 %v2361_v41, %v2337_v14  ;;  %v12672_v7 = vrot.slane %v8757_v12, %v7074_v27  ;;  %v12674_v45 = vld [vmem:[#allocation273_spill] sm:$0xff]  ;;  %12677 = vst [vmem:[#allocation276_spill] sm:$0xff] %v9237_v0  ;;  %v12865_v12 = vld [vmem:[#allocation160_spill] sm:$0xff] }
 0x429   : > { %12667 = vst [vmem:[#allocation340_spill] sm:$0xff] %v9177_v10  ;;  %12669 = vst [vmem:[#allocation341_spill] sm:$0xff] %v9184_v24  ;;  %v3917_v10 = vmul.f32 %v12670_v56, %v3909_v48  ;;  %v12673_v48 = vld [vmem:[#allocation193_spill] sm:$0xff]  ;;  %v9215_v39 = vadd.f32 %v3329_v23, %v9036_v25  ;;  %v3969_v15 = vmul.f32 %v12674_v45, %v3961_v20 }
 0x42a   : > { %v4012_v2 = vmul.f32 %v12672_v7, %v3987_v16  ;;  %v4039_v56 = vsel %vm11772_vm11, %v12673_v48, %v4031_v57  ;;  %v9221_v54 = vld [vmem:[%s11116_s5 + $0x6] ss:$8 sm:$0xf]  ;;  %v2324_v16 = vmul.f32 %v12647_v60, %v2300_v59  ;;  %v3363_v25 = vsel %vm3360_vm13, %v12675_v17, %v8444_v63  ;;  %3358 = vrot.lane.b32.xlu1 %v12507_v29, %s12117_s25  ;;  %s13324_s25 = sld [smem:[#allocation352_spill]] }
 0x42b   : > { %v3968_v23 = vmul.f32 %v12674_v45, %v3960_v53  ;;  %v12676_v20 = vrot.slane %v8915_v37, %v7074_v27  ;;  %v3312_v48 = vmul.f32 %v8087_v21, %v3285_v11  ;;  %v9239_v14 = vpop.permute.xlu1 %4032  ;;  %v3921_v41 = vadd.f32 %v3917_v10, %v9068_v49  ;;  %v12679_v59 = vld [vmem:[#allocation281_spill] sm:$0xff] }
 0x42c   : > { %12678 = vst [vmem:[#allocation342_spill] sm:$0xff] %v9239_v14  ;;  %v4021_v60 = vmul.f32 %v12679_v59, %v4013_v51  ;;  %v3920_v24 = vadd.f32 %v3916_v18, %v9080_v61  ;;  %v4038_v53 = vsel %vm11772_vm11, %v4031_v57, %v9239_v14  ;;  %v4020_v27 = vmul.f32 %v12679_v59, %v4012_v2  ;;  %v5447_v21 = vld [vmem:[%s11116_s5 + $0x22] ss:$8 sm:$0xf] }
 0x42d   : > { %v4064_v7 = vmul.f32 %v12676_v20, %v4039_v56  ;;  %v9254_v56 = vrot.slane %v5447_v21, %v8562_v62  ;;  %v9257_v49 = vrot.slane %v5447_v21, %v8577_v38  ;;  %v3393_v18 = vmul.f32 %v8090_v58, %v3363_v25  ;;  %v5448_v2 = vld [vmem:[%s11116_s5 + $0x24] ss:$8 sm:$0xf] }
 0x42e   : > { %v3973_v61 = vadd.f32 %v3969_v15, %v3921_v41  ;;  %v12680_v10 = vrot.slane %v8915_v37, %v6951_v50  ;;  %v9267_v57 = vrot.slane %v5448_v2, %v8562_v62  ;;  %v2336_v11 = vadd.f32 %v2324_v16, %v9074_v26  ;;  %v12682_v14 = vld [vmem:[#allocation122_spill] sm:$0xff]  ;;  %v12684_v15 = vld [vmem:[#allocation313_spill] sm:$0xff]  ;;  %v12685_v50 = vld [vmem:[#allocation84_spill] sm:$0xff]  ;;  %3438 = vrot.lane.b32.xlu1 %v12507_v29, %s12062_s3 }
 0x42f   : > { %v3972_v20 = vadd.f32 %v3968_v23, %v3920_v24  ;;  %v4072_v21 = vmul.f32 %v12682_v14, %v4064_v7  ;;  %v9272_v45 = vrot.slane %v5448_v2, %v8577_v38  ;;  %v3328_v58 = vmul.f32 %v12663_v19, %v3312_v48  ;;  %v9279_v41 = vpop.permute.xlu1 %3504  ;;  %v5449_v48 = vld [vmem:[%s11116_s5 + $0x40] ss:$8 sm:$0xf] }
 0x430   : > { %v4065_v51 = vmul.f32 %v12680_v10, %v4038_v53  ;;  %12681 = vst [vmem:[#allocation343_spill] sm:$0xff] %v9267_v57  ;;  %vm12686_vm11 = vcmp.lt.s32.totalorder %v6942_v22, 50  ;;  %12687 = vst [vmem:[#allocation313_spill] sm:$0xff] %v9279_v41  ;;  %v4025_v25 = vadd.f32 %v4021_v60, %v3973_v61  ;;  %v12688_v10 = vld [vmem:[#allocation155_spill] sm:$0xff]  ;;  %v9292_v16 = vrot.slane %v5449_v48, %v8562_v62  ;;  %v12692_v23 = vld [vmem:[#allocation92_spill] sm:$0xff] }
 0x431   : > { %12683 = vst [vmem:[#allocation344_spill] sm:$0xff] %v9272_v45  ;;  %v710_v37 = vsel %vm12686_vm11, %v12685_v50, %v12684_v15  ;;  %vm12689_vm12 = vmmov %vm12686_vm11  ;;  %v4024_v24 = vadd.f32 %v4020_v27, %v3972_v20  ;;  %v9295_v60 = vrot.slane %v5449_v48, %v8577_v38  ;;  %v3409_v7 = vmul.f32 %v12692_v23, %v3393_v18  ;;  %v12693_v61 = vld [vmem:[#allocation325_spill] sm:$0xff]  ;;  %v12701_v50 = vld [vmem:[#allocation219_spill] sm:$0xff] }
 0x432   : > { %v4073_v53 = vmul.f32 %v12682_v14, %v4065_v51  ;;  %v709_v26 = vsel %vm12689_vm12, %v12684_v15, %v12688_v10  ;;  %12690 = vst [vmem:[#allocation84_spill] sm:$0xff] %v9292_v16  ;;  %v12694_v51 = vld [vmem:[#allocation53_spill] sm:$0xff]  ;;  %v9302_v15 = vpop.permute.xlu0 %2630  ;;  %v12696_v10 = vld [vmem:[#allocation227_spill] sm:$0xff]  ;;  %v3365_v28 = vsel %vm3360_vm13, %v12701_v50, %v12675_v17  ;;  %vm12704_vm11 = vcmp.lt.s32.totalorder %v6942_v22, 48  ;;  %3518 = vrot.lane.b32.xlu1 %v12507_v29, %s12146_s14 }
 0x433   : > { %12691 = vst [vmem:[#allocation155_spill] sm:$0xff] %v9295_v60  ;;  %v3443_v2 = vsel %vm3440_vm7, %v12694_v51, %v12693_v61  ;;  %12695 = vst [vmem:[#allocation53_spill] sm:$0xff] %v9302_v15  ;;  %v9307_v20 = vld [vmem:[%s11116_s5 + $0x26] ss:$8 sm:$0xf]  ;;  %v4076_v19 = vadd.f32 %v4072_v21, %v4024_v24  ;;  %v2871_v34 = vpop.permute.xlu1 %2870 }
 0x434   : > { %v4077_v27 = vadd.f32 %v4073_v53, %v4025_v25  ;;  %v12697_v48 = vld [vmem:[#allocation209_spill] sm:$0xff]  ;;  %v3336_v53 = vadd.f32 %v3328_v58, %v9092_v55  ;;  %vm12712_vm12 = vmmov %vm12704_vm11  ;;  %v12720_v15 = vld [vmem:[#allocation278_spill] sm:$0xff] }
 0x435   : > { %v3003_v18 = vsel %vm2996_vm5, %v12697_v48, %v12696_v10  ;;  %v12698_v14 = vld [vmem:[#allocation269_spill] sm:$0xff]  ;;  %v9329_v48 = vadd.f32 %v9123_v35, %v2336_v11  ;;  %v12707_v35 = vld [vmem:[#allocation279_spill] sm:$0xff]  ;;  %v3417_v11 = vadd.f32 %v3409_v7, %v9215_v39  ;;  %v3445_v7 = vsel %vm3440_vm7, %v8991_v40, %v12694_v51  ;;  %v12723_v40 = vld [vmem:[#allocation140_spill] sm:$0xff] }
 0x436   : > { %v12699_v59 = vrot.slane %v12698_v14, %v8562_v62  ;;  %v12700_v63 = vrot.slane %v12698_v14, %v8577_v38  ;;  %4144 = vmatprep.subr.mxu1 %v4077_v27  ;;  %v12703_v21 = vld [vmem:[#allocation85_spill] sm:$0xff]  ;;  %v12706_v14 = vld [vmem:[#allocation132_spill] sm:$0xff]  ;;  %v9343_v17 = vmul.f32 %v12707_v35, %v3003_v18  ;;  %v12710_v27 = vld [vmem:[#allocation50_spill] sm:$0xff]  ;;  %3598 = vrot.lane.b32.xlu1 %v12507_v29, %s12160_s13 }
 0x437   : > { %v12705_v55 = vld [vmem:[#allocation173_spill] sm:$0xff]  ;;  %4145 = vmatpush1.msra.mxu1 %v4076_v19  ;;  %v12713_v18 = vld [vmem:[#allocation131_spill] sm:$0xff]  ;;  %v12741_v60 = vld [vmem:[#allocation296_spill] sm:$0xff] }
 0x438   : > { %v738_v61 = vmul.f32 %v12699_v59, %v710_v37  ;;  %v739_v31 = vmul.f32 %v12700_v63, %v709_v26  ;;  %v12702_v59 = vld [vmem:[#allocation239_spill] sm:$0xff]  ;;  %v3473_v58 = vmul.f32 %v12705_v55, %v3443_v2  ;;  %v3523_v63 = vsel %vm3520_vm14, %v12706_v14, %v9147_v5  ;;  %v12711_v55 = vld [vmem:[#allocation142_spill] sm:$0xff]  ;;  %v12716_v5 = vld [vmem:[#allocation112_spill] sm:$0xff] }
 0x439   : > { %v814_v37 = vsel %vm12704_vm11, %v12703_v21, %v12702_v59  ;;  %v5451_v26 = vld [vmem:[%s11116_s5 + $0x42] ss:$8 sm:$0xf]  ;;  %v813_v19 = vsel %vm12712_vm12, %v12702_v59, %v12711_v55  ;;  %v3392_v39 = vmul.f32 %v12713_v18, %v3365_v28  ;;  %v2415_v50 = vsel %vm2408_vm4, %v8939_v47, %v12716_v5  ;;  %v9378_v28 = vpop.permute.xlu0 %2690  ;;  %v9380_v18 = vpop.permute.xlu1 %3045 }
 0x43a   : > { %v9350_v24 = vrot.slane %v5451_v26, %v8562_v62  ;;  %v9353_v2 = vrot.slane %v5451_v26, %v8577_v38  ;;  %v9356_v21 = vmul.f32 %v12710_v27, %v738_v61  ;;  %v9368_v35 = vmul.f32 %v12710_v27, %v739_v31  ;;  %v12714_v26 = vld [vmem:[#allocation312_spill] sm:$0xff]  ;;  %v12717_v59 = vld [vmem:[#allocation293_spill] sm:$0xff]  ;;  %12718 = vst [vmem:[#allocation239_spill] sm:$0xff] %v9378_v28  ;;  %v12725_v47 = vld [vmem:[#allocation290_spill] sm:$0xff] }
 0x43b   : > { %v12715_v25 = vrot.slane %v12714_v26, %v8562_v62  ;;  %v3553_v55 = vmul.f32 %v12717_v59, %v3523_v63  ;;  %12719 = vst [vmem:[#allocation85_spill] sm:$0xff] %v9380_v18  ;;  %v3489_v51 = vmul.f32 %v12720_v15, %v3473_v58  ;;  %v3525_v31 = vsel %vm3520_vm14, %v9279_v41, %v12706_v14  ;;  %v12722_v59 = vld [vmem:[#allocation70_spill] sm:$0xff]  ;;  %v12732_v28 = vld [vmem:[#allocation292_spill] sm:$0xff] }
 0x43c   : > { %12708 = vst [vmem:[#allocation227_spill] sm:$0xff] %v9350_v24  ;;  %12709 = vst [vmem:[#allocation269_spill] sm:$0xff] %v9353_v2  ;;  %v12721_v63 = vrot.slane %v12714_v26, %v8577_v38  ;;  %v2412_v58 = vsel %vm2408_vm4, %v12716_v5, %v12722_v59  ;;  %v3472_v14 = vmul.f32 %v12723_v40, %v3445_v7  ;;  %v9404_v41 = vld [vmem:[%s11116_s5 + $0x44] ss:$8 sm:$0xf]  ;;  %3670 = vrot.lane.b32.xlu1 %v12507_v29, %s12735_s16 }
 0x43d   : > { %v842_v61 = vmul.f32 %v12715_v25, %v814_v37  ;;  %12724 = vst [vmem:[#allocation173_spill] sm:$0xff] %v9404_v41  ;;  %v3408_v37 = vmul.f32 %v12692_v23, %v3392_v39  ;;  %v2444_v26 = vmul.f32 %v12725_v47, %v2415_v50  ;;  %v12727_v5 = vld [vmem:[#allocation52_spill] sm:$0xff]  ;;  %v12728_v59 = vld [vmem:[#allocation305_spill] sm:$0xff]  ;;  %v3569_v39 = vmul.f32 %v12729_v8, %v3553_v55  ;;  %v12730_v23 = vld [vmem:[#allocation66_spill] sm:$0xff]  ;;  %v9425_v50 = vpop.permute.xlu1 %3592 }
 0x43e   : > { %v843_v27 = vmul.f32 %v12721_v63, %v813_v19  ;;  %v12726_v19 = vld [vmem:[#allocation163_spill] sm:$0xff]  ;;  %v2784_v25 = vsel %vm2780_vm15, %v9040_v33, %v12728_v59  ;;  %v3552_v47 = vmul.f32 %v12730_v23, %v3525_v31  ;;  %12731 = vst [vmem:[#allocation132_spill] sm:$0xff] %v9425_v50  ;;  %v2445_v0 = vmul.f32 %v12732_v28, %v2412_v58  ;;  %v12736_v23 = vld [vmem:[#allocation298_spill] sm:$0xff]  ;;  %v9439_v59 = vpop.permute.xlu0 %2778  ;;  %v12738_v28 = vld [vmem:[#allocation297_spill] sm:$0xff] }
 0x43f   : > { %v2787_v63 = vsel %vm2780_vm15, %v12726_v19, %v9040_v33  ;;  %v9417_v7 = vmul.f32 %v12727_v5, %v842_v61  ;;  %v12733_v19 = vld [vmem:[#allocation38_spill] sm:$0xff]  ;;  %v12734_v61 = vld [vmem:[#allocation199_spill] sm:$0xff]  ;;  %v3497_v33 = vadd.f32 %v3489_v51, %v3417_v11  ;;  %v3488_v55 = vmul.f32 %v12720_v15, %v3472_v14  ;;  %12737 = vst [vmem:[#allocation279_spill] sm:$0xff] %v9439_v59  ;;  %v12740_v24 = vld [vmem:[#allocation220_spill] sm:$0xff] }
 0x440   : > { %v2895_v40 = vsel %vm2888_vm3, %v12733_v19, %v2871_v34  ;;  %v3603_v41 = vsel %vm11805_vm1, %v12734_v61, %v9425_v50  ;;  %v2816_v31 = vmul.f32 %v12736_v23, %v2787_v63  ;;  %v2892_v58 = vsel %vm2888_vm3, %v2871_v34, %v12738_v28  ;;  %v12739_v19 = vld [vmem:[#allocation194_spill] sm:$0xff]  ;;  %v12742_v14 = vld [vmem:[#allocation300_spill] sm:$0xff]  ;;  %v12745_v34 = vld [vmem:[#allocation259_spill] sm:$0xff]  ;;  %3722 = vrot.lane.b32.xlu1 %v12507_v29, %s12749_s8  ;;  %s13322_s8 = sld [smem:[#allocation9_spill]] }
 0x441   : > { %v3633_v9 = vmul.f32 %v12739_v19, %v3603_v41  ;;  %v9446_v2 = vmul.f32 %v12727_v5, %v843_v27  ;;  %v3416_v50 = vadd.f32 %v3408_v37, %v3336_v53  ;;  %v2468_v43 = vmul.f32 %v12740_v24, %v2444_v26  ;;  %v12743_v23 = vld [vmem:[#allocation68_spill] sm:$0xff]  ;;  %v9453_v59 = vpop.permute.xlu1 %3584  ;;  %v12746_v28 = vld [vmem:[#allocation87_spill] sm:$0xff] }
 0x442   : > { %v2817_v11 = vmul.f32 %v12741_v60, %v2784_v25  ;;  %v3568_v51 = vmul.f32 %v12729_v8, %v3552_v47  ;;  %v2924_v63 = vmul.f32 %v12742_v14, %v2895_v40  ;;  %12744 = vst [vmem:[#allocation50_spill] sm:$0xff] %v9453_v59  ;;  %v3577_v16 = vadd.f32 %v3569_v39, %v3497_v33  ;;  %v12748_v37 = vld [vmem:[#allocation299_spill] sm:$0xff]  ;;  %v12752_v39 = vld [vmem:[#allocation146_spill] sm:$0xff] }
 0x443   : > { %v3649_v15 = vmul.f32 %v12743_v23, %v3633_v9  ;;  %vm12747_vm11 = vcmp.lt.s32.totalorder %v6942_v22, 46  ;;  %v2469_v53 = vmul.f32 %v12740_v24, %v2445_v0  ;;  %v2925_v27 = vmul.f32 %v12748_v37, %v2892_v58  ;;  %v12750_v9 = vld [vmem:[#allocation289_spill] sm:$0xff]  ;;  %v12751_v26 = vld [vmem:[#allocation311_spill] sm:$0xff] }
 0x444   : > { %v918_v41 = vsel %vm12747_vm11, %v12746_v28, %v12745_v34  ;;  %v3605_v60 = vsel %vm11805_vm1, %v9453_v59, %v12734_v61  ;;  %v2840_v25 = vmul.f32 %v12750_v9, %v2816_v31  ;;  %v3496_v5 = vadd.f32 %v3488_v55, %v3416_v50  ;;  %vm12753_vm12 = vmmov %vm12747_vm11  ;;  %v5453_v61 = vld [vmem:[%s11116_s5 + $0x46] ss:$8 sm:$0xf]  ;;  %v9485_v50 = vpop.permute.xlu0 %2886  ;;  %1772 = vrot.lane.b32.xlu1 %v12368_v6, %s11986_s10 }
 0x445   : > { %v3632_v19 = vmul.f32 %v12751_v26, %v3605_v60  ;;  %v3657_v40 = vadd.f32 %v3649_v15, %v3577_v16  ;;  %v917_v0 = vsel %vm12753_vm12, %v12745_v34, %v12752_v39  ;;  %v2841_v47 = vmul.f32 %v12750_v9, %v2817_v11  ;;  %v9488_v28 = vpop.permute.xlu1 %2984  ;;  %v12757_v11 = vld [vmem:[#allocation314_spill] sm:$0xff]  ;;  %vm12790_vm1 = vmmov %vm12788_vm2 }
 0x446   : > { %v9478_v33 = vrot.slane %v5453_v61, %v8562_v62  ;;  %v9481_v31 = vrot.slane %v5453_v61, %v8577_v38  ;;  %v2480_v16 = vadd.f32 %v2468_v43, %v9329_v48  ;;  %v2948_v15 = vmul.f32 %v9078_v36, %v2924_v63  ;;  %12756 = vst [vmem:[#allocation312_spill] sm:$0xff] %v9488_v28  ;;  %s5096_s19 = sshll.u32 %s13322_s8, 10 }
 0x447   : > { %v3648_v55 = vmul.f32 %v12743_v23, %v3632_v19  ;;  %4146 = vmatprep.subr.mxu1 %v3657_v40  ;;  %v3576_v58 = vadd.f32 %v3568_v51, %v3496_v5  ;;  %v12758_v14 = vrot.slane %v12757_v11, %v8562_v62  ;;  %v2481_v37 = vadd.f32 %v2469_v53, %v9204_v4  ;;  %v12760_v19 = vld [vmem:[#allocation150_spill] sm:$0xff]  ;;  %v12761_v4 = vld [vmem:[#allocation248_spill] sm:$0xff] }
 0x448   : > { %12754 = vst [vmem:[#allocation142_spill] sm:$0xff] %v9478_v33  ;;  %12755 = vst [vmem:[#allocation131_spill] sm:$0xff] %v9481_v31  ;;  %v2949_v60 = vmul.f32 %v9078_v36, %v2925_v27  ;;  %v3000_v43 = vsel %vm2996_vm5, %v12696_v10, %v9488_v28  ;;  %v12759_v48 = vrot.slane %v12757_v11, %v8577_v38  ;;  %vm12762_vm11 = vcmp.lt.s32.totalorder %v6942_v22, 35  ;;  %v12763_v27 = vld [vmem:[#allocation89_spill] sm:$0xff]  ;;  %v12765_v40 = vld [vmem:[#allocation154_spill] sm:$0xff] }
 0x449   : > { %v946_v34 = vmul.f32 %v12758_v14, %v918_v41  ;;  %v3033_v63 = vmul.f32 %v12581_v13, %v3000_v43  ;;  %v3656_v26 = vadd.f32 %v3648_v55, %v3576_v58  ;;  %v2852_v41 = vadd.f32 %v2840_v25, %v2480_v16  ;;  %vm12764_vm12 = vmmov %vm12762_vm11  ;;  %v12766_v5 = vld [vmem:[#allocation238_spill] sm:$0xff]  ;;  %v12767_v13 = vld [vmem:[#allocation91_spill] sm:$0xff]  ;;  %v650_v16 = vpop.permute.xlu1 %649  ;;  %3774 = vrot.lane.b32.xlu1 %v12507_v29, %s12773_s0 }
 0x44a   : > { %v947_v51 = vmul.f32 %v12759_v48, %v917_v0  ;;  %v1021_v53 = vsel %vm12762_vm11, %v12761_v4, %v12760_v19  ;;  %v1022_v10 = vsel %vm12764_vm12, %v12763_v27, %v12761_v4  ;;  %v1164_v39 = vsel %vm1162_vm10, %v12766_v5, %v12765_v40  ;;  %v12768_v11 = vld [vmem:[#allocation16_spill] sm:$0xff]  ;;  %v12769_v43 = vld [vmem:[#allocation129_spill] sm:$0xff]  ;;  %v9541_v19 = vpop.permute.xlu0 %2994 }
 0x44b   : > { %v2853_v0 = vadd.f32 %v2841_v47, %v2481_v37  ;;  %v1166_v25 = vsel %vm1162_vm10, %v12767_v13, %v12766_v5  ;;  %v3057_v61 = vmul.f32 %v9380_v18, %v3033_v63  ;;  %4147 = vmatpush1.msra.mxu1 %v3656_v26  ;;  %v2960_v55 = vadd.f32 %v2948_v15, %v2852_v41  ;;  %v12771_v37 = vld [vmem:[#allocation123_spill] sm:$0xff] }
 0x44c   : > { %v3056_v58 = vmul.f32 %v9380_v18, %v9343_v17  ;;  %v9525_v14 = vmul.f32 %v12768_v11, %v946_v34  ;;  %vm12770_vm11 = vcmp.lt.s32.totalorder %v6942_v22, 51  ;;  %v12774_v26 = vld [vmem:[#allocation315_spill] sm:$0xff]  ;;  %v12777_v4 = vrot.slane %v9085_v1, %v8562_v62 }
 0x44d   : > { %v656_v47 = vsel %vm12770_vm11, %v650_v16, %v12769_v43  ;;  %vm12772_vm12 = vmmov %vm12770_vm11  ;;  %v2961_v63 = vadd.f32 %v2949_v60, %v2853_v0  ;;  %v12775_v15 = vrot.slane %v12774_v26, %v8562_v62  ;;  %v12776_v17 = vrot.slane %v12774_v26, %v8577_v38  ;;  %v12779_v0 = vld [vmem:[#allocation236_spill] sm:$0xff] }
 0x44e   : > { %v657_v48 = vsel %vm12772_vm12, %v12771_v37, %v650_v16  ;;  %v12778_v40 = vrot.slane %v9085_v1, %v8577_v38  ;;  %v9550_v60 = vmul.f32 %v12768_v11, %v947_v51  ;;  %v1200_v13 = vmul.f32 %v12779_v0, %v1166_v25  ;;  %v12781_v37 = vld [vmem:[#allocation158_spill] sm:$0xff]  ;;  %v12787_v25 = vld [vmem:[#allocation157_spill] sm:$0xff]  ;;  %v9605_v23 = vpop.permute.xlu0 %3094 }
 0x44f   : > { %v1050_v41 = vmul.f32 %v12775_v15, %v1022_v10  ;;  %v1051_v34 = vmul.f32 %v12776_v17, %v1021_v53  ;;  %v684_v27 = vmul.f32 %v12777_v4, %v657_v48  ;;  %v12780_v10 = vld [vmem:[#allocation67_spill] sm:$0xff]  ;;  %v3069_v43 = vadd.f32 %v3057_v61, %v2961_v63  ;;  %v12782_v53 = vld [vmem:[#allocation318_spill] sm:$0xff]  ;;  %v12784_v15 = vld [vmem:[#allocation48_spill] sm:$0xff]  ;;  %v757_v4 = vpop.permute.xlu1 %756 }
 0x450   : > { %v685_v5 = vmul.f32 %v12778_v40, %v656_v47  ;;  %v1201_v16 = vmul.f32 %v12780_v10, %v1164_v39  ;;  %vm12783_vm11 = vcmp.lt.s32.totalorder %v6942_v22, 31  ;;  %v3068_v1 = vadd.f32 %v3056_v58, %v2960_v55  ;;  %v12785_v47 = vld [vmem:[#allocation95_spill] sm:$0xff]  ;;  %v12789_v61 = vld [vmem:[#allocation125_spill] sm:$0xff]  ;;  %v4080_v58 = vld [vmem:[%s12793_s20] sm:$0xff] }
 0x451   : > { %v1324_v26 = vsel %vm12783_vm11, %v12782_v53, %v12781_v37  ;;  %v694_v17 = vmul.f32 %v12784_v15, %v684_v27  ;;  %vm12786_vm12 = vmmov %vm12783_vm11  ;;  %v761_v39 = vsel %vm12788_vm2, %v757_v4, %v12787_v25  ;;  %v762_v11 = vsel %vm12790_vm1, %v12789_v61, %v757_v4  ;;  %4148 = vmatprep.subr.mxu1 %v3069_v43  ;;  %v12791_v63 = vld [vmem:[#allocation75_spill] sm:$0xff]  ;;  %v12792_v27 = vld [vmem:[#allocation20_spill] sm:$0xff] }
 0x452   : > { %v695_v48 = vmul.f32 %v12784_v15, %v685_v5  ;;  %v1326_v51 = vsel %vm12786_vm12, %v12785_v47, %v12782_v53  ;;  %3092 = vrot.lane.b32.xlu1 %v12791_v63, %s12345_s22  ;;  %v9573_v40 = vmul.f32 %v12792_v27, %v1050_v41  ;;  %v9576_v55 = vmul.f32 %v12792_v27, %v1051_v34  ;;  %v5454_v5 = vld [vmem:[%s11116_s5 + $0x85] ss:$8 sm:$0xf]  ;;  %s11064_s22 = scalar_lea.hbm %s13324_s25, %s5096_s19 }
 0x453   : > { %4149 = vmatpush1.msra.mxu1 %v3068_v1  ;;  %v9585_v43 = vrot.slane %v5454_v5, %v8562_v62  ;;  %v9588_v37 = vrot.slane %v5454_v5, %v8577_v38  ;;  %v12796_v41 = vld [vmem:[#allocation28_spill] sm:$0xff]  ;;  %v12797_v15 = vrot.slane %v9117_v44, %v8562_v62  ;;  %v12798_v1 = vrot.slane %v9117_v44, %v8577_v38  ;;  %v12799_v25 = vld [vmem:[#allocation30_spill] sm:$0xff]  ;;  %v12801_v5 = vld [vmem:[#allocation317_spill] sm:$0xff]  ;;  %v861_v59 = vpop.permute.xlu1 %860 }
 0x454   : > { %v9591_v53 = vmul.f32 %v12796_v41, %v1200_v13  ;;  %v9594_v34 = vmul.f32 %v12796_v41, %v1201_v16  ;;  %4150 = vmatprep.subr.mxu1 %v12799_v25  ;;  %v12800_v61 = vld [vmem:[#allocation316_spill] sm:$0xff]  ;;  %v1361_v18 = vmul.f32 %v12801_v5, %v1324_v26  ;;  %v750_v13 = vadd.f32 %v9356_v21, %v694_v17  ;;  %v12802_v41 = vld [vmem:[#allocation29_spill] sm:$0xff]  ;;  %v12812_v25 = vld [vmem:[#allocation322_spill] sm:$0xff] }
 0x455   : > { %12794 = vst [vmem:[#allocation112_spill] sm:$0xff] %v9585_v43  ;;  %12795 = vst [vmem:[#allocation293_spill] sm:$0xff] %v9588_v37  ;;  %v790_v4 = vmul.f32 %v12797_v15, %v762_v11  ;;  %v791_v47 = vmul.f32 %v12798_v1, %v761_v39  ;;  %v1360_v27 = vmul.f32 %v12800_v61, %v1326_v51  ;;  %4151 = vmatpush1.msra.mxu1 %v12802_v41  ;;  %v12803_v11 = vld [vmem:[#allocation14_spill] sm:$0xff]  ;;  %v12804_v39 = vld [vmem:[#allocation144_spill] sm:$0xff]  ;;  %vm12808_vm11 = vcmask 261120  }
 0x456   : > { %v751_v16 = vadd.f32 %v9368_v35, %v695_v48  ;;  %vm12805_vm1 = vcmp.lt.s32.totalorder %v6942_v22, 47  ;;  %v12806_v51 = vld [vmem:[#allocation86_spill] sm:$0xff]  ;;  %5070 = vmatmul.mubr.msk.f32.vlgmr.msra.gmra.mxu1 %vm12808_vm11, %v4080_v58  ;;  %v12809_v21 = vrot.slane %v9189_v42, %v8562_v62  ;;  %v12810_v17 = vrot.slane %v9189_v42, %v8577_v38  ;;  %2252 = vrot.lane.b32.xlu1 %v12368_v6, %s12004_s2  ;;  %v12814_v42 = vld [vmem:[#allocation99_spill] sm:$0xff]  ;;  %v12877_v37 = vld [vmem:[#allocation164_spill] sm:$0xff] }
 0x457   : > { %v798_v15 = vmul.f32 %v12803_v11, %v790_v4  ;;  %v799_v44 = vmul.f32 %v12803_v11, %v791_v47  ;;  %v865_v1 = vsel %vm12805_vm1, %v861_v59, %v12804_v39  ;;  %vm12807_vm2 = vmmov %vm12805_vm1  ;;  %v4081_v4 = vld [vmem:[%s12793_s20 + $0x8] sm:$0xff]  ;;  %v12811_v47 = vld [vmem:[#allocation162_spill] sm:$0xff]  ;;  %vm12813_vm12 = vcmp.lt.s32.totalorder %v6942_v22, 29 }
 0x458   : > { %v866_v26 = vsel %vm12807_vm2, %v12806_v51, %v861_v59  ;;  %v895_v48 = vmul.f32 %v12810_v17, %v865_v1  ;;  %v1475_v41 = vsel %vm12813_vm12, %v12812_v25, %v12811_v47  ;;  %vm12815_vm1 = vmmov %vm12813_vm12  ;;  %v12816_v1 = vmov 0.0   ;;  %v12817_v51 = vld [vmem:[#allocation34_spill] sm:$0xff]  ;;  %v12818_v17 = vld [vmem:[#allocation15_spill] sm:$0xff]  ;;  %v965_v47 = vpop.permute.xlu1 %964 }
 0x459   : > { %v894_v35 = vmul.f32 %v12809_v21, %v866_v26  ;;  %v1476_v6 = vsel %vm12815_vm1, %v12814_v42, %v12812_v25  ;;  %v802_v11 = vadd.f32 %v798_v15, %v750_v13  ;;  %v803_v39 = vadd.f32 %v799_v44, %v751_v16  ;;  %4190 = vmatprep.mubr.f32.mxu1 %v12816_v1  ;;  %v12819_v25 = vld [vmem:[#allocation148_spill] sm:$0xff]  ;;  %v12922_v43 = vld [vmem:[#allocation113_spill] sm:$0xff] }
 0x45a   : > { %v9644_v26 = vmul.f32 %v12817_v51, %v1360_v27  ;;  %v9647_v21 = vmul.f32 %v12817_v51, %v1361_v18  ;;  %v903_v59 = vmul.f32 %v12818_v17, %v895_v48  ;;  %vm12820_vm2 = vcmp.lt.s32.totalorder %v6942_v22, 45  ;;  %v12821_v16 = vld [vmem:[#allocation88_spill] sm:$0xff]  ;;  %v12824_v18 = vld [vmem:[#allocation277_spill] sm:$0xff]  ;;  %v9666_v48 = vpop.permute.xlu0 %3166  ;;  %3878 = vrot.lane.b32.xlu1 %v12507_v29, %s12157_s29  ;;  %v12831_v51 = vld [vmem:[#allocation103_spill] sm:$0xff]  ;;  %s13316_s29 = sld [smem:[#allocation6_spill]] }
 0x45b   : > { %v902_v58 = vmul.f32 %v12818_v17, %v894_v35  ;;  %v854_v9 = vadd.f32 %v9417_v7, %v802_v11  ;;  %v855_v28 = vadd.f32 %v9446_v2, %v803_v39  ;;  %v969_v13 = vsel %vm12820_vm2, %v965_v47, %v12819_v25  ;;  %vm12822_vm11 = vmmov %vm12820_vm2  ;;  %v12833_v25 = vld [vmem:[#allocation17_spill] sm:$0xff] }
 0x45c   : > { %v970_v27 = vsel %vm12822_vm11, %v12821_v16, %v965_v47  ;;  %vm12823_vm12 = vcmask 261120   ;;  %v12825_v15 = vrot.slane %v12824_v18, %v8562_v62  ;;  %v12826_v35 = vrot.slane %v12824_v18, %v8577_v38  ;;  %v5455_v18 = vld [vmem:[%s11116_s5 + $0x87] ss:$8 sm:$0xf] }
 0x45d   : > { %5071 = vmatmul.mubr.msk.f32.gmra.mxu1 %vm12823_vm12, %v4081_v4  ;;  %v12827_v2 = vrot.slane %v9221_v54, %v8562_v62  ;;  %v12828_v11 = vrot.slane %v9221_v54, %v8577_v38  ;;  %v4082_v4 = vld [vmem:[%s12793_s20 + $0x10] sm:$0xff]  ;;  %vm12830_vm1 = vcmp.lt.s32.totalorder %v6942_v22, 18  ;;  %v906_v47 = vadd.f32 %v902_v58, %v854_v9  ;;  %v12838_v58 = vld [vmem:[#allocation90_spill] sm:$0xff] }
 0x45e   : > { %v1504_v44 = vmul.f32 %v12825_v15, %v1476_v6  ;;  %v1505_v7 = vmul.f32 %v12826_v35, %v1475_v41  ;;  %v12829_v6 = vld [vmem:[#allocation166_spill] sm:$0xff]  ;;  %vm12832_vm2 = vmmov %vm12830_vm1  ;;  %v907_v54 = vadd.f32 %v903_v59, %v855_v28  ;;  %4196 = vmatprep.mubr.f32.mxu1 %v12816_v1  ;;  %v9694_v15 = vrot.slane %v5455_v18, %v8562_v62  ;;  %v12836_v28 = vld [vmem:[#allocation152_spill] sm:$0xff] }
 0x45f   : > { %v998_v42 = vmul.f32 %v12827_v2, %v970_v27  ;;  %v999_v39 = vmul.f32 %v12828_v11, %v969_v13  ;;  %v1588_v41 = vsel %vm12830_vm1, %v8825_v30, %v12829_v6  ;;  %v1590_v17 = vsel %vm12832_vm2, %v12831_v51, %v8825_v30  ;;  %v1075_v27 = vpop.permute.xlu1 %1074  ;;  %3930 = vrot.lane.b32.xlu1 %v12507_v29, %s5626_s12 }
 0x460   : > { %12834 = vst [vmem:[#allocation140_spill] sm:$0xff] %v9694_v15  ;;  %v9697_v35 = vrot.slane %v5455_v18, %v8577_v38  ;;  %v958_v30 = vadd.f32 %v9525_v14, %v906_v47  ;;  %v959_v9 = vadd.f32 %v9550_v60, %v907_v54  ;;  %vm12837_vm11 = vcmp.lt.s32.totalorder %v6942_v22, 34  ;;  %v4083_v60 = vld [vmem:[%s12793_s20 + $0x18] sm:$0xff]  ;;  %v12844_v47 = vld [vmem:[#allocation39_spill] sm:$0xff]  ;;  %v12846_v18 = vld [vmem:[#allocation288_spill] sm:$0xff]  ;;  %s323_s14 = sand.u32 1, %s13316_s29  }
 0x461   : > { %v1006_v13 = vmul.f32 %v12833_v25, %v998_v42  ;;  %v1007_v16 = vmul.f32 %v12833_v25, %v999_v39  ;;  %v1082_v59 = vsel %vm12837_vm11, %v1075_v27, %v12836_v28  ;;  %vm12839_vm12 = vmmov %vm12837_vm11  ;;  %vm12840_vm1 = vcmask 261120   ;;  %v12841_v42 = vld [vmem:[#allocation320_spill] sm:$0xff]  ;;  %v12842_v39 = vld [vmem:[#allocation321_spill] sm:$0xff]  ;;  %s4976_s9 = sshll.u32 %s323_s14, 6  ;;  %s11070_s6 = scalar_lea.sflag [#allocation3], %s323_s14 }
 0x462   : > { %12835 = vst [vmem:[#allocation290_spill] sm:$0xff] %v9697_v35  ;;  %v1084_v2 = vsel %vm12839_vm12, %v12838_v58, %v1075_v27  ;;  %5072 = vmatmul.mubr.msk.f32.gmra.mxu1 %vm12840_vm1, %v4082_v4  ;;  %v1624_v11 = vmul.f32 %v12841_v42, %v1590_v17  ;;  %v1625_v6 = vmul.f32 %v12842_v39, %v1588_v41  ;;  %v12843_v25 = vld [vmem:[#allocation328_spill] sm:$0xff]  ;;  %v12845_v41 = vld [vmem:[#allocation170_spill] sm:$0xff]  ;;  %vm12847_vm2 = vcmp.lt.s32.totalorder %v6942_v22, 16  ;;  %v12953_v39 = vld [vmem:[#allocation117_spill] sm:$0xff]  ;;  %s325_s16 = scalar_lea.vmem [#allocation2], %s4976_s9 }
 0x463   : > { %v1118_v51 = vmul.f32 %v8884_v32, %v1084_v2  ;;  %v1119_v14 = vmul.f32 %v12843_v25, %v1082_v59  ;;  %v9718_v54 = vmul.f32 %v12844_v47, %v1504_v44  ;;  %v9721_v4 = vmul.f32 %v12844_v47, %v1505_v7  ;;  %4202 = vmatprep.mubr.f32.mxu1 %v12816_v1  ;;  %v12848_v59 = vld [vmem:[#allocation107_spill] sm:$0xff]  ;;  %vm12849_vm11 = vmmov %vm12847_vm2  ;;  %v9732_v2 = vpop.permute.xlu0 %3218  ;;  %v12850_v44 = vld [vmem:[#allocation24_spill] sm:$0xff]  ;;  %s4910_s0 = sshll.u32 %s325_s16, 4  ;;  %s11066_s0 = int_to_ptr.vmem [resolvable:$true] %s4910_s0 }
 0x464   : > { %v1010_v17 = vadd.f32 %v1006_v13, %v958_v30  ;;  %v1011_v27 = vadd.f32 %v1007_v16, %v959_v9  ;;  %v1787_v28 = vsel %vm12847_vm2, %v12846_v18, %v12845_v41  ;;  %v1790_v58 = vsel %vm12849_vm11, %v12848_v59, %v12846_v18  ;;  %v1237_v13 = vpop.permute.xlu1 %1236  ;;  %v12851_v9 = vld [vmem:[#allocation156_spill] sm:$0xff]  ;;  %v12853_v41 = vld [vmem:[#allocation93_spill] sm:$0xff]  ;;  %3436 = vrot.lane.b32.xlu1 %v12791_v63, %s12062_s3  ;;  %v12966_v42 = vld [vmem:[#allocation203_spill] sm:$0xff]  ;;  %s5468_s2 = scalar_lea.vmem %s11066_s0, 1024  ;;  %p5475_p0 = scmp.lt.s32.totalorder %s11066_s0, %s5473_s24 }
 0x465   : > { %v1136_v36 = vmul.f32 %v12850_v44, %v1118_v51  ;;  %v1137_v7 = vmul.f32 %v12850_v44, %v1119_v14  ;;  %vm12852_vm12 = vcmp.lt.s32.totalorder %v6942_v22, 32  ;;  %vm12855_vm2 = vcmask 261120   ;;  %v12856_v18 = vld [vmem:[#allocation41_spill] sm:$0xff]  ;;  %v12857_v14 = vld [vmem:[#allocation174_spill] sm:$0xff]  ;;  %p5469_p11 = scmp.ne.s32.totalorder %s11066_s0, %s5468_s2  ;;  %p5476_p1 = scmp.lt.s32.totalorder %s5474_s28, %s5468_s2 }
 0x466   : > { %v1062_v16 = vadd.f32 %v9573_v40, %v1010_v17  ;;  %v1063_v30 = vadd.f32 %v9576_v55, %v1011_v27  ;;  %v1244_v47 = vsel %vm12852_vm12, %v1237_v13, %v12851_v9  ;;  %vm12854_vm1 = vmmov %vm12852_vm12  ;;  %5073 = vmatmul.mubr.msk.f32.gmra.mxu1 %vm12855_vm2, %v4083_v60  ;;  %v9746_v59 = vmul.f32 %v12856_v18, %v1624_v11  ;;  %v12858_v17 = vld [vmem:[#allocation104_spill] sm:$0xff]  ;;  %v12860_v60 = vld [vmem:[#allocation111_spill] sm:$0xff] }
 0x467   : > { %v1246_v8 = vsel %vm12854_vm1, %v12853_v41, %v1237_v13  ;;  %v9749_v51 = vmul.f32 %v12856_v18, %v1625_v6  ;;  %v1281_v55 = vmul.f32 %v9257_v49, %v1244_v47  ;;  %vm12859_vm11 = vcmp.lt.s32.totalorder %v6942_v22, 14  ;;  %4273 = vmatprep.mubr.f32.mxu1 %v12816_v1  ;;  %v12863_v9 = vld [vmem:[#allocation324_spill] sm:$0xff]  ;;  %p5470_p12 = pnand %p5469_p11, %p5718_p5  ;;  %p5477_p2 = por %p5476_p1, %p5475_p0 }
 0x468   : > { %v1280_v40 = vmul.f32 %v9254_v56, %v1246_v8  ;;  %v1994_v27 = vsel %vm12859_vm11, %v12858_v17, %v12857_v14  ;;  %vm12861_vm12 = vmmov %vm12859_vm11  ;;  %v1144_v44 = vadd.f32 %v1136_v36, %v1062_v16  ;;  %v1145_v6 = vadd.f32 %v1137_v7, %v1063_v30  ;;  %v12862_v8 = vld [vmem:[#allocation323_spill] sm:$0xff]  ;;  %v12864_v41 = vld [vmem:[#allocation32_spill] sm:$0xff]  ;;  %v1397_v15 = vpop.permute.xlu1 %1396  ;;  %2774 = vrot.lane.b32.xlu1 %v12548_v46, %s11969_s30 }
 0x469   : > { %v1996_v11 = vsel %vm12861_vm12, %v12860_v60, %v12858_v17  ;;  %v1830_v13 = vmul.f32 %v12862_v8, %v1790_v58  ;;  %v1831_v47 = vmul.f32 %v12863_v9, %v1787_v28  ;;  %v1297_v35 = vmul.f32 %v12864_v41, %v1281_v55  ;;  %v12867_v7 = vld [vmem:[#allocation97_spill] sm:$0xff]  ;;  %v12869_v58 = vld [vmem:[#allocation326_spill] sm:$0xff]  ;;  %v12870_v28 = vld [vmem:[#allocation327_spill] sm:$0xff]  ;;  %p5471_p13 = pneg %p5470_p12 }
 0x46a   : > { %v1296_v18 = vmul.f32 %v12864_v41, %v1280_v40  ;;  %v1224_v14 = vadd.f32 %v9591_v53, %v1144_v44  ;;  %v1225_v24 = vadd.f32 %v9594_v34, %v1145_v6  ;;  %vm12866_vm1 = vcmp.lt.s32.totalorder %v6942_v22, 30  ;;  %v9778_v40 = vpop.permute.xlu0 %3278  ;;  %v12871_v34 = vld [vmem:[#allocation178_spill] sm:$0xff]  ;;  %v12875_v44 = vld [vmem:[#allocation43_spill] sm:$0xff] }
 0x46b   : > { %v1404_v36 = vsel %vm12866_vm1, %v1397_v15, %v12865_v12  ;;  %vm12868_vm2 = vmmov %vm12866_vm1  ;;  %v2030_v30 = vmul.f32 %v12869_v58, %v1996_v11  ;;  %v2031_v17 = vmul.f32 %v12870_v28, %v1994_v27  ;;  %vm12872_vm11 = vcmp.lt.s32.totalorder %v6942_v22, 3  ;;  %v12927_v28 = vld [vmem:[#allocation149_spill] sm:$0xff]  ;;  %v12936_v9 = vld [vmem:[#allocation51_spill] sm:$0xff]  ;;  %p5478_p3 = pnand %p5477_p2, %p5471_p13 }
 0x46c   : > { %v1406_v16 = vsel %vm12868_vm2, %v12867_v7, %v1397_v15  ;;  %v1441_v53 = vmul.f32 %v9272_v45, %v1404_v36  ;;  %v2117_v12 = vsel %vm12872_vm11, %v8972_v52, %v12871_v34  ;;  %v12873_v15 = vld [vmem:[#allocation115_spill] sm:$0xff]  ;;  %vm12874_vm12 = vmmov %vm12872_vm11  ;;  %v1304_v27 = vadd.f32 %v1296_v18, %v1224_v14  ;;  %v12876_v36 = vld [vmem:[#allocation37_spill] sm:$0xff]  ;;  %4034 = vrot.lane.b32.xlu1 %v12507_v29, %s5625_s27 }
 0x46d   : > { %v1440_v55 = vmul.f32 %v9267_v57, %v1406_v16  ;;  %v2118_v60 = vsel %vm12874_vm12, %v12873_v15, %v8972_v52  ;;  %v1305_v11 = vadd.f32 %v1297_v35, %v1225_v24  ;;  %v9793_v6 = vmul.f32 %v12875_v44, %v1830_v13  ;;  %v1523_v16 = vpop.permute.xlu1 %1522  ;;  %v12879_v24 = vld [vmem:[#allocation101_spill] sm:$0xff]  ;;  %v12889_v29 = vld [vmem:[#allocation40_spill] sm:$0xff]  ;;  %v12944_v8 = vld [vmem:[#allocation151_spill] sm:$0xff] }
 0x46e   : > { %v9796_v41 = vmul.f32 %v12875_v44, %v1831_v47  ;;  %v1457_v7 = vmul.f32 %v12876_v36, %v1441_v53  ;;  %v1384_v34 = vadd.f32 %v9644_v26, %v1304_v27  ;;  %vm12878_vm1 = vcmp.lt.s32.totalorder %v6942_v22, 19  ;;  %v12881_v13 = vld [vmem:[#allocation301_spill] sm:$0xff] }
 0x46f   : > { %v1456_v46 = vmul.f32 %v12876_v36, %v1440_v55  ;;  %v1385_v1 = vadd.f32 %v9647_v21, %v1305_v11  ;;  %v1527_v52 = vsel %vm12878_vm1, %v1523_v16, %v12877_v37  ;;  %vm12880_vm2 = vmmov %vm12878_vm1  ;;  %v12882_v47 = vrot.slane %v12881_v13, %v8562_v62  ;;  %v12886_v15 = vld [vmem:[#allocation45_spill] sm:$0xff] }
 0x470   : > { %v1528_v35 = vsel %vm12880_vm2, %v12879_v24, %v1523_v16  ;;  %v12883_v14 = vrot.slane %v12881_v13, %v8577_v38  ;;  %v12884_v26 = vrot.slane %v9307_v20, %v8562_v62  ;;  %v12885_v53 = vrot.slane %v9307_v20, %v8577_v38  ;;  %v12888_v16 = vld [vmem:[#allocation119_spill] sm:$0xff]  ;;  %3596 = vrot.lane.b32.xlu1 %v12791_v63, %s12160_s13 }
 0x471   : > { %v2146_v18 = vmul.f32 %v12882_v47, %v2118_v60  ;;  %v9823_v27 = vmul.f32 %v12886_v15, %v2030_v30  ;;  %v9826_v60 = vmul.f32 %v12886_v15, %v2031_v17  ;;  %v1464_v11 = vadd.f32 %v1456_v46, %v1384_v34  ;;  %v1667_v17 = vpop.permute.xlu1 %1666 }
 0x472   : > { %v2147_v55 = vmul.f32 %v12883_v14, %v2117_v12  ;;  %v1556_v21 = vmul.f32 %v12884_v26, %v1528_v35  ;;  %v1557_v37 = vmul.f32 %v12885_v53, %v1527_v52  ;;  %v1465_v44 = vadd.f32 %v1457_v7, %v1385_v1  ;;  %v12887_v12 = vld [vmem:[#allocation182_spill] sm:$0xff]  ;;  %v9836_v52 = vpop.permute.xlu0 %2404  ;;  %v12890_v7 = vld [vmem:[#allocation168_spill] sm:$0xff]  ;;  %v12891_v35 = vld [vmem:[#allocation105_spill] sm:$0xff] }
 0x473   : > { %v2267_v36 = vsel %vm2264_vm6, %v9013_v3, %v12887_v12  ;;  %v2270_v20 = vsel %vm2264_vm6, %v12888_v16, %v9013_v3  ;;  %v1516_v46 = vadd.f32 %v9718_v54, %v1464_v11  ;;  %v1677_v34 = vsel %vm1674_vm0, %v1667_v17, %v12890_v7  ;;  %v12892_v3 = vld [vmem:[#allocation47_spill] sm:$0xff]  ;;  %v12893_v26 = vld [vmem:[#allocation84_spill] sm:$0xff]  ;;  %v12898_v11 = vld [vmem:[#allocation74_spill] sm:$0xff] }
 0x474   : > { %v1564_v30 = vmul.f32 %v12889_v29, %v1556_v21  ;;  %v1565_v24 = vmul.f32 %v12889_v29, %v1557_v37  ;;  %v1517_v1 = vadd.f32 %v9721_v4, %v1465_v44  ;;  %v1680_v13 = vsel %vm1674_vm0, %v12891_v35, %v1667_v17  ;;  %v12894_v53 = vld [vmem:[#allocation155_spill] sm:$0xff]  ;;  %v12895_v4 = vld [vmem:[#allocation133_spill] sm:$0xff]  ;;  %v12896_v37 = vld [vmem:[#allocation270_spill] sm:$0xff] }
 0x475   : > { %v9849_v47 = vmul.f32 %v12892_v3, %v2146_v18  ;;  %v9852_v14 = vmul.f32 %v12892_v3, %v2147_v55  ;;  %v1720_v21 = vmul.f32 %v12893_v26, %v1680_v13  ;;  %v1721_v54 = vmul.f32 %v12894_v53, %v1677_v34  ;;  %v4084_v12 = vld [vmem:[%s12638_s17] sm:$0xff]  ;;  %v1885_v13 = vpop.permute.xlu1 %1884 }
 0x476   : > { %vm12897_vm11 = vcmp.lt.s32.totalorder %v6942_v22, 34  ;;  %v1568_v44 = vadd.f32 %v1564_v30, %v1516_v46  ;;  %v1569_v55 = vadd.f32 %v1565_v24, %v1517_v1  ;;  %v12900_v16 = vld [vmem:[#allocation106_spill] sm:$0xff]  ;;  %vm12904_vm1 = vcmp.lt.s32.totalorder %v6942_v22, 15  ;;  %v12905_v24 = vld [vmem:[#allocation109_spill] sm:$0xff]  ;;  %v9883_v1 = vpop.permute.xlu0 %2504  ;;  %4090 = vperm.xlu1 %5361, %v4084_v12  }
 0x477   : > { %v1081_v15 = vsel %vm12897_vm11, %v12896_v37, %v12895_v4  ;;  %vm12899_vm12 = vmmov %vm12897_vm11  ;;  %v2310_v29 = vmul.f32 %v12900_v16, %v2270_v20  ;;  %v12901_v17 = vld [vmem:[#allocation114_spill] sm:$0xff]  ;;  %vm12911_vm11 = vcmp.lt.s32.totalorder %v6942_v22, 126 }
 0x478   : > { %v1083_v18 = vsel %vm12899_vm12, %v12898_v11, %v12896_v37  ;;  %v2311_v63 = vmul.f32 %v12901_v17, %v2267_v36  ;;  %v12902_v7 = vld [vmem:[#allocation42_spill] sm:$0xff]  ;;  %v1648_v3 = vadd.f32 %v9746_v59, %v1568_v44  ;;  %v1649_v4 = vadd.f32 %v9749_v51, %v1569_v55  ;;  %v12903_v37 = vld [vmem:[#allocation172_spill] sm:$0xff]  ;;  %vm12906_vm2 = vmmov %vm12904_vm1 }
 0x479   : > { %v1746_v34 = vmul.f32 %v12902_v7, %v1720_v21  ;;  %v1747_v35 = vmul.f32 %v12902_v7, %v1721_v54  ;;  %v1895_v30 = vsel %vm12904_vm1, %v1885_v13, %v12903_v37  ;;  %v1898_v46 = vsel %vm12906_vm2, %v12905_v24, %v1885_v13  ;;  %v12907_v21 = vld [vmem:[#allocation227_spill] sm:$0xff]  ;;  %v12908_v11 = vld [vmem:[#allocation269_spill] sm:$0xff]  ;;  %vm12913_vm12 = vmmov %vm12911_vm11 }
 0x47a   : > { %v1114_v20 = vmul.f32 %v8884_v32, %v1083_v18  ;;  %v1115_v36 = vmul.f32 %v12843_v25, %v1081_v15  ;;  %v1938_v54 = vmul.f32 %v12907_v21, %v1898_v46  ;;  %v1939_v59 = vmul.f32 %v12908_v11, %v1895_v30  ;;  %v12909_v51 = vld [vmem:[#allocation339_spill] sm:$0xff]  ;;  %v12910_v44 = vld [vmem:[#allocation145_spill] sm:$0xff]  ;;  %v4086_v25 = vld [vmem:[%s12638_s17 + $0x10] sm:$0xff] }
 0x47b   : > { %v2510_v55 = vsel %vm12911_vm11, %v12910_v44, %v12909_v51  ;;  %v12912_v7 = vld [vmem:[#allocation83_spill] sm:$0xff]  ;;  %v1758_v32 = vadd.f32 %v1746_v34, %v1648_v3  ;;  %v1759_v18 = vadd.f32 %v1747_v35, %v1649_v4  ;;  %v12914_v15 = vld [vmem:[#allocation276_spill] sm:$0xff]  ;;  %vm12916_vm1 = vcmp.lt.s32.totalorder %v6942_v22, 125  ;;  %v12917_v30 = vld [vmem:[#allocation118_spill] sm:$0xff]  ;;  %v2061_v34 = vpop.permute.xlu1 %2060  ;;  %4100 = vperm.xlu1 %5361, %v4086_v25  }
 0x47c   : > { %v2516_v13 = vsel %vm12913_vm12, %v12909_v51, %v12912_v7  ;;  %v12915_v37 = vld [vmem:[#allocation147_spill] sm:$0xff]  ;;  %vm12918_vm2 = vmmov %vm12916_vm1  ;;  %v12919_v46 = vld [vmem:[#allocation44_spill] sm:$0xff]  ;;  %vm12921_vm11 = vcmp.lt.s32.totalorder %v6942_v22, 13  ;;  %v9942_v25 = vmul.f32 %v12936_v9, %v2311_v63 }
 0x47d   : > { %v2581_v12 = vsel %vm12916_vm1, %v12915_v37, %v12914_v15  ;;  %v2584_v24 = vsel %vm12918_vm2, %v12914_v15, %v12917_v30  ;;  %v1962_v44 = vmul.f32 %v12919_v46, %v1938_v54  ;;  %v1963_v51 = vmul.f32 %v12919_v46, %v1939_v59  ;;  %v12920_v4 = vld [vmem:[#allocation176_spill] sm:$0xff]  ;;  %vm12923_vm12 = vmmov %vm12921_vm11  ;;  %v12924_v17 = vld [vmem:[#allocation302_spill] sm:$0xff] }
 0x47e   : > { %v1866_v35 = vadd.f32 %v9793_v6, %v1758_v32  ;;  %v1867_v3 = vadd.f32 %v9796_v41, %v1759_v18  ;;  %v2065_v7 = vsel %vm12921_vm11, %v2061_v34, %v12920_v4  ;;  %v2066_v37 = vsel %vm12923_vm12, %v12922_v43, %v2061_v34  ;;  %v12925_v15 = vld [vmem:[#allocation329_spill] sm:$0xff]  ;;  %v12929_v6 = vld [vmem:[#allocation120_spill] sm:$0xff]  ;;  %v12931_v32 = vld [vmem:[#allocation330_spill] sm:$0xff] }
 0x47f   : > { %v2546_v16 = vmul.f32 %v12924_v17, %v2510_v55  ;;  %v2547_v30 = vmul.f32 %v12925_v15, %v2516_v13  ;;  %v12926_v54 = vld [vmem:[#allocation53_spill] sm:$0xff]  ;;  %vm12928_vm1 = vcmp.lt.s32.totalorder %v6942_v22, 115  ;;  %v12932_v18 = vrot.slane %v12931_v32, %v8562_v62  ;;  %v12943_v63 = vld [vmem:[#allocation239_spill] sm:$0xff] }
 0x480   : > { %v2633_v59 = vsel %vm12928_vm1, %v12927_v28, %v12926_v54  ;;  %vm12930_vm2 = vmmov %vm12928_vm1  ;;  %v12933_v43 = vrot.slane %v12931_v32, %v8577_v38  ;;  %v1974_v13 = vadd.f32 %v1962_v44, %v1866_v35  ;;  %v12934_v34 = vld [vmem:[#allocation173_spill] sm:$0xff]  ;;  %v2171_v35 = vpop.permute.xlu1 %2170  ;;  %v12938_v32 = vld [vmem:[#allocation55_spill] sm:$0xff]  ;;  %vm12945_vm11 = vcmp.lt.s32.totalorder %v6942_v22, 114 }
 0x481   : > { %v2636_v41 = vsel %vm12930_vm2, %v12926_v54, %v12929_v6  ;;  %v2610_v46 = vmul.f32 %v12932_v18, %v2581_v12  ;;  %v12935_v4 = vrot.slane %v12934_v34, %v8562_v62  ;;  %v4087_v28 = vld [vmem:[%s12638_s17 + $0x18] sm:$0xff]  ;;  %v9939_v54 = vmul.f32 %v12936_v9, %v2310_v29  ;;  %v9944_v12 = vpop.permute.xlu0 %2688  ;;  %v12940_v18 = vld [vmem:[#allocation124_spill] sm:$0xff]  ;;  %vm12949_vm12 = vmmov %vm12945_vm11 }
 0x482   : > { %v2611_v55 = vmul.f32 %v12933_v43, %v2584_v24  ;;  %v1975_v6 = vadd.f32 %v1963_v51, %v1867_v3  ;;  %v12937_v24 = vrot.slane %v12934_v34, %v8577_v38  ;;  %v12941_v43 = vrot.slane %v12940_v18, %v8562_v62  ;;  %4105 = vperm.xlu1 %5361, %v4087_v28  }
 0x483   : > { %v2094_v58 = vmul.f32 %v12935_v4, %v2066_v37  ;;  %v9950_v37 = vmul.f32 %v12938_v32, %v1114_v20  ;;  %v12942_v29 = vrot.slane %v12940_v18, %v8577_v38  ;;  %v2694_v51 = vsel %vm12945_vm11, %v12944_v8, %v12943_v63 }
 0x484   : > { %v2095_v44 = vmul.f32 %v12937_v24, %v2065_v7  ;;  %v2662_v4 = vmul.f32 %v12941_v43, %v2633_v59  ;;  %v9963_v3 = vmul.f32 %v12938_v32, %v1115_v36  ;;  %v12947_v7 = vld [vmem:[#allocation58_spill] sm:$0xff]  ;;  %v12948_v24 = vld [vmem:[#allocation121_spill] sm:$0xff]  ;;  %v2054_v36 = vadd.f32 %v9823_v27, %v1974_v13  ;;  %v12952_v43 = vld [vmem:[#allocation331_spill] sm:$0xff] }
 0x485   : > { %12939 = vst [vmem:[#allocation52_spill] sm:$0xff] %v9950_v37  ;;  %v2663_v9 = vmul.f32 %v12942_v29, %v2636_v41  ;;  %v9966_v34 = vmul.f32 %v12947_v7, %v2546_v16  ;;  %v9969_v20 = vmul.f32 %v12947_v7, %v2547_v30  ;;  %v2700_v59 = vsel %vm12949_vm12, %v12943_v63, %v12948_v24  ;;  %v12950_v41 = vld [vmem:[#allocation57_spill] sm:$0xff]  ;;  %v12951_v32 = vld [vmem:[#allocation46_spill] sm:$0xff]  ;;  %v9989_v63 = vpop.permute.xlu1 %2406  ;;  %v12956_v27 = vld [vmem:[#allocation332_spill] sm:$0xff] }
 0x486   : > { %12946 = vst [vmem:[#allocation66_spill] sm:$0xff] %v9963_v3  ;;  %v9976_v18 = vmul.f32 %v12950_v41, %v2610_v46  ;;  %v9979_v8 = vmul.f32 %v12950_v41, %v2611_v55  ;;  %v2102_v16 = vmul.f32 %v12951_v32, %v2094_v58  ;;  %v2730_v29 = vmul.f32 %v12952_v43, %v2694_v51  ;;  %v12955_v46 = vld [vmem:[#allocation59_spill] sm:$0xff]  ;;  %v12957_v13 = vld [vmem:[#allocation180_spill] sm:$0xff]  ;;  %v12962_v41 = vld [vmem:[#allocation165_spill] sm:$0xff] }
 0x487   : > { %v2055_v30 = vadd.f32 %v9826_v60, %v1975_v6  ;;  %v2103_v7 = vmul.f32 %v12951_v32, %v2095_v44  ;;  %vm12954_vm1 = vcmp.lt.s32.totalorder %v6942_v22, 2  ;;  %v9992_v24 = vmul.f32 %v12955_v46, %v2662_v4  ;;  %v12959_v6 = vld [vmem:[#allocation279_spill] sm:$0xff]  ;;  %v12960_v44 = vld [vmem:[#allocation153_spill] sm:$0xff] }
 0x488   : > { %v2180_v28 = vsel %vm12954_vm1, %v12953_v39, %v2171_v35  ;;  %v9995_v55 = vmul.f32 %v12955_v46, %v2663_v9  ;;  %v2731_v58 = vmul.f32 %v12956_v27, %v2700_v59  ;;  %vm12958_vm2 = vmmov %vm12954_vm1  ;;  %v2783_v51 = vsel %vm2780_vm15, %v12960_v44, %v12959_v6  ;;  %v12961_v39 = vld [vmem:[#allocation159_spill] sm:$0xff]  ;;  %v10013_v59 = vpop.permute.xlu0 %2776  ;;  %v12964_v46 = vld [vmem:[#allocation169_spill] sm:$0xff] }
 0x489   : > { %v2178_v60 = vsel %vm12958_vm2, %v2171_v35, %v12957_v13  ;;  %v2792_v4 = vsel %vm2780_vm15, %v12959_v6, %v12961_v39  ;;  %v2891_v9 = vsel %vm2888_vm3, %v12962_v41, %v9485_v50  ;;  %v5456_v35 = vld [vmem:[%s11116_s5 + $0x86] ss:$8 sm:$0xf]  ;;  %v2900_v13 = vsel %vm2888_vm3, %v9485_v50, %v12964_v46 }
 0x48a   : > { %v10019_v32 = vrot.slane %v5456_v35, %v8562_v62  ;;  %v12965_v6 = vld [vmem:[#allocation175_spill] sm:$0xff]  ;;  %v2106_v39 = vadd.f32 %v2102_v16, %v2054_v36  ;;  %v2214_v41 = vmul.f32 %v9478_v33, %v2180_v28  ;;  %v10031_v45 = vmul.f32 %v12966_v42, %v2730_v29  ;;  %v12970_v46 = vld [vmem:[#allocation306_spill] sm:$0xff] }
 0x48b   : > { %v2999_v44 = vsel %vm2996_vm5, %v12965_v6, %v9541_v19  ;;  %v2107_v3 = vadd.f32 %v2103_v7, %v2055_v30  ;;  %v2215_v57 = vmul.f32 %v9481_v31, %v2178_v60  ;;  %v10037_v37 = vrot.slane %v5456_v35, %v8577_v38  ;;  %v12971_v6 = vld [vmem:[#allocation102_spill] sm:$0xff]  ;;  %v12972_v16 = vld [vmem:[#allocation179_spill] sm:$0xff]  ;;  %v12973_v30 = vld [vmem:[#allocation333_spill] sm:$0xff] }
 0x48c   : > { %12963 = vst [vmem:[#allocation292_spill] sm:$0xff] %v10019_v32  ;;  %12967 = vst [vmem:[#allocation199_spill] sm:$0xff] %v10031_v45  ;;  %v10034_v32 = vpop.permute.xlu1 %1154  ;;  %v10040_v50 = vmul.f32 %v12966_v42, %v2731_v58  ;;  %v2826_v5 = vmul.f32 %v12970_v46, %v2783_v51  ;;  %v2827_v36 = vmul.f32 %v12971_v6, %v2792_v4  ;;  %v12974_v28 = vld [vmem:[#allocation334_spill] sm:$0xff]  ;;  %v12975_v31 = vld [vmem:[#allocation335_spill] sm:$0xff]  ;;  %vm12977_vm11 = vcmp.lt.s32.totalorder %v6942_v22, 110  ;;  %v10070_v45 = vpop.permute.xlu0 %2884 }
 0x48d   : > { %12968 = vst [vmem:[#allocation298_spill] sm:$0xff] %v10037_v37  ;;  %v3008_v29 = vsel %vm2996_vm5, %v9541_v19, %v12972_v16  ;;  %v2934_v7 = vmul.f32 %v12973_v30, %v2891_v9  ;;  %v2935_v60 = vmul.f32 %v12974_v28, %v2900_v13  ;;  %v3042_v33 = vmul.f32 %v12975_v31, %v2999_v44  ;;  %v12976_v35 = vld [vmem:[#allocation185_spill] sm:$0xff]  ;;  %vm12979_vm12 = vmmov %vm12977_vm11  ;;  %v12980_v4 = vld [vmem:[#allocation195_spill] sm:$0xff] }
 0x48e   : > { %12969 = vst [vmem:[#allocation194_spill] sm:$0xff] %v10040_v50  ;;  %v3098_v42 = vsel %vm12977_vm11, %v12976_v35, %v9605_v23  ;;  %v12978_v58 = vld [vmem:[#allocation189_spill] sm:$0xff]  ;;  %vm12981_vm1 = vcmp.lt.s32.totalorder %v6942_v22, 109  ;;  %v2158_v9 = vadd.f32 %v9849_v47, %v2106_v39  ;;  %v12983_v44 = vld [vmem:[#allocation336_spill] sm:$0xff]  ;;  %v12984_v50 = vld [vmem:[#allocation198_spill] sm:$0xff]  ;;  %vm13004_vm11 = vcmp.lt.s32.totalorder %v6942_v22, 99 }
 0x48f   : > { %v3104_v51 = vsel %vm12979_vm12, %v9605_v23, %v12978_v58  ;;  %v3169_v19 = vsel %vm12981_vm1, %v12980_v4, %v9666_v48  ;;  %v12982_v13 = vld [vmem:[#allocation49_spill] sm:$0xff]  ;;  %v3043_v37 = vmul.f32 %v12983_v44, %v3008_v29  ;;  %vm12985_vm2 = vmmov %vm12981_vm1  ;;  %v2159_v23 = vadd.f32 %v9852_v14, %v2107_v3  ;;  %v12986_v4 = vld [vmem:[#allocation108_spill] sm:$0xff] }
 0x490   : > { %v2230_v16 = vmul.f32 %v12982_v13, %v2214_v41  ;;  %v3172_v35 = vsel %vm12985_vm2, %v9666_v48, %v12984_v50  ;;  %v2231_v58 = vmul.f32 %v12982_v13, %v2215_v57  ;;  %v10074_v61 = vpop.permute.xlu1 %1234  ;;  %v10077_v11 = vmul.f32 %v12986_v4, %v2826_v5  ;;  %v12988_v39 = vld [vmem:[#allocation72_spill] sm:$0xff]  ;;  %v12990_v14 = vld [vmem:[#allocation217_spill] sm:$0xff]  ;;  %v12992_v13 = vld [vmem:[#allocation307_spill] sm:$0xff] }
 0x491   : > { %v10080_v47 = vmul.f32 %v12986_v4, %v2827_v36  ;;  %v3134_v41 = vmul.f32 %v12988_v39, %v3098_v42  ;;  %v5457_v48 = vld [vmem:[%s11116_s5 + $0xa0] ss:$8 sm:$0xf]  ;;  %v10090_v3 = vmul.f32 %v12990_v14, %v2934_v7  ;;  %v12993_v5 = vrot.slane %v12992_v13, %v8562_v62  ;;  %v10108_v7 = vld [vmem:[%s11116_s5 + $0xa1] ss:$8 sm:$0xf]  ;;  %vm13010_vm12 = vmmov %vm13004_vm11 }
 0x492   : > { %12987 = vst [vmem:[#allocation296_spill] sm:$0xff] %v10077_v11  ;;  %v10087_v50 = vrot.slane %v5457_v48, %v8562_v62  ;;  %v12991_v57 = vld [vmem:[#allocation337_spill] sm:$0xff]  ;;  %v10097_v36 = vrot.slane %v5457_v48, %v8577_v38  ;;  %v10100_v42 = vmul.f32 %v12990_v14, %v2935_v60  ;;  %v12996_v4 = vrot.slane %v12992_v13, %v8577_v38  ;;  %v13003_v13 = vld [vmem:[#allocation204_spill] sm:$0xff] }
 0x493   : > { %v3135_v29 = vmul.f32 %v12991_v57, %v3104_v51  ;;  %v3198_v11 = vmul.f32 %v12993_v5, %v3169_v19  ;;  %12997 = vst [vmem:[#allocation299_spill] sm:$0xff] %v10108_v7  ;;  %v12998_v19 = vld [vmem:[#allocation136_spill] sm:$0xff]  ;;  %v2239_v60 = vadd.f32 %v2231_v58, %v2159_v23  ;;  %v1663_v51 = vpop.permute.xlu0 %1662  ;;  %v13011_v57 = vld [vmem:[#allocation126_spill] sm:$0xff]  ;;  %vm13025_vm1 = vcmp.lt.s32.totalorder %v6942_v22, 126 }
 0x494   : > { %12989 = vst [vmem:[#allocation300_spill] sm:$0xff] %v10087_v50  ;;  %12994 = vst [vmem:[#allocation259_spill] sm:$0xff] %v10097_v36  ;;  %v3199_v39 = vmul.f32 %v12996_v4, %v3172_v35  ;;  %v2238_v50 = vadd.f32 %v2230_v16, %v2158_v9  ;;  %v10113_v5 = vmul.f32 %v12998_v19, %v3042_v33  ;;  %v10118_v14 = vpop.permute.xlu1 %1314  ;;  %v13001_v16 = vld [vmem:[#allocation242_spill] sm:$0xff]  ;;  %v13009_v9 = vld [vmem:[#allocation208_spill] sm:$0xff] }
 0x495   : > { %12995 = vst [vmem:[#allocation87_spill] sm:$0xff] %v10100_v42  ;;  %v10116_v48 = vmul.f32 %v12998_v19, %v3043_v37  ;;  %v10123_v35 = vmul.f32 %v13001_v16, %v3134_v41  ;;  %v3221_v4 = vsel %vm13004_vm11, %v13003_v13, %v9732_v2  ;;  %v10132_v33 = vld [vmem:[%s11116_s5 + $0xa2] ss:$8 sm:$0xf]  ;;  %v10139_v58 = vmul.f32 %v13001_v16, %v3135_v29  ;;  %vm13027_vm2 = vmmov %vm13025_vm1 }
 0x496   : > { %12999 = vst [vmem:[#allocation311_spill] sm:$0xff] %v10113_v5  ;;  %13005 = vst [vmem:[#allocation150_spill] sm:$0xff] %v10132_v33  ;;  %v13007_v41 = vld [vmem:[#allocation186_spill] sm:$0xff]  ;;  %v3224_v13 = vsel %vm13010_vm12, %v9732_v2, %v13009_v9  ;;  %v2411_v37 = vsel %vm2408_vm4, %v13011_v57, %v9989_v63  ;;  %v2346_v16 = vadd.f32 %v9939_v54, %v2238_v50  ;;  %v13015_v9 = vld [vmem:[#allocation308_spill] sm:$0xff]  ;;  %vm13031_vm11 = vcmp.lt.s32.totalorder %v6942_v22, 114 }
 0x497   : > { %13000 = vst [vmem:[#allocation146_spill] sm:$0xff] %v10116_v48  ;;  %13002 = vst [vmem:[#allocation314_spill] sm:$0xff] %v10123_v35  ;;  %v10142_v19 = vmul.f32 %v13007_v41, %v3198_v11  ;;  %v10153_v7 = vmul.f32 %v13007_v41, %v3199_v39  ;;  %v13013_v29 = vld [vmem:[#allocation214_spill] sm:$0xff]  ;;  %v13016_v33 = vrot.slane %v13015_v9, %v8562_v62  ;;  %v13029_v35 = vld [vmem:[#allocation309_spill] sm:$0xff] }
 0x498   : > { %13006 = vst [vmem:[#allocation248_spill] sm:$0xff] %v10139_v58  ;;  %v3282_v11 = vsel %vm3280_vm9, %v13013_v29, %v9778_v40  ;;  %v13014_v23 = vld [vmem:[#allocation82_spill] sm:$0xff]  ;;  %v2347_v41 = vadd.f32 %v9942_v25, %v2239_v60  ;;  %v13019_v50 = vrot.slane %v13015_v9, %v8577_v38  ;;  %v13021_v25 = vld [vmem:[#allocation233_spill] sm:$0xff]  ;;  %vm13034_vm12 = vmmov %vm13031_vm11 }
 0x499   : > { %13008 = vst [vmem:[#allocation89_spill] sm:$0xff] %v10142_v19  ;;  %13012 = vst [vmem:[#allocation154_spill] sm:$0xff] %v10153_v7  ;;  %v2420_v2 = vsel %vm2408_vm4, %v9989_v63, %v13014_v23  ;;  %v3250_v36 = vmul.f32 %v13016_v33, %v3221_v4  ;;  %v13017_v57 = vld [vmem:[#allocation218_spill] sm:$0xff]  ;;  %v10172_v7 = vpop.permute.xlu1 %1394  ;;  %v13020_v33 = vld [vmem:[#allocation205_spill] sm:$0xff]  ;;  %v2419_v60 = vsel %vm2408_vm4, %v9836_v52, %v13021_v25 }
 0x49a   : > { %v3288_v39 = vsel %vm3280_vm9, %v9778_v40, %v13017_v57  ;;  %v10177_v54 = vld [vmem:[%s11116_s5 + $0xa3] ss:$8 sm:$0xf]  ;;  %v3251_v4 = vmul.f32 %v13019_v50, %v3224_v13  ;;  %v2410_v40 = vsel %vm2408_vm4, %v13020_v33, %v9836_v52 }
 0x49b   : > { %13018 = vst [vmem:[#allocation238_spill] sm:$0xff] %v10177_v54  ;;  %v13022_v23 = vld [vmem:[#allocation340_spill] sm:$0xff]  ;;  %v13023_v57 = vld [vmem:[#allocation183_spill] sm:$0xff]  ;;  %v13024_v63 = vld [vmem:[#allocation237_spill] sm:$0xff]  ;;  %v3319_v48 = vmul.f32 %v13029_v35, %v3288_v39 }
 0x49c   : > { %v2454_v29 = vmul.f32 %v13022_v23, %v2411_v37  ;;  %v3318_v19 = vmul.f32 %v13023_v57, %v3282_v11  ;;  %v2509_v9 = vsel %vm13025_vm1, %v13024_v63, %v9883_v1  ;;  %v13026_v13 = vld [vmem:[#allocation243_spill] sm:$0xff]  ;;  %v13028_v33 = vld [vmem:[#allocation341_spill] sm:$0xff]  ;;  %v13032_v11 = vld [vmem:[#allocation280_spill] sm:$0xff]  ;;  %v2450_v63 = vmul.f32 %v13022_v23, %v2410_v40 }
 0x49d   : > { %v2515_v50 = vsel %vm13027_vm2, %v9883_v1, %v13026_v13  ;;  %v2455_v58 = vmul.f32 %v13028_v33, %v2420_v2  ;;  %v13030_v52 = vld [vmem:[#allocation247_spill] sm:$0xff]  ;;  %v2382_v25 = vadd.f32 %v13032_v11, %v2346_v16  ;;  %v2451_v5 = vmul.f32 %v13028_v33, %v2419_v60  ;;  %v13033_v62 = vld [vmem:[#allocation253_spill] sm:$0xff]  ;;  %v2993_v2 = vpop.permute.xlu0 %2992  ;;  %v10218_v35 = vpop.permute.xlu1 %1578  ;;  %v13037_v40 = vld [vmem:[#allocation54_spill] sm:$0xff] }
 0x49e   : > { %v2693_v37 = vsel %vm13031_vm11, %v13030_v52, %v9944_v12  ;;  %v2699_v1 = vsel %vm13034_vm12, %v9944_v12, %v13033_v62  ;;  %v13035_v39 = vld [vmem:[#allocation283_spill] sm:$0xff]  ;;  %v13036_v52 = vld [vmem:[#allocation192_spill] sm:$0xff]  ;;  %v2542_v16 = vmul.f32 %v12924_v17, %v2509_v9  ;;  %v2543_v11 = vmul.f32 %v12925_v15, %v2515_v50  ;;  %v13038_v54 = vld [vmem:[#allocation258_spill] sm:$0xff] }
 0x49f   : > { %v2383_v13 = vadd.f32 %v13035_v39, %v2347_v41  ;;  %v10221_v42 = vmul.f32 %v13036_v52, %v3250_v36  ;;  %v2478_v57 = vmul.f32 %v13037_v40, %v2454_v29  ;;  %v10227_v60 = vmul.f32 %v13036_v52, %v3251_v4  ;;  %v13039_v36 = vld [vmem:[#allocation257_spill] sm:$0xff]  ;;  %v13040_v15 = vld [vmem:[#allocation263_spill] sm:$0xff]  ;;  %v13046_v52 = vld [vmem:[#allocation98_spill] sm:$0xff] }
 0x4a0   : > { %v10230_v33 = vmul.f32 %v13038_v54, %v3318_v19  ;;  %v2726_v62 = vmul.f32 %v12952_v43, %v2693_v37  ;;  %v2479_v12 = vmul.f32 %v13037_v40, %v2455_v58  ;;  %v2727_v41 = vmul.f32 %v12956_v27, %v2699_v1  ;;  %v13041_v9 = vld [vmem:[#allocation201_spill] sm:$0xff]  ;;  %v13047_v40 = vld [vmem:[#allocation211_spill] sm:$0xff] }
 0x4a1   : > { %v2782_v17 = vsel %vm2780_vm15, %v13039_v36, %v10013_v59  ;;  %v2791_v4 = vsel %vm2780_vm15, %v10013_v59, %v13040_v15  ;;  %v2490_v29 = vadd.f32 %v2478_v57, %v2382_v25  ;;  %v10244_v19 = vmul.f32 %v13038_v54, %v3319_v48  ;;  %v10252_v50 = vpop.permute.xlu1 %1664  ;;  %v13042_v37 = vld [vmem:[#allocation229_spill] sm:$0xff]  ;;  %v13043_v59 = vld [vmem:[#allocation228_spill] sm:$0xff]  ;;  %v13044_v54 = vld [vmem:[#allocation94_spill] sm:$0xff] }
 0x4a2   : > { %v10247_v43 = vmul.f32 %v13041_v9, %v2450_v63  ;;  %v10250_v58 = vmul.f32 %v13041_v9, %v2451_v5  ;;  %v2491_v27 = vadd.f32 %v2479_v12, %v2383_v13  ;;  %v10255_v1 = vmul.f32 %v13042_v37, %v2542_v16  ;;  %v13045_v63 = vld [vmem:[#allocation284_spill] sm:$0xff] }
 0x4a3   : > { %v10258_v39 = vmul.f32 %v13042_v37, %v2543_v11  ;;  %v2890_v48 = vsel %vm2888_vm3, %v13043_v59, %v10070_v45  ;;  %v2899_v5 = vsel %vm2888_vm3, %v10070_v45, %v13044_v54  ;;  %v2822_v57 = vmul.f32 %v12970_v46, %v2782_v17  ;;  %v1881_v11 = vpop.permute.xlu0 %1880  ;;  %v13048_v45 = vld [vmem:[#allocation73_spill] sm:$0xff]  ;;  %v13090_v46 = vld [vmem:[#allocation194_spill] sm:$0xff] }
 0x4a4   : > { %v2823_v25 = vmul.f32 %v12971_v6, %v2791_v4  ;;  %v1675_v13 = vsel %vm1674_vm0, %v1663_v51, %v13045_v63  ;;  %v1678_v16 = vsel %vm1674_vm0, %v13046_v52, %v1663_v51  ;;  %v10277_v12 = vmul.f32 %v13047_v40, %v2726_v62  ;;  %v13049_v51 = vld [vmem:[#allocation77_spill] sm:$0xff]  ;;  %v13050_v63 = vld [vmem:[#allocation252_spill] sm:$0xff]  ;;  %v13087_v6 = vld [vmem:[#allocation343_spill] sm:$0xff] }
 0x4a5   : > { %v10280_v36 = vmul.f32 %v13047_v40, %v2727_v41  ;;  %v2998_v17 = vsel %vm2996_vm5, %v13048_v45, %v2993_v2  ;;  %v2570_v15 = vadd.f32 %v9966_v34, %v2490_v29  ;;  %v2930_v4 = vmul.f32 %v12973_v30, %v2890_v48  ;;  %v10293_v59 = vpop.permute.xlu1 %1774  ;;  %v13051_v29 = vld [vmem:[#allocation135_spill] sm:$0xff]  ;;  %v13055_v40 = vld [vmem:[#allocation294_spill] sm:$0xff] }
 0x4a6   : > { %v2931_v9 = vmul.f32 %v12974_v28, %v2899_v5  ;;  %v2571_v37 = vadd.f32 %v9969_v20, %v2491_v27  ;;  %v1165_v62 = vsel %vm1162_vm10, %v13049_v51, %v10034_v32  ;;  %v1712_v41 = vmul.f32 %v12893_v26, %v1678_v16  ;;  %v13052_v27 = vld [vmem:[#allocation110_spill] sm:$0xff]  ;;  %v13053_v16 = vld [vmem:[#allocation79_spill] sm:$0xff]  ;;  %v13059_v51 = vld [vmem:[#allocation221_spill] sm:$0xff] }
 0x4a7   : > { %v1713_v54 = vmul.f32 %v12894_v53, %v1675_v13  ;;  %v3007_v34 = vsel %vm2996_vm5, %v2993_v2, %v13050_v63  ;;  %v1163_v20 = vsel %vm1162_vm10, %v10034_v32, %v13051_v29  ;;  %v10305_v48 = vmul.f32 %v13052_v27, %v2822_v57  ;;  %v13057_v57 = vld [vmem:[#allocation137_spill] sm:$0xff]  ;;  %v10328_v29 = vpop.permute.xlu0 %3826 }
 0x4a8   : > { %v10308_v5 = vmul.f32 %v13052_v27, %v2823_v25  ;;  %v3038_v52 = vmul.f32 %v12975_v31, %v2998_v17  ;;  %vm13054_vm1 = vcmp.lt.s32.totalorder %v6942_v22, 32  ;;  %vm13056_vm2 = vcmp.lt.s32.totalorder %v6942_v22, 15  ;;  %v13086_v31 = vld [vmem:[#allocation52_spill] sm:$0xff] }
 0x4a9   : > { %v1245_v13 = vsel %vm13054_vm1, %v13053_v16, %v10074_v61  ;;  %v1896_v2 = vsel %vm13056_vm2, %v13055_v40, %v1881_v11  ;;  %v2622_v45 = vadd.f32 %v9976_v18, %v2570_v15  ;;  %v1196_v32 = vmul.f32 %v12779_v0, %v1165_v62  ;;  %vm13058_vm10 = vmmov %vm13054_vm1  ;;  %v1883_v40 = vpop.permute.xlu1 %1882  ;;  %v13060_v0 = vld [vmem:[#allocation226_spill] sm:$0xff]  ;;  %v13063_v62 = vld [vmem:[#allocation304_spill] sm:$0xff] }
 0x4aa   : > { %v1243_v25 = vsel %vm13058_vm10, %v10074_v61, %v13057_v57  ;;  %v10325_v17 = vmul.f32 %v13059_v51, %v2930_v4  ;;  %v3039_v63 = vmul.f32 %v12983_v44, %v3007_v34  ;;  %v2623_v27 = vadd.f32 %v9979_v8, %v2571_v37  ;;  %vm13064_vm11 = vmmov %vm13056_vm2  ;;  %v13065_v37 = vld [vmem:[#allocation76_spill] sm:$0xff] }
 0x4ab   : > { %v1197_v16 = vmul.f32 %v12780_v10, %v1163_v20  ;;  %v10333_v18 = vmul.f32 %v13059_v51, %v2931_v9  ;;  %v10336_v15 = vmul.f32 %v13060_v0, %v1712_v41  ;;  %v10339_v61 = vmul.f32 %v13060_v0, %v1713_v54  ;;  %v13067_v41 = vld [vmem:[#allocation271_spill] sm:$0xff]  ;;  %v13069_v57 = vld [vmem:[#allocation56_spill] sm:$0xff]  ;;  %v13073_v51 = vld [vmem:[#allocation78_spill] sm:$0xff] }
 0x4ac   : > { %v1276_v4 = vmul.f32 %v9254_v56, %v1245_v13  ;;  %v1893_v34 = vsel %vm13064_vm11, %v1881_v11, %v13063_v62  ;;  %v1930_v8 = vmul.f32 %v12907_v21, %v1896_v2  ;;  %v1277_v10 = vmul.f32 %v9257_v49, %v1243_v25  ;;  %v13070_v13 = vld [vmem:[#allocation139_spill] sm:$0xff]  ;;  %v13076_v0 = vld [vmem:[#allocation60_spill] sm:$0xff] }
 0x4ad   : > { %13061 = vst [vmem:[#allocation91_spill] sm:$0xff] %v10336_v15  ;;  %13062 = vst [vmem:[#allocation16_spill] sm:$0xff] %v10339_v61  ;;  %vm13066_vm12 = vcmp.lt.s32.totalorder %v6942_v22, 31  ;;  %v10352_v20 = vmul.f32 %v13067_v41, %v3038_v52  ;;  %v2674_v54 = vadd.f32 %v9992_v24, %v2622_v45  ;;  %v1212_v56 = vmul.f32 %v13069_v57, %v1196_v32  ;;  %v1985_v24 = vpop.permute.xlu1 %1984  ;;  %v13075_v45 = vld [vmem:[#allocation269_spill] sm:$0xff]  ;;  %v13096_v61 = vld [vmem:[#allocation167_spill] sm:$0xff] }
 0x4ae   : > { %v1325_v9 = vsel %vm13066_vm12, %v13065_v37, %v10118_v14  ;;  %vm13071_vm1 = vmmov %vm13066_vm12  ;;  %v10361_v2 = vmul.f32 %v13067_v41, %v3039_v63  ;;  %v2675_v49 = vadd.f32 %v9995_v55, %v2623_v27  ;;  %v1213_v25 = vmul.f32 %v13069_v57, %v1197_v16  ;;  %v13077_v37 = vld [vmem:[#allocation316_spill] sm:$0xff]  ;;  %v10381_v16 = vpop.permute.xlu0 %3276  ;;  %v13082_v57 = vld [vmem:[#allocation317_spill] sm:$0xff] }
 0x4af   : > { %13068 = vst [vmem:[#allocation129_spill] sm:$0xff] %v10352_v20  ;;  %v1323_v11 = vsel %vm13071_vm1, %v10118_v14, %v13070_v13  ;;  %vm13074_vm2 = vcmp.lt.s32.totalorder %v6942_v22, 30  ;;  %v10370_v32 = vmul.f32 %v13075_v45, %v1893_v34  ;;  %v1292_v62 = vmul.f32 %v13076_v0, %v1276_v4  ;;  %v13078_v13 = vld [vmem:[#allocation141_spill] sm:$0xff]  ;;  %v13080_v63 = vld [vmem:[#allocation240_spill] sm:$0xff]  ;;  %v13149_v20 = vld [vmem:[#allocation219_spill] sm:$0xff] }
 0x4b0   : > { %13072 = vst [vmem:[#allocation123_spill] sm:$0xff] %v10361_v2  ;;  %v1405_v52 = vsel %vm13074_vm2, %v13073_v51, %v10172_v7  ;;  %v1356_v14 = vmul.f32 %v13077_v37, %v1325_v9  ;;  %vm13079_vm10 = vmmov %vm13074_vm2  ;;  %v10379_v27 = vmul.f32 %v13080_v63, %v1930_v8  ;;  %v1293_v41 = vmul.f32 %v13076_v0, %v1277_v10  ;;  %v13083_v34 = vld [vmem:[#allocation81_spill] sm:$0xff]  ;;  %v13085_v9 = vld [vmem:[#allocation199_spill] sm:$0xff] }
 0x4b1   : > { %v1403_v55 = vsel %vm13079_vm10, %v10172_v7, %v13078_v13  ;;  %v1357_v51 = vmul.f32 %v13082_v57, %v1323_v11  ;;  %vm13084_vm11 = vcmp.lt.s32.totalorder %v6942_v22, 18  ;;  %v2754_v37 = vadd.f32 %v13085_v9, %v2674_v54  ;;  %v13088_v13 = vld [vmem:[#allocation143_spill] sm:$0xff]  ;;  %v13091_v0 = vld [vmem:[#allocation66_spill] sm:$0xff]  ;;  %v13092_v57 = vld [vmem:[#allocation344_spill] sm:$0xff] }
 0x4b2   : > { %13081 = vst [vmem:[#allocation315_spill] sm:$0xff] %v10379_v27  ;;  %v1589_v4 = vsel %vm13084_vm11, %v13083_v34, %v10218_v35  ;;  %v1220_v44 = vadd.f32 %v1212_v56, %v13086_v31  ;;  %v1436_v7 = vmul.f32 %v13087_v6, %v1405_v52  ;;  %vm13089_vm12 = vmmov %vm13084_vm11  ;;  %v2755_v10 = vadd.f32 %v13090_v46, %v2675_v49  ;;  %v13093_v2 = vld [vmem:[#allocation161_spill] sm:$0xff]  ;;  %v2169_v34 = vpop.permute.xlu1 %2168  ;;  %v13094_v56 = vld [vmem:[#allocation63_spill] sm:$0xff] }
 0x4b3   : > { %v1587_v8 = vsel %vm13089_vm12, %v10218_v35, %v13088_v13  ;;  %v1221_v11 = vadd.f32 %v1213_v25, %v13091_v0  ;;  %v1437_v27 = vmul.f32 %v13092_v57, %v1403_v55  ;;  %v1679_v54 = vsel %vm1674_vm0, %v13093_v2, %v10252_v50  ;;  %v13095_v52 = vld [vmem:[#allocation320_spill] sm:$0xff]  ;;  %v13097_v25 = vld [vmem:[#allocation321_spill] sm:$0xff]  ;;  %v13098_v13 = vld [vmem:[#allocation171_spill] sm:$0xff] }
 0x4b4   : > { %v1300_v31 = vadd.f32 %v1292_v62, %v1220_v44  ;;  %v1372_v6 = vmul.f32 %v13094_v56, %v1356_v14  ;;  %v1620_v9 = vmul.f32 %v13095_v52, %v1589_v4  ;;  %v1676_v46 = vsel %vm1674_vm0, %v10252_v50, %v13096_v61  ;;  %v13100_v44 = vld [vmem:[#allocation296_spill] sm:$0xff]  ;;  %v13101_v14 = vld [vmem:[#allocation61_spill] sm:$0xff]  ;;  %v10422_v61 = vpop.permute.xlu0 %3356  ;;  %v13107_v52 = vld [vmem:[#allocation323_spill] sm:$0xff] }
 0x4b5   : > { %v1301_v35 = vadd.f32 %v1293_v41, %v1221_v11  ;;  %v1373_v49 = vmul.f32 %v13094_v56, %v1357_v51  ;;  %v1621_v55 = vmul.f32 %v13097_v25, %v1587_v8  ;;  %vm13099_vm1 = vcmp.lt.s32.totalorder %v6942_v22, 16  ;;  %v13102_v57 = vld [vmem:[#allocation177_spill] sm:$0xff] }
 0x4b6   : > { %v1789_v2 = vsel %vm13099_vm1, %v13098_v13, %v10293_v59  ;;  %v2862_v62 = vadd.f32 %v13100_v44, %v2754_v37  ;;  %v1452_v0 = vmul.f32 %v13101_v14, %v1436_v7  ;;  %v1716_v4 = vmul.f32 %v12893_v26, %v1679_v54  ;;  %vm13103_vm0 = vmmov %vm13099_vm1  ;;  %v13104_v11 = vld [vmem:[#allocation181_spill] sm:$0xff]  ;;  %v2255_v7 = vpop.permute.xlu1 %2254  ;;  %v13106_v26 = vld [vmem:[#allocation64_spill] sm:$0xff] }
 0x4b7   : > { %v1786_v50 = vsel %vm13103_vm0, %v10293_v59, %v13102_v57  ;;  %v2863_v41 = vadd.f32 %v10080_v47, %v2755_v10  ;;  %v1453_v51 = vmul.f32 %v13101_v14, %v1437_v27  ;;  %v1717_v8 = vmul.f32 %v12894_v53, %v1676_v46  ;;  %v13108_v13 = vld [vmem:[#allocation187_spill] sm:$0xff]  ;;  %v13110_v27 = vld [vmem:[#allocation324_spill] sm:$0xff]  ;;  %v13148_v15 = vld [vmem:[#allocation309_spill] sm:$0xff] }
 0x4b8   : > { %vm13105_vm2 = vcmp.lt.s32.totalorder %v6942_v22, 15  ;;  %v1380_v56 = vadd.f32 %v1372_v6, %v1300_v31  ;;  %v1636_v54 = vmul.f32 %v13106_v26, %v1620_v9  ;;  %v1826_v25 = vmul.f32 %v13107_v52, %v1789_v2  ;;  %v13111_v53 = vld [vmem:[#allocation191_spill] sm:$0xff]  ;;  %v13113_v57 = vld [vmem:[#allocation224_spill] sm:$0xff]  ;;  %v13114_v9 = vld [vmem:[#allocation197_spill] sm:$0xff] }
 0x4b9   : > { %v1897_v37 = vsel %vm13105_vm2, %v13104_v11, %v1883_v40  ;;  %vm13109_vm10 = vmmov %vm13105_vm2  ;;  %v1381_v44 = vadd.f32 %v1373_v49, %v1301_v35  ;;  %v1637_v47 = vmul.f32 %v13106_v26, %v1621_v55  ;;  %v1827_v10 = vmul.f32 %v13110_v27, %v1786_v50  ;;  %v13116_v49 = vld [vmem:[#allocation200_spill] sm:$0xff]  ;;  %v13119_v26 = vld [vmem:[#allocation326_spill] sm:$0xff] }
 0x4ba   : > { %v1894_v59 = vsel %vm13109_vm10, %v1883_v40, %v13108_v13  ;;  %vm13112_vm11 = vcmp.lt.s32.totalorder %v6942_v22, 14  ;;  %v1460_v14 = vadd.f32 %v1452_v0, %v1380_v56  ;;  %v1742_v31 = vmul.f32 %v13113_v57, %v1716_v4  ;;  %v10450_v50 = vpop.permute.xlu1 %3358  ;;  %v13118_v56 = vld [vmem:[#allocation134_spill] sm:$0xff] }
 0x4bb   : > { %v1995_v46 = vsel %vm13112_vm11, %v13111_v53, %v1985_v24  ;;  %v1934_v6 = vmul.f32 %v12907_v21, %v1897_v37  ;;  %vm13115_vm12 = vmmov %vm13112_vm11  ;;  %v1461_v11 = vadd.f32 %v1453_v51, %v1381_v44  ;;  %v1743_v40 = vmul.f32 %v13113_v57, %v1717_v8  ;;  %v13120_v37 = vld [vmem:[#allocation206_spill] sm:$0xff]  ;;  %v2403_v51 = vpop.permute.xlu0 %2402 }
 0x4bc   : > { %v1993_v2 = vsel %vm13115_vm12, %v1985_v24, %v13114_v9  ;;  %v1935_v35 = vmul.f32 %v13075_v45, %v1894_v59  ;;  %vm13117_vm1 = vcmp.lt.s32.totalorder %v6942_v22, 2  ;;  %v1644_v0 = vadd.f32 %v1636_v54, %v1460_v14  ;;  %v13122_v45 = vld [vmem:[#allocation327_spill] sm:$0xff]  ;;  %v13123_v44 = vld [vmem:[#allocation210_spill] sm:$0xff] }
 0x4bd   : > { %v2179_v55 = vsel %vm13117_vm1, %v13116_v49, %v2169_v34  ;;  %v1850_v4 = vmul.f32 %v13118_v56, %v1826_v25  ;;  %v2026_v21 = vmul.f32 %v13119_v26, %v1995_v46  ;;  %vm13121_vm0 = vmmov %vm13117_vm1  ;;  %v1645_v13 = vadd.f32 %v1637_v47, %v1461_v11  ;;  %v13124_v54 = vld [vmem:[#allocation234_spill] sm:$0xff]  ;;  %v13126_v46 = vld [vmem:[#allocation216_spill] sm:$0xff] }
 0x4be   : > { %v2177_v24 = vsel %vm13121_vm0, %v2169_v34, %v13120_v37  ;;  %v1851_v8 = vmul.f32 %v13118_v56, %v1827_v10  ;;  %v2027_v59 = vmul.f32 %v13122_v45, %v1993_v2  ;;  %v2269_v53 = vsel %vm2264_vm6, %v13123_v44, %v2255_v7  ;;  %v13125_v25 = vld [vmem:[#allocation142_spill] sm:$0xff]  ;;  %v13127_v34 = vld [vmem:[#allocation69_spill] sm:$0xff]  ;;  %v13129_v11 = vld [vmem:[#allocation131_spill] sm:$0xff]  ;;  %v10473_v26 = vpop.permute.xlu1 %3438 }
 0x4bf   : > { %v1754_v57 = vadd.f32 %v1742_v31, %v1644_v0  ;;  %v1958_v14 = vmul.f32 %v13124_v54, %v1934_v6  ;;  %v2210_v9 = vmul.f32 %v13125_v25, %v2179_v55  ;;  %v2266_v49 = vsel %vm2264_vm6, %v2255_v7, %v13126_v46  ;;  %v13130_v6 = vld [vmem:[#allocation184_spill] sm:$0xff]  ;;  %v13131_v55 = vld [vmem:[#allocation106_spill] sm:$0xff] }
 0x4c0   : > { %vm13128_vm2 = vcmp.lt.s32.totalorder %v6942_v22, 81  ;;  %v1755_v10 = vadd.f32 %v1743_v40, %v1645_v13  ;;  %v1959_v2 = vmul.f32 %v13124_v54, %v1935_v35  ;;  %v2211_v56 = vmul.f32 %v13129_v11, %v2177_v24  ;;  %v13132_v25 = vld [vmem:[#allocation114_spill] sm:$0xff]  ;;  %v13136_v24 = vld [vmem:[#allocation213_spill] sm:$0xff] }
 0x4c1   : > { %v3829_v47 = vsel %vm13128_vm2, %v13127_v34, %v10328_v29  ;;  %v1862_v31 = vadd.f32 %v1850_v4, %v1754_v57  ;;  %v2042_v0 = vmul.f32 %v13130_v6, %v2026_v21  ;;  %v2306_v37 = vmul.f32 %v13131_v55, %v2269_v53  ;;  %v13133_v34 = vld [vmem:[#allocation87_spill] sm:$0xff]  ;;  %v13134_v13 = vld [vmem:[#allocation266_spill] sm:$0xff]  ;;  %vm13135_vm10 = vmmov %vm13128_vm2 }
 0x4c2   : > { %v2970_v45 = vadd.f32 %v10090_v3, %v2862_v62  ;;  %v1863_v7 = vadd.f32 %v1851_v8, %v1755_v10  ;;  %v2043_v44 = vmul.f32 %v13130_v6, %v2027_v59  ;;  %v2307_v46 = vmul.f32 %v13132_v25, %v2266_v49  ;;  %v13137_v4 = vld [vmem:[#allocation80_spill] sm:$0xff]  ;;  %v13139_v53 = vld [vmem:[#allocation190_spill] sm:$0xff]  ;;  %v3983_v59 = vpop.permute.xlu0 %3982  ;;  %v10498_v10 = vpop.permute.xlu1 %3518 }
 0x4c3   : > { %v2971_v40 = vadd.f32 %v13133_v34, %v2863_v41  ;;  %v3832_v35 = vsel %vm13135_vm10, %v10328_v29, %v13134_v13  ;;  %v13138_v57 = vrot.slane %v13136_v24, %v13137_v4  ;;  %v1970_v54 = vadd.f32 %v1958_v14, %v1862_v31  ;;  %v13140_v3 = vld [vmem:[#allocation188_spill] sm:$0xff]  ;;  %v13142_v14 = vld [vmem:[#allocation207_spill] sm:$0xff]  ;;  %v13143_v31 = vld [vmem:[#allocation250_spill] sm:$0xff] }
 0x4c4   : > { %v2226_v11 = vmul.f32 %v13139_v53, %v2210_v9  ;;  %v3281_v62 = vsel %vm3280_vm9, %v13140_v3, %v10381_v16  ;;  %v13141_v8 = vld [vmem:[#allocation212_spill] sm:$0xff]  ;;  %v1971_v49 = vadd.f32 %v1959_v2, %v1863_v7  ;;  %v2227_v29 = vmul.f32 %v13139_v53, %v2211_v56  ;;  %v13144_v34 = vld [vmem:[#allocation311_spill] sm:$0xff]  ;;  %v13146_v56 = vld [vmem:[#allocation146_spill] sm:$0xff] }
 0x4c5   : > { %v3858_v21 = vmul.f32 %v13138_v57, %v3829_v47  ;;  %v3287_v41 = vsel %vm3280_vm9, %v10381_v16, %v13141_v8  ;;  %v3361_v9 = vsel %vm3360_vm13, %v13142_v14, %v10422_v61  ;;  %v2050_v47 = vadd.f32 %v2042_v0, %v1970_v54  ;;  %v13147_v53 = vld [vmem:[#allocation183_spill] sm:$0xff]  ;;  %v13151_v14 = vld [vmem:[#allocation70_spill] sm:$0xff] }
 0x4c6   : > { %v2330_v6 = vmul.f32 %v13143_v31, %v2306_v37  ;;  %v3078_v13 = vadd.f32 %v13144_v34, %v2970_v45  ;;  %v13145_v57 = vrot.slane %v13136_v24, %v8577_v38  ;;  %v2051_v3 = vadd.f32 %v2043_v44, %v1971_v49  ;;  %v13150_v45 = vld [vmem:[#allocation112_spill] sm:$0xff]  ;;  %v10524_v24 = vpop.permute.xlu1 %3598  ;;  %v13155_v49 = vld [vmem:[#allocation246_spill] sm:$0xff] }
 0x4c7   : > { %v2331_v2 = vmul.f32 %v13143_v31, %v2307_v46  ;;  %v3079_v7 = vadd.f32 %v13146_v56, %v2971_v40  ;;  %v3314_v8 = vmul.f32 %v13147_v53, %v3281_v62  ;;  %v3315_v55 = vmul.f32 %v13148_v15, %v3287_v41  ;;  %v13153_v62 = vld [vmem:[#allocation254_spill] sm:$0xff]  ;;  %v13157_v34 = vld [vmem:[#allocation248_spill] sm:$0xff]  ;;  %v13159_v56 = vld [vmem:[#allocation341_spill] sm:$0xff] }
 0x4c8   : > { %v3859_v16 = vmul.f32 %v13145_v57, %v3832_v35  ;;  %v3367_v0 = vsel %vm3360_vm13, %v10422_v61, %v13149_v20  ;;  %v2234_v37 = vadd.f32 %v2226_v11, %v2050_v47  ;;  %v3394_v54 = vmul.f32 %v13150_v45, %v3361_v9  ;;  %v13152_v35 = vld [vmem:[#allocation130_spill] sm:$0xff]  ;;  %v13156_v47 = vld [vmem:[#allocation71_spill] sm:$0xff]  ;;  %v13160_v53 = vld [vmem:[#allocation260_spill] sm:$0xff] }
 0x4c9   : > { %v2409_v44 = vsel %vm2408_vm4, %v13151_v14, %v2403_v51  ;;  %v2418_v46 = vsel %vm2408_vm4, %v2403_v51, %v13152_v35  ;;  %v2235_v40 = vadd.f32 %v2227_v29, %v2051_v3  ;;  %v10528_v15 = vmul.f32 %v13080_v63, %v10370_v32  ;;  %v13154_v11 = vld [vmem:[#allocation314_spill] sm:$0xff]  ;;  %v3517_v29 = vpop.permute.xlu0 %3516  ;;  %v13158_v63 = vld [vmem:[#allocation293_spill] sm:$0xff] }
 0x4ca   : > { %v3985_v20 = vsel %vm3984_vm8, %v13153_v62, %v3983_v59  ;;  %v2342_v61 = vadd.f32 %v2330_v6, %v2234_v37  ;;  %v3158_v41 = vadd.f32 %v13154_v11, %v3078_v13  ;;  %v10535_v9 = vmul.f32 %v13155_v49, %v3858_v21  ;;  %v3671_v35 = vpop.permute.xlu1 %3670  ;;  %v13168_v11 = vld [vmem:[#allocation202_spill] sm:$0xff] }
 0x4cb   : > { %v3988_v51 = vsel %vm3984_vm8, %v3983_v59, %v13156_v47  ;;  %v2343_v31 = vadd.f32 %v2331_v2, %v2235_v40  ;;  %v3159_v57 = vadd.f32 %v13157_v34, %v3079_v7  ;;  %v10542_v32 = vmul.f32 %v13155_v49, %v3859_v16  ;;  %v13161_v59 = vld [vmem:[#allocation92_spill] sm:$0xff]  ;;  %v13162_v2 = vld [vmem:[#allocation319_spill] sm:$0xff]  ;;  %v13169_v49 = vld [vmem:[#allocation154_spill] sm:$0xff] }
 0x4cc   : > { %v3395_v3 = vmul.f32 %v13158_v63, %v3367_v0  ;;  %v2446_v6 = vmul.f32 %v13022_v23, %v2409_v44  ;;  %v2447_v13 = vmul.f32 %v13159_v56, %v2418_v46  ;;  %v10548_v21 = vmul.f32 %v13160_v53, %v3314_v8  ;;  %v13165_v44 = vld [vmem:[#allocation31_spill] sm:$0xff]  ;;  %v13166_v46 = vld [vmem:[#allocation285_spill] sm:$0xff] }
 0x4cd   : > { %v10551_v37 = vmul.f32 %v13160_v53, %v3315_v55  ;;  %v10554_v14 = vmul.f32 %v13161_v59, %v3394_v54  ;;  %v13163_v7 = vrot.slane %v13162_v2, %v13137_v4  ;;  %v13164_v0 = vrot.slane %v13162_v2, %v8577_v38  ;;  %v13167_v55 = vld [vmem:[#allocation89_spill] sm:$0xff]  ;;  %v13170_v34 = vld [vmem:[#allocation223_spill] sm:$0xff] }
 0x4ce   : > { %v3521_v8 = vsel %vm3520_vm14, %v13165_v44, %v3517_v29  ;;  %v2378_v40 = vadd.f32 %v13166_v46, %v2342_v61  ;;  %v3210_v62 = vadd.f32 %v13167_v55, %v3158_v41  ;;  %v2379_v54 = vadd.f32 %v13168_v11, %v2343_v31  ;;  %v13171_v56 = vld [vmem:[#allocation225_spill] sm:$0xff]  ;;  %v13172_v61 = vld [vmem:[#allocation220_spill] sm:$0xff]  ;;  %v13173_v31 = vld [vmem:[#allocation231_spill] sm:$0xff]  ;;  %v2883_v11 = vpop.permute.xlu0 %2882 }
 0x4cf   : > { %v4014_v16 = vmul.f32 %v13163_v7, %v3985_v20  ;;  %v4015_v23 = vmul.f32 %v13164_v0, %v3988_v51  ;;  %v3211_v47 = vadd.f32 %v13169_v49, %v3159_v57  ;;  %v3362_v20 = vsel %vm3360_vm13, %v13170_v34, %v10450_v50  ;;  %v13174_v7 = vld [vmem:[#allocation281_spill] sm:$0xff]  ;;  %v13177_v46 = vld [vmem:[#allocation235_spill] sm:$0xff] }
 0x4d0   : > { %v3368_v51 = vsel %vm3360_vm13, %v10450_v50, %v13171_v56  ;;  %v10578_v53 = vmul.f32 %v13161_v59, %v3395_v3  ;;  %v10581_v2 = vmul.f32 %v13172_v61, %v2446_v6  ;;  %v10584_v41 = vmul.f32 %v13172_v61, %v2447_v13  ;;  %v13175_v44 = vld [vmem:[#allocation313_spill] sm:$0xff]  ;;  %v13176_v3 = vld [vmem:[#allocation140_spill] sm:$0xff]  ;;  %v3723_v13 = vpop.permute.xlu1 %3722 }
 0x4d1   : > { %v3442_v57 = vsel %vm3440_vm7, %v13173_v31, %v10473_v26  ;;  %v10591_v0 = vmul.f32 %v13174_v7, %v4014_v16  ;;  %v3527_v50 = vsel %vm3520_vm14, %v3517_v29, %v13175_v44  ;;  %v3554_v59 = vmul.f32 %v13176_v3, %v3521_v8  ;;  %v13178_v61 = vld [vmem:[#allocation292_spill] sm:$0xff] }
 0x4d2   : > { %v3448_v6 = vsel %vm3440_vm7, %v10473_v26, %v13177_v46  ;;  %v10602_v55 = vmul.f32 %v13174_v7, %v4015_v23  ;;  %v2486_v49 = vadd.f32 %v10247_v43, %v2378_v40  ;;  %v3398_v16 = vmul.f32 %v13150_v45, %v3362_v20  ;;  %v13179_v26 = vld [vmem:[#allocation290_spill] sm:$0xff]  ;;  %v13186_v7 = vld [vmem:[#allocation264_spill] sm:$0xff] }
 0x4d3   : > { %v3399_v34 = vmul.f32 %v13158_v63, %v3368_v51  ;;  %v2487_v29 = vadd.f32 %v10250_v58, %v2379_v54  ;;  %v3262_v8 = vadd.f32 %v10221_v42, %v3210_v62  ;;  %v3263_v56 = vadd.f32 %v10227_v60, %v3211_v47  ;;  %v13180_v46 = vld [vmem:[#allocation298_spill] sm:$0xff]  ;;  %v13181_v42 = vld [vmem:[#allocation303_spill] sm:$0xff]  ;;  %v13183_v60 = vld [vmem:[#allocation297_spill] sm:$0xff] }
 0x4d4   : > { %v3478_v31 = vmul.f32 %v13178_v61, %v3442_v57  ;;  %v3555_v44 = vmul.f32 %v13179_v26, %v3527_v50  ;;  %v3479_v23 = vmul.f32 %v13180_v46, %v3448_v6  ;;  %v10616_v43 = vld [vmem:[%s11116_s5 + $0xa5] ss:$8 sm:$0xf]  ;;  %v10623_v63 = vmul.f32 %v13181_v42, %v3554_v59  ;;  %v1773_v51 = vpop.permute.xlu1 %1772 }
 0x4d5   : > { %v2889_v40 = vsel %vm2888_vm3, %v13183_v60, %v2883_v11  ;;  %v13184_v62 = vld [vmem:[#allocation38_spill] sm:$0xff]  ;;  %v13185_v47 = vld [vmem:[#allocation241_spill] sm:$0xff]  ;;  %v2566_v57 = vadd.f32 %v10255_v1, %v2486_v49  ;;  %v3414_v50 = vmul.f32 %v13186_v7, %v3398_v16  ;;  %v3415_v59 = vmul.f32 %v13186_v7, %v3399_v34  ;;  %v13189_v49 = vld [vmem:[#allocation251_spill] sm:$0xff] }
 0x4d6   : > { %13182 = vst [vmem:[#allocation236_spill] sm:$0xff] %v10623_v63  ;;  %v2898_v54 = vsel %vm2888_vm3, %v2883_v11, %v13184_v62  ;;  %v3522_v20 = vsel %vm3520_vm14, %v13185_v47, %v10498_v10  ;;  %v13187_v6 = vld [vmem:[#allocation245_spill] sm:$0xff]  ;;  %v2567_v58 = vadd.f32 %v10258_v39, %v2487_v29  ;;  %v3342_v11 = vadd.f32 %v10230_v33, %v3262_v8  ;;  %v13188_v45 = vld [vmem:[#allocation274_spill] sm:$0xff]  ;;  %v13191_v34 = vld [vmem:[#allocation255_spill] sm:$0xff] }
 0x4d7   : > { %v3528_v60 = vsel %vm3520_vm14, %v10498_v10, %v13187_v6  ;;  %v3343_v62 = vadd.f32 %v10244_v19, %v3263_v56  ;;  %v3494_v47 = vmul.f32 %v13188_v45, %v3478_v31  ;;  %v3495_v63 = vmul.f32 %v13188_v45, %v3479_v23  ;;  %v13193_v31 = vld [vmem:[#allocation261_spill] sm:$0xff]  ;;  %v13195_v45 = vld [vmem:[#allocation300_spill] sm:$0xff]  ;;  %v13200_v6 = vld [vmem:[#allocation299_spill] sm:$0xff] }
 0x4d8   : > { %v3558_v1 = vmul.f32 %v13176_v3, %v3522_v20  ;;  %vm13190_vm3 = vcmp.lt.s32.totalorder %v6942_v22, 94  ;;  %v10657_v33 = vmul.f32 %v13181_v42, %v3555_v44  ;;  %v10660_v19 = vmul.f32 %v12973_v30, %v2889_v40  ;;  %v3775_v29 = vpop.permute.xlu1 %3774  ;;  %v13196_v42 = vld [vmem:[#allocation259_spill] sm:$0xff]  ;;  %v13197_v30 = vld [vmem:[#allocation265_spill] sm:$0xff] }
 0x4d9   : > { %v3602_v16 = vsel %vm13190_vm3, %v13189_v49, %v10524_v24  ;;  %vm13192_vm4 = vmmov %vm13190_vm3  ;;  %v10663_v10 = vmul.f32 %v12974_v28, %v2898_v54  ;;  %v3559_v3 = vmul.f32 %v13179_v26, %v3528_v60  ;;  %v3422_v8 = vadd.f32 %v3414_v50, %v3342_v11  ;;  %v10678_v26 = vld [vmem:[%s11116_s5 + $0xa6] ss:$8 sm:$0xf] }
 0x4da   : > { %v3608_v39 = vsel %vm13192_vm4, %v10524_v24, %v13191_v34  ;;  %v3423_v56 = vadd.f32 %v3415_v59, %v3343_v62  ;;  %vm13194_vm13 = vcmp.lt.s32.totalorder %v6942_v22, 93  ;;  %v2750_v24 = vadd.f32 %v10277_v12, %v2566_v57  ;;  %v13199_v50 = vld [vmem:[#allocation295_spill] sm:$0xff]  ;;  %v13202_v11 = vld [vmem:[#allocation272_spill] sm:$0xff] }
 0x4db   : > { %v3673_v23 = vsel %vm13194_vm13, %v13193_v31, %v3671_v35  ;;  %v3638_v44 = vmul.f32 %v13195_v45, %v3602_v16  ;;  %v3639_v20 = vmul.f32 %v13196_v42, %v3608_v39  ;;  %vm13198_vm14 = vmmov %vm13194_vm13  ;;  %v3951_v40 = vrot.slane %v10678_v26, %v13137_v4  ;;  %v13204_v49 = vld [vmem:[#allocation96_spill] sm:$0xff] }
 0x4dc   : > { %v3676_v28 = vsel %vm13198_vm14, %v3671_v35, %v13197_v30  ;;  %v3502_v54 = vadd.f32 %v3494_v47, %v3422_v8  ;;  %v3503_v7 = vadd.f32 %v3495_v63, %v3423_v56  ;;  %v3574_v12 = vmul.f32 %v13199_v50, %v3558_v1  ;;  %v3093_v47 = vpop.permute.xlu1 %3092  ;;  %v13209_v34 = vld [vmem:[#allocation100_spill] sm:$0xff]  ;;  %v13214_v30 = vld [vmem:[#allocation291_spill] sm:$0xff] }
 0x4dd   : > { %v2751_v57 = vadd.f32 %v10280_v36, %v2567_v58  ;;  %v3575_v59 = vmul.f32 %v13199_v50, %v3559_v3  ;;  %v13201_v60 = vrot.slane %v13200_v6, %v13137_v4  ;;  %vm13203_vm9 = vcmp.lt.s32.totalorder %v6942_v22, 83  ;;  %v13207_v36 = vld [vmem:[#allocation286_spill] sm:$0xff]  ;;  %v13211_v8 = vld [vmem:[#allocation128_spill] sm:$0xff] }
 0x4de   : > { %v3725_v62 = vsel %vm13203_vm9, %v13202_v11, %v3723_v13  ;;  %vm13205_vm8 = vmmov %vm13203_vm9  ;;  %v13206_v63 = vrot.slane %v13200_v6, %v8577_v38  ;;  %vm13208_vm11 = vcmp.lt.s32.totalorder %v6942_v22, 16  ;;  %v2858_v3 = vadd.f32 %v10305_v48, %v2750_v24  ;;  %v13216_v6 = vld [vmem:[#allocation150_spill] sm:$0xff] }
 0x4df   : > { %v3702_v35 = vmul.f32 %v13201_v60, %v3673_v23  ;;  %v3728_v16 = vsel %vm13205_vm8, %v3723_v13, %v13204_v49  ;;  %v1785_v58 = vsel %vm13208_vm11, %v1773_v51, %v13207_v36  ;;  %vm13210_vm12 = vmmov %vm13208_vm11  ;;  %v3654_v56 = vmul.f32 %v13211_v8, %v3638_v44  ;;  %v13212_v13 = vld [vmem:[#allocation282_spill] sm:$0xff] }
 0x4e0   : > { %v3703_v1 = vmul.f32 %v13206_v63, %v3676_v28  ;;  %v1788_v39 = vsel %vm13210_vm12, %v13209_v34, %v1773_v51  ;;  %v3655_v31 = vmul.f32 %v13211_v8, %v3639_v20  ;;  %vm13213_vm1 = vcmp.lt.s32.totalorder %v6942_v22, 82  ;;  %v13219_v20 = vld [vmem:[#allocation215_spill] sm:$0xff] }
 0x4e1   : > { %v3777_v23 = vsel %vm13213_vm1, %v13212_v13, %v3775_v29  ;;  %vm13215_vm0 = vmmov %vm13213_vm1  ;;  %v3582_v50 = vadd.f32 %v3574_v12, %v3502_v54  ;;  %v13217_v60 = vrot.slane %v13216_v6, %v13137_v4  ;;  %v13218_v48 = vrot.slane %v13216_v6, %v8577_v38  ;;  %v13220_v12 = vld [vmem:[#allocation238_spill] sm:$0xff]  ;;  %v13223_v13 = vld [vmem:[#allocation127_spill] sm:$0xff] }
 0x4e2   : > { %v3780_v28 = vsel %vm13215_vm0, %v3775_v29, %v13214_v30  ;;  %v3955_v24 = vrot.slane %v10678_v26, %v8577_v38  ;;  %v3583_v44 = vadd.f32 %v3575_v59, %v3503_v7  ;;  %v3710_v49 = vmul.f32 %v13219_v20, %v3702_v35  ;;  %v2253_v29 = vpop.permute.xlu1 %2252  ;;  %v13226_v30 = vld [vmem:[#allocation310_spill] sm:$0xff]  ;;  %v13228_v6 = vld [vmem:[#allocation287_spill] sm:$0xff] }
 0x4e3   : > { %v3754_v11 = vmul.f32 %v13217_v60, %v3725_v62  ;;  %v3755_v51 = vmul.f32 %v13218_v48, %v3728_v16  ;;  %v1822_v63 = vmul.f32 %v13107_v52, %v1788_v39  ;;  %v1823_v36 = vmul.f32 %v13110_v27, %v1785_v58  ;;  %v13225_v58 = vld [vmem:[#allocation222_spill] sm:$0xff]  ;;  %v13229_v60 = vld [vmem:[#allocation267_spill] sm:$0xff] }
 0x4e4   : > { %v3711_v54 = vmul.f32 %v13219_v20, %v3703_v1  ;;  %v13221_v62 = vrot.slane %v13220_v12, %v13137_v4  ;;  %v13222_v16 = vrot.slane %v13220_v12, %v8577_v38  ;;  %vm13224_vm2 = vcmp.lt.s32.totalorder %v6942_v22, 110  ;;  %v13233_v20 = vld [vmem:[#allocation337_spill] sm:$0xff] }
 0x4e5   : > { %v3097_v7 = vsel %vm13224_vm2, %v13223_v13, %v3093_v47  ;;  %v3662_v59 = vadd.f32 %v3654_v56, %v3582_v50  ;;  %v3663_v35 = vadd.f32 %v3655_v31, %v3583_v44  ;;  %v2859_v52 = vadd.f32 %v10308_v5, %v2751_v57  ;;  %vm13227_vm10 = vmmov %vm13224_vm2  ;;  %v13230_v31 = vld [vmem:[#allocation72_spill] sm:$0xff] }
 0x4e6   : > { %v3806_v34 = vmul.f32 %v13221_v62, %v3777_v23  ;;  %v3807_v8 = vmul.f32 %v13222_v16, %v3780_v28  ;;  %v2966_v27 = vadd.f32 %v10325_v17, %v2858_v3  ;;  %v3762_v1 = vmul.f32 %v13225_v58, %v3754_v11  ;;  %v13231_v57 = vld [vmem:[#allocation268_spill] sm:$0xff]  ;;  %v3879_v3 = vpop.permute.xlu1 %3878  ;;  %v13236_v16 = vld [vmem:[#allocation275_spill] sm:$0xff] }
 0x4e7   : > { %v3763_v39 = vmul.f32 %v13225_v58, %v3755_v51  ;;  %v3103_v23 = vsel %vm13227_vm10, %v3093_v47, %v13226_v30  ;;  %v2265_v28 = vsel %vm2264_vm6, %v2253_v29, %v13228_v6  ;;  %v1846_v48 = vmul.f32 %v13229_v60, %v1822_v63  ;;  %v13232_v51 = vld [vmem:[#allocation232_spill] sm:$0xff] }
 0x4e8   : > { %v1847_v56 = vmul.f32 %v13229_v60, %v1823_v36  ;;  %v3130_v5 = vmul.f32 %v13230_v31, %v3097_v7  ;;  %v2268_v17 = vsel %vm2264_vm6, %v13231_v57, %v2253_v29  ;;  %v3714_v50 = vadd.f32 %v3710_v49, %v3662_v59  ;;  %v13234_v63 = vld [vmem:[#allocation196_spill] sm:$0xff] }
 0x4e9   : > { %v3715_v11 = vadd.f32 %v3711_v54, %v3663_v35  ;;  %v3814_v44 = vmul.f32 %v13232_v51, %v3806_v34  ;;  %v3815_v47 = vmul.f32 %v13232_v51, %v3807_v8  ;;  %v3131_v12 = vmul.f32 %v13233_v20, %v3103_v23  ;;  %v13238_v54 = vld [vmem:[#allocation129_spill] sm:$0xff]  ;;  %v13239_v34 = vld [vmem:[#allocation106_spill] sm:$0xff]  ;;  %v13240_v35 = vld [vmem:[#allocation91_spill] sm:$0xff] }
 0x4ea   : > { %v2303_v62 = vmul.f32 %v13132_v25, %v2265_v28  ;;  %vm13235_vm3 = vcmp.lt.s32.totalorder %v6942_v22, 80  ;;  %v3766_v29 = vadd.f32 %v3762_v1, %v3714_v50  ;;  %v2967_v49 = vadd.f32 %v10333_v18, %v2859_v52  ;;  %v13241_v30 = vld [vmem:[#allocation16_spill] sm:$0xff]  ;;  %v3931_v28 = vpop.permute.xlu1 %3930  ;;  %v13245_v52 = vld [vmem:[#allocation249_spill] sm:$0xff]  ;;  %v13250_v50 = vld [vmem:[#allocation338_spill] sm:$0xff] }
 0x4eb   : > { %v3881_v36 = vsel %vm13235_vm3, %v13234_v63, %v3879_v3  ;;  %vm13237_vm4 = vmmov %vm13235_vm3  ;;  %v3074_v7 = vadd.f32 %v13238_v54, %v2966_v27  ;;  %v2302_v59 = vmul.f32 %v13239_v34, %v2268_v17  ;;  %v3767_v8 = vadd.f32 %v3763_v39, %v3715_v11  ;;  %v13242_v23 = vld [vmem:[#allocation244_spill] sm:$0xff]  ;;  %v13247_v39 = vld [vmem:[#allocation230_spill] sm:$0xff] }
 0x4ec   : > { %v3884_v13 = vsel %vm13237_vm4, %v3879_v3, %v13236_v16  ;;  %v1858_v58 = vadd.f32 %v1846_v48, %v13240_v35  ;;  %v1859_v25 = vadd.f32 %v1847_v56, %v13241_v30  ;;  %v3146_v6 = vmul.f32 %v13242_v23, %v3130_v5  ;;  %v13249_v17 = vld [vmem:[#allocation256_spill] sm:$0xff]  ;;  %v13251_v63 = vld [vmem:[#allocation123_spill] sm:$0xff]  ;;  %v13254_v54 = vld [vmem:[#allocation325_spill] sm:$0xff] }
 0x4ed   : > { %v13243_v60 = vrot.slane %v10616_v43, %v13137_v4  ;;  %v13244_v1 = vrot.slane %v10616_v43, %v8577_v38  ;;  %vm13246_vm6 = vcmp.lt.s32.totalorder %v6942_v22, 79  ;;  %v3818_v56 = vadd.f32 %v3814_v44, %v3766_v29  ;;  %v13252_v44 = vld [vmem:[#allocation315_spill] sm:$0xff] }
 0x4ee   : > { %v3933_v27 = vsel %vm13246_vm6, %v13245_v52, %v3931_v28  ;;  %vm13248_vm13 = vmmov %vm13246_vm6  ;;  %v3819_v57 = vadd.f32 %v3815_v47, %v3767_v8  ;;  %v3147_v5 = vmul.f32 %v13242_v23, %v3131_v12  ;;  %v2327_v3 = vmul.f32 %v13249_v17, %v2303_v62  ;;  %v13253_v62 = vld [vmem:[#allocation262_spill] sm:$0xff]  ;;  %v13256_v8 = vld [vmem:[#allocation273_spill] sm:$0xff] }
 0x4ef   : > { %v3910_v31 = vmul.f32 %v13243_v60, %v3881_v36  ;;  %v3911_v18 = vmul.f32 %v13244_v1, %v3884_v13  ;;  %v3936_v48 = vsel %vm13248_vm13, %v3931_v28, %v13247_v39  ;;  %v10781_v11 = vmul.f32 %v13250_v50, %v10663_v10  ;;  %v3437_v13 = vpop.permute.xlu1 %3436  ;;  %v5463_v28 = vld [vmem:[%s11116_s5 + $0xc0] ss:$8 sm:$0xf]  ;;  %v2991_v60 = vpop.permute.xlu0 %2990 }
 0x4f0   : > { %v2326_v43 = vmul.f32 %v13249_v17, %v2302_v59  ;;  %v3962_v51 = vmul.f32 %v3951_v40, %v3933_v27  ;;  %v3963_v20 = vmul.f32 %v3955_v24, %v3936_v48  ;;  %v3075_v36 = vadd.f32 %v13251_v63, %v2967_v49  ;;  %v13255_v59 = vld [vmem:[#allocation116_spill] sm:$0xff]  ;;  %v13258_v52 = vld [vmem:[#allocation163_spill] sm:$0xff]  ;;  %v13259_v27 = vld [vmem:[#allocation33_spill] sm:$0xff] }
 0x4f1   : > { %v3154_v16 = vadd.f32 %v3146_v6, %v3074_v7  ;;  %v1966_v47 = vadd.f32 %v13252_v44, %v1858_v58  ;;  %v1967_v12 = vadd.f32 %v10528_v15, %v1859_v25  ;;  %v3918_v29 = vmul.f32 %v13253_v62, %v3910_v31  ;;  %v13260_v48 = vld [vmem:[#allocation306_spill] sm:$0xff]  ;;  %v13266_v44 = vld [vmem:[#allocation289_spill] sm:$0xff] }
 0x4f2   : > { %v3919_v10 = vmul.f32 %v13253_v62, %v3911_v18  ;;  %v3441_v34 = vsel %vm3440_vm7, %v13254_v54, %v3437_v13  ;;  %v3447_v26 = vsel %vm3440_vm7, %v3437_v13, %v13255_v59  ;;  %v3155_v40 = vadd.f32 %v3147_v5, %v3075_v36  ;;  %v13257_v18 = vld [vmem:[#allocation305_spill] sm:$0xff] }
 0x4f3   : > { %v2339_v24 = vadd.f32 %v2327_v3, %v1967_v12  ;;  %v3870_v49 = vadd.f32 %v10535_v9, %v3818_v56  ;;  %v3871_v7 = vadd.f32 %v10542_v32, %v3819_v57  ;;  %v2338_v15 = vadd.f32 %v2326_v43, %v1966_v47  ;;  %v2775_v6 = vpop.permute.xlu1 %2774  ;;  %v13263_v43 = vld [vmem:[#allocation278_spill] sm:$0xff]  ;;  %v13265_v36 = vld [vmem:[#allocation209_spill] sm:$0xff] }
 0x4f4   : > { %v3970_v35 = vmul.f32 %v13256_v8, %v3962_v51  ;;  %v3971_v58 = vmul.f32 %v13256_v8, %v3963_v20  ;;  %v3474_v30 = vmul.f32 %v13178_v61, %v3441_v34  ;;  %v3338_v25 = vadd.f32 %v10548_v21, %v3154_v16  ;;  %v13264_v20 = vld [vmem:[#allocation312_spill] sm:$0xff]  ;;  %v13269_v54 = vld [vmem:[#allocation193_spill] sm:$0xff] }
 0x4f5   : > { %v3475_v23 = vmul.f32 %v13180_v46, %v3447_v26  ;;  %v4055_v9 = vrot.slane %v5463_v28, %v13137_v4  ;;  %v4059_v32 = vrot.slane %v5463_v28, %v8577_v38  ;;  %v3922_v31 = vadd.f32 %v3918_v29, %v3870_v49  ;;  %v13261_v4 = vld [vmem:[#allocation102_spill] sm:$0xff] }
 0x4f6   : > { %v3923_v1 = vadd.f32 %v3919_v10, %v3871_v7  ;;  %v2781_v61 = vsel %vm2780_vm15, %v13257_v18, %v2775_v6  ;;  %v2790_v21 = vsel %vm2780_vm15, %v2775_v6, %v13258_v52  ;;  %v3339_v46 = vadd.f32 %v10551_v37, %v3155_v40  ;;  %v13262_v38 = vld [vmem:[#allocation138_spill] sm:$0xff]  ;;  %v13272_v6 = vld [vmem:[#allocation336_spill] sm:$0xff]  ;;  %v13277_v18 = vld [vmem:[#allocation335_spill] sm:$0xff] }
 0x4f7   : > { %v2375_v39 = vadd.f32 %v13259_v27, %v2339_v24  ;;  %v2818_v56 = vmul.f32 %v13260_v48, %v2781_v61  ;;  %v2819_v57 = vmul.f32 %v13261_v4, %v2790_v21  ;;  %v2374_v5 = vadd.f32 %v13262_v38, %v2338_v15  ;;  %v4035_v12 = vpop.permute.xlu1 %4034  ;;  %v13267_v29 = vld [vmem:[#allocation342_spill] sm:$0xff]  ;;  %v13278_v52 = vld [vmem:[#allocation236_spill] sm:$0xff] }
 0x4f8   : > { %v3974_v17 = vadd.f32 %v3970_v35, %v3922_v31  ;;  %v3975_v3 = vadd.f32 %v3971_v58, %v3923_v1  ;;  %v3490_v51 = vmul.f32 %v13263_v43, %v3474_v30  ;;  %v2997_v63 = vsel %vm2996_vm5, %v13264_v20, %v2991_v60  ;;  %v13271_v58 = vld [vmem:[#allocation122_spill] sm:$0xff] }
 0x4f9   : > { %v3006_v37 = vsel %vm2996_vm5, %v2991_v60, %v13265_v36  ;;  %v3491_v16 = vmul.f32 %v13263_v43, %v3475_v23  ;;  %v2843_v47 = vmul.f32 %v13266_v44, %v2819_v57  ;;  %v3418_v13 = vadd.f32 %v10554_v14, %v3338_v25  ;;  %v5466_v43 = vld [vmem:[%s12793_s20 + $0x10] sm:$0xff] }
 0x4fa   : > { %v2842_v62 = vmul.f32 %v13266_v44, %v2818_v56  ;;  %vm13268_vm7 = vcmp.lt.s32.totalorder %v6942_v22, 77  ;;  %v3419_v59 = vadd.f32 %v10578_v53, %v3339_v46  ;;  %v2483_v26 = vadd.f32 %v10584_v41, %v2375_v39  ;;  %v13273_v41 = vld [vmem:[#allocation132_spill] sm:$0xff] }
 0x4fb   : > { %v4037_v10 = vsel %vm13268_vm7, %v13267_v29, %v4035_v12  ;;  %vm13270_vm15 = vmmov %vm13268_vm7  ;;  %v3498_v49 = vadd.f32 %v3490_v51, %v3418_v13  ;;  %v2482_v7 = vadd.f32 %v10581_v2, %v2374_v5  ;;  %v4026_v14 = vadd.f32 %v10591_v0, %v3974_v17  ;;  %v3597_v23 = vpop.permute.xlu1 %3596  ;;  %v13279_v46 = vld [vmem:[#allocation68_spill] sm:$0xff]  ;;  %v13281_v5 = vld [vmem:[#allocation65_spill] sm:$0xff] }
 0x4fc   : > { %v4040_v34 = vsel %vm13270_vm15, %v4035_v12, %v13269_v54  ;;  %v4066_v40 = vmul.f32 %v4055_v9, %v4037_v10  ;;  %v4027_v15 = vadd.f32 %v10602_v55, %v3975_v3  ;;  %v3499_v8 = vadd.f32 %v3491_v16, %v3419_v59  ;;  %v13282_v17 = vld [vmem:[#allocation62_spill] sm:$0xff]  ;;  %v5465_v3 = vld [vmem:[%s12793_s20 + $0x8] sm:$0xff]  ;;  %v5467_v51 = vld [vmem:[%s12793_s20 + $0x18] sm:$0xff]  ;;  %v10888_v16 = vpop.permute.xlu0 %4095 }
 0x4fd   : > { %v4067_v24 = vmul.f32 %v4059_v32, %v4040_v34  ;;  %v2855_v35 = vadd.f32 %v2843_v47, %v2483_v26  ;;  %v3035_v53 = vmul.f32 %v13272_v6, %v3006_v37  ;;  %v2854_v28 = vadd.f32 %v2842_v62, %v2482_v7  ;;  %v13275_v32 = vld [vmem:[#allocation50_spill] sm:$0xff] }
 0x4fe   : > { %v4074_v30 = vmul.f32 %v13271_v58, %v4066_v40  ;;  %vm13274_vm5 = vcmp.lt.s32.totalorder %v6942_v22, 94  ;;  %v2950_v1 = vmul.f32 %v13250_v50, %v10660_v19  ;;  %v3034_v61 = vmul.f32 %v13277_v18, %v2997_v63 }
 0x4ff   : > { %v4075_v25 = vmul.f32 %v13271_v58, %v4067_v24  ;;  %v3601_v9 = vsel %vm13274_vm5, %v13273_v41, %v3597_v23  ;;  %vm13276_vm14 = vmmov %vm13274_vm5  ;;  %v3578_v21 = vadd.f32 %v13278_v52, %v3498_v49  ;;  %v3579_v22 = vadd.f32 %v10657_v33, %v3499_v8  ;;  %v5464_v33 = vld [vmem:[%s12793_s20] sm:$0xff]  ;;  %v10885_v20 = vpop.permute.xlu1 %4090 }
 0x500   : > { %v3607_v2 = vsel %vm13276_vm14, %v3597_v23, %v13275_v32  ;;  %v4078_v0 = vadd.f32 %v4074_v30, %v4026_v14  ;;  %v3634_v55 = vmul.f32 %v13195_v45, %v3601_v9  ;;  %v2963_v48 = vadd.f32 %v10781_v11, %v2855_v35 }
 0x501   : > { %v3635_v60 = vmul.f32 %v13196_v42, %v3607_v2  ;;  %v4079_v31 = vadd.f32 %v4075_v25, %v4027_v15  ;;  %v2962_v45 = vadd.f32 %v2950_v1, %v2854_v28  ;;  %v13280_v42 = vld [vmem:[#allocation85_spill] sm:$0xff]  ;;  %vm13283_vm9 = vcmask 261120  }
 0x502   : > { %v3650_v27 = vmul.f32 %v13279_v46, %v3634_v55  ;;  %v3059_v56 = vmul.f32 %v13280_v42, %v3035_v53  ;;  %v3058_v19 = vmul.f32 %v13280_v42, %v3034_v61  ;;  %v13284_v11 = vmov 0.0   ;;  %vm13285_vm8 = vmmov %vm13283_vm9 }
 0x503   : > { %v3651_v39 = vmul.f32 %v13279_v46, %v3635_v60  ;;  %4233 = vmatprep.subr.mxu1 %v4079_v31  ;;  %vm13286_vm11 = vmmov %vm13285_vm8  ;;  %v10892_v29 = vpop.permute.xlu1 %4100 }
 0x504   : > { %4234 = vmatpush1.msra.mxu1 %v4078_v0  ;;  %v3658_v4 = vadd.f32 %v3650_v27, %v3578_v21  ;;  %v3071_v50 = vadd.f32 %v3059_v56, %v2963_v48  ;;  %v3070_v38 = vadd.f32 %v3058_v19, %v2962_v45  ;;  %vm13287_vm12 = vmmov %vm13285_vm8 }
 0x505   : > { %v3659_v57 = vadd.f32 %v3651_v39, %v3579_v22  ;;  %vm13308_vm1 = vmmov %vm13285_vm8 }
 0x506   : > { %vm13309_vm0 = vmmov %vm13308_vm1 }
 0x507   : > { %4235 = vmatprep.subr.mxu1 %v3659_v57  ;;  %v10897_v15 = vpop.permute.xlu1 %4105  ;;  %vm13310_vm2 = vmmov %vm13309_vm0 }
 0x508   : > { %4236 = vmatpush1.msra.mxu1 %v3658_v4  ;;  %vm13311_vm10 = vmmov %vm13309_vm0 }
 0x509   : > { %4237 = vmatprep.subr.mxu1 %v3071_v50  ;;  %vm13312_vm3 = vmmov %vm13309_vm0 }
 0x50a   : > { %4238 = vmatpush1.msra.mxu1 %v3070_v38  ;;  %vm13313_vm4 = vmmov %vm13309_vm0 }
 0x50b   : > { %4239 = vmatprep.subr.mxu1 %v13281_v5  ;;  %vm13314_vm6 = vmmov %vm13309_vm0 }
 0x50c   : > { %4240 = vmatpush1.msra.mxu1 %v13282_v17  ;;  %vm13315_vm13 = vmmov %vm13309_vm0 }
 0x50d   : > { %5074 = vmatmul.mubr.msk.f32.vlgmr.msra.gmra.mxu1 %vm13283_vm9, %v5464_v33  ;;  %vm13318_vm7 = vmmov %vm13309_vm0 }
 0x50e   : > { %4279 = vmatprep.mubr.f32.mxu1 %v13284_v11  ;;  %vm13319_vm15 = vmmov %vm13309_vm0 }
 0x50f   : > { %vm13320_vm5 = vmmov %vm13309_vm0 }
 0x510   : > { %vm13321_vm14 = vmmov %vm13309_vm0 }
 0x511   : > { %5075 = vmatmul.mubr.msk.f32.gmra.mxu1 %vm13285_vm8, %v5465_v3 }
 0x512   : > { %4285 = vmatprep.mubr.f32.mxu1 %v13284_v11 }
 0x515   : > { %5076 = vmatmul.mubr.msk.f32.gmra.mxu1 %vm13286_vm11, %v5466_v43 }
 0x516   : > { %4291 = vmatprep.mubr.f32.mxu1 %v13284_v11  ;;  %v4186_v63 = vpop.f32.mrf.mxu1 }
 0x517   : > { %v4187_v36 = vadd.f32 %v4186_v63, %v10885_v20 }
 0x518   : > { %v4188_v37 = vpop.f32.mrf.mxu1 }
 0x519   : > { %5077 = vmatmul.mubr.msk.f32.gmra.mxu1 %vm13287_vm12, %v5467_v51  ;;  %v4189_v44 = vadd.f32 %v4188_v37, %v10885_v20  ;;  %v4298_v12 = vmax.f32 %v4187_v36, 0.0 }
 0x51b   : > { %v4299_v13 = vmax.f32 %v4189_v44, 0.0 }
 0x51d   : > { %v4192_v47 = vpop.f32.mrf.mxu1  ;;  %v4318_v54 = vmax.f32 %v4298_v12, %v4299_v13 }
 0x51e   : > { %v4193_v62 = vadd.f32 %v4192_v47, %v10888_v16 }
 0x51f   : > { %v4194_v10 = vpop.f32.mrf.mxu1  ;;  %4319 = vmax.xlane.f32.xlu0 %v4318_v54  ;;  %v13289_v54 = vld [vmem:[#allocation36_spill] sm:$0xff] }
 0x520   : > { %v4195_v34 = vadd.f32 %v4194_v10, %v10888_v16  ;;  %v4302_v26 = vmax.f32 %v4193_v62, 0.0  ;;  %v13288_v10 = vld [vmem:[#allocation27_spill] sm:$0xff] }
 0x522   : > { %v4198_v59 = vpop.f32.mrf.mxu1  ;;  %v4303_v40 = vmax.f32 %v4195_v34, 0.0  ;;  %v13290_v34 = vsub.f32 %v13288_v10, %v13289_v54 }
 0x523   : > { %v4199_v24 = vadd.f32 %v4198_v59, %v10892_v29 }
 0x524   : > { %v4200_v49 = vpop.f32.mrf.mxu1  ;;  %v4321_v7 = vmax.f32 %v4302_v26, %v4303_v40  ;;  %v4503_v59 = vmul.f32 1.442695, %v13290_v34 }
 0x525   : > { %v4201_v14 = vadd.f32 %v4200_v49, %v10892_v29  ;;  %v4306_v35 = vmax.f32 %v4199_v24, 0.0 }
 0x526   : > { %v4204_v8 = vpop.f32.mrf.mxu1  ;;  %4322 = vmax.xlane.f32.xlu1 %v4321_v7 }
 0x527   : > { %v4307_v58 = vmax.f32 %v4201_v14, 0.0  ;;  %v4205_v30 = vadd.f32 %v4204_v8, %v10897_v15 }
 0x528   : > { %v4206_v25 = vpop.f32.mrf.mxu1 }
 0x529   : > { %v4324_v23 = vmax.f32 %v4306_v35, %v4307_v58  ;;  %v4207_v6 = vadd.f32 %v4206_v25, %v10897_v15  ;;  %v4310_v53 = vmax.f32 %v4205_v30, 0.0 }
 0x52b   : > { %v4311_v28 = vmax.f32 %v4207_v6, 0.0  ;;  %4325 = vmax.xlane.f32.xlu0 %v4324_v23 }
 0x52d   : > { %v4327_v41 = vmax.f32 %v4310_v53, %v4311_v28 }
 0x52f   : > { %4328 = vmax.xlane.f32.xlu0 %v4327_v41 }
 0x5a8   : > { %v4320_v9 = vpop.xlane.xlu0 %4319 }
 0x5a9   : > { %v4330_v32 = vsub.f32 %v4298_v12, %v4320_v9  ;;  %v4331_v2 = vsub.f32 %v4299_v13, %v4320_v9  ;;  %v4764_v9 = vld [vmem:[%s13291_s21 + $0x8] sm:$0xff] }
 0x5ab   : > { %v4338_v0 = vmul.f32 1.442695, %v4330_v32  ;;  %v4340_v55 = vmul.f32 1.442695, %v4331_v2  ;;  %v4766_v32 = vld [vmem:[%s13291_s21 + $0x18] sm:$0xff] }
 0x5ac   : > { %v13292_v2 = vld [vmem:[#allocation21_spill] sm:$0xff] }
 0x5ad   : > { %5363 = vpow2.f32 %v4338_v0  ;;  %v13293_v0 = vld [vmem:[#allocation35_spill] sm:$0xff] }
 0x5ae   : > { %5365 = vpow2.f32 %v4340_v55  ;;  %v13294_v55 = vsub.f32 %v13292_v2, %v13293_v0 }
 0x5af   : > { %v4323_v60 = vpop.xlane.xlu1 %4322 }
 0x5b0   : > { %v4332_v31 = vsub.f32 %v4302_v26, %v4323_v60  ;;  %v4333_v1 = vsub.f32 %v4303_v40, %v4323_v60  ;;  %v4493_v60 = vmul.f32 1.442695, %v13294_v55 }
 0x5b2   : > { %v4342_v18 = vmul.f32 1.442695, %v4332_v31  ;;  %v4344_v61 = vmul.f32 1.442695, %v4333_v1  ;;  %v13295_v31 = vld [vmem:[#allocation26_spill] sm:$0xff] }
 0x5b3   : > { %v13296_v1 = vsub.f32 %v13295_v31, %v13293_v0 }
 0x5b4   : > { %v4326_v52 = vpop.xlane.xlu0 %4325  ;;  %5367 = vpow2.f32 %v4342_v18 }
 0x5b5   : > { %v4334_v21 = vsub.f32 %v4306_v35, %v4326_v52  ;;  %v4335_v46 = vsub.f32 %v4307_v58, %v4326_v52  ;;  %5369 = vpow2.f32 %v4344_v61  ;;  %v4501_v18 = vmul.f32 1.442695, %v13296_v1  ;;  %v13297_v52 = vld [vmem:[#allocation25_spill] sm:$0xff] }
 0x5b7   : > { %v4346_v27 = vmul.f32 1.442695, %v4334_v21  ;;  %v4348_v39 = vmul.f32 1.442695, %v4335_v46  ;;  %v13298_v21 = vsub.f32 %v13297_v52, %v13289_v54 }
 0x5b8   : > { %v4329_v22 = vpop.xlane.xlu0 %4328 }
 0x5b9   : > { %5371 = vpow2.f32 %v4346_v27  ;;  %v4336_v48 = vsub.f32 %v4310_v53, %v4329_v22  ;;  %v4337_v45 = vsub.f32 %v4311_v28, %v4329_v22  ;;  %v4499_v46 = vmul.f32 1.442695, %v13298_v21  ;;  %v13299_v27 = vld [vmem:[#allocation23_spill] sm:$0xff] }
 0x5ba   : > { %5373 = vpow2.f32 %v4348_v39  ;;  %v10901_v19 = vpop.eup %5363  ;;  %v13300_v39 = vsub.f32 %v13299_v27, %v13293_v0 }
 0x5bb   : > { %v4350_v42 = vmul.f32 1.442695, %v4336_v48  ;;  %v4352_v56 = vmul.f32 1.442695, %v4337_v45  ;;  %v10903_v50 = vpop.eup %5365  ;;  %v13301_v48 = vld [vmem:[#allocation22_spill] sm:$0xff] }
 0x5bc   : > { %v4354_v5 = vadd.f32 %v10903_v50, %v10901_v19  ;;  %v4497_v22 = vmul.f32 1.442695, %v13300_v39  ;;  %v13302_v45 = vsub.f32 %v13301_v48, %v13289_v54 }
 0x5bd   : > { %5375 = vpow2.f32 %v4350_v42 }
 0x5be   : > { %5377 = vpow2.f32 %v4352_v56  ;;  %4355 = vadd.xlane.f32.xlu1 %v4354_v5  ;;  %v4495_v42 = vmul.f32 1.442695, %v13302_v45  ;;  %v13305_v5 = vld [vmem:[#allocation18_spill] sm:$0xff] }
 0x5bf   : > { %5379 = vpow2.f32 %v4503_v59 }
 0x5c1   : > { %v10907_v33 = vpop.eup %5367 }
 0x5c2   : > { %v10909_v3 = vpop.eup %5369 }
 0x5c3   : > { %v4357_v51 = vadd.f32 %v10909_v3, %v10907_v33 }
 0x5c5   : > { %4358 = vadd.xlane.f32.xlu0 %v4357_v51 }
 0x5c6   : > { %v10913_v36 = vpop.eup %5371 }
 0x5c7   : > { %v10915_v37 = vpop.eup %5373 }
 0x5c8   : > { %v4360_v47 = vadd.f32 %v10915_v37, %v10913_v36 }
 0x5ca   : > { %v10920_v62 = vpop.eup %5375  ;;  %4361 = vadd.xlane.f32.xlu1 %v4360_v47 }
 0x5cb   : > { %v10927_v24 = vpop.eup %5377 }
 0x5cc   : > { %v4363_v7 = vadd.f32 %v10927_v24, %v10920_v62  ;;  %v10936_v41 = vpop.eup %5379 }
 0x5cd   : > { %v4275_v4 = vpop.f32.mrf.mxu1 }
 0x5ce   : > { %4364 = vadd.xlane.f32.xlu0 %v4363_v7  ;;  %v4276_v6 = vadd.f32 %v4275_v4, %v10885_v20  ;;  %v13303_v4 = vld [vmem:[#allocation19_spill] sm:$0xff] }
 0x5cf   : > { %v4277_v57 = vpop.f32.mrf.mxu1 }
 0x5d0   : > { %v4278_v25 = vadd.f32 %v4277_v57, %v10885_v20  ;;  %v4300_v28 = vmax.f32 %v4276_v6, 0.0  ;;  %v4765_v20 = vld [vmem:[%s13291_s21 + $0x10] sm:$0xff]  ;;  %v13304_v57 = vsub.f32 %v13303_v4, %v13289_v54 }
 0x5d1   : > { %v4281_v38 = vpop.f32.mrf.mxu1 }
 0x5d2   : > { %v4282_v30 = vadd.f32 %v4281_v38, %v10888_v16  ;;  %v4301_v53 = vmax.f32 %v4278_v25, 0.0  ;;  %v4491_v38 = vmul.f32 1.442695, %v13304_v57 }
 0x5d3   : > { %v4283_v17 = vpop.f32.mrf.mxu1 }
 0x5d4   : > { %v4284_v35 = vadd.f32 %v4283_v17, %v10888_v16  ;;  %v4763_v16 = vld [vmem:[%s13291_s21] sm:$0xff]  ;;  %v13306_v17 = vsub.f32 %v13305_v5, %v13293_v0 }
 0x5d5   : > { %v4287_v43 = vpop.f32.mrf.mxu1 }
 0x5d6   : > { %v4288_v14 = vadd.f32 %v4287_v43, %v10892_v29  ;;  %v4305_v23 = vmax.f32 %v4284_v35, 0.0  ;;  %v4489_v43 = vmul.f32 1.442695, %v13306_v17 }
 0x5d7   : > { %v4289_v63 = vpop.f32.mrf.mxu1 }
 0x5d8   : > { %v4290_v26 = vadd.f32 %v4289_v63, %v10892_v29  ;;  %v4304_v29 = vmax.f32 %v4282_v30, 0.0 }
 0x5d9   : > { %v4293_v44 = vpop.f32.mrf.mxu1 }
 0x5da   : > { %v4294_v12 = vadd.f32 %v4293_v44, %v10897_v15  ;;  %v4309_v58 = vmax.f32 %v4290_v26, 0.0 }
 0x5db   : > { %v4295_v13 = vpop.f32.mrf.mxu1 }
 0x5dc   : > { %v4296_v40 = vadd.f32 %v4295_v13, %v10897_v15  ;;  %v4312_v8 = vmax.f32 %v4294_v12, 0.0  ;;  %v4308_v15 = vmax.f32 %v4288_v14, 0.0 }
 0x5de   : > { %v4313_v49 = vmax.f32 %v4296_v40, 0.0 }
 0x5e0   : > { %4402 = vmatprep.subr.mxu1 %v4313_v49 }
 0x5e1   : > { %4403 = vmatpush1.xpose.msra.mxu1 %v4312_v8 }
 0x5e2   : > { %4404 = vmatprep.subr.mxu1 %v4309_v58 }
 0x5e4   : > { %4769 = vperm.xlu0 %5362, %v4763_v16  }
 0x5e5   : > { %4405 = vmatpush1.xpose.msra.mxu1 %v4308_v15 }
 0x5e6   : > { %4406 = vmatprep.subr.mxu1 %v4305_v23 }
 0x5e8   : > { %4774 = vperm.xlu0 %5362, %v4764_v9  }
 0x5e9   : > { %4407 = vmatpush1.xpose.msra.mxu1 %v4304_v29 }
 0x5ea   : > { %4408 = vmatprep.subr.mxu1 %v4301_v53 }
 0x5ec   : > { %4779 = vperm.xlu0 %5362, %v4765_v20  }
 0x5ed   : > { %4409 = vmatpush1.xpose.msra.mxu1 %v4300_v28 }
 0x5ee   : > { %4541 = vmatprep.subr.mxu1 %v10936_v41 }
 0x5f0   : > { %4784 = vperm.xlu0 %5362, %v4766_v32  }
 0x647   : > { %v4356_v61 = vpop.xlane.xlu1 %4355 }
 0x648   : > { %5381 = vrcp.f32 %v4356_v61 }
 0x649   : > { %5383 = vpow2.f32 %v4493_v60 }
 0x64a   : > { %5385 = vpow2.f32 %v4501_v18 }
 0x64e   : > { %v4359_v56 = vpop.xlane.xlu0 %4358 }
 0x64f   : > { %5387 = vrcp.f32 %v4359_v56 }
 0x650   : > { %5389 = vpow2.f32 %v4499_v46 }
 0x651   : > { %5391 = vpow2.f32 %v4497_v22 }
 0x652   : > { %5393 = vpow2.f32 %v4495_v42 }
 0x653   : > { %v4362_v51 = vpop.xlane.xlu1 %4361 }
 0x654   : > { %5395 = vrcp.f32 %v4362_v51 }
 0x655   : > { %5397 = vpow2.f32 %v4491_v38  ;;  %v5382_v44 = vpop.eup %5381 }
 0x656   : > { %5399 = vpow2.f32 %v4489_v43  ;;  %v4368_v47 = vmul.f32 %v5382_v44, %v10903_v50  ;;  %v4367_v12 = vmul.f32 %v5382_v44, %v10901_v19  ;;  %v10974_v13 = vpop.eup %5383 }
 0x657   : > { %v4365_v63 = vpop.xlane.xlu0 %4364  ;;  %v10976_v10 = vpop.eup %5385 }
 0x658   : > { %5401 = vrcp.f32 %v4365_v63  ;;  %4442 = vmatprep.mubr.f32.mxu1 %v4368_v47 }
 0x659   : > { %4443 = vmatmul.mubr.f32.vlgmr.msra.gmra.mxu1 %v4367_v12 }
 0x65a   : > { %4542 = vmatpush1.msra.mxu1 %v10976_v10 }
 0x65c   : > { %v5388_v54 = vpop.eup %5387 }
 0x65d   : > { %v10978_v34 = vpop.eup %5389  ;;  %v4371_v59 = vmul.f32 %v5388_v54, %v10909_v3  ;;  %v4370_v26 = vmul.f32 %v5388_v54, %v10907_v33 }
 0x65e   : > { %v10983_v40 = vpop.eup %5391  ;;  %4543 = vmatprep.subr.mxu1 %v10978_v34 }
 0x65f   : > { %v10986_v19 = vpop.eup %5393  ;;  %4544 = vmatpush1.msra.mxu1 %v10983_v40  ;;  %4447 = vmatprep.mubr.f32.mxu1 %v4371_v59 }
 0x660   : > { %4545 = vmatprep.subr.mxu1 %v10986_v19  ;;  %4448 = vmatmul.mubr.f32.gmra.mxu1 %v4370_v26  ;;  %v4759_v26 = vld [vmem:[%s13317_s18] sm:$0xff] }
 0x661   : > { %v5396_v50 = vpop.eup %5395  ;;  %4546 = vmatpush1.msra.mxu1 %v10974_v13 }
 0x662   : > { %v10990_v49 = vpop.eup %5397  ;;  %v4374_v3 = vmul.f32 %v5396_v50, %v10915_v37  ;;  %v4373_v33 = vmul.f32 %v5396_v50, %v10913_v36  ;;  %v4314_v36 = vld [vmem:[%s13307_s1] sm:$0xff]  ;;  %v4315_v37 = vld [vmem:[%s13307_s1 + $0x8] sm:$0xff]  ;;  %v4762_v50 = vld [vmem:[%s13317_s18 + $0x18] sm:$0xff] }
 0x663   : > { %v10995_v7 = vpop.eup %5399  ;;  %4547 = vmatprep.subr.mxu1 %v10990_v49 }
 0x664   : > { %4548 = vmatpush1.msra.mxu1 %v10995_v7  ;;  %4452 = vmatprep.mubr.f32.mxu1 %v4374_v3 }
 0x665   : > { %v5402_v14 = vpop.eup %5401  ;;  %4453 = vmatmul.mubr.f32.gmra.mxu1 %v4373_v33 }
 0x666   : > { %v4377_v8 = vmul.f32 %v5402_v14, %v10927_v24  ;;  %v4376_v35 = vmul.f32 %v5402_v14, %v10920_v62  ;;  %v4316_v62 = vld [vmem:[%s13307_s1 + $0x10] sm:$0xff]  ;;  %v4317_v24 = vld [vmem:[%s13307_s1 + $0x18] sm:$0xff] }
 0x668   : > { %4457 = vmatprep.mubr.f32.mxu1 %v4377_v8 }
 0x669   : > { %4458 = vmatmul.mubr.f32.gmra.mxu1 %v4376_v35 }
 0x66a   : > { %4581 = vmatprep.mubr.f32.mxu1 %v13284_v11 }
 0x66d   : > { %5078 = vmatmul.mubr.msk.f32.vlgmr.msra.gmra.mxu1 %vm13308_vm1, %v4314_v36 }
 0x66e   : > { %4587 = vmatprep.mubr.f32.mxu1 %v13284_v11 }
 0x671   : > { %5079 = vmatmul.mubr.msk.f32.gmra.mxu1 %vm13309_vm0, %v4315_v37 }
 0x672   : > { %4593 = vmatprep.mubr.f32.mxu1 %v13284_v11 }
 0x675   : > { %5080 = vmatmul.mubr.msk.f32.gmra.mxu1 %vm13310_vm2, %v4316_v62 }
 0x676   : > { %4599 = vmatprep.mubr.f32.mxu1 %v13284_v11 }
 0x679   : > { %5081 = vmatmul.mubr.msk.f32.gmra.mxu1 %vm13311_vm10, %v4317_v24 }
 0x67a   : > { %4734 = vmatprep.mubr.f32.mxu1 %v13284_v11 }
 0x719   : > { %v4444_v58 = vpop.f32.mrf.mxu1 }
 0x71a   : > { %v4622_v30 = vmul.f32 %v4444_v58, %v4314_v36 }
 0x71b   : > { %v4446_v15 = vpop.f32.mrf.mxu1 }
 0x71c   : > { %4626 = vxpose.xlu1.b32.start [1/4] (short) (narrow) %v4622_v30, 32 }
 0x720   : > { %v4449_v25 = vpop.f32.mrf.mxu1 }
 0x721   : > { %v4623_v23 = vmul.f32 %v4449_v25, %v4315_v37 }
 0x722   : > { %v4451_v6 = vpop.f32.mrf.mxu1 }
 0x723   : > { %4627 = vxpose.xlu1.b32.cont [2/4] (short) (narrow) %v4623_v23, 32 }
 0x725   : > { %v4454_v29 = vpop.f32.mrf.mxu1 }
 0x726   : > { %v4624_v53 = vmul.f32 %v4454_v29, %v4316_v62 }
 0x727   : > { %v4456_v28 = vpop.f32.mrf.mxu1 }
 0x728   : > { %4628 = vxpose.xlu1.b32.cont [3/4] (short) (narrow) %v4624_v53, 32 }
 0x729   : > { %v4459_v16 = vpop.f32.mrf.mxu1 }
 0x72a   : > { %v4625_v9 = vmul.f32 %v4459_v16, %v4317_v24 }
 0x72b   : > { %v4461_v20 = vpop.f32.mrf.mxu1 }
 0x72c   : > { %4629 = vxpose.xlu1.b32.end [4/4] (short) (narrow) %v4625_v9, 32 }
 0x72d   : > { %v4583_v32 = vpop.f32.mrf.mxu1 }
 0x72f   : > { %v4585_v2 = vpop.f32.mrf.mxu1 }
 0x731   : > { %v4589_v0 = vpop.f32.mrf.mxu1 }
 0x733   : > { %v4591_v55 = vpop.f32.mrf.mxu1 }
 0x735   : > { %v4595_v60 = vpop.f32.mrf.mxu1 }
 0x737   : > { %v4597_v31 = vpop.f32.mrf.mxu1 }
 0x738   : > { %5403 = vrcp.f32 %v4597_v31 }
 0x739   : > { %v4601_v1 = vpop.f32.mrf.mxu1 }
 0x73a   : > { %5405 = vrcp.f32 %v4601_v1 }
 0x73b   : > { %v4603_v18 = vpop.f32.mrf.mxu1 }
 0x73c   : > { %5407 = vrcp.f32 %v4603_v18 }
 0x73d   : > { %5409 = vrcp.f32 %v4595_v60 }
 0x73e   : > { %5411 = vrcp.f32 %v4591_v55 }
 0x73f   : > { %5413 = vrcp.f32 %v4589_v0 }
 0x740   : > { %5415 = vrcp.f32 %v4585_v2 }
 0x741   : > { %5417 = vrcp.f32 %v4583_v32 }
 0x745   : > { %v5404_v61 = vpop.eup %5403 }
 0x746   : > { %v4617_v45 = vmul.f32 %v5404_v61, %v10978_v34 }
 0x747   : > { %v5406_v52 = vpop.eup %5405 }
 0x748   : > { %v4619_v22 = vmul.f32 %v5406_v52, %v10976_v10 }
 0x749   : > { %v5408_v21 = vpop.eup %5407 }
 0x74a   : > { %v5410_v46 = vpop.eup %5409  ;;  %v4621_v27 = vmul.f32 %v5408_v21, %v10936_v41 }
 0x74b   : > { %v5412_v39 = vpop.eup %5411  ;;  %v4615_v56 = vmul.f32 %v5410_v46, %v10983_v40  ;;  %v4760_v40 = vld [vmem:[%s13317_s18 + $0x8] sm:$0xff] }
 0x74c   : > { %v5414_v48 = vpop.eup %5413  ;;  %4694 = vmatprep.subr.mxu1 %v4621_v27  ;;  %v4613_v57 = vmul.f32 %v5412_v39, %v10986_v19  ;;  %v4761_v19 = vld [vmem:[%s13317_s18 + $0x10] sm:$0xff] }
 0x74d   : > { %v5416_v42 = vpop.eup %5415  ;;  %4695 = vmatpush1.msra.mxu1 %v4619_v22  ;;  %v4611_v38 = vmul.f32 %v5414_v48, %v10974_v13 }
 0x74e   : > { %v5418_v4 = vpop.eup %5417  ;;  %4696 = vmatprep.subr.mxu1 %v4617_v45  ;;  %v4609_v41 = vmul.f32 %v5416_v42, %v10990_v49  ;;  %v4770_v49 = vpop.permute.xlu0 %4769 }
 0x74f   : > { %4697 = vmatpush1.msra.mxu1 %v4615_v56  ;;  %v4607_v5 = vmul.f32 %v5418_v4, %v10995_v7 }
 0x750   : > { %4698 = vmatprep.subr.mxu1 %v4613_v57 }
 0x751   : > { %4699 = vmatpush1.msra.mxu1 %v4611_v38 }
 0x752   : > { %4700 = vmatprep.subr.mxu1 %v4609_v41  ;;  %v4775_v3 = vpop.permute.xlu0 %4774 }
 0x753   : > { %4701 = vmatpush1.msra.mxu1 %v4607_v5 }
 0x756   : > { %v4780_v36 = vpop.permute.xlu0 %4779 }
 0x75a   : > { %v4785_v25 = vpop.permute.xlu0 %4784 }
 0x79c   : > { %v4642_v17 = vpop.trf.xlu1 }
 0x79d   : > { %5082 = vmatmul.mubr.msk.f32.vlgmr.msra.gmra.mxu1 %vm13312_vm3, %v4642_v17 }
 0x79e   : > { %4740 = vmatprep.mubr.f32.mxu1 %v13284_v11 }
 0x7a0   : > { %v4643_v43 = vpop.trf.xlu1 }
 0x7a1   : > { %5083 = vmatmul.mubr.msk.f32.gmra.mxu1 %vm13313_vm4, %v4643_v43 }
 0x7a2   : > { %4746 = vmatprep.mubr.f32.mxu1 %v13284_v11 }
 0x7a4   : > { %v4644_v51 = vpop.trf.xlu1 }
 0x7a5   : > { %5084 = vmatmul.mubr.msk.f32.gmra.mxu1 %vm13314_vm6, %v4644_v51 }
 0x7a6   : > { %4752 = vmatprep.mubr.f32.mxu1 %v13284_v11 }
 0x7a8   : > { %v4645_v63 = vpop.trf.xlu1 }
 0x7a9   : > { %5085 = vmatmul.mubr.msk.f32.gmra.mxu1 %vm13315_vm13, %v4645_v63 }
 0x7aa   : > { %4863 = vmatprep.mubr.f32.mxu1 %v13284_v11 }
 0x85d   : > { %v4736_v44 = vpop.f32.mrf.mxu1 }
 0x85f   : > { %v4738_v47 = vpop.f32.mrf.mxu1 }
 0x861   : > { %v4742_v12 = vpop.f32.mrf.mxu1 }
 0x863   : > { %v4744_v13 = vpop.f32.mrf.mxu1 }
 0x865   : > { %v4748_v10 = vpop.f32.mrf.mxu1 }
 0x867   : > { %v4750_v54 = vpop.f32.mrf.mxu1 }
 0x869   : > { %v4754_v34 = vpop.f32.mrf.mxu1 }
 0x86b   : > { %v4756_v59 = vpop.f32.mrf.mxu1 }
 0x86c   : > { %4823 = vmatprep.subr.mxu1 %v4756_v59 }
 0x86d   : > { %4824 = vmatpush1.msra.mxu1 %v4754_v34 }
 0x86e   : > { %4825 = vmatprep.subr.mxu1 %v4750_v54 }
 0x86f   : > { %4826 = vmatpush1.msra.mxu1 %v4748_v10 }
 0x870   : > { %4827 = vmatprep.subr.mxu1 %v4744_v13 }
 0x871   : > { %4828 = vmatpush1.msra.mxu1 %v4742_v12 }
 0x872   : > { %4829 = vmatprep.subr.mxu1 %v4738_v47 }
 0x873   : > { %4830 = vmatpush1.msra.mxu1 %v4736_v44 }
 0x874   : > { %5086 = vmatmul.mubr.msk.f32.vlgmr.msra.gmra.mxu1 %vm13318_vm7, %v4759_v26 }
 0x875   : > { %4869 = vmatprep.mubr.f32.mxu1 %v13284_v11 }
 0x878   : > { %5087 = vmatmul.mubr.msk.f32.gmra.mxu1 %vm13319_vm15, %v4760_v40 }
 0x879   : > { %4875 = vmatprep.mubr.f32.mxu1 %v13284_v11 }
 0x87c   : > { %5088 = vmatmul.mubr.msk.f32.gmra.mxu1 %vm13320_vm5, %v4761_v19 }
 0x87d   : > { %4881 = vmatprep.mubr.f32.mxu1 %v13284_v11 }
 0x880   : > { %5089 = vmatmul.mubr.msk.f32.gmra.mxu1 %vm13321_vm14, %v4762_v50 }
 0x934   : > { %v4865_v33 = vpop.f32.mrf.mxu1 }
 0x935   : > { %v4866_v7 = vadd.f32 %v4865_v33, %v4770_v49 }
 0x936   : > { %v4867_v14 = vpop.f32.mrf.mxu1 }
 0x937   : > { %4888 = vst [vmem:[%s325_s16] sm:$0xff] %v4866_v7  ;;  %v4868_v8 = vadd.f32 %v4867_v14, %v4770_v49 }
 0x938   : > { %v4871_v35 = vpop.f32.mrf.mxu1 }
 0x939   : > { %4889 = vst [vmem:[%s325_s16 + $0x8] sm:$0xff] %v4868_v8  ;;  %v4872_v11 = vadd.f32 %v4871_v35, %v4775_v3 }
 0x93a   : > { %v4873_v37 = vpop.f32.mrf.mxu1 }
 0x93b   : > { %4890 = vst [vmem:[%s325_s16 + $0x10] sm:$0xff] %v4872_v11  ;;  %v4874_v62 = vadd.f32 %v4873_v37, %v4775_v3 }
 0x93c   : > { %v4877_v24 = vpop.f32.mrf.mxu1 }
 0x93d   : > { %4891 = vst [vmem:[%s325_s16 + $0x18] sm:$0xff] %v4874_v62  ;;  %v4878_v58 = vadd.f32 %v4877_v24, %v4780_v36 }
 0x93e   : > { %v4879_v30 = vpop.f32.mrf.mxu1 }
 0x93f   : > { %4892 = vst [vmem:[%s325_s16 + $0x20] sm:$0xff] %v4878_v58  ;;  %v4880_v15 = vadd.f32 %v4879_v30, %v4780_v36 }
 0x940   : > { %v4883_v23 = vpop.f32.mrf.mxu1 }
 0x941   : > { %4893 = vst [vmem:[%s325_s16 + $0x28] sm:$0xff] %v4880_v15  ;;  %v4884_v6 = vadd.f32 %v4883_v23, %v4785_v25 }
 0x942   : > { %v4885_v29 = vpop.f32.mrf.mxu1 }
 0x943   : > { %4894 = vst [vmem:[%s325_s16 + $0x30] sm:$0xff] %v4884_v6  ;;  %v4886_v53 = vadd.f32 %v4885_v29, %v4785_v25 }
 0x945   : > { %4895 = vst [vmem:[%s325_s16 + $0x38] sm:$0xff] %v4886_v53 }
 0x946   : > { %5481 = shalt.err (!%p5478_p3)
}
 0x947   : > { %s5482_s29 = scalar_lea.hbm %s11064_s22, 1024  ;;  %s5486_s27 = scalar_lea.hbm %s13324_s25, 2048 }
 0x948   : > { %p5483_p4 = scmp.ne.s32.totalorder %s11064_s22, %s5482_s29  ;;  %p5487_p9 = scmp.lt.s32.totalorder %s11064_s22, %s13324_s25 }
 0x949   : > { %p5488_p10 = scmp.lt.s32.totalorder %s5486_s27, %s5482_s29 }
 0x94a   : > { %p5484_p7 = pnand %p5483_p4, %p5718_p5 }
 0x94b   : > { %p5489_p11 = por %p5488_p10, %p5487_p9 }
 0x94c   : > { %p5485_p8 = pneg %p5484_p7 }
 0x94e   : > { %p5490_p12 = pnand %p5489_p11, %p5485_p8 }
 0x950   : > { %5493 = shalt.err (!%p5490_p12)
}
 0x951   : > { %s5629_s23 = smov 256  }
 0x952   : > { %5153 = dma.vmem_to_hbm [thread:$0]  (%p5718_p5), %s11066_s0, 1024, %s11064_s22, %s11070_s6, %s5629_s23, %s5629_s23, %s11986_s10  }
 0x953 PF: > { %s13325_s14 = sld [smem:[#allocation8_spill]] }
 0x954   : > { %s13326_s9 = sld [smem:[#allocation5_spill]] }
 0x959   : > { %p5159_p13 = scmp.ge.s32.totalorder %s13325_s14, 2 }
 0x95a   : > { %s4925_s8 = sand.u32 1, %s13326_s9  }
 0x95b   : > { %p5156_p0 = pnand %p5159_p13, %p5722_p6  ;;  %s4926_s19 = scalar_lea.sflag [#allocation3], %s4925_s8 }
 0x95d   : > { %p5157_p1 = pneg %p5156_p0 }
 0x95f   : > { %5511 = dma.done.wait (%p5157_p1), %s4926_s19, 1024  }
 0x960   : > { %5513 = vsyncadd (%p5157_p1), %s4926_s19, 4294966272  ;;  %s13328_s12 = sld [smem:[#allocation10_spill]] }
 0x961   : > { %s13329_s30 = sld [smem:[#allocation6_spill]] }
 0x962   : > { %s13330_s10 = sld [smem:[#allocation7_spill]] }
 0x963   : > { %s13331_s11 = sld [smem:[#allocation11_spill]] }
 0x966   : > { %p19_p2 = scmp.ge.s32.totalorder %s13328_s12, 4  }
 0x968   :  { %21 = sbr.rel (!%p19_p2) target bundleno = 12 (0xc), region = 138 }
 0x96d   :  { %4931 = vsyncpa [#allocation3], 1 }
 0x96e   :  { %4933 = vsyncpa [#allocation3 + $0x1], 1 }

</bundles_post_ra>
